<compile_context>
chip_gen: v7x
topology: tpu7x:2x2x1
jax: 0.10.0
libtpu: 0.0.40
codegen_flags: <defaults>
</compile_context>

<pallas_src>
import functools
import math

import jax
import jax.numpy as jnp
from jax import lax
from jax.experimental import pallas as pl
from jax.experimental.pallas import tpu as pltpu

BN_EPS = 1e-3  # torchvision MobileNetV3 BatchNorm eps


# ----------------------------- Pallas kernels ------------------------------

def _full_spec(shape):
    zeros = (0,) * len(shape)
    return pl.BlockSpec(shape, lambda n, _z=zeros: _z)


def _tail_expand_kernel(*refs, use_se, use_res, emit_proj, next_act):
    """Per-sample fused: [SE] -> project 1x1 (+BN) -> [residual] -> next-block expand 1x1 (+BN+act)."""
    n_out = 2 if emit_proj else 1
    out_refs = refs[len(refs) - n_out:]
    it = iter(refs[:len(refs) - n_out])

    h = next(it)[0]                                     # (HW, Cexp) bf16
    hw = h.shape[0]
    if use_se:
        sw1 = next(it); sb1 = next(it); sw2 = next(it); sb2 = next(it)
        # Global avg pool as a 1-row bf16 MXU matmul with f32 accumulation:
        # avoids materializing an f32 copy of the (HW, Cexp) tile.
        ones_row = jnp.ones((1, hw), dtype=jnp.bfloat16)
        pooled = jnp.dot(ones_row, h, preferred_element_type=jnp.float32) * (1.0 / hw)
        s = jnp.dot(pooled.astype(jnp.bfloat16), sw1[...],
                    preferred_element_type=jnp.float32) + sb1[...]
        s = jnp.maximum(s, 0.0)                                       # ReLU
        s = jnp.dot(s.astype(jnp.bfloat16), sw2[...],
                    preferred_element_type=jnp.float32) + sb2[...]
        s = jnp.clip(s + 3.0, 0.0, 6.0) * (1.0 / 6.0)                 # Hardsigmoid
        h = h * s.astype(jnp.bfloat16)                                # bf16 rescale

    pw = next(it); pb = next(it)
    proj = jnp.dot(h, pw[...], preferred_element_type=jnp.float32) + pb[...]
    if use_res:
        proj = proj + next(it)[0].astype(jnp.float32)
    proj_bf = proj.astype(jnp.bfloat16)

    nw = next(it); nb = next(it)                         # next block's expand conv
    nxt = jnp.dot(proj_bf, nw[...], preferred_element_type=jnp.float32) + nb[...]
    if next_act == "hardswish":
        nxt = nxt * jnp.clip(nxt + 3.0, 0.0, 6.0) * (1.0 / 6.0)
    else:
        nxt = jnp.maximum(nxt, 0.0)

    out_refs[0][0] = nxt.astype(jnp.bfloat16)
    if emit_proj:
        out_refs[1][0] = proj_bf


def tail_expand(dw_nhwc, blk, nxt_blk, res):
    """Fused tail(block i) + expand(block i+1). Returns (expanded_next, proj_or_None)."""
    N, H, W, Cexp = dw_nhwc.shape
    HW = H * W
    Cout = blk["cout"]
    Cnext = nxt_blk["exp"]
    use_se = blk["use_se"]
    use_res = res is not None
    emit_proj = nxt_blk["use_res"]

    inputs = [dw_nhwc.reshape(N, HW, Cexp)]
    in_specs = [pl.BlockSpec((1, HW, Cexp), lambda n: (n, 0, 0))]
    if use_se:
        sq = blk["se_w1"].shape[1]
        inputs += [blk["se_w1"], blk["se_b1"].reshape(1, sq),
                   blk["se_w2"], blk["se_b2"].reshape(1, Cexp)]
        in_specs += [_full_spec((Cexp, sq)), _full_spec((1, sq)),
                     _full_spec((sq, Cexp)), _full_spec((1, Cexp))]
    inputs += [blk["project_w"], blk["project_b"].reshape(1, Cout)]
    in_specs += [_full_spec((Cexp, Cout)), _full_spec((1, Cout))]
    if use_res:
        inputs.append(res.reshape(N, HW, Cout))
        in_specs.append(pl.BlockSpec((1, HW, Cout), lambda n: (n, 0, 0)))
    inputs += [nxt_blk["expand_w"], nxt_blk["expand_b"].reshape(1, Cnext)]
    in_specs += [_full_spec((Cout, Cnext)), _full_spec((1, Cnext))]

    kernel = functools.partial(_tail_expand_kernel, use_se=use_se, use_res=use_res,
                               emit_proj=emit_proj, next_act=nxt_blk["act"])
    exp_shape = jax.ShapeDtypeStruct((N, HW, Cnext), jnp.bfloat16)
    exp_spec = pl.BlockSpec((1, HW, Cnext), lambda n: (n, 0, 0))
    cparams = pltpu.CompilerParams(dimension_semantics=("parallel",))

    if emit_proj:
        proj_shape = jax.ShapeDtypeStruct((N, HW, Cout), jnp.bfloat16)
        proj_spec = pl.BlockSpec((1, HW, Cout), lambda n: (n, 0, 0))
        exp_out, proj_out = pl.pallas_call(
            kernel, out_shape=(exp_shape, proj_shape), grid=(N,),
            in_specs=in_specs, out_specs=(exp_spec, proj_spec),
            compiler_params=cparams)(*inputs)
        proj_out = proj_out.reshape(N, H, W, Cout)
    else:
        exp_out = pl.pallas_call(
            kernel, out_shape=exp_shape, grid=(N,),
            in_specs=in_specs, out_specs=exp_spec,
            compiler_params=cparams)(*inputs)
        proj_out = None
    return exp_out.reshape(N, H, W, Cnext), proj_out


def _tail_head_kernel(h_ref, sw1, sb1, sw2, sb2, pw, pb, res_ref,
                      lw, lb, w1, b1, w2, b2, o_ref):
    """Per-sample fused: SE -> project (+BN) -> residual -> last conv(96->576)+HS -> GAP -> MLP."""
    h = h_ref[0]                                        # (HW, 576) bf16
    hw = h.shape[0]
    ones_row = jnp.ones((1, hw), dtype=jnp.bfloat16)
    pooled = jnp.dot(ones_row, h, preferred_element_type=jnp.float32) * (1.0 / hw)
    s = jnp.dot(pooled.astype(jnp.bfloat16), sw1[...],
                preferred_element_type=jnp.float32) + sb1[...]
    s = jnp.maximum(s, 0.0)
    s = jnp.dot(s.astype(jnp.bfloat16), sw2[...],
                preferred_element_type=jnp.float32) + sb2[...]
    s = jnp.clip(s + 3.0, 0.0, 6.0) * (1.0 / 6.0)
    h = h * s.astype(jnp.bfloat16)

    proj = jnp.dot(h, pw[...], preferred_element_type=jnp.float32) + pb[...]
    proj = proj + res_ref[0].astype(jnp.float32)        # block-10 residual (always present)

    feat = jnp.dot(proj.astype(jnp.bfloat16), lw[...],
                   preferred_element_type=jnp.float32) + lb[...]
    feat = feat * jnp.clip(feat + 3.0, 0.0, 6.0) * (1.0 / 6.0)   # hardswish, (HW, 576) f32

    gap = jnp.mean(feat, axis=0, keepdims=True)                   # per-sample GAP, f32
    z = jnp.dot(gap, w1[...], preferred_element_type=jnp.float32) + b1[...]
    z = jnp.maximum(z, 0.0)
    out = jnp.dot(z, w2[...], preferred_element_type=jnp.float32) + b2[...]
    o_ref[0] = out.astype(o_ref.dtype)


def tail_head(dw_nhwc, blk, res, last, fc1_w, fc1_b, fc2_w, fc2_b):
    N, H, W, Cexp = dw_nhwc.shape
    HW = H * W
    Cout = blk["cout"]
    sq = blk["se_w1"].shape[1]
    C576 = last["w"].shape[1]

    inputs = [dw_nhwc.reshape(N, HW, Cexp),
              blk["se_w1"], blk["se_b1"].reshape(1, sq),
              blk["se_w2"], blk["se_b2"].reshape(1, Cexp),
              blk["project_w"], blk["project_b"].reshape(1, Cout),
              res.reshape(N, HW, Cout),
              last["w"], last["b"].reshape(1, C576),
              fc1_w, fc1_b.reshape(1, -1), fc2_w, fc2_b.reshape(1, -1)]
    in_specs = [pl.BlockSpec((1, HW, Cexp), lambda n: (n, 0, 0)),
                _full_spec((Cexp, sq)), _full_spec((1, sq)),
                _full_spec((sq, Cexp)), _full_spec((1, Cexp)),
                _full_spec((Cexp, Cout)), _full_spec((1, Cout)),
                pl.BlockSpec((1, HW, Cout), lambda n: (n, 0, 0)),
                _full_spec((Cout, C576)), _full_spec((1, C576)),
                _full_spec(fc1_w.shape), _full_spec((1, fc1_b.shape[0])),
                _full_spec(fc2_w.shape), _full_spec((1, fc2_b.shape[0]))]
    out = pl.pallas_call(
        _tail_head_kernel,
        out_shape=jax.ShapeDtypeStruct((N, 1, 2), jnp.float32),
        grid=(N,),
        in_specs=in_specs,
        out_specs=pl.BlockSpec((1, 1, 2), lambda n: (n, 0, 0)),
        compiler_params=pltpu.CompilerParams(dimension_semantics=("parallel",)),
    )(*inputs)
    return out.reshape(N, 2)


# ------------------------------- JAX glue ----------------------------------

def _hardswish(x):
    return x * jnp.clip(x + 3.0, 0.0, 6.0) * (1.0 / 6.0)


def conv2d_nhwc(x, w_hwio, stride, padding, groups=1):
    return lax.conv_general_dilated(
        x, w_hwio,
        window_strides=(stride, stride),
        padding=[(padding, padding), (padding, padding)],
        dimension_numbers=("NHWC", "HWIO", "NHWC"),
        feature_group_count=groups,
        preferred_element_type=jnp.float32)


def _make_divisible(v, divisor=8, min_value=None):
    if min_value is None:
        min_value = divisor
    new_v = max(min_value, int(v + divisor / 2) // divisor * divisor)
    if new_v < 0.9 * v:
        new_v += divisor
    return new_v


# MobileNetV3-Small inverted residual configuration
# (in_c, kernel, expanded_c, out_c, use_se, activation, stride)
INVERTED_RESIDUAL_SETTING = [
    (16, 3, 16, 16, True, "relu", 2),
    (16, 3, 72, 24, False, "relu", 2),
    (24, 3, 88, 24, False, "relu", 1),
    (24, 5, 96, 40, True, "hardswish", 2),
    (40, 5, 240, 40, True, "hardswish", 1),
    (40, 5, 240, 40, True, "hardswish", 1),
    (40, 5, 120, 48, True, "hardswish", 1),
    (48, 5, 144, 48, True, "hardswish", 1),
    (48, 5, 288, 96, True, "hardswish", 2),
    (96, 5, 576, 96, True, "hardswish", 1),
    (96, 5, 576, 96, True, "hardswish", 1),
]


def _conv_w(key, kh, kw, cin, cout):
    fan_in = kh * kw * cin
    std = math.sqrt(2.0 / fan_in)
    return jax.random.normal(key, (kh, kw, cin, cout), jnp.float32) * std


def _bn_fold(key, c):
    # Fresh BatchNorm folded in eval form: running_mean=0, running_var=1.
    kg, kb = jax.random.split(key)
    gamma = 1.0 + 0.1 * jax.random.normal(kg, (c,), jnp.float32)
    beta = 0.1 * jax.random.normal(kb, (c,), jnp.float32)
    scale = gamma / jnp.sqrt(1.0 + BN_EPS)
    return scale, beta


def _xavier(key, fin, fout):
    bound = math.sqrt(6.0 / (fin + fout))
    return jax.random.uniform(key, (fin, fout), jnp.float32, -bound, bound)


def init_params(key):
    keys = iter(jax.random.split(key, 256))
    params = {}

    # Stem: 3x3 s2, 3->16, BN, Hardswish
    w = _conv_w(next(keys), 3, 3, 3, 16)
    s, b = _bn_fold(next(keys), 16)
    params["stem"] = {"w": (w * s).astype(jnp.bfloat16), "b": b}

    blocks = []
    for (cin, k, exp, cout, use_se, act, stride) in INVERTED_RESIDUAL_SETTING:
        blk = {"act": act, "stride": stride, "k": k, "use_se": use_se,
               "use_res": (stride == 1 and cin == cout),
               "cin": cin, "exp": exp, "cout": cout}
        if exp != cin:  # expand 1x1 conv + BN + act
            w = _conv_w(next(keys), 1, 1, cin, exp)[0, 0]       # (cin, exp)
            s, b = _bn_fold(next(keys), exp)
            blk["expand_w"], blk["expand_b"] = (w * s).astype(jnp.bfloat16), b
        # depthwise kxk conv + BN + act
        wd = _conv_w(next(keys), k, k, 1, exp)
        s, b = _bn_fold(next(keys), exp)
        blk["dw_w"], blk["dw_b"] = (wd * s).astype(jnp.bfloat16), b
        if use_se:  # SqueezeExcitation(exp, make_divisible(exp//4, 8)); weights bf16, f32 acc
            sq = _make_divisible(exp // 4, 8)
            blk["se_w1"] = _conv_w(next(keys), 1, 1, exp, sq)[0, 0].astype(jnp.bfloat16)
            blk["se_b1"] = jnp.zeros((sq,), jnp.float32)
            blk["se_w2"] = _conv_w(next(keys), 1, 1, sq, exp)[0, 0].astype(jnp.bfloat16)
            blk["se_b2"] = jnp.zeros((exp,), jnp.float32)
        # project 1x1 conv + BN (no activation)
        wp = _conv_w(next(keys), 1, 1, exp, cout)[0, 0]
        s, b = _bn_fold(next(keys), cout)
        blk["project_w"], blk["project_b"] = (wp * s).astype(jnp.bfloat16), b
        blocks.append(blk)
    params["blocks"] = blocks

    # Last conv: 1x1, 96 -> 576, BN, Hardswish (fused into head kernel)
    wl = _conv_w(next(keys), 1, 1, 96, 576)[0, 0]
    s, b = _bn_fold(next(keys), 576)
    params["last"] = {"w": (wl * s).astype(jnp.bfloat16), "b": b}

    # Replaced classifier: Linear(576,256) (xavier_uniform), ReLU, Linear(256,2) (xavier_uniform)
    params["fc1_w"] = _xavier(next(keys), 576, 256)
    params["fc1_b"] = jnp.zeros((256,), jnp.float32)
    params["fc2_w"] = _xavier(next(keys), 256, 2)
    params["fc2_b"] = jnp.zeros((2,), jnp.float32)
    return params


def ball_localization_forward(params, x_nchw):
    """x_nchw: (N, 3, H, W) float32 -> (N, 2) float32."""
    x = jnp.transpose(x_nchw, (0, 2, 3, 1)).astype(jnp.bfloat16)  # NCHW -> NHWC, bf16
    # Stem (3x3 s2) + BN + Hardswish
    x = conv2d_nhwc(x, params["stem"]["w"], 2, 1) + params["stem"]["b"]
    x = _hardswish(x).astype(jnp.bfloat16)

    blocks = params["blocks"]
    h_exp = x           # block 0 has no expand conv (exp == cin)
    block_in = x        # current block's pre-expand input (for residual; block 0 never uses it)
    out = None
    for i, blk in enumerate(blocks):
        # TODO(synk): kxk depthwise conv (and stem 3x3) kept in lax.conv_general_dilated;
        #             pulling it into the Pallas block kernel (VPU shifted adds) is the
        #             remaining fusion step.
        pad = (blk["k"] - 1) // 2
        dw = conv2d_nhwc(h_exp, blk["dw_w"], blk["stride"], pad,
                         groups=blk["exp"]) + blk["dw_b"]
        dw = _hardswish(dw) if blk["act"] == "hardswish" else jnp.maximum(dw, 0.0)
        dw = dw.astype(jnp.bfloat16)
        res = block_in if blk["use_res"] else None
        if i + 1 < len(blocks):
            # Fused: SE + project + residual of block i, then block (i+1)'s expand 1x1.
            h_exp, block_in = tail_expand(dw, blk, blocks[i + 1], res)
        else:
            # Fused: SE + project + residual of block 10, last conv 96->576 + HS,
            # per-sample global average pool, Linear(576,256)+ReLU, Linear(256,2).
            out = tail_head(dw, blk, res, params["last"],
                            params["fc1_w"], params["fc1_b"],
                            params["fc2_w"], params["fc2_b"])
    return out


if __name__ == "__main__":
    key = jax.random.PRNGKey(0)
    k_param, k_x = jax.random.split(key)
    params = init_params(k_param)
    # Small but valid MobileNetV3 input: batch=2, 3 channels, 64x64 spatial.
    x = jax.random.normal(k_x, (2, 3, 64, 64), jnp.float32)
    fwd = jax.jit(functools.partial(ball_localization_forward, params))
    out = jax.block_until_ready(fwd(x))
    assert out.shape == (2, 2), out.shape
    assert bool(jnp.all(jnp.isfinite(out)))
    print("KERNEL_OK")
</pallas_src>

<mosaic_0001>
module attributes {stable_mosaic.version = 11 : i64} {
  func.func @_tail_expand_kernel(%arg0: i32, %arg1: memref<1x256x16xbf16, #tpu.memory_space<vmem>>, %arg2: memref<16x8xbf16, #tpu.memory_space<vmem>>, %arg3: memref<1x8xf32, #tpu.memory_space<vmem>>, %arg4: memref<8x16xbf16, #tpu.memory_space<vmem>>, %arg5: memref<1x16xf32, #tpu.memory_space<vmem>>, %arg6: memref<16x16xbf16, #tpu.memory_space<vmem>>, %arg7: memref<1x16xf32, #tpu.memory_space<vmem>>, %arg8: memref<16x72xbf16, #tpu.memory_space<vmem>>, %arg9: memref<1x72xf32, #tpu.memory_space<vmem>>, %arg10: memref<1x256x72xbf16, #tpu.memory_space<vmem>>) attributes {dimension_semantics = [#tpu.dimension_semantics<parallel>], iteration_bounds = array<i64: 2>, scalar_prefetch = 0 : i64, scratch_operands = 0 : i64, tpu.core_type = #tpu.core_type<tc>, window_params = [{transform_indices = @transform_0, window_bounds = array<i64: 1, 256, 16>}, {pipeline_mode = #tpu.pipeline_mode<synchronous>, transform_indices = @transform_1, window_bounds = array<i64: 16, 8>}, {pipeline_mode = #tpu.pipeline_mode<synchronous>, transform_indices = @transform_2, window_bounds = array<i64: 1, 8>}, {pipeline_mode = #tpu.pipeline_mode<synchronous>, transform_indices = @transform_3, window_bounds = array<i64: 8, 16>}, {pipeline_mode = #tpu.pipeline_mode<synchronous>, transform_indices = @transform_4, window_bounds = array<i64: 1, 16>}, {pipeline_mode = #tpu.pipeline_mode<synchronous>, transform_indices = @transform_5, window_bounds = array<i64: 16, 16>}, {pipeline_mode = #tpu.pipeline_mode<synchronous>, transform_indices = @transform_6, window_bounds = array<i64: 1, 16>}, {pipeline_mode = #tpu.pipeline_mode<synchronous>, transform_indices = @transform_7, window_bounds = array<i64: 16, 72>}, {pipeline_mode = #tpu.pipeline_mode<synchronous>, transform_indices = @transform_8, window_bounds = array<i64: 1, 72>}, {transform_indices = @transform_9, window_bounds = array<i64: 1, 256, 72>}]} {
    %c0 = arith.constant 0 : index
    %c0_0 = arith.constant 0 : index
    %c0_1 = arith.constant 0 : index
    %0 = vector.load %arg1[%c0, %c0_0, %c0_1] : memref<1x256x16xbf16, #tpu.memory_space<vmem>>, vector<1x256x16xbf16>
    %1 = vector.shape_cast %0 : vector<1x256x16xbf16> to vector<256x16xbf16>
    %cst = arith.constant 1.000000e+00 : bf16
    %2 = vector.broadcast %cst : bf16 to vector<1x256xbf16>
    %cst_2 = arith.constant dense<0.000000e+00> : vector<1x16xf32>
    %3 = tpu.matmul %2, %1, %cst_2 {dimension_numbers = #tpu.dot_dimension_numbers<[1], [0], [0], [1], [0, 0, 1, 1], [], []>} : vector<1x256xbf16>, vector<256x16xbf16>, vector<1x16xf32> -> vector<1x16xf32>
    %cst_3 = arith.constant 3.906250e-03 : f32
    %4 = vector.broadcast %cst_3 : f32 to vector<1x16xf32>
    %5 = arith.mulf %3, %4 : vector<1x16xf32>
    %6 = arith.truncf %5 : vector<1x16xf32> to vector<1x16xbf16>
    %c0_4 = arith.constant 0 : index
    %c0_5 = arith.constant 0 : index
    %7 = vector.load %arg2[%c0_4, %c0_5] : memref<16x8xbf16, #tpu.memory_space<vmem>>, vector<16x8xbf16>
    %cst_6 = arith.constant dense<0.000000e+00> : vector<1x8xf32>
    %8 = tpu.matmul %6, %7, %cst_6 {dimension_numbers = #tpu.dot_dimension_numbers<[1], [0], [0], [1], [0, 0, 1, 1], [], []>} : vector<1x16xbf16>, vector<16x8xbf16>, vector<1x8xf32> -> vector<1x8xf32>
    %c0_7 = arith.constant 0 : index
    %c0_8 = arith.constant 0 : index
    %9 = vector.load %arg3[%c0_7, %c0_8] : memref<1x8xf32, #tpu.memory_space<vmem>>, vector<1x8xf32>
    %10 = arith.addf %8, %9 : vector<1x8xf32>
    %cst_9 = arith.constant 0.000000e+00 : f32
    %11 = vector.broadcast %cst_9 : f32 to vector<1x8xf32>
    %12 = arith.maximumf %10, %11 : vector<1x8xf32>
    %13 = arith.truncf %12 : vector<1x8xf32> to vector<1x8xbf16>
    %c0_10 = arith.constant 0 : index
    %c0_11 = arith.constant 0 : index
    %14 = vector.load %arg4[%c0_10, %c0_11] : memref<8x16xbf16, #tpu.memory_space<vmem>>, vector<8x16xbf16>
    %cst_12 = arith.constant dense<0.000000e+00> : vector<1x16xf32>
    %15 = tpu.matmul %13, %14, %cst_12 {dimension_numbers = #tpu.dot_dimension_numbers<[1], [0], [0], [1], [0, 0, 1, 1], [], []>} : vector<1x8xbf16>, vector<8x16xbf16>, vector<1x16xf32> -> vector<1x16xf32>
    %c0_13 = arith.constant 0 : index
    %c0_14 = arith.constant 0 : index
    %16 = vector.load %arg5[%c0_13, %c0_14] : memref<1x16xf32, #tpu.memory_space<vmem>>, vector<1x16xf32>
    %17 = arith.addf %15, %16 : vector<1x16xf32>
    %cst_15 = arith.constant 3.000000e+00 : f32
    %18 = vector.broadcast %cst_15 : f32 to vector<1x16xf32>
    %19 = arith.addf %17, %18 : vector<1x16xf32>
    %cst_16 = arith.constant 0.000000e+00 : f32
    %cst_17 = arith.constant 6.000000e+00 : f32
    %20 = vector.broadcast %cst_16 : f32 to vector<1x16xf32>
    %21 = arith.maximumf %20, %19 : vector<1x16xf32>
    %22 = vector.broadcast %cst_17 : f32 to vector<1x16xf32>
    %23 = arith.minimumf %22, %21 : vector<1x16xf32>
    %cst_18 = arith.constant 0.166666672 : f32
    %24 = vector.broadcast %cst_18 : f32 to vector<1x16xf32>
    %25 = arith.mulf %23, %24 : vector<1x16xf32>
    %26 = arith.truncf %25 : vector<1x16xf32> to vector<1x16xbf16>
    %27 = vector.broadcast %26 : vector<1x16xbf16> to vector<256x16xbf16>
    %28 = arith.mulf %1, %27 : vector<256x16xbf16>
    %c0_19 = arith.constant 0 : index
    %c0_20 = arith.constant 0 : index
    %29 = vector.load %arg6[%c0_19, %c0_20] : memref<16x16xbf16, #tpu.memory_space<vmem>>, vector<16x16xbf16>
    %cst_21 = arith.constant dense<0.000000e+00> : vector<256x16xf32>
    %30 = tpu.matmul %28, %29, %cst_21 {dimension_numbers = #tpu.dot_dimension_numbers<[1], [0], [0], [1], [0, 0, 1, 1], [], []>} : vector<256x16xbf16>, vector<16x16xbf16>, vector<256x16xf32> -> vector<256x16xf32>
    %c0_22 = arith.constant 0 : index
    %c0_23 = arith.constant 0 : index
    %31 = vector.load %arg7[%c0_22, %c0_23] : memref<1x16xf32, #tpu.memory_space<vmem>>, vector<1x16xf32>
    %32 = vector.broadcast %31 : vector<1x16xf32> to vector<256x16xf32>
    %33 = arith.addf %30, %32 : vector<256x16xf32>
    %34 = arith.truncf %33 : vector<256x16xf32> to vector<256x16xbf16>
    %c0_24 = arith.constant 0 : index
    %c0_25 = arith.constant 0 : index
    %35 = vector.load %arg8[%c0_24, %c0_25] : memref<16x72xbf16, #tpu.memory_space<vmem>>, vector<16x72xbf16>
    %cst_26 = arith.constant dense<0.000000e+00> : vector<256x72xf32>
    %36 = tpu.matmul %34, %35, %cst_26 {dimension_numbers = #tpu.dot_dimension_numbers<[1], [0], [0], [1], [0, 0, 1, 1], [], []>} : vector<256x16xbf16>, vector<16x72xbf16>, vector<256x72xf32> -> vector<256x72xf32>
    %c0_27 = arith.constant 0 : index
    %c0_28 = arith.constant 0 : index
    %37 = vector.load %arg9[%c0_27, %c0_28] : memref<1x72xf32, #tpu.memory_space<vmem>>, vector<1x72xf32>
    %38 = vector.broadcast %37 : vector<1x72xf32> to vector<256x72xf32>
    %39 = arith.addf %36, %38 : vector<256x72xf32>
    %cst_29 = arith.constant 0.000000e+00 : f32
    %40 = vector.broadcast %cst_29 : f32 to vector<256x72xf32>
    %41 = arith.maximumf %39, %40 : vector<256x72xf32>
    %42 = arith.truncf %41 : vector<256x72xf32> to vector<256x72xbf16>
    %c0_30 = arith.constant 0 : index
    %c0_31 = arith.constant 0 : index
    %c0_32 = arith.constant 0 : index
    %43 = vector.load %arg10[%c0_30, %c0_31, %c0_32] : memref<1x256x72xbf16, #tpu.memory_space<vmem>>, vector<1x256x72xbf16>
    %44 = vector.shape_cast %43 : vector<1x256x72xbf16> to vector<256x72xbf16>
    %45 = vector.shape_cast %42 : vector<256x72xbf16> to vector<1x256x72xbf16>
    tpu.vector_store %arg10[%c0_30, %c0_31, %c0_32], %45 {strides = array<i32>} : memref<1x256x72xbf16, #tpu.memory_space<vmem>>, vector<1x256x72xbf16>,
    return
  }
  func.func @transform_0(%arg0: i32) -> (i32, i32, i32) {
    %c0_i32 = arith.constant 0 : i32
    %c0_i32_0 = arith.constant 0 : i32
    %c0_i32_1 = arith.constant 0 : i32
    return %arg0, %c0_i32, %c0_i32_0 : i32, i32, i32
  }
  func.func @transform_1(%arg0: i32) -> (i32, i32) {
    %c0_i32 = arith.constant 0 : i32
    %c0_i32_0 = arith.constant 0 : i32
    %c0_i32_1 = arith.constant 0 : i32
    return %c0_i32, %c0_i32_0 : i32, i32
  }
  func.func @transform_2(%arg0: i32) -> (i32, i32) {
    %c0_i32 = arith.constant 0 : i32
    %c0_i32_0 = arith.constant 0 : i32
    %c0_i32_1 = arith.constant 0 : i32
    return %c0_i32, %c0_i32_0 : i32, i32
  }
  func.func @transform_3(%arg0: i32) -> (i32, i32) {
    %c0_i32 = arith.constant 0 : i32
    %c0_i32_0 = arith.constant 0 : i32
    %c0_i32_1 = arith.constant 0 : i32
    return %c0_i32, %c0_i32_0 : i32, i32
  }
  func.func @transform_4(%arg0: i32) -> (i32, i32) {
    %c0_i32 = arith.constant 0 : i32
    %c0_i32_0 = arith.constant 0 : i32
    %c0_i32_1 = arith.constant 0 : i32
    return %c0_i32, %c0_i32_0 : i32, i32
  }
  func.func @transform_5(%arg0: i32) -> (i32, i32) {
    %c0_i32 = arith.constant 0 : i32
    %c0_i32_0 = arith.constant 0 : i32
    %c0_i32_1 = arith.constant 0 : i32
    return %c0_i32, %c0_i32_0 : i32, i32
  }
  func.func @transform_6(%arg0: i32) -> (i32, i32) {
    %c0_i32 = arith.constant 0 : i32
    %c0_i32_0 = arith.constant 0 : i32
    %c0_i32_1 = arith.constant 0 : i32
    return %c0_i32, %c0_i32_0 : i32, i32
  }
  func.func @transform_7(%arg0: i32) -> (i32, i32) {
    %c0_i32 = arith.constant 0 : i32
    %c0_i32_0 = arith.constant 0 : i32
    %c0_i32_1 = arith.constant 0 : i32
    return %c0_i32, %c0_i32_0 : i32, i32
  }
  func.func @transform_8(%arg0: i32) -> (i32, i32) {
    %c0_i32 = arith.constant 0 : i32
    %c0_i32_0 = arith.constant 0 : i32
    %c0_i32_1 = arith.constant 0 : i32
    return %c0_i32, %c0_i32_0 : i32, i32
  }
  func.func @transform_9(%arg0: i32) -> (i32, i32, i32) {
    %c0_i32 = arith.constant 0 : i32
    %c0_i32_0 = arith.constant 0 : i32
    %c0_i32_1 = arith.constant 0 : i32
    return %arg0, %c0_i32, %c0_i32_0 : i32, i32, i32
  }
}

module attributes {stable_mosaic.version = 11 : i64} {
  func.func @_tail_expand_kernel(%arg0: i32, %arg1: memref<1x64x72xbf16, #tpu.memory_space<vmem>>, %arg2: memref<72x24xbf16, #tpu.memory_space<vmem>>, %arg3: memref<1x24xf32, #tpu.memory_space<vmem>>, %arg4: memref<24x88xbf16, #tpu.memory_space<vmem>>, %arg5: memref<1x88xf32, #tpu.memory_space<vmem>>, %arg6: memref<1x64x88xbf16, #tpu.memory_space<vmem>>, %arg7: memref<1x64x24xbf16, #tpu.memory_space<vmem>>) attributes {dimension_semantics = [#tpu.dimension_semantics<parallel>], iteration_bounds = array<i64: 2>, scalar_prefetch = 0 : i64, scratch_operands = 0 : i64, tpu.core_type = #tpu.core_type<tc>, window_params = [{transform_indices = @transform_0, window_bounds = array<i64: 1, 64, 72>}, {pipeline_mode = #tpu.pipeline_mode<synchronous>, transform_indices = @transform_1, window_bounds = array<i64: 72, 24>}, {pipeline_mode = #tpu.pipeline_mode<synchronous>, transform_indices = @transform_2, window_bounds = array<i64: 1, 24>}, {pipeline_mode = #tpu.pipeline_mode<synchronous>, transform_indices = @transform_3, window_bounds = array<i64: 24, 88>}, {pipeline_mode = #tpu.pipeline_mode<synchronous>, transform_indices = @transform_4, window_bounds = array<i64: 1, 88>}, {transform_indices = @transform_5, window_bounds = array<i64: 1, 64, 88>}, {transform_indices = @transform_6, window_bounds = array<i64: 1, 64, 24>}]} {
    %c0 = arith.constant 0 : index
    %c0_0 = arith.constant 0 : index
    %c0_1 = arith.constant 0 : index
    %0 = vector.load %arg1[%c0, %c0_0, %c0_1] : memref<1x64x72xbf16, #tpu.memory_space<vmem>>, vector<1x64x72xbf16>
    %1 = vector.shape_cast %0 : vector<1x64x72xbf16> to vector<64x72xbf16>
    %c0_2 = arith.constant 0 : index
    %c0_3 = arith.constant 0 : index
    %2 = vector.load %arg2[%c0_2, %c0_3] : memref<72x24xbf16, #tpu.memory_space<vmem>>, vector<72x24xbf16>
    %cst = arith.constant dense<0.000000e+00> : vector<64x24xf32>
    %3 = tpu.matmul %1, %2, %cst {dimension_numbers = #tpu.dot_dimension_numbers<[1], [0], [0], [1], [0, 0, 1, 1], [], []>} : vector<64x72xbf16>, vector<72x24xbf16>, vector<64x24xf32> -> vector<64x24xf32>
    %c0_4 = arith.constant 0 : index
    %c0_5 = arith.constant 0 : index
    %4 = vector.load %arg3[%c0_4, %c0_5] : memref<1x24xf32, #tpu.memory_space<vmem>>, vector<1x24xf32>
    %5 = vector.broadcast %4 : vector<1x24xf32> to vector<64x24xf32>
    %6 = arith.addf %3, %5 : vector<64x24xf32>
    %7 = arith.truncf %6 : vector<64x24xf32> to vector<64x24xbf16>
    %c0_6 = arith.constant 0 : index
    %c0_7 = arith.constant 0 : index
    %8 = vector.load %arg4[%c0_6, %c0_7] : memref<24x88xbf16, #tpu.memory_space<vmem>>, vector<24x88xbf16>
    %cst_8 = arith.constant dense<0.000000e+00> : vector<64x88xf32>
    %9 = tpu.matmul %7, %8, %cst_8 {dimension_numbers = #tpu.dot_dimension_numbers<[1], [0], [0], [1], [0, 0, 1, 1], [], []>} : vector<64x24xbf16>, vector<24x88xbf16>, vector<64x88xf32> -> vector<64x88xf32>
    %c0_9 = arith.constant 0 : index
    %c0_10 = arith.constant 0 : index
    %10 = vector.load %arg5[%c0_9, %c0_10] : memref<1x88xf32, #tpu.memory_space<vmem>>, vector<1x88xf32>
    %11 = vector.broadcast %10 : vector<1x88xf32> to vector<64x88xf32>
    %12 = arith.addf %9, %11 : vector<64x88xf32>
    %cst_11 = arith.constant 0.000000e+00 : f32
    %13 = vector.broadcast %cst_11 : f32 to vector<64x88xf32>
    %14 = arith.maximumf %12, %13 : vector<64x88xf32>
    %15 = arith.truncf %14 : vector<64x88xf32> to vector<64x88xbf16>
    %c0_12 = arith.constant 0 : index
    %c0_13 = arith.constant 0 : index
    %c0_14 = arith.constant 0 : index
    %16 = vector.load %arg6[%c0_12, %c0_13, %c0_14] : memref<1x64x88xbf16, #tpu.memory_space<vmem>>, vector<1x64x88xbf16>
    %17 = vector.shape_cast %16 : vector<1x64x88xbf16> to vector<64x88xbf16>
    %18 = vector.shape_cast %15 : vector<64x88xbf16> to vector<1x64x88xbf16>
    tpu.vector_store %arg6[%c0_12, %c0_13, %c0_14], %18 {strides = array<i32>} : memref<1x64x88xbf16, #tpu.memory_space<vmem>>, vector<1x64x88xbf16>,
    %c0_15 = arith.constant 0 : index
    %c0_16 = arith.constant 0 : index
    %c0_17 = arith.constant 0 : index
    %19 = vector.load %arg7[%c0_15, %c0_16, %c0_17] : memref<1x64x24xbf16, #tpu.memory_space<vmem>>, vector<1x64x24xbf16>
    %20 = vector.shape_cast %19 : vector<1x64x24xbf16> to vector<64x24xbf16>
    %21 = vector.shape_cast %7 : vector<64x24xbf16> to vector<1x64x24xbf16>
    tpu.vector_store %arg7[%c0_15, %c0_16, %c0_17], %21 {strides = array<i32>} : memref<1x64x24xbf16, #tpu.memory_space<vmem>>, vector<1x64x24xbf16>,
    return
  }
  func.func @transform_0(%arg0: i32) -> (i32, i32, i32) {
    %c0_i32 = arith.constant 0 : i32
    %c0_i32_0 = arith.constant 0 : i32
    %c0_i32_1 = arith.constant 0 : i32
    return %arg0, %c0_i32, %c0_i32_0 : i32, i32, i32
  }
  func.func @transform_1(%arg0: i32) -> (i32, i32) {
    %c0_i32 = arith.constant 0 : i32
    %c0_i32_0 = arith.constant 0 : i32
    %c0_i32_1 = arith.constant 0 : i32
    return %c0_i32, %c0_i32_0 : i32, i32
  }
  func.func @transform_2(%arg0: i32) -> (i32, i32) {
    %c0_i32 = arith.constant 0 : i32
    %c0_i32_0 = arith.constant 0 : i32
    %c0_i32_1 = arith.constant 0 : i32
    return %c0_i32, %c0_i32_0 : i32, i32
  }
  func.func @transform_3(%arg0: i32) -> (i32, i32) {
    %c0_i32 = arith.constant 0 : i32
    %c0_i32_0 = arith.constant 0 : i32
    %c0_i32_1 = arith.constant 0 : i32
    return %c0_i32, %c0_i32_0 : i32, i32
  }
  func.func @transform_4(%arg0: i32) -> (i32, i32) {
    %c0_i32 = arith.constant 0 : i32
    %c0_i32_0 = arith.constant 0 : i32
    %c0_i32_1 = arith.constant 0 : i32
    return %c0_i32, %c0_i32_0 : i32, i32
  }
  func.func @transform_5(%arg0: i32) -> (i32, i32, i32) {
    %c0_i32 = arith.constant 0 : i32
    %c0_i32_0 = arith.constant 0 : i32
    %c0_i32_1 = arith.constant 0 : i32
    return %arg0, %c0_i32, %c0_i32_0 : i32, i32, i32
  }
  func.func @transform_6(%arg0: i32) -> (i32, i32, i32) {
    %c0_i32 = arith.constant 0 : i32
    %c0_i32_0 = arith.constant 0 : i32
    %c0_i32_1 = arith.constant 0 : i32
    return %arg0, %c0_i32, %c0_i32_0 : i32, i32, i32
  }
}

module attributes {stable_mosaic.version = 11 : i64} {
  func.func @_tail_expand_kernel(%arg0: i32, %arg1: memref<1x64x88xbf16, #tpu.memory_space<vmem>>, %arg2: memref<88x24xbf16, #tpu.memory_space<vmem>>, %arg3: memref<1x24xf32, #tpu.memory_space<vmem>>, %arg4: memref<1x64x24xbf16, #tpu.memory_space<vmem>>, %arg5: memref<24x96xbf16, #tpu.memory_space<vmem>>, %arg6: memref<1x96xf32, #tpu.memory_space<vmem>>, %arg7: memref<1x64x96xbf16, #tpu.memory_space<vmem>>) attributes {dimension_semantics = [#tpu.dimension_semantics<parallel>], iteration_bounds = array<i64: 2>, scalar_prefetch = 0 : i64, scratch_operands = 0 : i64, tpu.core_type = #tpu.core_type<tc>, window_params = [{transform_indices = @transform_0, window_bounds = array<i64: 1, 64, 88>}, {pipeline_mode = #tpu.pipeline_mode<synchronous>, transform_indices = @transform_1, window_bounds = array<i64: 88, 24>}, {pipeline_mode = #tpu.pipeline_mode<synchronous>, transform_indices = @transform_2, window_bounds = array<i64: 1, 24>}, {transform_indices = @transform_3, window_bounds = array<i64: 1, 64, 24>}, {pipeline_mode = #tpu.pipeline_mode<synchronous>, transform_indices = @transform_4, window_bounds = array<i64: 24, 96>}, {pipeline_mode = #tpu.pipeline_mode<synchronous>, transform_indices = @transform_5, window_bounds = array<i64: 1, 96>}, {transform_indices = @transform_6, window_bounds = array<i64: 1, 64, 96>}]} {
    %c0 = arith.constant 0 : index
    %c0_0 = arith.constant 0 : index
    %c0_1 = arith.constant 0 : index
    %0 = vector.load %arg1[%c0, %c0_0, %c0_1] : memref<1x64x88xbf16, #tpu.memory_space<vmem>>, vector<1x64x88xbf16>
    %1 = vector.shape_cast %0 : vector<1x64x88xbf16> to vector<64x88xbf16>
    %c0_2 = arith.constant 0 : index
    %c0_3 = arith.constant 0 : index
    %2 = vector.load %arg2[%c0_2, %c0_3] : memref<88x24xbf16, #tpu.memory_space<vmem>>, vector<88x24xbf16>
    %cst = arith.constant dense<0.000000e+00> : vector<64x24xf32>
    %3 = tpu.matmul %1, %2, %cst {dimension_numbers = #tpu.dot_dimension_numbers<[1], [0], [0], [1], [0, 0, 1, 1], [], []>} : vector<64x88xbf16>, vector<88x24xbf16>, vector<64x24xf32> -> vector<64x24xf32>
    %c0_4 = arith.constant 0 : index
    %c0_5 = arith.constant 0 : index
    %4 = vector.load %arg3[%c0_4, %c0_5] : memref<1x24xf32, #tpu.memory_space<vmem>>, vector<1x24xf32>
    %5 = vector.broadcast %4 : vector<1x24xf32> to vector<64x24xf32>
    %6 = arith.addf %3, %5 : vector<64x24xf32>
    %c0_6 = arith.constant 0 : index
    %c0_7 = arith.constant 0 : index
    %c0_8 = arith.constant 0 : index
    %7 = vector.load %arg4[%c0_6, %c0_7, %c0_8] : memref<1x64x24xbf16, #tpu.memory_space<vmem>>, vector<1x64x24xbf16>
    %8 = vector.shape_cast %7 : vector<1x64x24xbf16> to vector<64x24xbf16>
    %9 = arith.extf %8 : vector<64x24xbf16> to vector<64x24xf32>
    %10 = arith.addf %6, %9 : vector<64x24xf32>
    %11 = arith.truncf %10 : vector<64x24xf32> to vector<64x24xbf16>
    %c0_9 = arith.constant 0 : index
    %c0_10 = arith.constant 0 : index
    %12 = vector.load %arg5[%c0_9, %c0_10] : memref<24x96xbf16, #tpu.memory_space<vmem>>, vector<24x96xbf16>
    %cst_11 = arith.constant dense<0.000000e+00> : vector<64x96xf32>
    %13 = tpu.matmul %11, %12, %cst_11 {dimension_numbers = #tpu.dot_dimension_numbers<[1], [0], [0], [1], [0, 0, 1, 1], [], []>} : vector<64x24xbf16>, vector<24x96xbf16>, vector<64x96xf32> -> vector<64x96xf32>
    %c0_12 = arith.constant 0 : index
    %c0_13 = arith.constant 0 : index
    %14 = vector.load %arg6[%c0_12, %c0_13] : memref<1x96xf32, #tpu.memory_space<vmem>>, vector<1x96xf32>
    %15 = vector.broadcast %14 : vector<1x96xf32> to vector<64x96xf32>
    %16 = arith.addf %13, %15 : vector<64x96xf32>
    %cst_14 = arith.constant 3.000000e+00 : f32
    %17 = vector.broadcast %cst_14 : f32 to vector<64x96xf32>
    %18 = arith.addf %16, %17 : vector<64x96xf32>
    %cst_15 = arith.constant 0.000000e+00 : f32
    %cst_16 = arith.constant 6.000000e+00 : f32
    %19 = vector.broadcast %cst_15 : f32 to vector<64x96xf32>
    %20 = arith.maximumf %19, %18 : vector<64x96xf32>
    %21 = vector.broadcast %cst_16 : f32 to vector<64x96xf32>
    %22 = arith.minimumf %21, %20 : vector<64x96xf32>
    %23 = arith.mulf %16, %22 : vector<64x96xf32>
    %cst_17 = arith.constant 0.166666672 : f32
    %24 = vector.broadcast %cst_17 : f32 to vector<64x96xf32>
    %25 = arith.mulf %23, %24 : vector<64x96xf32>
    %26 = arith.truncf %25 : vector<64x96xf32> to vector<64x96xbf16>
    %c0_18 = arith.constant 0 : index
    %c0_19 = arith.constant 0 : index
    %c0_20 = arith.constant 0 : index
    %27 = vector.load %arg7[%c0_18, %c0_19, %c0_20] : memref<1x64x96xbf16, #tpu.memory_space<vmem>>, vector<1x64x96xbf16>
    %28 = vector.shape_cast %27 : vector<1x64x96xbf16> to vector<64x96xbf16>
    %29 = vector.shape_cast %26 : vector<64x96xbf16> to vector<1x64x96xbf16>
    tpu.vector_store %arg7[%c0_18, %c0_19, %c0_20], %29 {strides = array<i32>} : memref<1x64x96xbf16, #tpu.memory_space<vmem>>, vector<1x64x96xbf16>,
    return
  }
  func.func @transform_0(%arg0: i32) -> (i32, i32, i32) {
    %c0_i32 = arith.constant 0 : i32
    %c0_i32_0 = arith.constant 0 : i32
    %c0_i32_1 = arith.constant 0 : i32
    return %arg0, %c0_i32, %c0_i32_0 : i32, i32, i32
  }
  func.func @transform_1(%arg0: i32) -> (i32, i32) {
    %c0_i32 = arith.constant 0 : i32
    %c0_i32_0 = arith.constant 0 : i32
    %c0_i32_1 = arith.constant 0 : i32
    return %c0_i32, %c0_i32_0 : i32, i32
  }
  func.func @transform_2(%arg0: i32) -> (i32, i32) {
    %c0_i32 = arith.constant 0 : i32
    %c0_i32_0 = arith.constant 0 : i32
    %c0_i32_1 = arith.constant 0 : i32
    return %c0_i32, %c0_i32_0 : i32, i32
  }
  func.func @transform_3(%arg0: i32) -> (i32, i32, i32) {
    %c0_i32 = arith.constant 0 : i32
    %c0_i32_0 = arith.constant 0 : i32
    %c0_i32_1 = arith.constant 0 : i32
    return %arg0, %c0_i32, %c0_i32_0 : i32, i32, i32
  }
  func.func @transform_4(%arg0: i32) -> (i32, i32) {
    %c0_i32 = arith.constant 0 : i32
    %c0_i32_0 = arith.constant 0 : i32
    %c0_i32_1 = arith.constant 0 : i32
    return %c0_i32, %c0_i32_0 : i32, i32
  }
  func.func @transform_5(%arg0: i32) -> (i32, i32) {
    %c0_i32 = arith.constant 0 : i32
    %c0_i32_0 = arith.constant 0 : i32
    %c0_i32_1 = arith.constant 0 : i32
    return %c0_i32, %c0_i32_0 : i32, i32
  }
  func.func @transform_6(%arg0: i32) -> (i32, i32, i32) {
    %c0_i32 = arith.constant 0 : i32
    %c0_i32_0 = arith.constant 0 : i32
    %c0_i32_1 = arith.constant 0 : i32
    return %arg0, %c0_i32, %c0_i32_0 : i32, i32, i32
  }
}

module attributes {stable_mosaic.version = 11 : i64} {
  func.func @_tail_expand_kernel(%arg0: i32, %arg1: memref<1x16x96xbf16, #tpu.memory_space<vmem>>, %arg2: memref<96x24xbf16, #tpu.memory_space<vmem>>, %arg3: memref<1x24xf32, #tpu.memory_space<vmem>>, %arg4: memref<24x96xbf16, #tpu.memory_space<vmem>>, %arg5: memref<1x96xf32, #tpu.memory_space<vmem>>, %arg6: memref<96x40xbf16, #tpu.memory_space<vmem>>, %arg7: memref<1x40xf32, #tpu.memory_space<vmem>>, %arg8: memref<40x240xbf16, #tpu.memory_space<vmem>>, %arg9: memref<1x240xf32, #tpu.memory_space<vmem>>, %arg10: memref<1x16x240xbf16, #tpu.memory_space<vmem>>, %arg11: memref<1x16x40xbf16, #tpu.memory_space<vmem>>) attributes {dimension_semantics = [#tpu.dimension_semantics<parallel>], iteration_bounds = array<i64: 2>, scalar_prefetch = 0 : i64, scratch_operands = 0 : i64, tpu.core_type = #tpu.core_type<tc>, window_params = [{transform_indices = @transform_0, window_bounds = array<i64: 1, 16, 96>}, {pipeline_mode = #tpu.pipeline_mode<synchronous>, transform_indices = @transform_1, window_bounds = array<i64: 96, 24>}, {pipeline_mode = #tpu.pipeline_mode<synchronous>, transform_indices = @transform_2, window_bounds = array<i64: 1, 24>}, {pipeline_mode = #tpu.pipeline_mode<synchronous>, transform_indices = @transform_3, window_bounds = array<i64: 24, 96>}, {pipeline_mode = #tpu.pipeline_mode<synchronous>, transform_indices = @transform_4, window_bounds = array<i64: 1, 96>}, {pipeline_mode = #tpu.pipeline_mode<synchronous>, transform_indices = @transform_5, window_bounds = array<i64: 96, 40>}, {pipeline_mode = #tpu.pipeline_mode<synchronous>, transform_indices = @transform_6, window_bounds = array<i64: 1, 40>}, {pipeline_mode = #tpu.pipeline_mode<synchronous>, transform_indices = @transform_7, window_bounds = array<i64: 40, 240>}, {pipeline_mode = #tpu.pipeline_mode<synchronous>, transform_indices = @transform_8, window_bounds = array<i64: 1, 240>}, {transform_indices = @transform_9, window_bounds = array<i64: 1, 16, 240>}, {transform_indices = @transform_10, window_bounds = array<i64: 1, 16, 40>}]} {
    %c0 = arith.constant 0 : index
    %c0_0 = arith.constant 0 : index
    %c0_1 = arith.constant 0 : index
    %0 = vector.load %arg1[%c0, %c0_0, %c0_1] : memref<1x16x96xbf16, #tpu.memory_space<vmem>>, vector<1x16x96xbf16>
    %1 = vector.shape_cast %0 : vector<1x16x96xbf16> to vector<16x96xbf16>
    %cst = arith.constant 1.000000e+00 : bf16
    %2 = vector.broadcast %cst : bf16 to vector<1x16xbf16>
    %cst_2 = arith.constant dense<0.000000e+00> : vector<1x96xf32>
    %3 = tpu.matmul %2, %1, %cst_2 {dimension_numbers = #tpu.dot_dimension_numbers<[1], [0], [0], [1], [0, 0, 1, 1], [], []>} : vector<1x16xbf16>, vector<16x96xbf16>, vector<1x96xf32> -> vector<1x96xf32>
    %cst_3 = arith.constant 6.250000e-02 : f32
    %4 = vector.broadcast %cst_3 : f32 to vector<1x96xf32>
    %5 = arith.mulf %3, %4 : vector<1x96xf32>
    %6 = arith.truncf %5 : vector<1x96xf32> to vector<1x96xbf16>
    %c0_4 = arith.constant 0 : index
    %c0_5 = arith.constant 0 : index
    %7 = vector.load %arg2[%c0_4, %c0_5] : memref<96x24xbf16, #tpu.memory_space<vmem>>, vector<96x24xbf16>
    %cst_6 = arith.constant dense<0.000000e+00> : vector<1x24xf32>
    %8 = tpu.matmul %6, %7, %cst_6 {dimension_numbers = #tpu.dot_dimension_numbers<[1], [0], [0], [1], [0, 0, 1, 1], [], []>} : vector<1x96xbf16>, vector<96x24xbf16>, vector<1x24xf32> -> vector<1x24xf32>
    %c0_7 = arith.constant 0 : index
    %c0_8 = arith.constant 0 : index
    %9 = vector.load %arg3[%c0_7, %c0_8] : memref<1x24xf32, #tpu.memory_space<vmem>>, vector<1x24xf32>
    %10 = arith.addf %8, %9 : vector<1x24xf32>
    %cst_9 = arith.constant 0.000000e+00 : f32
    %11 = vector.broadcast %cst_9 : f32 to vector<1x24xf32>
    %12 = arith.maximumf %10, %11 : vector<1x24xf32>
    %13 = arith.truncf %12 : vector<1x24xf32> to vector<1x24xbf16>
    %c0_10 = arith.constant 0 : index
    %c0_11 = arith.constant 0 : index
    %14 = vector.load %arg4[%c0_10, %c0_11] : memref<24x96xbf16, #tpu.memory_space<vmem>>, vector<24x96xbf16>
    %cst_12 = arith.constant dense<0.000000e+00> : vector<1x96xf32>
    %15 = tpu.matmul %13, %14, %cst_12 {dimension_numbers = #tpu.dot_dimension_numbers<[1], [0], [0], [1], [0, 0, 1, 1], [], []>} : vector<1x24xbf16>, vector<24x96xbf16>, vector<1x96xf32> -> vector<1x96xf32>
    %c0_13 = arith.constant 0 : index
    %c0_14 = arith.constant 0 : index
    %16 = vector.load %arg5[%c0_13, %c0_14] : memref<1x96xf32, #tpu.memory_space<vmem>>, vector<1x96xf32>
    %17 = arith.addf %15, %16 : vector<1x96xf32>
    %cst_15 = arith.constant 3.000000e+00 : f32
    %18 = vector.broadcast %cst_15 : f32 to vector<1x96xf32>
    %19 = arith.addf %17, %18 : vector<1x96xf32>
    %cst_16 = arith.constant 0.000000e+00 : f32
    %cst_17 = arith.constant 6.000000e+00 : f32
    %20 = vector.broadcast %cst_16 : f32 to vector<1x96xf32>
    %21 = arith.maximumf %20, %19 : vector<1x96xf32>
    %22 = vector.broadcast %cst_17 : f32 to vector<1x96xf32>
    %23 = arith.minimumf %22, %21 : vector<1x96xf32>
    %cst_18 = arith.constant 0.166666672 : f32
    %24 = vector.broadcast %cst_18 : f32 to vector<1x96xf32>
    %25 = arith.mulf %23, %24 : vector<1x96xf32>
    %26 = arith.truncf %25 : vector<1x96xf32> to vector<1x96xbf16>
    %27 = vector.broadcast %26 : vector<1x96xbf16> to vector<16x96xbf16>
    %28 = arith.mulf %1, %27 : vector<16x96xbf16>
    %c0_19 = arith.constant 0 : index
    %c0_20 = arith.constant 0 : index
    %29 = vector.load %arg6[%c0_19, %c0_20] : memref<96x40xbf16, #tpu.memory_space<vmem>>, vector<96x40xbf16>
    %cst_21 = arith.constant dense<0.000000e+00> : vector<16x40xf32>
    %30 = tpu.matmul %28, %29, %cst_21 {dimension_numbers = #tpu.dot_dimension_numbers<[1], [0], [0], [1], [0, 0, 1, 1], [], []>} : vector<16x96xbf16>, vector<96x40xbf16>, vector<16x40xf32> -> vector<16x40xf32>
    %c0_22 = arith.constant 0 : index
    %c0_23 = arith.constant 0 : index
    %31 = vector.load %arg7[%c0_22, %c0_23] : memref<1x40xf32, #tpu.memory_space<vmem>>, vector<1x40xf32>
    %32 = vector.broadcast %31 : vector<1x40xf32> to vector<16x40xf32>
    %33 = arith.addf %30, %32 : vector<16x40xf32>
    %34 = arith.truncf %33 : vector<16x40xf32> to vector<16x40xbf16>
    %c0_24 = arith.constant 0 : index
    %c0_25 = arith.constant 0 : index
    %35 = vector.load %arg8[%c0_24, %c0_25] : memref<40x240xbf16, #tpu.memory_space<vmem>>, vector<40x240xbf16>
    %cst_26 = arith.constant dense<0.000000e+00> : vector<16x240xf32>
    %36 = tpu.matmul %34, %35, %cst_26 {dimension_numbers = #tpu.dot_dimension_numbers<[1], [0], [0], [1], [0, 0, 1, 1], [], []>} : vector<16x40xbf16>, vector<40x240xbf16>, vector<16x240xf32> -> vector<16x240xf32>
    %c0_27 = arith.constant 0 : index
    %c0_28 = arith.constant 0 : index
    %37 = vector.load %arg9[%c0_27, %c0_28] : memref<1x240xf32, #tpu.memory_space<vmem>>, vector<1x240xf32>
    %38 = vector.broadcast %37 : vector<1x240xf32> to vector<16x240xf32>
    %39 = arith.addf %36, %38 : vector<16x240xf32>
    %cst_29 = arith.constant 3.000000e+00 : f32
    %40 = vector.broadcast %cst_29 : f32 to vector<16x240xf32>
    %41 = arith.addf %39, %40 : vector<16x240xf32>
    %cst_30 = arith.constant 0.000000e+00 : f32
    %cst_31 = arith.constant 6.000000e+00 : f32
    %42 = vector.broadcast %cst_30 : f32 to vector<16x240xf32>
    %43 = arith.maximumf %42, %41 : vector<16x240xf32>
    %44 = vector.broadcast %cst_31 : f32 to vector<16x240xf32>
    %45 = arith.minimumf %44, %43 : vector<16x240xf32>
    %46 = arith.mulf %39, %45 : vector<16x240xf32>
    %cst_32 = arith.constant 0.166666672 : f32
    %47 = vector.broadcast %cst_32 : f32 to vector<16x240xf32>
    %48 = arith.mulf %46, %47 : vector<16x240xf32>
    %49 = arith.truncf %48 : vector<16x240xf32> to vector<16x240xbf16>
    %c0_33 = arith.constant 0 : index
    %c0_34 = arith.constant 0 : index
    %c0_35 = arith.constant 0 : index
    %50 = vector.load %arg10[%c0_33, %c0_34, %c0_35] : memref<1x16x240xbf16, #tpu.memory_space<vmem>>, vector<1x16x240xbf16>
    %51 = vector.shape_cast %50 : vector<1x16x240xbf16> to vector<16x240xbf16>
    %52 = vector.shape_cast %49 : vector<16x240xbf16> to vector<1x16x240xbf16>
    tpu.vector_store %arg10[%c0_33, %c0_34, %c0_35], %52 {strides = array<i32>} : memref<1x16x240xbf16, #tpu.memory_space<vmem>>, vector<1x16x240xbf16>,
    %c0_36 = arith.constant 0 : index
    %c0_37 = arith.constant 0 : index
    %c0_38 = arith.constant 0 : index
    %53 = vector.load %arg11[%c0_36, %c0_37, %c0_38] : memref<1x16x40xbf16, #tpu.memory_space<vmem>>, vector<1x16x40xbf16>
    %54 = vector.shape_cast %53 : vector<1x16x40xbf16> to vector<16x40xbf16>
    %55 = vector.shape_cast %34 : vector<16x40xbf16> to vector<1x16x40xbf16>
    tpu.vector_store %arg11[%c0_36, %c0_37, %c0_38], %55 {strides = array<i32>} : memref<1x16x40xbf16, #tpu.memory_space<vmem>>, vector<1x16x40xbf16>,
    return
  }
  func.func @transform_0(%arg0: i32) -> (i32, i32, i32) {
    %c0_i32 = arith.constant 0 : i32
    %c0_i32_0 = arith.constant 0 : i32
    %c0_i32_1 = arith.constant 0 : i32
    return %arg0, %c0_i32, %c0_i32_0 : i32, i32, i32
  }
  func.func @transform_1(%arg0: i32) -> (i32, i32) {
    %c0_i32 = arith.constant 0 : i32
    %c0_i32_0 = arith.constant 0 : i32
    %c0_i32_1 = arith.constant 0 : i32
    return %c0_i32, %c0_i32_0 : i32, i32
  }
  func.func @transform_2(%arg0: i32) -> (i32, i32) {
    %c0_i32 = arith.constant 0 : i32
    %c0_i32_0 = arith.constant 0 : i32
    %c0_i32_1 = arith.constant 0 : i32
    return %c0_i32, %c0_i32_0 : i32, i32
  }
  func.func @transform_3(%arg0: i32) -> (i32, i32) {
    %c0_i32 = arith.constant 0 : i32
    %c0_i32_0 = arith.constant 0 : i32
    %c0_i32_1 = arith.constant 0 : i32
    return %c0_i32, %c0_i32_0 : i32, i32
  }
  func.func @transform_4(%arg0: i32) -> (i32, i32) {
    %c0_i32 = arith.constant 0 : i32
    %c0_i32_0 = arith.constant 0 : i32
    %c0_i32_1 = arith.constant 0 : i32
    return %c0_i32, %c0_i32_0 : i32, i32
  }
  func.func @transform_5(%arg0: i32) -> (i32, i32) {
    %c0_i32 = arith.constant 0 : i32
    %c0_i32_0 = arith.constant 0 : i32
    %c0_i32_1 = arith.constant 0 : i32
    return %c0_i32, %c0_i32_0 : i32, i32
  }
  func.func @transform_6(%arg0: i32) -> (i32, i32) {
    %c0_i32 = arith.constant 0 : i32
    %c0_i32_0 = arith.constant 0 : i32
    %c0_i32_1 = arith.constant 0 : i32
    return %c0_i32, %c0_i32_0 : i32, i32
  }
  func.func @transform_7(%arg0: i32) -> (i32, i32) {
    %c0_i32 = arith.constant 0 : i32
    %c0_i32_0 = arith.constant 0 : i32
    %c0_i32_1 = arith.constant 0 : i32
    return %c0_i32, %c0_i32_0 : i32, i32
  }
  func.func @transform_8(%arg0: i32) -> (i32, i32) {
    %c0_i32 = arith.constant 0 : i32
    %c0_i32_0 = arith.constant 0 : i32
    %c0_i32_1 = arith.constant 0 : i32
    return %c0_i32, %c0_i32_0 : i32, i32
  }
  func.func @transform_9(%arg0: i32) -> (i32, i32, i32) {
    %c0_i32 = arith.constant 0 : i32
    %c0_i32_0 = arith.constant 0 : i32
    %c0_i32_1 = arith.constant 0 : i32
    return %arg0, %c0_i32, %c0_i32_0 : i32, i32, i32
  }
  func.func @transform_10(%arg0: i32) -> (i32, i32, i32) {
    %c0_i32 = arith.constant 0 : i32
    %c0_i32_0 = arith.constant 0 : i32
    %c0_i32_1 = arith.constant 0 : i32
    return %arg0, %c0_i32, %c0_i32_0 : i32, i32, i32
  }
}

module attributes {stable_mosaic.version = 11 : i64} {
  func.func @_tail_expand_kernel(%arg0: i32, %arg1: memref<1x16x240xbf16, #tpu.memory_space<vmem>>, %arg2: memref<240x64xbf16, #tpu.memory_space<vmem>>, %arg3: memref<1x64xf32, #tpu.memory_space<vmem>>, %arg4: memref<64x240xbf16, #tpu.memory_space<vmem>>, %arg5: memref<1x240xf32, #tpu.memory_space<vmem>>, %arg6: memref<240x40xbf16, #tpu.memory_space<vmem>>, %arg7: memref<1x40xf32, #tpu.memory_space<vmem>>, %arg8: memref<1x16x40xbf16, #tpu.memory_space<vmem>>, %arg9: memref<40x240xbf16, #tpu.memory_space<vmem>>, %arg10: memref<1x240xf32, #tpu.memory_space<vmem>>, %arg11: memref<1x16x240xbf16, #tpu.memory_space<vmem>>, %arg12: memref<1x16x40xbf16, #tpu.memory_space<vmem>>) attributes {dimension_semantics = [#tpu.dimension_semantics<parallel>], iteration_bounds = array<i64: 2>, scalar_prefetch = 0 : i64, scratch_operands = 0 : i64, tpu.core_type = #tpu.core_type<tc>, window_params = [{transform_indices = @transform_0, window_bounds = array<i64: 1, 16, 240>}, {pipeline_mode = #tpu.pipeline_mode<synchronous>, transform_indices = @transform_1, window_bounds = array<i64: 240, 64>}, {pipeline_mode = #tpu.pipeline_mode<synchronous>, transform_indices = @transform_2, window_bounds = array<i64: 1, 64>}, {pipeline_mode = #tpu.pipeline_mode<synchronous>, transform_indices = @transform_3, window_bounds = array<i64: 64, 240>}, {pipeline_mode = #tpu.pipeline_mode<synchronous>, transform_indices = @transform_4, window_bounds = array<i64: 1, 240>}, {pipeline_mode = #tpu.pipeline_mode<synchronous>, transform_indices = @transform_5, window_bounds = array<i64: 240, 40>}, {pipeline_mode = #tpu.pipeline_mode<synchronous>, transform_indices = @transform_6, window_bounds = array<i64: 1, 40>}, {transform_indices = @transform_7, window_bounds = array<i64: 1, 16, 40>}, {pipeline_mode = #tpu.pipeline_mode<synchronous>, transform_indices = @transform_8, window_bounds = array<i64: 40, 240>}, {pipeline_mode = #tpu.pipeline_mode<synchronous>, transform_indices = @transform_9, window_bounds = array<i64: 1, 240>}, {transform_indices = @transform_10, window_bounds = array<i64: 1, 16, 240>}, {transform_indices = @transform_11, window_bounds = array<i64: 1, 16, 40>}]} {
    %c0 = arith.constant 0 : index
    %c0_0 = arith.constant 0 : index
    %c0_1 = arith.constant 0 : index
    %0 = vector.load %arg1[%c0, %c0_0, %c0_1] : memref<1x16x240xbf16, #tpu.memory_space<vmem>>, vector<1x16x240xbf16>
    %1 = vector.shape_cast %0 : vector<1x16x240xbf16> to vector<16x240xbf16>
    %cst = arith.constant 1.000000e+00 : bf16
    %2 = vector.broadcast %cst : bf16 to vector<1x16xbf16>
    %cst_2 = arith.constant dense<0.000000e+00> : vector<1x240xf32>
    %3 = tpu.matmul %2, %1, %cst_2 {dimension_numbers = #tpu.dot_dimension_numbers<[1], [0], [0], [1], [0, 0, 1, 1], [], []>} : vector<1x16xbf16>, vector<16x240xbf16>, vector<1x240xf32> -> vector<1x240xf32>
    %cst_3 = arith.constant 6.250000e-02 : f32
    %4 = vector.broadcast %cst_3 : f32 to vector<1x240xf32>
    %5 = arith.mulf %3, %4 : vector<1x240xf32>
    %6 = arith.truncf %5 : vector<1x240xf32> to vector<1x240xbf16>
    %c0_4 = arith.constant 0 : index
    %c0_5 = arith.constant 0 : index
    %7 = vector.load %arg2[%c0_4, %c0_5] : memref<240x64xbf16, #tpu.memory_space<vmem>>, vector<240x64xbf16>
    %cst_6 = arith.constant dense<0.000000e+00> : vector<1x64xf32>
    %8 = tpu.matmul %6, %7, %cst_6 {dimension_numbers = #tpu.dot_dimension_numbers<[1], [0], [0], [1], [0, 0, 1, 1], [], []>} : vector<1x240xbf16>, vector<240x64xbf16>, vector<1x64xf32> -> vector<1x64xf32>
    %c0_7 = arith.constant 0 : index
    %c0_8 = arith.constant 0 : index
    %9 = vector.load %arg3[%c0_7, %c0_8] : memref<1x64xf32, #tpu.memory_space<vmem>>, vector<1x64xf32>
    %10 = arith.addf %8, %9 : vector<1x64xf32>
    %cst_9 = arith.constant 0.000000e+00 : f32
    %11 = vector.broadcast %cst_9 : f32 to vector<1x64xf32>
    %12 = arith.maximumf %10, %11 : vector<1x64xf32>
    %13 = arith.truncf %12 : vector<1x64xf32> to vector<1x64xbf16>
    %c0_10 = arith.constant 0 : index
    %c0_11 = arith.constant 0 : index
    %14 = vector.load %arg4[%c0_10, %c0_11] : memref<64x240xbf16, #tpu.memory_space<vmem>>, vector<64x240xbf16>
    %cst_12 = arith.constant dense<0.000000e+00> : vector<1x240xf32>
    %15 = tpu.matmul %13, %14, %cst_12 {dimension_numbers = #tpu.dot_dimension_numbers<[1], [0], [0], [1], [0, 0, 1, 1], [], []>} : vector<1x64xbf16>, vector<64x240xbf16>, vector<1x240xf32> -> vector<1x240xf32>
    %c0_13 = arith.constant 0 : index
    %c0_14 = arith.constant 0 : index
    %16 = vector.load %arg5[%c0_13, %c0_14] : memref<1x240xf32, #tpu.memory_space<vmem>>, vector<1x240xf32>
    %17 = arith.addf %15, %16 : vector<1x240xf32>
    %cst_15 = arith.constant 3.000000e+00 : f32
    %18 = vector.broadcast %cst_15 : f32 to vector<1x240xf32>
    %19 = arith.addf %17, %18 : vector<1x240xf32>
    %cst_16 = arith.constant 0.000000e+00 : f32
    %cst_17 = arith.constant 6.000000e+00 : f32
    %20 = vector.broadcast %cst_16 : f32 to vector<1x240xf32>
    %21 = arith.maximumf %20, %19 : vector<1x240xf32>
    %22 = vector.broadcast %cst_17 : f32 to vector<1x240xf32>
    %23 = arith.minimumf %22, %21 : vector<1x240xf32>
    %cst_18 = arith.constant 0.166666672 : f32
    %24 = vector.broadcast %cst_18 : f32 to vector<1x240xf32>
    %25 = arith.mulf %23, %24 : vector<1x240xf32>
    %26 = arith.truncf %25 : vector<1x240xf32> to vector<1x240xbf16>
    %27 = vector.broadcast %26 : vector<1x240xbf16> to vector<16x240xbf16>
    %28 = arith.mulf %1, %27 : vector<16x240xbf16>
    %c0_19 = arith.constant 0 : index
    %c0_20 = arith.constant 0 : index
    %29 = vector.load %arg6[%c0_19, %c0_20] : memref<240x40xbf16, #tpu.memory_space<vmem>>, vector<240x40xbf16>
    %cst_21 = arith.constant dense<0.000000e+00> : vector<16x40xf32>
    %30 = tpu.matmul %28, %29, %cst_21 {dimension_numbers = #tpu.dot_dimension_numbers<[1], [0], [0], [1], [0, 0, 1, 1], [], []>} : vector<16x240xbf16>, vector<240x40xbf16>, vector<16x40xf32> -> vector<16x40xf32>
    %c0_22 = arith.constant 0 : index
    %c0_23 = arith.constant 0 : index
    %31 = vector.load %arg7[%c0_22, %c0_23] : memref<1x40xf32, #tpu.memory_space<vmem>>, vector<1x40xf32>
    %32 = vector.broadcast %31 : vector<1x40xf32> to vector<16x40xf32>
    %33 = arith.addf %30, %32 : vector<16x40xf32>
    %c0_24 = arith.constant 0 : index
    %c0_25 = arith.constant 0 : index
    %c0_26 = arith.constant 0 : index
    %34 = vector.load %arg8[%c0_24, %c0_25, %c0_26] : memref<1x16x40xbf16, #tpu.memory_space<vmem>>, vector<1x16x40xbf16>
    %35 = vector.shape_cast %34 : vector<1x16x40xbf16> to vector<16x40xbf16>
    %36 = arith.extf %35 : vector<16x40xbf16> to vector<16x40xf32>
    %37 = arith.addf %33, %36 : vector<16x40xf32>
    %38 = arith.truncf %37 : vector<16x40xf32> to vector<16x40xbf16>
    %c0_27 = arith.constant 0 : index
    %c0_28 = arith.constant 0 : index
    %39 = vector.load %arg9[%c0_27, %c0_28] : memref<40x240xbf16, #tpu.memory_space<vmem>>, vector<40x240xbf16>
    %cst_29 = arith.constant dense<0.000000e+00> : vector<16x240xf32>
    %40 = tpu.matmul %38, %39, %cst_29 {dimension_numbers = #tpu.dot_dimension_numbers<[1], [0], [0], [1], [0, 0, 1, 1], [], []>} : vector<16x40xbf16>, vector<40x240xbf16>, vector<16x240xf32> -> vector<16x240xf32>
    %c0_30 = arith.constant 0 : index
    %c0_31 = arith.constant 0 : index
    %41 = vector.load %arg10[%c0_30, %c0_31] : memref<1x240xf32, #tpu.memory_space<vmem>>, vector<1x240xf32>
    %42 = vector.broadcast %41 : vector<1x240xf32> to vector<16x240xf32>
    %43 = arith.addf %40, %42 : vector<16x240xf32>
    %cst_32 = arith.constant 3.000000e+00 : f32
    %44 = vector.broadcast %cst_32 : f32 to vector<16x240xf32>
    %45 = arith.addf %43, %44 : vector<16x240xf32>
    %cst_33 = arith.constant 0.000000e+00 : f32
    %cst_34 = arith.constant 6.000000e+00 : f32
    %46 = vector.broadcast %cst_33 : f32 to vector<16x240xf32>
    %47 = arith.maximumf %46, %45 : vector<16x240xf32>
    %48 = vector.broadcast %cst_34 : f32 to vector<16x240xf32>
    %49 = arith.minimumf %48, %47 : vector<16x240xf32>
    %50 = arith.mulf %43, %49 : vector<16x240xf32>
    %cst_35 = arith.constant 0.166666672 : f32
    %51 = vector.broadcast %cst_35 : f32 to vector<16x240xf32>
    %52 = arith.mulf %50, %51 : vector<16x240xf32>
    %53 = arith.truncf %52 : vector<16x240xf32> to vector<16x240xbf16>
    %c0_36 = arith.constant 0 : index
    %c0_37 = arith.constant 0 : index
    %c0_38 = arith.constant 0 : index
    %54 = vector.load %arg11[%c0_36, %c0_37, %c0_38] : memref<1x16x240xbf16, #tpu.memory_space<vmem>>, vector<1x16x240xbf16>
    %55 = vector.shape_cast %54 : vector<1x16x240xbf16> to vector<16x240xbf16>
    %56 = vector.shape_cast %53 : vector<16x240xbf16> to vector<1x16x240xbf16>
    tpu.vector_store %arg11[%c0_36, %c0_37, %c0_38], %56 {strides = array<i32>} : memref<1x16x240xbf16, #tpu.memory_space<vmem>>, vector<1x16x240xbf16>,
    %c0_39 = arith.constant 0 : index
    %c0_40 = arith.constant 0 : index
    %c0_41 = arith.constant 0 : index
    %57 = vector.load %arg12[%c0_39, %c0_40, %c0_41] : memref<1x16x40xbf16, #tpu.memory_space<vmem>>, vector<1x16x40xbf16>
    %58 = vector.shape_cast %57 : vector<1x16x40xbf16> to vector<16x40xbf16>
    %59 = vector.shape_cast %38 : vector<16x40xbf16> to vector<1x16x40xbf16>
    tpu.vector_store %arg12[%c0_39, %c0_40, %c0_41], %59 {strides = array<i32>} : memref<1x16x40xbf16, #tpu.memory_space<vmem>>, vector<1x16x40xbf16>,
    return
  }
  func.func @transform_0(%arg0: i32) -> (i32, i32, i32) {
    %c0_i32 = arith.constant 0 : i32
    %c0_i32_0 = arith.constant 0 : i32
    %c0_i32_1 = arith.constant 0 : i32
    return %arg0, %c0_i32, %c0_i32_0 : i32, i32, i32
  }
  func.func @transform_1(%arg0: i32) -> (i32, i32) {
    %c0_i32 = arith.constant 0 : i32
    %c0_i32_0 = arith.constant 0 : i32
    %c0_i32_1 = arith.constant 0 : i32
    return %c0_i32, %c0_i32_0 : i32, i32
  }
  func.func @transform_2(%arg0: i32) -> (i32, i32) {
    %c0_i32 = arith.constant 0 : i32
    %c0_i32_0 = arith.constant 0 : i32
    %c0_i32_1 = arith.constant 0 : i32
    return %c0_i32, %c0_i32_0 : i32, i32
  }
  func.func @transform_3(%arg0: i32) -> (i32, i32) {
    %c0_i32 = arith.constant 0 : i32
    %c0_i32_0 = arith.constant 0 : i32
    %c0_i32_1 = arith.constant 0 : i32
    return %c0_i32, %c0_i32_0 : i32, i32
  }
  func.func @transform_4(%arg0: i32) -> (i32, i32) {
    %c0_i32 = arith.constant 0 : i32
    %c0_i32_0 = arith.constant 0 : i32
    %c0_i32_1 = arith.constant 0 : i32
    return %c0_i32, %c0_i32_0 : i32, i32
  }
  func.func @transform_5(%arg0: i32) -> (i32, i32) {
    %c0_i32 = arith.constant 0 : i32
    %c0_i32_0 = arith.constant 0 : i32
    %c0_i32_1 = arith.constant 0 : i32
    return %c0_i32, %c0_i32_0 : i32, i32
  }
  func.func @transform_6(%arg0: i32) -> (i32, i32) {
    %c0_i32 = arith.constant 0 : i32
    %c0_i32_0 = arith.constant 0 : i32
    %c0_i32_1 = arith.constant 0 : i32
    return %c0_i32, %c0_i32_0 : i32, i32
  }
  func.func @transform_7(%arg0: i32) -> (i32, i32, i32) {
    %c0_i32 = arith.constant 0 : i32
    %c0_i32_0 = arith.constant 0 : i32
    %c0_i32_1 = arith.constant 0 : i32
    return %arg0, %c0_i32, %c0_i32_0 : i32, i32, i32
  }
  func.func @transform_8(%arg0: i32) -> (i32, i32) {
    %c0_i32 = arith.constant 0 : i32
    %c0_i32_0 = arith.constant 0 : i32
    %c0_i32_1 = arith.constant 0 : i32
    return %c0_i32, %c0_i32_0 : i32, i32
  }
  func.func @transform_9(%arg0: i32) -> (i32, i32) {
    %c0_i32 = arith.constant 0 : i32
    %c0_i32_0 = arith.constant 0 : i32
    %c0_i32_1 = arith.constant 0 : i32
    return %c0_i32, %c0_i32_0 : i32, i32
  }
  func.func @transform_10(%arg0: i32) -> (i32, i32, i32) {
    %c0_i32 = arith.constant 0 : i32
    %c0_i32_0 = arith.constant 0 : i32
    %c0_i32_1 = arith.constant 0 : i32
    return %arg0, %c0_i32, %c0_i32_0 : i32, i32, i32
  }
  func.func @transform_11(%arg0: i32) -> (i32, i32, i32) {
    %c0_i32 = arith.constant 0 : i32
    %c0_i32_0 = arith.constant 0 : i32
    %c0_i32_1 = arith.constant 0 : i32
    return %arg0, %c0_i32, %c0_i32_0 : i32, i32, i32
  }
}

module attributes {stable_mosaic.version = 11 : i64} {
  func.func @_tail_expand_kernel(%arg0: i32, %arg1: memref<1x16x240xbf16, #tpu.memory_space<vmem>>, %arg2: memref<240x64xbf16, #tpu.memory_space<vmem>>, %arg3: memref<1x64xf32, #tpu.memory_space<vmem>>, %arg4: memref<64x240xbf16, #tpu.memory_space<vmem>>, %arg5: memref<1x240xf32, #tpu.memory_space<vmem>>, %arg6: memref<240x40xbf16, #tpu.memory_space<vmem>>, %arg7: memref<1x40xf32, #tpu.memory_space<vmem>>, %arg8: memref<1x16x40xbf16, #tpu.memory_space<vmem>>, %arg9: memref<40x120xbf16, #tpu.memory_space<vmem>>, %arg10: memref<1x120xf32, #tpu.memory_space<vmem>>, %arg11: memref<1x16x120xbf16, #tpu.memory_space<vmem>>) attributes {dimension_semantics = [#tpu.dimension_semantics<parallel>], iteration_bounds = array<i64: 2>, scalar_prefetch = 0 : i64, scratch_operands = 0 : i64, tpu.core_type = #tpu.core_type<tc>, window_params = [{transform_indices = @transform_0, window_bounds = array<i64: 1, 16, 240>}, {pipeline_mode = #tpu.pipeline_mode<synchronous>, transform_indices = @transform_1, window_bounds = array<i64: 240, 64>}, {pipeline_mode = #tpu.pipeline_mode<synchronous>, transform_indices = @transform_2, window_bounds = array<i64: 1, 64>}, {pipeline_mode = #tpu.pipeline_mode<synchronous>, transform_indices = @transform_3, window_bounds = array<i64: 64, 240>}, {pipeline_mode = #tpu.pipeline_mode<synchronous>, transform_indices = @transform_4, window_bounds = array<i64: 1, 240>}, {pipeline_mode = #tpu.pipeline_mode<synchronous>, transform_indices = @transform_5, window_bounds = array<i64: 240, 40>}, {pipeline_mode = #tpu.pipeline_mode<synchronous>, transform_indices = @transform_6, window_bounds = array<i64: 1, 40>}, {transform_indices = @transform_7, window_bounds = array<i64: 1, 16, 40>}, {pipeline_mode = #tpu.pipeline_mode<synchronous>, transform_indices = @transform_8, window_bounds = array<i64: 40, 120>}, {pipeline_mode = #tpu.pipeline_mode<synchronous>, transform_indices = @transform_9, window_bounds = array<i64: 1, 120>}, {transform_indices = @transform_10, window_bounds = array<i64: 1, 16, 120>}]} {
    %c0 = arith.constant 0 : index
    %c0_0 = arith.constant 0 : index
    %c0_1 = arith.constant 0 : index
    %0 = vector.load %arg1[%c0, %c0_0, %c0_1] : memref<1x16x240xbf16, #tpu.memory_space<vmem>>, vector<1x16x240xbf16>
    %1 = vector.shape_cast %0 : vector<1x16x240xbf16> to vector<16x240xbf16>
    %cst = arith.constant 1.000000e+00 : bf16
    %2 = vector.broadcast %cst : bf16 to vector<1x16xbf16>
    %cst_2 = arith.constant dense<0.000000e+00> : vector<1x240xf32>
    %3 = tpu.matmul %2, %1, %cst_2 {dimension_numbers = #tpu.dot_dimension_numbers<[1], [0], [0], [1], [0, 0, 1, 1], [], []>} : vector<1x16xbf16>, vector<16x240xbf16>, vector<1x240xf32> -> vector<1x240xf32>
    %cst_3 = arith.constant 6.250000e-02 : f32
    %4 = vector.broadcast %cst_3 : f32 to vector<1x240xf32>
    %5 = arith.mulf %3, %4 : vector<1x240xf32>
    %6 = arith.truncf %5 : vector<1x240xf32> to vector<1x240xbf16>
    %c0_4 = arith.constant 0 : index
    %c0_5 = arith.constant 0 : index
    %7 = vector.load %arg2[%c0_4, %c0_5] : memref<240x64xbf16, #tpu.memory_space<vmem>>, vector<240x64xbf16>
    %cst_6 = arith.constant dense<0.000000e+00> : vector<1x64xf32>
    %8 = tpu.matmul %6, %7, %cst_6 {dimension_numbers = #tpu.dot_dimension_numbers<[1], [0], [0], [1], [0, 0, 1, 1], [], []>} : vector<1x240xbf16>, vector<240x64xbf16>, vector<1x64xf32> -> vector<1x64xf32>
    %c0_7 = arith.constant 0 : index
    %c0_8 = arith.constant 0 : index
    %9 = vector.load %arg3[%c0_7, %c0_8] : memref<1x64xf32, #tpu.memory_space<vmem>>, vector<1x64xf32>
    %10 = arith.addf %8, %9 : vector<1x64xf32>
    %cst_9 = arith.constant 0.000000e+00 : f32
    %11 = vector.broadcast %cst_9 : f32 to vector<1x64xf32>
    %12 = arith.maximumf %10, %11 : vector<1x64xf32>
    %13 = arith.truncf %12 : vector<1x64xf32> to vector<1x64xbf16>
    %c0_10 = arith.constant 0 : index
    %c0_11 = arith.constant 0 : index
    %14 = vector.load %arg4[%c0_10, %c0_11] : memref<64x240xbf16, #tpu.memory_space<vmem>>, vector<64x240xbf16>
    %cst_12 = arith.constant dense<0.000000e+00> : vector<1x240xf32>
    %15 = tpu.matmul %13, %14, %cst_12 {dimension_numbers = #tpu.dot_dimension_numbers<[1], [0], [0], [1], [0, 0, 1, 1], [], []>} : vector<1x64xbf16>, vector<64x240xbf16>, vector<1x240xf32> -> vector<1x240xf32>
    %c0_13 = arith.constant 0 : index
    %c0_14 = arith.constant 0 : index
    %16 = vector.load %arg5[%c0_13, %c0_14] : memref<1x240xf32, #tpu.memory_space<vmem>>, vector<1x240xf32>
    %17 = arith.addf %15, %16 : vector<1x240xf32>
    %cst_15 = arith.constant 3.000000e+00 : f32
    %18 = vector.broadcast %cst_15 : f32 to vector<1x240xf32>
    %19 = arith.addf %17, %18 : vector<1x240xf32>
    %cst_16 = arith.constant 0.000000e+00 : f32
    %cst_17 = arith.constant 6.000000e+00 : f32
    %20 = vector.broadcast %cst_16 : f32 to vector<1x240xf32>
    %21 = arith.maximumf %20, %19 : vector<1x240xf32>
    %22 = vector.broadcast %cst_17 : f32 to vector<1x240xf32>
    %23 = arith.minimumf %22, %21 : vector<1x240xf32>
    %cst_18 = arith.constant 0.166666672 : f32
    %24 = vector.broadcast %cst_18 : f32 to vector<1x240xf32>
    %25 = arith.mulf %23, %24 : vector<1x240xf32>
    %26 = arith.truncf %25 : vector<1x240xf32> to vector<1x240xbf16>
    %27 = vector.broadcast %26 : vector<1x240xbf16> to vector<16x240xbf16>
    %28 = arith.mulf %1, %27 : vector<16x240xbf16>
    %c0_19 = arith.constant 0 : index
    %c0_20 = arith.constant 0 : index
    %29 = vector.load %arg6[%c0_19, %c0_20] : memref<240x40xbf16, #tpu.memory_space<vmem>>, vector<240x40xbf16>
    %cst_21 = arith.constant dense<0.000000e+00> : vector<16x40xf32>
    %30 = tpu.matmul %28, %29, %cst_21 {dimension_numbers = #tpu.dot_dimension_numbers<[1], [0], [0], [1], [0, 0, 1, 1], [], []>} : vector<16x240xbf16>, vector<240x40xbf16>, vector<16x40xf32> -> vector<16x40xf32>
    %c0_22 = arith.constant 0 : index
    %c0_23 = arith.constant 0 : index
    %31 = vector.load %arg7[%c0_22, %c0_23] : memref<1x40xf32, #tpu.memory_space<vmem>>, vector<1x40xf32>
    %32 = vector.broadcast %31 : vector<1x40xf32> to vector<16x40xf32>
    %33 = arith.addf %30, %32 : vector<16x40xf32>
    %c0_24 = arith.constant 0 : index
    %c0_25 = arith.constant 0 : index
    %c0_26 = arith.constant 0 : index
    %34 = vector.load %arg8[%c0_24, %c0_25, %c0_26] : memref<1x16x40xbf16, #tpu.memory_space<vmem>>, vector<1x16x40xbf16>
    %35 = vector.shape_cast %34 : vector<1x16x40xbf16> to vector<16x40xbf16>
    %36 = arith.extf %35 : vector<16x40xbf16> to vector<16x40xf32>
    %37 = arith.addf %33, %36 : vector<16x40xf32>
    %38 = arith.truncf %37 : vector<16x40xf32> to vector<16x40xbf16>
    %c0_27 = arith.constant 0 : index
    %c0_28 = arith.constant 0 : index
    %39 = vector.load %arg9[%c0_27, %c0_28] : memref<40x120xbf16, #tpu.memory_space<vmem>>, vector<40x120xbf16>
    %cst_29 = arith.constant dense<0.000000e+00> : vector<16x120xf32>
    %40 = tpu.matmul %38, %39, %cst_29 {dimension_numbers = #tpu.dot_dimension_numbers<[1], [0], [0], [1], [0, 0, 1, 1], [], []>} : vector<16x40xbf16>, vector<40x120xbf16>, vector<16x120xf32> -> vector<16x120xf32>
    %c0_30 = arith.constant 0 : index
    %c0_31 = arith.constant 0 : index
    %41 = vector.load %arg10[%c0_30, %c0_31] : memref<1x120xf32, #tpu.memory_space<vmem>>, vector<1x120xf32>
    %42 = vector.broadcast %41 : vector<1x120xf32> to vector<16x120xf32>
    %43 = arith.addf %40, %42 : vector<16x120xf32>
    %cst_32 = arith.constant 3.000000e+00 : f32
    %44 = vector.broadcast %cst_32 : f32 to vector<16x120xf32>
    %45 = arith.addf %43, %44 : vector<16x120xf32>
    %cst_33 = arith.constant 0.000000e+00 : f32
    %cst_34 = arith.constant 6.000000e+00 : f32
    %46 = vector.broadcast %cst_33 : f32 to vector<16x120xf32>
    %47 = arith.maximumf %46, %45 : vector<16x120xf32>
    %48 = vector.broadcast %cst_34 : f32 to vector<16x120xf32>
    %49 = arith.minimumf %48, %47 : vector<16x120xf32>
    %50 = arith.mulf %43, %49 : vector<16x120xf32>
    %cst_35 = arith.constant 0.166666672 : f32
    %51 = vector.broadcast %cst_35 : f32 to vector<16x120xf32>
    %52 = arith.mulf %50, %51 : vector<16x120xf32>
    %53 = arith.truncf %52 : vector<16x120xf32> to vector<16x120xbf16>
    %c0_36 = arith.constant 0 : index
    %c0_37 = arith.constant 0 : index
    %c0_38 = arith.constant 0 : index
    %54 = vector.load %arg11[%c0_36, %c0_37, %c0_38] : memref<1x16x120xbf16, #tpu.memory_space<vmem>>, vector<1x16x120xbf16>
    %55 = vector.shape_cast %54 : vector<1x16x120xbf16> to vector<16x120xbf16>
    %56 = vector.shape_cast %53 : vector<16x120xbf16> to vector<1x16x120xbf16>
    tpu.vector_store %arg11[%c0_36, %c0_37, %c0_38], %56 {strides = array<i32>} : memref<1x16x120xbf16, #tpu.memory_space<vmem>>, vector<1x16x120xbf16>,
    return
  }
  func.func @transform_0(%arg0: i32) -> (i32, i32, i32) {
    %c0_i32 = arith.constant 0 : i32
    %c0_i32_0 = arith.constant 0 : i32
    %c0_i32_1 = arith.constant 0 : i32
    return %arg0, %c0_i32, %c0_i32_0 : i32, i32, i32
  }
  func.func @transform_1(%arg0: i32) -> (i32, i32) {
    %c0_i32 = arith.constant 0 : i32
    %c0_i32_0 = arith.constant 0 : i32
    %c0_i32_1 = arith.constant 0 : i32
    return %c0_i32, %c0_i32_0 : i32, i32
  }
  func.func @transform_2(%arg0: i32) -> (i32, i32) {
    %c0_i32 = arith.constant 0 : i32
    %c0_i32_0 = arith.constant 0 : i32
    %c0_i32_1 = arith.constant 0 : i32
    return %c0_i32, %c0_i32_0 : i32, i32
  }
  func.func @transform_3(%arg0: i32) -> (i32, i32) {
    %c0_i32 = arith.constant 0 : i32
    %c0_i32_0 = arith.constant 0 : i32
    %c0_i32_1 = arith.constant 0 : i32
    return %c0_i32, %c0_i32_0 : i32, i32
  }
  func.func @transform_4(%arg0: i32) -> (i32, i32) {
    %c0_i32 = arith.constant 0 : i32
    %c0_i32_0 = arith.constant 0 : i32
    %c0_i32_1 = arith.constant 0 : i32
    return %c0_i32, %c0_i32_0 : i32, i32
  }
  func.func @transform_5(%arg0: i32) -> (i32, i32) {
    %c0_i32 = arith.constant 0 : i32
    %c0_i32_0 = arith.constant 0 : i32
    %c0_i32_1 = arith.constant 0 : i32
    return %c0_i32, %c0_i32_0 : i32, i32
  }
  func.func @transform_6(%arg0: i32) -> (i32, i32) {
    %c0_i32 = arith.constant 0 : i32
    %c0_i32_0 = arith.constant 0 : i32
    %c0_i32_1 = arith.constant 0 : i32
    return %c0_i32, %c0_i32_0 : i32, i32
  }
  func.func @transform_7(%arg0: i32) -> (i32, i32, i32) {
    %c0_i32 = arith.constant 0 : i32
    %c0_i32_0 = arith.constant 0 : i32
    %c0_i32_1 = arith.constant 0 : i32
    return %arg0, %c0_i32, %c0_i32_0 : i32, i32, i32
  }
  func.func @transform_8(%arg0: i32) -> (i32, i32) {
    %c0_i32 = arith.constant 0 : i32
    %c0_i32_0 = arith.constant 0 : i32
    %c0_i32_1 = arith.constant 0 : i32
    return %c0_i32, %c0_i32_0 : i32, i32
  }
  func.func @transform_9(%arg0: i32) -> (i32, i32) {
    %c0_i32 = arith.constant 0 : i32
    %c0_i32_0 = arith.constant 0 : i32
    %c0_i32_1 = arith.constant 0 : i32
    return %c0_i32, %c0_i32_0 : i32, i32
  }
  func.func @transform_10(%arg0: i32) -> (i32, i32, i32) {
    %c0_i32 = arith.constant 0 : i32
    %c0_i32_0 = arith.constant 0 : i32
    %c0_i32_1 = arith.constant 0 : i32
    return %arg0, %c0_i32, %c0_i32_0 : i32, i32, i32
  }
}

module attributes {stable_mosaic.version = 11 : i64} {
  func.func @_tail_expand_kernel(%arg0: i32, %arg1: memref<1x16x120xbf16, #tpu.memory_space<vmem>>, %arg2: memref<120x32xbf16, #tpu.memory_space<vmem>>, %arg3: memref<1x32xf32, #tpu.memory_space<vmem>>, %arg4: memref<32x120xbf16, #tpu.memory_space<vmem>>, %arg5: memref<1x120xf32, #tpu.memory_space<vmem>>, %arg6: memref<120x48xbf16, #tpu.memory_space<vmem>>, %arg7: memref<1x48xf32, #tpu.memory_space<vmem>>, %arg8: memref<48x144xbf16, #tpu.memory_space<vmem>>, %arg9: memref<1x144xf32, #tpu.memory_space<vmem>>, %arg10: memref<1x16x144xbf16, #tpu.memory_space<vmem>>, %arg11: memref<1x16x48xbf16, #tpu.memory_space<vmem>>) attributes {dimension_semantics = [#tpu.dimension_semantics<parallel>], iteration_bounds = array<i64: 2>, scalar_prefetch = 0 : i64, scratch_operands = 0 : i64, tpu.core_type = #tpu.core_type<tc>, window_params = [{transform_indices = @transform_0, window_bounds = array<i64: 1, 16, 120>}, {pipeline_mode = #tpu.pipeline_mode<synchronous>, transform_indices = @transform_1, window_bounds = array<i64: 120, 32>}, {pipeline_mode = #tpu.pipeline_mode<synchronous>, transform_indices = @transform_2, window_bounds = array<i64: 1, 32>}, {pipeline_mode = #tpu.pipeline_mode<synchronous>, transform_indices = @transform_3, window_bounds = array<i64: 32, 120>}, {pipeline_mode = #tpu.pipeline_mode<synchronous>, transform_indices = @transform_4, window_bounds = array<i64: 1, 120>}, {pipeline_mode = #tpu.pipeline_mode<synchronous>, transform_indices = @transform_5, window_bounds = array<i64: 120, 48>}, {pipeline_mode = #tpu.pipeline_mode<synchronous>, transform_indices = @transform_6, window_bounds = array<i64: 1, 48>}, {pipeline_mode = #tpu.pipeline_mode<synchronous>, transform_indices = @transform_7, window_bounds = array<i64: 48, 144>}, {pipeline_mode = #tpu.pipeline_mode<synchronous>, transform_indices = @transform_8, window_bounds = array<i64: 1, 144>}, {transform_indices = @transform_9, window_bounds = array<i64: 1, 16, 144>}, {transform_indices = @transform_10, window_bounds = array<i64: 1, 16, 48>}]} {
    %c0 = arith.constant 0 : index
    %c0_0 = arith.constant 0 : index
    %c0_1 = arith.constant 0 : index
    %0 = vector.load %arg1[%c0, %c0_0, %c0_1] : memref<1x16x120xbf16, #tpu.memory_space<vmem>>, vector<1x16x120xbf16>
    %1 = vector.shape_cast %0 : vector<1x16x120xbf16> to vector<16x120xbf16>
    %cst = arith.constant 1.000000e+00 : bf16
    %2 = vector.broadcast %cst : bf16 to vector<1x16xbf16>
    %cst_2 = arith.constant dense<0.000000e+00> : vector<1x120xf32>
    %3 = tpu.matmul %2, %1, %cst_2 {dimension_numbers = #tpu.dot_dimension_numbers<[1], [0], [0], [1], [0, 0, 1, 1], [], []>} : vector<1x16xbf16>, vector<16x120xbf16>, vector<1x120xf32> -> vector<1x120xf32>
    %cst_3 = arith.constant 6.250000e-02 : f32
    %4 = vector.broadcast %cst_3 : f32 to vector<1x120xf32>
    %5 = arith.mulf %3, %4 : vector<1x120xf32>
    %6 = arith.truncf %5 : vector<1x120xf32> to vector<1x120xbf16>
    %c0_4 = arith.constant 0 : index
    %c0_5 = arith.constant 0 : index
    %7 = vector.load %arg2[%c0_4, %c0_5] : memref<120x32xbf16, #tpu.memory_space<vmem>>, vector<120x32xbf16>
    %cst_6 = arith.constant dense<0.000000e+00> : vector<1x32xf32>
    %8 = tpu.matmul %6, %7, %cst_6 {dimension_numbers = #tpu.dot_dimension_numbers<[1], [0], [0], [1], [0, 0, 1, 1], [], []>} : vector<1x120xbf16>, vector<120x32xbf16>, vector<1x32xf32> -> vector<1x32xf32>
    %c0_7 = arith.constant 0 : index
    %c0_8 = arith.constant 0 : index
    %9 = vector.load %arg3[%c0_7, %c0_8] : memref<1x32xf32, #tpu.memory_space<vmem>>, vector<1x32xf32>
    %10 = arith.addf %8, %9 : vector<1x32xf32>
    %cst_9 = arith.constant 0.000000e+00 : f32
    %11 = vector.broadcast %cst_9 : f32 to vector<1x32xf32>
    %12 = arith.maximumf %10, %11 : vector<1x32xf32>
    %13 = arith.truncf %12 : vector<1x32xf32> to vector<1x32xbf16>
    %c0_10 = arith.constant 0 : index
    %c0_11 = arith.constant 0 : index
    %14 = vector.load %arg4[%c0_10, %c0_11] : memref<32x120xbf16, #tpu.memory_space<vmem>>, vector<32x120xbf16>
    %cst_12 = arith.constant dense<0.000000e+00> : vector<1x120xf32>
    %15 = tpu.matmul %13, %14, %cst_12 {dimension_numbers = #tpu.dot_dimension_numbers<[1], [0], [0], [1], [0, 0, 1, 1], [], []>} : vector<1x32xbf16>, vector<32x120xbf16>, vector<1x120xf32> -> vector<1x120xf32>
    %c0_13 = arith.constant 0 : index
    %c0_14 = arith.constant 0 : index
    %16 = vector.load %arg5[%c0_13, %c0_14] : memref<1x120xf32, #tpu.memory_space<vmem>>, vector<1x120xf32>
    %17 = arith.addf %15, %16 : vector<1x120xf32>
    %cst_15 = arith.constant 3.000000e+00 : f32
    %18 = vector.broadcast %cst_15 : f32 to vector<1x120xf32>
    %19 = arith.addf %17, %18 : vector<1x120xf32>
    %cst_16 = arith.constant 0.000000e+00 : f32
    %cst_17 = arith.constant 6.000000e+00 : f32
    %20 = vector.broadcast %cst_16 : f32 to vector<1x120xf32>
    %21 = arith.maximumf %20, %19 : vector<1x120xf32>
    %22 = vector.broadcast %cst_17 : f32 to vector<1x120xf32>
    %23 = arith.minimumf %22, %21 : vector<1x120xf32>
    %cst_18 = arith.constant 0.166666672 : f32
    %24 = vector.broadcast %cst_18 : f32 to vector<1x120xf32>
    %25 = arith.mulf %23, %24 : vector<1x120xf32>
    %26 = arith.truncf %25 : vector<1x120xf32> to vector<1x120xbf16>
    %27 = vector.broadcast %26 : vector<1x120xbf16> to vector<16x120xbf16>
    %28 = arith.mulf %1, %27 : vector<16x120xbf16>
    %c0_19 = arith.constant 0 : index
    %c0_20 = arith.constant 0 : index
    %29 = vector.load %arg6[%c0_19, %c0_20] : memref<120x48xbf16, #tpu.memory_space<vmem>>, vector<120x48xbf16>
    %cst_21 = arith.constant dense<0.000000e+00> : vector<16x48xf32>
    %30 = tpu.matmul %28, %29, %cst_21 {dimension_numbers = #tpu.dot_dimension_numbers<[1], [0], [0], [1], [0, 0, 1, 1], [], []>} : vector<16x120xbf16>, vector<120x48xbf16>, vector<16x48xf32> -> vector<16x48xf32>
    %c0_22 = arith.constant 0 : index
    %c0_23 = arith.constant 0 : index
    %31 = vector.load %arg7[%c0_22, %c0_23] : memref<1x48xf32, #tpu.memory_space<vmem>>, vector<1x48xf32>
    %32 = vector.broadcast %31 : vector<1x48xf32> to vector<16x48xf32>
    %33 = arith.addf %30, %32 : vector<16x48xf32>
    %34 = arith.truncf %33 : vector<16x48xf32> to vector<16x48xbf16>
    %c0_24 = arith.constant 0 : index
    %c0_25 = arith.constant 0 : index
    %35 = vector.load %arg8[%c0_24, %c0_25] : memref<48x144xbf16, #tpu.memory_space<vmem>>, vector<48x144xbf16>
    %cst_26 = arith.constant dense<0.000000e+00> : vector<16x144xf32>
    %36 = tpu.matmul %34, %35, %cst_26 {dimension_numbers = #tpu.dot_dimension_numbers<[1], [0], [0], [1], [0, 0, 1, 1], [], []>} : vector<16x48xbf16>, vector<48x144xbf16>, vector<16x144xf32> -> vector<16x144xf32>
    %c0_27 = arith.constant 0 : index
    %c0_28 = arith.constant 0 : index
    %37 = vector.load %arg9[%c0_27, %c0_28] : memref<1x144xf32, #tpu.memory_space<vmem>>, vector<1x144xf32>
    %38 = vector.broadcast %37 : vector<1x144xf32> to vector<16x144xf32>
    %39 = arith.addf %36, %38 : vector<16x144xf32>
    %cst_29 = arith.constant 3.000000e+00 : f32
    %40 = vector.broadcast %cst_29 : f32 to vector<16x144xf32>
    %41 = arith.addf %39, %40 : vector<16x144xf32>
    %cst_30 = arith.constant 0.000000e+00 : f32
    %cst_31 = arith.constant 6.000000e+00 : f32
    %42 = vector.broadcast %cst_30 : f32 to vector<16x144xf32>
    %43 = arith.maximumf %42, %41 : vector<16x144xf32>
    %44 = vector.broadcast %cst_31 : f32 to vector<16x144xf32>
    %45 = arith.minimumf %44, %43 : vector<16x144xf32>
    %46 = arith.mulf %39, %45 : vector<16x144xf32>
    %cst_32 = arith.constant 0.166666672 : f32
    %47 = vector.broadcast %cst_32 : f32 to vector<16x144xf32>
    %48 = arith.mulf %46, %47 : vector<16x144xf32>
    %49 = arith.truncf %48 : vector<16x144xf32> to vector<16x144xbf16>
    %c0_33 = arith.constant 0 : index
    %c0_34 = arith.constant 0 : index
    %c0_35 = arith.constant 0 : index
    %50 = vector.load %arg10[%c0_33, %c0_34, %c0_35] : memref<1x16x144xbf16, #tpu.memory_space<vmem>>, vector<1x16x144xbf16>
    %51 = vector.shape_cast %50 : vector<1x16x144xbf16> to vector<16x144xbf16>
    %52 = vector.shape_cast %49 : vector<16x144xbf16> to vector<1x16x144xbf16>
    tpu.vector_store %arg10[%c0_33, %c0_34, %c0_35], %52 {strides = array<i32>} : memref<1x16x144xbf16, #tpu.memory_space<vmem>>, vector<1x16x144xbf16>,
    %c0_36 = arith.constant 0 : index
    %c0_37 = arith.constant 0 : index
    %c0_38 = arith.constant 0 : index
    %53 = vector.load %arg11[%c0_36, %c0_37, %c0_38] : memref<1x16x48xbf16, #tpu.memory_space<vmem>>, vector<1x16x48xbf16>
    %54 = vector.shape_cast %53 : vector<1x16x48xbf16> to vector<16x48xbf16>
    %55 = vector.shape_cast %34 : vector<16x48xbf16> to vector<1x16x48xbf16>
    tpu.vector_store %arg11[%c0_36, %c0_37, %c0_38], %55 {strides = array<i32>} : memref<1x16x48xbf16, #tpu.memory_space<vmem>>, vector<1x16x48xbf16>,
    return
  }
  func.func @transform_0(%arg0: i32) -> (i32, i32, i32) {
    %c0_i32 = arith.constant 0 : i32
    %c0_i32_0 = arith.constant 0 : i32
    %c0_i32_1 = arith.constant 0 : i32
    return %arg0, %c0_i32, %c0_i32_0 : i32, i32, i32
  }
  func.func @transform_1(%arg0: i32) -> (i32, i32) {
    %c0_i32 = arith.constant 0 : i32
    %c0_i32_0 = arith.constant 0 : i32
    %c0_i32_1 = arith.constant 0 : i32
    return %c0_i32, %c0_i32_0 : i32, i32
  }
  func.func @transform_2(%arg0: i32) -> (i32, i32) {
    %c0_i32 = arith.constant 0 : i32
    %c0_i32_0 = arith.constant 0 : i32
    %c0_i32_1 = arith.constant 0 : i32
    return %c0_i32, %c0_i32_0 : i32, i32
  }
  func.func @transform_3(%arg0: i32) -> (i32, i32) {
    %c0_i32 = arith.constant 0 : i32
    %c0_i32_0 = arith.constant 0 : i32
    %c0_i32_1 = arith.constant 0 : i32
    return %c0_i32, %c0_i32_0 : i32, i32
  }
  func.func @transform_4(%arg0: i32) -> (i32, i32) {
    %c0_i32 = arith.constant 0 : i32
    %c0_i32_0 = arith.constant 0 : i32
    %c0_i32_1 = arith.constant 0 : i32
    return %c0_i32, %c0_i32_0 : i32, i32
  }
  func.func @transform_5(%arg0: i32) -> (i32, i32) {
    %c0_i32 = arith.constant 0 : i32
    %c0_i32_0 = arith.constant 0 : i32
    %c0_i32_1 = arith.constant 0 : i32
    return %c0_i32, %c0_i32_0 : i32, i32
  }
  func.func @transform_6(%arg0: i32) -> (i32, i32) {
    %c0_i32 = arith.constant 0 : i32
    %c0_i32_0 = arith.constant 0 : i32
    %c0_i32_1 = arith.constant 0 : i32
    return %c0_i32, %c0_i32_0 : i32, i32
  }
  func.func @transform_7(%arg0: i32) -> (i32, i32) {
    %c0_i32 = arith.constant 0 : i32
    %c0_i32_0 = arith.constant 0 : i32
    %c0_i32_1 = arith.constant 0 : i32
    return %c0_i32, %c0_i32_0 : i32, i32
  }
  func.func @transform_8(%arg0: i32) -> (i32, i32) {
    %c0_i32 = arith.constant 0 : i32
    %c0_i32_0 = arith.constant 0 : i32
    %c0_i32_1 = arith.constant 0 : i32
    return %c0_i32, %c0_i32_0 : i32, i32
  }
  func.func @transform_9(%arg0: i32) -> (i32, i32, i32) {
    %c0_i32 = arith.constant 0 : i32
    %c0_i32_0 = arith.constant 0 : i32
    %c0_i32_1 = arith.constant 0 : i32
    return %arg0, %c0_i32, %c0_i32_0 : i32, i32, i32
  }
  func.func @transform_10(%arg0: i32) -> (i32, i32, i32) {
    %c0_i32 = arith.constant 0 : i32
    %c0_i32_0 = arith.constant 0 : i32
    %c0_i32_1 = arith.constant 0 : i32
    return %arg0, %c0_i32, %c0_i32_0 : i32, i32, i32
  }
}

module attributes {stable_mosaic.version = 11 : i64} {
  func.func @_tail_expand_kernel(%arg0: i32, %arg1: memref<1x16x144xbf16, #tpu.memory_space<vmem>>, %arg2: memref<144x40xbf16, #tpu.memory_space<vmem>>, %arg3: memref<1x40xf32, #tpu.memory_space<vmem>>, %arg4: memref<40x144xbf16, #tpu.memory_space<vmem>>, %arg5: memref<1x144xf32, #tpu.memory_space<vmem>>, %arg6: memref<144x48xbf16, #tpu.memory_space<vmem>>, %arg7: memref<1x48xf32, #tpu.memory_space<vmem>>, %arg8: memref<1x16x48xbf16, #tpu.memory_space<vmem>>, %arg9: memref<48x288xbf16, #tpu.memory_space<vmem>>, %arg10: memref<1x288xf32, #tpu.memory_space<vmem>>, %arg11: memref<1x16x288xbf16, #tpu.memory_space<vmem>>) attributes {dimension_semantics = [#tpu.dimension_semantics<parallel>], iteration_bounds = array<i64: 2>, scalar_prefetch = 0 : i64, scratch_operands = 0 : i64, tpu.core_type = #tpu.core_type<tc>, window_params = [{transform_indices = @transform_0, window_bounds = array<i64: 1, 16, 144>}, {pipeline_mode = #tpu.pipeline_mode<synchronous>, transform_indices = @transform_1, window_bounds = array<i64: 144, 40>}, {pipeline_mode = #tpu.pipeline_mode<synchronous>, transform_indices = @transform_2, window_bounds = array<i64: 1, 40>}, {pipeline_mode = #tpu.pipeline_mode<synchronous>, transform_indices = @transform_3, window_bounds = array<i64: 40, 144>}, {pipeline_mode = #tpu.pipeline_mode<synchronous>, transform_indices = @transform_4, window_bounds = array<i64: 1, 144>}, {pipeline_mode = #tpu.pipeline_mode<synchronous>, transform_indices = @transform_5, window_bounds = array<i64: 144, 48>}, {pipeline_mode = #tpu.pipeline_mode<synchronous>, transform_indices = @transform_6, window_bounds = array<i64: 1, 48>}, {transform_indices = @transform_7, window_bounds = array<i64: 1, 16, 48>}, {pipeline_mode = #tpu.pipeline_mode<synchronous>, transform_indices = @transform_8, window_bounds = array<i64: 48, 288>}, {pipeline_mode = #tpu.pipeline_mode<synchronous>, transform_indices = @transform_9, window_bounds = array<i64: 1, 288>}, {transform_indices = @transform_10, window_bounds = array<i64: 1, 16, 288>}]} {
    %c0 = arith.constant 0 : index
    %c0_0 = arith.constant 0 : index
    %c0_1 = arith.constant 0 : index
    %0 = vector.load %arg1[%c0, %c0_0, %c0_1] : memref<1x16x144xbf16, #tpu.memory_space<vmem>>, vector<1x16x144xbf16>
    %1 = vector.shape_cast %0 : vector<1x16x144xbf16> to vector<16x144xbf16>
    %cst = arith.constant 1.000000e+00 : bf16
    %2 = vector.broadcast %cst : bf16 to vector<1x16xbf16>
    %cst_2 = arith.constant dense<0.000000e+00> : vector<1x144xf32>
    %3 = tpu.matmul %2, %1, %cst_2 {dimension_numbers = #tpu.dot_dimension_numbers<[1], [0], [0], [1], [0, 0, 1, 1], [], []>} : vector<1x16xbf16>, vector<16x144xbf16>, vector<1x144xf32> -> vector<1x144xf32>
    %cst_3 = arith.constant 6.250000e-02 : f32
    %4 = vector.broadcast %cst_3 : f32 to vector<1x144xf32>
    %5 = arith.mulf %3, %4 : vector<1x144xf32>
    %6 = arith.truncf %5 : vector<1x144xf32> to vector<1x144xbf16>
    %c0_4 = arith.constant 0 : index
    %c0_5 = arith.constant 0 : index
    %7 = vector.load %arg2[%c0_4, %c0_5] : memref<144x40xbf16, #tpu.memory_space<vmem>>, vector<144x40xbf16>
    %cst_6 = arith.constant dense<0.000000e+00> : vector<1x40xf32>
    %8 = tpu.matmul %6, %7, %cst_6 {dimension_numbers = #tpu.dot_dimension_numbers<[1], [0], [0], [1], [0, 0, 1, 1], [], []>} : vector<1x144xbf16>, vector<144x40xbf16>, vector<1x40xf32> -> vector<1x40xf32>
    %c0_7 = arith.constant 0 : index
    %c0_8 = arith.constant 0 : index
    %9 = vector.load %arg3[%c0_7, %c0_8] : memref<1x40xf32, #tpu.memory_space<vmem>>, vector<1x40xf32>
    %10 = arith.addf %8, %9 : vector<1x40xf32>
    %cst_9 = arith.constant 0.000000e+00 : f32
    %11 = vector.broadcast %cst_9 : f32 to vector<1x40xf32>
    %12 = arith.maximumf %10, %11 : vector<1x40xf32>
    %13 = arith.truncf %12 : vector<1x40xf32> to vector<1x40xbf16>
    %c0_10 = arith.constant 0 : index
    %c0_11 = arith.constant 0 : index
    %14 = vector.load %arg4[%c0_10, %c0_11] : memref<40x144xbf16, #tpu.memory_space<vmem>>, vector<40x144xbf16>
    %cst_12 = arith.constant dense<0.000000e+00> : vector<1x144xf32>
    %15 = tpu.matmul %13, %14, %cst_12 {dimension_numbers = #tpu.dot_dimension_numbers<[1], [0], [0], [1], [0, 0, 1, 1], [], []>} : vector<1x40xbf16>, vector<40x144xbf16>, vector<1x144xf32> -> vector<1x144xf32>
    %c0_13 = arith.constant 0 : index
    %c0_14 = arith.constant 0 : index
    %16 = vector.load %arg5[%c0_13, %c0_14] : memref<1x144xf32, #tpu.memory_space<vmem>>, vector<1x144xf32>
    %17 = arith.addf %15, %16 : vector<1x144xf32>
    %cst_15 = arith.constant 3.000000e+00 : f32
    %18 = vector.broadcast %cst_15 : f32 to vector<1x144xf32>
    %19 = arith.addf %17, %18 : vector<1x144xf32>
    %cst_16 = arith.constant 0.000000e+00 : f32
    %cst_17 = arith.constant 6.000000e+00 : f32
    %20 = vector.broadcast %cst_16 : f32 to vector<1x144xf32>
    %21 = arith.maximumf %20, %19 : vector<1x144xf32>
    %22 = vector.broadcast %cst_17 : f32 to vector<1x144xf32>
    %23 = arith.minimumf %22, %21 : vector<1x144xf32>
    %cst_18 = arith.constant 0.166666672 : f32
    %24 = vector.broadcast %cst_18 : f32 to vector<1x144xf32>
    %25 = arith.mulf %23, %24 : vector<1x144xf32>
    %26 = arith.truncf %25 : vector<1x144xf32> to vector<1x144xbf16>
    %27 = vector.broadcast %26 : vector<1x144xbf16> to vector<16x144xbf16>
    %28 = arith.mulf %1, %27 : vector<16x144xbf16>
    %c0_19 = arith.constant 0 : index
    %c0_20 = arith.constant 0 : index
    %29 = vector.load %arg6[%c0_19, %c0_20] : memref<144x48xbf16, #tpu.memory_space<vmem>>, vector<144x48xbf16>
    %cst_21 = arith.constant dense<0.000000e+00> : vector<16x48xf32>
    %30 = tpu.matmul %28, %29, %cst_21 {dimension_numbers = #tpu.dot_dimension_numbers<[1], [0], [0], [1], [0, 0, 1, 1], [], []>} : vector<16x144xbf16>, vector<144x48xbf16>, vector<16x48xf32> -> vector<16x48xf32>
    %c0_22 = arith.constant 0 : index
    %c0_23 = arith.constant 0 : index
    %31 = vector.load %arg7[%c0_22, %c0_23] : memref<1x48xf32, #tpu.memory_space<vmem>>, vector<1x48xf32>
    %32 = vector.broadcast %31 : vector<1x48xf32> to vector<16x48xf32>
    %33 = arith.addf %30, %32 : vector<16x48xf32>
    %c0_24 = arith.constant 0 : index
    %c0_25 = arith.constant 0 : index
    %c0_26 = arith.constant 0 : index
    %34 = vector.load %arg8[%c0_24, %c0_25, %c0_26] : memref<1x16x48xbf16, #tpu.memory_space<vmem>>, vector<1x16x48xbf16>
    %35 = vector.shape_cast %34 : vector<1x16x48xbf16> to vector<16x48xbf16>
    %36 = arith.extf %35 : vector<16x48xbf16> to vector<16x48xf32>
    %37 = arith.addf %33, %36 : vector<16x48xf32>
    %38 = arith.truncf %37 : vector<16x48xf32> to vector<16x48xbf16>
    %c0_27 = arith.constant 0 : index
    %c0_28 = arith.constant 0 : index
    %39 = vector.load %arg9[%c0_27, %c0_28] : memref<48x288xbf16, #tpu.memory_space<vmem>>, vector<48x288xbf16>
    %cst_29 = arith.constant dense<0.000000e+00> : vector<16x288xf32>
    %40 = tpu.matmul %38, %39, %cst_29 {dimension_numbers = #tpu.dot_dimension_numbers<[1], [0], [0], [1], [0, 0, 1, 1], [], []>} : vector<16x48xbf16>, vector<48x288xbf16>, vector<16x288xf32> -> vector<16x288xf32>
    %c0_30 = arith.constant 0 : index
    %c0_31 = arith.constant 0 : index
    %41 = vector.load %arg10[%c0_30, %c0_31] : memref<1x288xf32, #tpu.memory_space<vmem>>, vector<1x288xf32>
    %42 = vector.broadcast %41 : vector<1x288xf32> to vector<16x288xf32>
    %43 = arith.addf %40, %42 : vector<16x288xf32>
    %cst_32 = arith.constant 3.000000e+00 : f32
    %44 = vector.broadcast %cst_32 : f32 to vector<16x288xf32>
    %45 = arith.addf %43, %44 : vector<16x288xf32>
    %cst_33 = arith.constant 0.000000e+00 : f32
    %cst_34 = arith.constant 6.000000e+00 : f32
    %46 = vector.broadcast %cst_33 : f32 to vector<16x288xf32>
    %47 = arith.maximumf %46, %45 : vector<16x288xf32>
    %48 = vector.broadcast %cst_34 : f32 to vector<16x288xf32>
    %49 = arith.minimumf %48, %47 : vector<16x288xf32>
    %50 = arith.mulf %43, %49 : vector<16x288xf32>
    %cst_35 = arith.constant 0.166666672 : f32
    %51 = vector.broadcast %cst_35 : f32 to vector<16x288xf32>
    %52 = arith.mulf %50, %51 : vector<16x288xf32>
    %53 = arith.truncf %52 : vector<16x288xf32> to vector<16x288xbf16>
    %c0_36 = arith.constant 0 : index
    %c0_37 = arith.constant 0 : index
    %c0_38 = arith.constant 0 : index
    %54 = vector.load %arg11[%c0_36, %c0_37, %c0_38] : memref<1x16x288xbf16, #tpu.memory_space<vmem>>, vector<1x16x288xbf16>
    %55 = vector.shape_cast %54 : vector<1x16x288xbf16> to vector<16x288xbf16>
    %56 = vector.shape_cast %53 : vector<16x288xbf16> to vector<1x16x288xbf16>
    tpu.vector_store %arg11[%c0_36, %c0_37, %c0_38], %56 {strides = array<i32>} : memref<1x16x288xbf16, #tpu.memory_space<vmem>>, vector<1x16x288xbf16>,
    return
  }
  func.func @transform_0(%arg0: i32) -> (i32, i32, i32) {
    %c0_i32 = arith.constant 0 : i32
    %c0_i32_0 = arith.constant 0 : i32
    %c0_i32_1 = arith.constant 0 : i32
    return %arg0, %c0_i32, %c0_i32_0 : i32, i32, i32
  }
  func.func @transform_1(%arg0: i32) -> (i32, i32) {
    %c0_i32 = arith.constant 0 : i32
    %c0_i32_0 = arith.constant 0 : i32
    %c0_i32_1 = arith.constant 0 : i32
    return %c0_i32, %c0_i32_0 : i32, i32
  }
  func.func @transform_2(%arg0: i32) -> (i32, i32) {
    %c0_i32 = arith.constant 0 : i32
    %c0_i32_0 = arith.constant 0 : i32
    %c0_i32_1 = arith.constant 0 : i32
    return %c0_i32, %c0_i32_0 : i32, i32
  }
  func.func @transform_3(%arg0: i32) -> (i32, i32) {
    %c0_i32 = arith.constant 0 : i32
    %c0_i32_0 = arith.constant 0 : i32
    %c0_i32_1 = arith.constant 0 : i32
    return %c0_i32, %c0_i32_0 : i32, i32
  }
  func.func @transform_4(%arg0: i32) -> (i32, i32) {
    %c0_i32 = arith.constant 0 : i32
    %c0_i32_0 = arith.constant 0 : i32
    %c0_i32_1 = arith.constant 0 : i32
    return %c0_i32, %c0_i32_0 : i32, i32
  }
  func.func @transform_5(%arg0: i32) -> (i32, i32) {
    %c0_i32 = arith.constant 0 : i32
    %c0_i32_0 = arith.constant 0 : i32
    %c0_i32_1 = arith.constant 0 : i32
    return %c0_i32, %c0_i32_0 : i32, i32
  }
  func.func @transform_6(%arg0: i32) -> (i32, i32) {
    %c0_i32 = arith.constant 0 : i32
    %c0_i32_0 = arith.constant 0 : i32
    %c0_i32_1 = arith.constant 0 : i32
    return %c0_i32, %c0_i32_0 : i32, i32
  }
  func.func @transform_7(%arg0: i32) -> (i32, i32, i32) {
    %c0_i32 = arith.constant 0 : i32
    %c0_i32_0 = arith.constant 0 : i32
    %c0_i32_1 = arith.constant 0 : i32
    return %arg0, %c0_i32, %c0_i32_0 : i32, i32, i32
  }
  func.func @transform_8(%arg0: i32) -> (i32, i32) {
    %c0_i32 = arith.constant 0 : i32
    %c0_i32_0 = arith.constant 0 : i32
    %c0_i32_1 = arith.constant 0 : i32
    return %c0_i32, %c0_i32_0 : i32, i32
  }
  func.func @transform_9(%arg0: i32) -> (i32, i32) {
    %c0_i32 = arith.constant 0 : i32
    %c0_i32_0 = arith.constant 0 : i32
    %c0_i32_1 = arith.constant 0 : i32
    return %c0_i32, %c0_i32_0 : i32, i32
  }
  func.func @transform_10(%arg0: i32) -> (i32, i32, i32) {
    %c0_i32 = arith.constant 0 : i32
    %c0_i32_0 = arith.constant 0 : i32
    %c0_i32_1 = arith.constant 0 : i32
    return %arg0, %c0_i32, %c0_i32_0 : i32, i32, i32
  }
}

module attributes {stable_mosaic.version = 11 : i64} {
  func.func @_tail_expand_kernel(%arg0: i32, %arg1: memref<1x4x288xbf16, #tpu.memory_space<vmem>>, %arg2: memref<288x72xbf16, #tpu.memory_space<vmem>>, %arg3: memref<1x72xf32, #tpu.memory_space<vmem>>, %arg4: memref<72x288xbf16, #tpu.memory_space<vmem>>, %arg5: memref<1x288xf32, #tpu.memory_space<vmem>>, %arg6: memref<288x96xbf16, #tpu.memory_space<vmem>>, %arg7: memref<1x96xf32, #tpu.memory_space<vmem>>, %arg8: memref<96x576xbf16, #tpu.memory_space<vmem>>, %arg9: memref<1x576xf32, #tpu.memory_space<vmem>>, %arg10: memref<1x4x576xbf16, #tpu.memory_space<vmem>>, %arg11: memref<1x4x96xbf16, #tpu.memory_space<vmem>>) attributes {dimension_semantics = [#tpu.dimension_semantics<parallel>], iteration_bounds = array<i64: 2>, scalar_prefetch = 0 : i64, scratch_operands = 0 : i64, tpu.core_type = #tpu.core_type<tc>, window_params = [{transform_indices = @transform_0, window_bounds = array<i64: 1, 4, 288>}, {pipeline_mode = #tpu.pipeline_mode<synchronous>, transform_indices = @transform_1, window_bounds = array<i64: 288, 72>}, {pipeline_mode = #tpu.pipeline_mode<synchronous>, transform_indices = @transform_2, window_bounds = array<i64: 1, 72>}, {pipeline_mode = #tpu.pipeline_mode<synchronous>, transform_indices = @transform_3, window_bounds = array<i64: 72, 288>}, {pipeline_mode = #tpu.pipeline_mode<synchronous>, transform_indices = @transform_4, window_bounds = array<i64: 1, 288>}, {pipeline_mode = #tpu.pipeline_mode<synchronous>, transform_indices = @transform_5, window_bounds = array<i64: 288, 96>}, {pipeline_mode = #tpu.pipeline_mode<synchronous>, transform_indices = @transform_6, window_bounds = array<i64: 1, 96>}, {pipeline_mode = #tpu.pipeline_mode<synchronous>, transform_indices = @transform_7, window_bounds = array<i64: 96, 576>}, {pipeline_mode = #tpu.pipeline_mode<synchronous>, transform_indices = @transform_8, window_bounds = array<i64: 1, 576>}, {transform_indices = @transform_9, window_bounds = array<i64: 1, 4, 576>}, {transform_indices = @transform_10, window_bounds = array<i64: 1, 4, 96>}]} {
    %c0 = arith.constant 0 : index
    %c0_0 = arith.constant 0 : index
    %c0_1 = arith.constant 0 : index
    %0 = vector.load %arg1[%c0, %c0_0, %c0_1] : memref<1x4x288xbf16, #tpu.memory_space<vmem>>, vector<1x4x288xbf16>
    %1 = vector.shape_cast %0 : vector<1x4x288xbf16> to vector<4x288xbf16>
    %cst = arith.constant 1.000000e+00 : bf16
    %2 = vector.broadcast %cst : bf16 to vector<1x4xbf16>
    %cst_2 = arith.constant dense<0.000000e+00> : vector<1x288xf32>
    %3 = tpu.matmul %2, %1, %cst_2 {dimension_numbers = #tpu.dot_dimension_numbers<[1], [0], [0], [1], [0, 0, 1, 1], [], []>} : vector<1x4xbf16>, vector<4x288xbf16>, vector<1x288xf32> -> vector<1x288xf32>
    %cst_3 = arith.constant 2.500000e-01 : f32
    %4 = vector.broadcast %cst_3 : f32 to vector<1x288xf32>
    %5 = arith.mulf %3, %4 : vector<1x288xf32>
    %6 = arith.truncf %5 : vector<1x288xf32> to vector<1x288xbf16>
    %c0_4 = arith.constant 0 : index
    %c0_5 = arith.constant 0 : index
    %7 = vector.load %arg2[%c0_4, %c0_5] : memref<288x72xbf16, #tpu.memory_space<vmem>>, vector<288x72xbf16>
    %cst_6 = arith.constant dense<0.000000e+00> : vector<1x72xf32>
    %8 = tpu.matmul %6, %7, %cst_6 {dimension_numbers = #tpu.dot_dimension_numbers<[1], [0], [0], [1], [0, 0, 1, 1], [], []>} : vector<1x288xbf16>, vector<288x72xbf16>, vector<1x72xf32> -> vector<1x72xf32>
    %c0_7 = arith.constant 0 : index
    %c0_8 = arith.constant 0 : index
    %9 = vector.load %arg3[%c0_7, %c0_8] : memref<1x72xf32, #tpu.memory_space<vmem>>, vector<1x72xf32>
    %10 = arith.addf %8, %9 : vector<1x72xf32>
    %cst_9 = arith.constant 0.000000e+00 : f32
    %11 = vector.broadcast %cst_9 : f32 to vector<1x72xf32>
    %12 = arith.maximumf %10, %11 : vector<1x72xf32>
    %13 = arith.truncf %12 : vector<1x72xf32> to vector<1x72xbf16>
    %c0_10 = arith.constant 0 : index
    %c0_11 = arith.constant 0 : index
    %14 = vector.load %arg4[%c0_10, %c0_11] : memref<72x288xbf16, #tpu.memory_space<vmem>>, vector<72x288xbf16>
    %cst_12 = arith.constant dense<0.000000e+00> : vector<1x288xf32>
    %15 = tpu.matmul %13, %14, %cst_12 {dimension_numbers = #tpu.dot_dimension_numbers<[1], [0], [0], [1], [0, 0, 1, 1], [], []>} : vector<1x72xbf16>, vector<72x288xbf16>, vector<1x288xf32> -> vector<1x288xf32>
    %c0_13 = arith.constant 0 : index
    %c0_14 = arith.constant 0 : index
    %16 = vector.load %arg5[%c0_13, %c0_14] : memref<1x288xf32, #tpu.memory_space<vmem>>, vector<1x288xf32>
    %17 = arith.addf %15, %16 : vector<1x288xf32>
    %cst_15 = arith.constant 3.000000e+00 : f32
    %18 = vector.broadcast %cst_15 : f32 to vector<1x288xf32>
    %19 = arith.addf %17, %18 : vector<1x288xf32>
    %cst_16 = arith.constant 0.000000e+00 : f32
    %cst_17 = arith.constant 6.000000e+00 : f32
    %20 = vector.broadcast %cst_16 : f32 to vector<1x288xf32>
    %21 = arith.maximumf %20, %19 : vector<1x288xf32>
    %22 = vector.broadcast %cst_17 : f32 to vector<1x288xf32>
    %23 = arith.minimumf %22, %21 : vector<1x288xf32>
    %cst_18 = arith.constant 0.166666672 : f32
    %24 = vector.broadcast %cst_18 : f32 to vector<1x288xf32>
    %25 = arith.mulf %23, %24 : vector<1x288xf32>
    %26 = arith.truncf %25 : vector<1x288xf32> to vector<1x288xbf16>
    %27 = vector.broadcast %26 : vector<1x288xbf16> to vector<4x288xbf16>
    %28 = arith.mulf %1, %27 : vector<4x288xbf16>
    %c0_19 = arith.constant 0 : index
    %c0_20 = arith.constant 0 : index
    %29 = vector.load %arg6[%c0_19, %c0_20] : memref<288x96xbf16, #tpu.memory_space<vmem>>, vector<288x96xbf16>
    %cst_21 = arith.constant dense<0.000000e+00> : vector<4x96xf32>
    %30 = tpu.matmul %28, %29, %cst_21 {dimension_numbers = #tpu.dot_dimension_numbers<[1], [0], [0], [1], [0, 0, 1, 1], [], []>} : vector<4x288xbf16>, vector<288x96xbf16>, vector<4x96xf32> -> vector<4x96xf32>
    %c0_22 = arith.constant 0 : index
    %c0_23 = arith.constant 0 : index
    %31 = vector.load %arg7[%c0_22, %c0_23] : memref<1x96xf32, #tpu.memory_space<vmem>>, vector<1x96xf32>
    %32 = vector.broadcast %31 : vector<1x96xf32> to vector<4x96xf32>
    %33 = arith.addf %30, %32 : vector<4x96xf32>
    %34 = arith.truncf %33 : vector<4x96xf32> to vector<4x96xbf16>
    %c0_24 = arith.constant 0 : index
    %c0_25 = arith.constant 0 : index
    %35 = vector.load %arg8[%c0_24, %c0_25] : memref<96x576xbf16, #tpu.memory_space<vmem>>, vector<96x576xbf16>
    %cst_26 = arith.constant dense<0.000000e+00> : vector<4x576xf32>
    %36 = tpu.matmul %34, %35, %cst_26 {dimension_numbers = #tpu.dot_dimension_numbers<[1], [0], [0], [1], [0, 0, 1, 1], [], []>} : vector<4x96xbf16>, vector<96x576xbf16>, vector<4x576xf32> -> vector<4x576xf32>
    %c0_27 = arith.constant 0 : index
    %c0_28 = arith.constant 0 : index
    %37 = vector.load %arg9[%c0_27, %c0_28] : memref<1x576xf32, #tpu.memory_space<vmem>>, vector<1x576xf32>
    %38 = vector.broadcast %37 : vector<1x576xf32> to vector<4x576xf32>
    %39 = arith.addf %36, %38 : vector<4x576xf32>
    %cst_29 = arith.constant 3.000000e+00 : f32
    %40 = vector.broadcast %cst_29 : f32 to vector<4x576xf32>
    %41 = arith.addf %39, %40 : vector<4x576xf32>
    %cst_30 = arith.constant 0.000000e+00 : f32
    %cst_31 = arith.constant 6.000000e+00 : f32
    %42 = vector.broadcast %cst_30 : f32 to vector<4x576xf32>
    %43 = arith.maximumf %42, %41 : vector<4x576xf32>
    %44 = vector.broadcast %cst_31 : f32 to vector<4x576xf32>
    %45 = arith.minimumf %44, %43 : vector<4x576xf32>
    %46 = arith.mulf %39, %45 : vector<4x576xf32>
    %cst_32 = arith.constant 0.166666672 : f32
    %47 = vector.broadcast %cst_32 : f32 to vector<4x576xf32>
    %48 = arith.mulf %46, %47 : vector<4x576xf32>
    %49 = arith.truncf %48 : vector<4x576xf32> to vector<4x576xbf16>
    %c0_33 = arith.constant 0 : index
    %c0_34 = arith.constant 0 : index
    %c0_35 = arith.constant 0 : index
    %50 = vector.load %arg10[%c0_33, %c0_34, %c0_35] : memref<1x4x576xbf16, #tpu.memory_space<vmem>>, vector<1x4x576xbf16>
    %51 = vector.shape_cast %50 : vector<1x4x576xbf16> to vector<4x576xbf16>
    %52 = vector.shape_cast %49 : vector<4x576xbf16> to vector<1x4x576xbf16>
    tpu.vector_store %arg10[%c0_33, %c0_34, %c0_35], %52 {strides = array<i32>} : memref<1x4x576xbf16, #tpu.memory_space<vmem>>, vector<1x4x576xbf16>,
    %c0_36 = arith.constant 0 : index
    %c0_37 = arith.constant 0 : index
    %c0_38 = arith.constant 0 : index
    %53 = vector.load %arg11[%c0_36, %c0_37, %c0_38] : memref<1x4x96xbf16, #tpu.memory_space<vmem>>, vector<1x4x96xbf16>
    %54 = vector.shape_cast %53 : vector<1x4x96xbf16> to vector<4x96xbf16>
    %55 = vector.shape_cast %34 : vector<4x96xbf16> to vector<1x4x96xbf16>
    tpu.vector_store %arg11[%c0_36, %c0_37, %c0_38], %55 {strides = array<i32>} : memref<1x4x96xbf16, #tpu.memory_space<vmem>>, vector<1x4x96xbf16>,
    return
  }
  func.func @transform_0(%arg0: i32) -> (i32, i32, i32) {
    %c0_i32 = arith.constant 0 : i32
    %c0_i32_0 = arith.constant 0 : i32
    %c0_i32_1 = arith.constant 0 : i32
    return %arg0, %c0_i32, %c0_i32_0 : i32, i32, i32
  }
  func.func @transform_1(%arg0: i32) -> (i32, i32) {
    %c0_i32 = arith.constant 0 : i32
    %c0_i32_0 = arith.constant 0 : i32
    %c0_i32_1 = arith.constant 0 : i32
    return %c0_i32, %c0_i32_0 : i32, i32
  }
  func.func @transform_2(%arg0: i32) -> (i32, i32) {
    %c0_i32 = arith.constant 0 : i32
    %c0_i32_0 = arith.constant 0 : i32
    %c0_i32_1 = arith.constant 0 : i32
    return %c0_i32, %c0_i32_0 : i32, i32
  }
  func.func @transform_3(%arg0: i32) -> (i32, i32) {
    %c0_i32 = arith.constant 0 : i32
    %c0_i32_0 = arith.constant 0 : i32
    %c0_i32_1 = arith.constant 0 : i32
    return %c0_i32, %c0_i32_0 : i32, i32
  }
  func.func @transform_4(%arg0: i32) -> (i32, i32) {
    %c0_i32 = arith.constant 0 : i32
    %c0_i32_0 = arith.constant 0 : i32
    %c0_i32_1 = arith.constant 0 : i32
    return %c0_i32, %c0_i32_0 : i32, i32
  }
  func.func @transform_5(%arg0: i32) -> (i32, i32) {
    %c0_i32 = arith.constant 0 : i32
    %c0_i32_0 = arith.constant 0 : i32
    %c0_i32_1 = arith.constant 0 : i32
    return %c0_i32, %c0_i32_0 : i32, i32
  }
  func.func @transform_6(%arg0: i32) -> (i32, i32) {
    %c0_i32 = arith.constant 0 : i32
    %c0_i32_0 = arith.constant 0 : i32
    %c0_i32_1 = arith.constant 0 : i32
    return %c0_i32, %c0_i32_0 : i32, i32
  }
  func.func @transform_7(%arg0: i32) -> (i32, i32) {
    %c0_i32 = arith.constant 0 : i32
    %c0_i32_0 = arith.constant 0 : i32
    %c0_i32_1 = arith.constant 0 : i32
    return %c0_i32, %c0_i32_0 : i32, i32
  }
  func.func @transform_8(%arg0: i32) -> (i32, i32) {
    %c0_i32 = arith.constant 0 : i32
    %c0_i32_0 = arith.constant 0 : i32
    %c0_i32_1 = arith.constant 0 : i32
    return %c0_i32, %c0_i32_0 : i32, i32
  }
  func.func @transform_9(%arg0: i32) -> (i32, i32, i32) {
    %c0_i32 = arith.constant 0 : i32
    %c0_i32_0 = arith.constant 0 : i32
    %c0_i32_1 = arith.constant 0 : i32
    return %arg0, %c0_i32, %c0_i32_0 : i32, i32, i32
  }
  func.func @transform_10(%arg0: i32) -> (i32, i32, i32) {
    %c0_i32 = arith.constant 0 : i32
    %c0_i32_0 = arith.constant 0 : i32
    %c0_i32_1 = arith.constant 0 : i32
    return %arg0, %c0_i32, %c0_i32_0 : i32, i32, i32
  }
}

module attributes {stable_mosaic.version = 11 : i64} {
  func.func @_tail_expand_kernel(%arg0: i32, %arg1: memref<1x4x576xbf16, #tpu.memory_space<vmem>>, %arg2: memref<576x144xbf16, #tpu.memory_space<vmem>>, %arg3: memref<1x144xf32, #tpu.memory_space<vmem>>, %arg4: memref<144x576xbf16, #tpu.memory_space<vmem>>, %arg5: memref<1x576xf32, #tpu.memory_space<vmem>>, %arg6: memref<576x96xbf16, #tpu.memory_space<vmem>>, %arg7: memref<1x96xf32, #tpu.memory_space<vmem>>, %arg8: memref<1x4x96xbf16, #tpu.memory_space<vmem>>, %arg9: memref<96x576xbf16, #tpu.memory_space<vmem>>, %arg10: memref<1x576xf32, #tpu.memory_space<vmem>>, %arg11: memref<1x4x576xbf16, #tpu.memory_space<vmem>>, %arg12: memref<1x4x96xbf16, #tpu.memory_space<vmem>>) attributes {dimension_semantics = [#tpu.dimension_semantics<parallel>], iteration_bounds = array<i64: 2>, scalar_prefetch = 0 : i64, scratch_operands = 0 : i64, tpu.core_type = #tpu.core_type<tc>, window_params = [{transform_indices = @transform_0, window_bounds = array<i64: 1, 4, 576>}, {pipeline_mode = #tpu.pipeline_mode<synchronous>, transform_indices = @transform_1, window_bounds = array<i64: 576, 144>}, {pipeline_mode = #tpu.pipeline_mode<synchronous>, transform_indices = @transform_2, window_bounds = array<i64: 1, 144>}, {pipeline_mode = #tpu.pipeline_mode<synchronous>, transform_indices = @transform_3, window_bounds = array<i64: 144, 576>}, {pipeline_mode = #tpu.pipeline_mode<synchronous>, transform_indices = @transform_4, window_bounds = array<i64: 1, 576>}, {pipeline_mode = #tpu.pipeline_mode<synchronous>, transform_indices = @transform_5, window_bounds = array<i64: 576, 96>}, {pipeline_mode = #tpu.pipeline_mode<synchronous>, transform_indices = @transform_6, window_bounds = array<i64: 1, 96>}, {transform_indices = @transform_7, window_bounds = array<i64: 1, 4, 96>}, {pipeline_mode = #tpu.pipeline_mode<synchronous>, transform_indices = @transform_8, window_bounds = array<i64: 96, 576>}, {pipeline_mode = #tpu.pipeline_mode<synchronous>, transform_indices = @transform_9, window_bounds = array<i64: 1, 576>}, {transform_indices = @transform_10, window_bounds = array<i64: 1, 4, 576>}, {transform_indices = @transform_11, window_bounds = array<i64: 1, 4, 96>}]} {
    %c0 = arith.constant 0 : index
    %c0_0 = arith.constant 0 : index
    %c0_1 = arith.constant 0 : index
    %0 = vector.load %arg1[%c0, %c0_0, %c0_1] : memref<1x4x576xbf16, #tpu.memory_space<vmem>>, vector<1x4x576xbf16>
    %1 = vector.shape_cast %0 : vector<1x4x576xbf16> to vector<4x576xbf16>
    %cst = arith.constant 1.000000e+00 : bf16
    %2 = vector.broadcast %cst : bf16 to vector<1x4xbf16>
    %cst_2 = arith.constant dense<0.000000e+00> : vector<1x576xf32>
    %3 = tpu.matmul %2, %1, %cst_2 {dimension_numbers = #tpu.dot_dimension_numbers<[1], [0], [0], [1], [0, 0, 1, 1], [], []>} : vector<1x4xbf16>, vector<4x576xbf16>, vector<1x576xf32> -> vector<1x576xf32>
    %cst_3 = arith.constant 2.500000e-01 : f32
    %4 = vector.broadcast %cst_3 : f32 to vector<1x576xf32>
    %5 = arith.mulf %3, %4 : vector<1x576xf32>
    %6 = arith.truncf %5 : vector<1x576xf32> to vector<1x576xbf16>
    %c0_4 = arith.constant 0 : index
    %c0_5 = arith.constant 0 : index
    %7 = vector.load %arg2[%c0_4, %c0_5] : memref<576x144xbf16, #tpu.memory_space<vmem>>, vector<576x144xbf16>
    %cst_6 = arith.constant dense<0.000000e+00> : vector<1x144xf32>
    %8 = tpu.matmul %6, %7, %cst_6 {dimension_numbers = #tpu.dot_dimension_numbers<[1], [0], [0], [1], [0, 0, 1, 1], [], []>} : vector<1x576xbf16>, vector<576x144xbf16>, vector<1x144xf32> -> vector<1x144xf32>
    %c0_7 = arith.constant 0 : index
    %c0_8 = arith.constant 0 : index
    %9 = vector.load %arg3[%c0_7, %c0_8] : memref<1x144xf32, #tpu.memory_space<vmem>>, vector<1x144xf32>
    %10 = arith.addf %8, %9 : vector<1x144xf32>
    %cst_9 = arith.constant 0.000000e+00 : f32
    %11 = vector.broadcast %cst_9 : f32 to vector<1x144xf32>
    %12 = arith.maximumf %10, %11 : vector<1x144xf32>
    %13 = arith.truncf %12 : vector<1x144xf32> to vector<1x144xbf16>
    %c0_10 = arith.constant 0 : index
    %c0_11 = arith.constant 0 : index
    %14 = vector.load %arg4[%c0_10, %c0_11] : memref<144x576xbf16, #tpu.memory_space<vmem>>, vector<144x576xbf16>
    %cst_12 = arith.constant dense<0.000000e+00> : vector<1x576xf32>
    %15 = tpu.matmul %13, %14, %cst_12 {dimension_numbers = #tpu.dot_dimension_numbers<[1], [0], [0], [1], [0, 0, 1, 1], [], []>} : vector<1x144xbf16>, vector<144x576xbf16>, vector<1x576xf32> -> vector<1x576xf32>
    %c0_13 = arith.constant 0 : index
    %c0_14 = arith.constant 0 : index
    %16 = vector.load %arg5[%c0_13, %c0_14] : memref<1x576xf32, #tpu.memory_space<vmem>>, vector<1x576xf32>
    %17 = arith.addf %15, %16 : vector<1x576xf32>
    %cst_15 = arith.constant 3.000000e+00 : f32
    %18 = vector.broadcast %cst_15 : f32 to vector<1x576xf32>
    %19 = arith.addf %17, %18 : vector<1x576xf32>
    %cst_16 = arith.constant 0.000000e+00 : f32
    %cst_17 = arith.constant 6.000000e+00 : f32
    %20 = vector.broadcast %cst_16 : f32 to vector<1x576xf32>
    %21 = arith.maximumf %20, %19 : vector<1x576xf32>
    %22 = vector.broadcast %cst_17 : f32 to vector<1x576xf32>
    %23 = arith.minimumf %22, %21 : vector<1x576xf32>
    %cst_18 = arith.constant 0.166666672 : f32
    %24 = vector.broadcast %cst_18 : f32 to vector<1x576xf32>
    %25 = arith.mulf %23, %24 : vector<1x576xf32>
    %26 = arith.truncf %25 : vector<1x576xf32> to vector<1x576xbf16>
    %27 = vector.broadcast %26 : vector<1x576xbf16> to vector<4x576xbf16>
    %28 = arith.mulf %1, %27 : vector<4x576xbf16>
    %c0_19 = arith.constant 0 : index
    %c0_20 = arith.constant 0 : index
    %29 = vector.load %arg6[%c0_19, %c0_20] : memref<576x96xbf16, #tpu.memory_space<vmem>>, vector<576x96xbf16>
    %cst_21 = arith.constant dense<0.000000e+00> : vector<4x96xf32>
    %30 = tpu.matmul %28, %29, %cst_21 {dimension_numbers = #tpu.dot_dimension_numbers<[1], [0], [0], [1], [0, 0, 1, 1], [], []>} : vector<4x576xbf16>, vector<576x96xbf16>, vector<4x96xf32> -> vector<4x96xf32>
    %c0_22 = arith.constant 0 : index
    %c0_23 = arith.constant 0 : index
    %31 = vector.load %arg7[%c0_22, %c0_23] : memref<1x96xf32, #tpu.memory_space<vmem>>, vector<1x96xf32>
    %32 = vector.broadcast %31 : vector<1x96xf32> to vector<4x96xf32>
    %33 = arith.addf %30, %32 : vector<4x96xf32>
    %c0_24 = arith.constant 0 : index
    %c0_25 = arith.constant 0 : index
    %c0_26 = arith.constant 0 : index
    %34 = vector.load %arg8[%c0_24, %c0_25, %c0_26] : memref<1x4x96xbf16, #tpu.memory_space<vmem>>, vector<1x4x96xbf16>
    %35 = vector.shape_cast %34 : vector<1x4x96xbf16> to vector<4x96xbf16>
    %36 = arith.extf %35 : vector<4x96xbf16> to vector<4x96xf32>
    %37 = arith.addf %33, %36 : vector<4x96xf32>
    %38 = arith.truncf %37 : vector<4x96xf32> to vector<4x96xbf16>
    %c0_27 = arith.constant 0 : index
    %c0_28 = arith.constant 0 : index
    %39 = vector.load %arg9[%c0_27, %c0_28] : memref<96x576xbf16, #tpu.memory_space<vmem>>, vector<96x576xbf16>
    %cst_29 = arith.constant dense<0.000000e+00> : vector<4x576xf32>
    %40 = tpu.matmul %38, %39, %cst_29 {dimension_numbers = #tpu.dot_dimension_numbers<[1], [0], [0], [1], [0, 0, 1, 1], [], []>} : vector<4x96xbf16>, vector<96x576xbf16>, vector<4x576xf32> -> vector<4x576xf32>
    %c0_30 = arith.constant 0 : index
    %c0_31 = arith.constant 0 : index
    %41 = vector.load %arg10[%c0_30, %c0_31] : memref<1x576xf32, #tpu.memory_space<vmem>>, vector<1x576xf32>
    %42 = vector.broadcast %41 : vector<1x576xf32> to vector<4x576xf32>
    %43 = arith.addf %40, %42 : vector<4x576xf32>
    %cst_32 = arith.constant 3.000000e+00 : f32
    %44 = vector.broadcast %cst_32 : f32 to vector<4x576xf32>
    %45 = arith.addf %43, %44 : vector<4x576xf32>
    %cst_33 = arith.constant 0.000000e+00 : f32
    %cst_34 = arith.constant 6.000000e+00 : f32
    %46 = vector.broadcast %cst_33 : f32 to vector<4x576xf32>
    %47 = arith.maximumf %46, %45 : vector<4x576xf32>
    %48 = vector.broadcast %cst_34 : f32 to vector<4x576xf32>
    %49 = arith.minimumf %48, %47 : vector<4x576xf32>
    %50 = arith.mulf %43, %49 : vector<4x576xf32>
    %cst_35 = arith.constant 0.166666672 : f32
    %51 = vector.broadcast %cst_35 : f32 to vector<4x576xf32>
    %52 = arith.mulf %50, %51 : vector<4x576xf32>
    %53 = arith.truncf %52 : vector<4x576xf32> to vector<4x576xbf16>
    %c0_36 = arith.constant 0 : index
    %c0_37 = arith.constant 0 : index
    %c0_38 = arith.constant 0 : index
    %54 = vector.load %arg11[%c0_36, %c0_37, %c0_38] : memref<1x4x576xbf16, #tpu.memory_space<vmem>>, vector<1x4x576xbf16>
    %55 = vector.shape_cast %54 : vector<1x4x576xbf16> to vector<4x576xbf16>
    %56 = vector.shape_cast %53 : vector<4x576xbf16> to vector<1x4x576xbf16>
    tpu.vector_store %arg11[%c0_36, %c0_37, %c0_38], %56 {strides = array<i32>} : memref<1x4x576xbf16, #tpu.memory_space<vmem>>, vector<1x4x576xbf16>,
    %c0_39 = arith.constant 0 : index
    %c0_40 = arith.constant 0 : index
    %c0_41 = arith.constant 0 : index
    %57 = vector.load %arg12[%c0_39, %c0_40, %c0_41] : memref<1x4x96xbf16, #tpu.memory_space<vmem>>, vector<1x4x96xbf16>
    %58 = vector.shape_cast %57 : vector<1x4x96xbf16> to vector<4x96xbf16>
    %59 = vector.shape_cast %38 : vector<4x96xbf16> to vector<1x4x96xbf16>
    tpu.vector_store %arg12[%c0_39, %c0_40, %c0_41], %59 {strides = array<i32>} : memref<1x4x96xbf16, #tpu.memory_space<vmem>>, vector<1x4x96xbf16>,
    return
  }
  func.func @transform_0(%arg0: i32) -> (i32, i32, i32) {
    %c0_i32 = arith.constant 0 : i32
    %c0_i32_0 = arith.constant 0 : i32
    %c0_i32_1 = arith.constant 0 : i32
    return %arg0, %c0_i32, %c0_i32_0 : i32, i32, i32
  }
  func.func @transform_1(%arg0: i32) -> (i32, i32) {
    %c0_i32 = arith.constant 0 : i32
    %c0_i32_0 = arith.constant 0 : i32
    %c0_i32_1 = arith.constant 0 : i32
    return %c0_i32, %c0_i32_0 : i32, i32
  }
  func.func @transform_2(%arg0: i32) -> (i32, i32) {
    %c0_i32 = arith.constant 0 : i32
    %c0_i32_0 = arith.constant 0 : i32
    %c0_i32_1 = arith.constant 0 : i32
    return %c0_i32, %c0_i32_0 : i32, i32
  }
  func.func @transform_3(%arg0: i32) -> (i32, i32) {
    %c0_i32 = arith.constant 0 : i32
    %c0_i32_0 = arith.constant 0 : i32
    %c0_i32_1 = arith.constant 0 : i32
    return %c0_i32, %c0_i32_0 : i32, i32
  }
  func.func @transform_4(%arg0: i32) -> (i32, i32) {
    %c0_i32 = arith.constant 0 : i32
    %c0_i32_0 = arith.constant 0 : i32
    %c0_i32_1 = arith.constant 0 : i32
    return %c0_i32, %c0_i32_0 : i32, i32
  }
  func.func @transform_5(%arg0: i32) -> (i32, i32) {
    %c0_i32 = arith.constant 0 : i32
    %c0_i32_0 = arith.constant 0 : i32
    %c0_i32_1 = arith.constant 0 : i32
    return %c0_i32, %c0_i32_0 : i32, i32
  }
  func.func @transform_6(%arg0: i32) -> (i32, i32) {
    %c0_i32 = arith.constant 0 : i32
    %c0_i32_0 = arith.constant 0 : i32
    %c0_i32_1 = arith.constant 0 : i32
    return %c0_i32, %c0_i32_0 : i32, i32
  }
  func.func @transform_7(%arg0: i32) -> (i32, i32, i32) {
    %c0_i32 = arith.constant 0 : i32
    %c0_i32_0 = arith.constant 0 : i32
    %c0_i32_1 = arith.constant 0 : i32
    return %arg0, %c0_i32, %c0_i32_0 : i32, i32, i32
  }
  func.func @transform_8(%arg0: i32) -> (i32, i32) {
    %c0_i32 = arith.constant 0 : i32
    %c0_i32_0 = arith.constant 0 : i32
    %c0_i32_1 = arith.constant 0 : i32
    return %c0_i32, %c0_i32_0 : i32, i32
  }
  func.func @transform_9(%arg0: i32) -> (i32, i32) {
    %c0_i32 = arith.constant 0 : i32
    %c0_i32_0 = arith.constant 0 : i32
    %c0_i32_1 = arith.constant 0 : i32
    return %c0_i32, %c0_i32_0 : i32, i32
  }
  func.func @transform_10(%arg0: i32) -> (i32, i32, i32) {
    %c0_i32 = arith.constant 0 : i32
    %c0_i32_0 = arith.constant 0 : i32
    %c0_i32_1 = arith.constant 0 : i32
    return %arg0, %c0_i32, %c0_i32_0 : i32, i32, i32
  }
  func.func @transform_11(%arg0: i32) -> (i32, i32, i32) {
    %c0_i32 = arith.constant 0 : i32
    %c0_i32_0 = arith.constant 0 : i32
    %c0_i32_1 = arith.constant 0 : i32
    return %arg0, %c0_i32, %c0_i32_0 : i32, i32, i32
  }
}

module attributes {stable_mosaic.version = 11 : i64} {
  func.func @_tail_head_kernel(%arg0: i32, %arg1: memref<1x4x576xbf16, #tpu.memory_space<vmem>>, %arg2: memref<576x144xbf16, #tpu.memory_space<vmem>>, %arg3: memref<1x144xf32, #tpu.memory_space<vmem>>, %arg4: memref<144x576xbf16, #tpu.memory_space<vmem>>, %arg5: memref<1x576xf32, #tpu.memory_space<vmem>>, %arg6: memref<576x96xbf16, #tpu.memory_space<vmem>>, %arg7: memref<1x96xf32, #tpu.memory_space<vmem>>, %arg8: memref<1x4x96xbf16, #tpu.memory_space<vmem>>, %arg9: memref<96x576xbf16, #tpu.memory_space<vmem>>, %arg10: memref<1x576xf32, #tpu.memory_space<vmem>>, %arg11: memref<576x256xf32, #tpu.memory_space<vmem>>, %arg12: memref<1x256xf32, #tpu.memory_space<vmem>>, %arg13: memref<256x2xf32, #tpu.memory_space<vmem>>, %arg14: memref<1x2xf32, #tpu.memory_space<vmem>>, %arg15: memref<1x1x2xf32, #tpu.memory_space<vmem>>) attributes {dimension_semantics = [#tpu.dimension_semantics<parallel>], iteration_bounds = array<i64: 2>, scalar_prefetch = 0 : i64, scratch_operands = 0 : i64, tpu.core_type = #tpu.core_type<tc>, window_params = [{transform_indices = @transform_0, window_bounds = array<i64: 1, 4, 576>}, {pipeline_mode = #tpu.pipeline_mode<synchronous>, transform_indices = @transform_1, window_bounds = array<i64: 576, 144>}, {pipeline_mode = #tpu.pipeline_mode<synchronous>, transform_indices = @transform_2, window_bounds = array<i64: 1, 144>}, {pipeline_mode = #tpu.pipeline_mode<synchronous>, transform_indices = @transform_3, window_bounds = array<i64: 144, 576>}, {pipeline_mode = #tpu.pipeline_mode<synchronous>, transform_indices = @transform_4, window_bounds = array<i64: 1, 576>}, {pipeline_mode = #tpu.pipeline_mode<synchronous>, transform_indices = @transform_5, window_bounds = array<i64: 576, 96>}, {pipeline_mode = #tpu.pipeline_mode<synchronous>, transform_indices = @transform_6, window_bounds = array<i64: 1, 96>}, {transform_indices = @transform_7, window_bounds = array<i64: 1, 4, 96>}, {pipeline_mode = #tpu.pipeline_mode<synchronous>, transform_indices = @transform_8, window_bounds = array<i64: 96, 576>}, {pipeline_mode = #tpu.pipeline_mode<synchronous>, transform_indices = @transform_9, window_bounds = array<i64: 1, 576>}, {pipeline_mode = #tpu.pipeline_mode<synchronous>, transform_indices = @transform_10, window_bounds = array<i64: 576, 256>}, {pipeline_mode = #tpu.pipeline_mode<synchronous>, transform_indices = @transform_11, window_bounds = array<i64: 1, 256>}, {pipeline_mode = #tpu.pipeline_mode<synchronous>, transform_indices = @transform_12, window_bounds = array<i64: 256, 2>}, {pipeline_mode = #tpu.pipeline_mode<synchronous>, transform_indices = @transform_13, window_bounds = array<i64: 1, 2>}, {transform_indices = @transform_14, window_bounds = array<i64: 1, 1, 2>}]} {
    %c0 = arith.constant 0 : index
    %c0_0 = arith.constant 0 : index
    %c0_1 = arith.constant 0 : index
    %0 = vector.load %arg1[%c0, %c0_0, %c0_1] : memref<1x4x576xbf16, #tpu.memory_space<vmem>>, vector<1x4x576xbf16>
    %1 = vector.shape_cast %0 : vector<1x4x576xbf16> to vector<4x576xbf16>
    %cst = arith.constant 1.000000e+00 : bf16
    %2 = vector.broadcast %cst : bf16 to vector<1x4xbf16>
    %cst_2 = arith.constant dense<0.000000e+00> : vector<1x576xf32>
    %3 = tpu.matmul %2, %1, %cst_2 {dimension_numbers = #tpu.dot_dimension_numbers<[1], [0], [0], [1], [0, 0, 1, 1], [], []>} : vector<1x4xbf16>, vector<4x576xbf16>, vector<1x576xf32> -> vector<1x576xf32>
    %cst_3 = arith.constant 2.500000e-01 : f32
    %4 = vector.broadcast %cst_3 : f32 to vector<1x576xf32>
    %5 = arith.mulf %3, %4 : vector<1x576xf32>
    %6 = arith.truncf %5 : vector<1x576xf32> to vector<1x576xbf16>
    %c0_4 = arith.constant 0 : index
    %c0_5 = arith.constant 0 : index
    %7 = vector.load %arg2[%c0_4, %c0_5] : memref<576x144xbf16, #tpu.memory_space<vmem>>, vector<576x144xbf16>
    %cst_6 = arith.constant dense<0.000000e+00> : vector<1x144xf32>
    %8 = tpu.matmul %6, %7, %cst_6 {dimension_numbers = #tpu.dot_dimension_numbers<[1], [0], [0], [1], [0, 0, 1, 1], [], []>} : vector<1x576xbf16>, vector<576x144xbf16>, vector<1x144xf32> -> vector<1x144xf32>
    %c0_7 = arith.constant 0 : index
    %c0_8 = arith.constant 0 : index
    %9 = vector.load %arg3[%c0_7, %c0_8] : memref<1x144xf32, #tpu.memory_space<vmem>>, vector<1x144xf32>
    %10 = arith.addf %8, %9 : vector<1x144xf32>
    %cst_9 = arith.constant 0.000000e+00 : f32
    %11 = vector.broadcast %cst_9 : f32 to vector<1x144xf32>
    %12 = arith.maximumf %10, %11 : vector<1x144xf32>
    %13 = arith.truncf %12 : vector<1x144xf32> to vector<1x144xbf16>
    %c0_10 = arith.constant 0 : index
    %c0_11 = arith.constant 0 : index
    %14 = vector.load %arg4[%c0_10, %c0_11] : memref<144x576xbf16, #tpu.memory_space<vmem>>, vector<144x576xbf16>
    %cst_12 = arith.constant dense<0.000000e+00> : vector<1x576xf32>
    %15 = tpu.matmul %13, %14, %cst_12 {dimension_numbers = #tpu.dot_dimension_numbers<[1], [0], [0], [1], [0, 0, 1, 1], [], []>} : vector<1x144xbf16>, vector<144x576xbf16>, vector<1x576xf32> -> vector<1x576xf32>
    %c0_13 = arith.constant 0 : index
    %c0_14 = arith.constant 0 : index
    %16 = vector.load %arg5[%c0_13, %c0_14] : memref<1x576xf32, #tpu.memory_space<vmem>>, vector<1x576xf32>
    %17 = arith.addf %15, %16 : vector<1x576xf32>
    %cst_15 = arith.constant 3.000000e+00 : f32
    %18 = vector.broadcast %cst_15 : f32 to vector<1x576xf32>
    %19 = arith.addf %17, %18 : vector<1x576xf32>
    %cst_16 = arith.constant 0.000000e+00 : f32
    %cst_17 = arith.constant 6.000000e+00 : f32
    %20 = vector.broadcast %cst_16 : f32 to vector<1x576xf32>
    %21 = arith.maximumf %20, %19 : vector<1x576xf32>
    %22 = vector.broadcast %cst_17 : f32 to vector<1x576xf32>
    %23 = arith.minimumf %22, %21 : vector<1x576xf32>
    %cst_18 = arith.constant 0.166666672 : f32
    %24 = vector.broadcast %cst_18 : f32 to vector<1x576xf32>
    %25 = arith.mulf %23, %24 : vector<1x576xf32>
    %26 = arith.truncf %25 : vector<1x576xf32> to vector<1x576xbf16>
    %27 = vector.broadcast %26 : vector<1x576xbf16> to vector<4x576xbf16>
    %28 = arith.mulf %1, %27 : vector<4x576xbf16>
    %c0_19 = arith.constant 0 : index
    %c0_20 = arith.constant 0 : index
    %29 = vector.load %arg6[%c0_19, %c0_20] : memref<576x96xbf16, #tpu.memory_space<vmem>>, vector<576x96xbf16>
    %cst_21 = arith.constant dense<0.000000e+00> : vector<4x96xf32>
    %30 = tpu.matmul %28, %29, %cst_21 {dimension_numbers = #tpu.dot_dimension_numbers<[1], [0], [0], [1], [0, 0, 1, 1], [], []>} : vector<4x576xbf16>, vector<576x96xbf16>, vector<4x96xf32> -> vector<4x96xf32>
    %c0_22 = arith.constant 0 : index
    %c0_23 = arith.constant 0 : index
    %31 = vector.load %arg7[%c0_22, %c0_23] : memref<1x96xf32, #tpu.memory_space<vmem>>, vector<1x96xf32>
    %32 = vector.broadcast %31 : vector<1x96xf32> to vector<4x96xf32>
    %33 = arith.addf %30, %32 : vector<4x96xf32>
    %c0_24 = arith.constant 0 : index
    %c0_25 = arith.constant 0 : index
    %c0_26 = arith.constant 0 : index
    %34 = vector.load %arg8[%c0_24, %c0_25, %c0_26] : memref<1x4x96xbf16, #tpu.memory_space<vmem>>, vector<1x4x96xbf16>
    %35 = vector.shape_cast %34 : vector<1x4x96xbf16> to vector<4x96xbf16>
    %36 = arith.extf %35 : vector<4x96xbf16> to vector<4x96xf32>
    %37 = arith.addf %33, %36 : vector<4x96xf32>
    %38 = arith.truncf %37 : vector<4x96xf32> to vector<4x96xbf16>
    %c0_27 = arith.constant 0 : index
    %c0_28 = arith.constant 0 : index
    %39 = vector.load %arg9[%c0_27, %c0_28] : memref<96x576xbf16, #tpu.memory_space<vmem>>, vector<96x576xbf16>
    %cst_29 = arith.constant dense<0.000000e+00> : vector<4x576xf32>
    %40 = tpu.matmul %38, %39, %cst_29 {dimension_numbers = #tpu.dot_dimension_numbers<[1], [0], [0], [1], [0, 0, 1, 1], [], []>} : vector<4x96xbf16>, vector<96x576xbf16>, vector<4x576xf32> -> vector<4x576xf32>
    %c0_30 = arith.constant 0 : index
    %c0_31 = arith.constant 0 : index
    %41 = vector.load %arg10[%c0_30, %c0_31] : memref<1x576xf32, #tpu.memory_space<vmem>>, vector<1x576xf32>
    %42 = vector.broadcast %41 : vector<1x576xf32> to vector<4x576xf32>
    %43 = arith.addf %40, %42 : vector<4x576xf32>
    %cst_32 = arith.constant 3.000000e+00 : f32
    %44 = vector.broadcast %cst_32 : f32 to vector<4x576xf32>
    %45 = arith.addf %43, %44 : vector<4x576xf32>
    %cst_33 = arith.constant 0.000000e+00 : f32
    %cst_34 = arith.constant 6.000000e+00 : f32
    %46 = vector.broadcast %cst_33 : f32 to vector<4x576xf32>
    %47 = arith.maximumf %46, %45 : vector<4x576xf32>
    %48 = vector.broadcast %cst_34 : f32 to vector<4x576xf32>
    %49 = arith.minimumf %48, %47 : vector<4x576xf32>
    %50 = arith.mulf %43, %49 : vector<4x576xf32>
    %cst_35 = arith.constant 0.166666672 : f32
    %51 = vector.broadcast %cst_35 : f32 to vector<4x576xf32>
    %52 = arith.mulf %50, %51 : vector<4x576xf32>
    %cst_36 = arith.constant dense<0.000000e+00> : vector<576xf32>
    %53 = vector.multi_reduction <add>, %52, %cst_36 [0] : vector<4x576xf32> to vector<576xf32>
    %54 = vector.shape_cast %53 : vector<576xf32> to vector<1x576xf32>
    %cst_37 = arith.constant 4.000000e+00 : f32
    %55 = vector.broadcast %cst_37 : f32 to vector<1x576xf32>
    %56 = arith.divf %54, %55 : vector<1x576xf32>
    %c0_38 = arith.constant 0 : index
    %c0_39 = arith.constant 0 : index
    %57 = vector.load %arg11[%c0_38, %c0_39] : memref<576x256xf32, #tpu.memory_space<vmem>>, vector<576x256xf32>
    %cst_40 = arith.constant dense<0.000000e+00> : vector<1x256xf32>
    %58 = tpu.matmul %56, %57, %cst_40 {dimension_numbers = #tpu.dot_dimension_numbers<[1], [0], [0], [1], [0, 0, 1, 1], [], []>} : vector<1x576xf32>, vector<576x256xf32>, vector<1x256xf32> -> vector<1x256xf32>
    %c0_41 = arith.constant 0 : index
    %c0_42 = arith.constant 0 : index
    %59 = vector.load %arg12[%c0_41, %c0_42] : memref<1x256xf32, #tpu.memory_space<vmem>>, vector<1x256xf32>
    %60 = arith.addf %58, %59 : vector<1x256xf32>
    %cst_43 = arith.constant 0.000000e+00 : f32
    %61 = vector.broadcast %cst_43 : f32 to vector<1x256xf32>
    %62 = arith.maximumf %60, %61 : vector<1x256xf32>
    %c0_44 = arith.constant 0 : index
    %c0_45 = arith.constant 0 : index
    %63 = vector.load %arg13[%c0_44, %c0_45] : memref<256x2xf32, #tpu.memory_space<vmem>>, vector<256x2xf32>
    %cst_46 = arith.constant dense<0.000000e+00> : vector<1x2xf32>
    %64 = tpu.matmul %62, %63, %cst_46 {dimension_numbers = #tpu.dot_dimension_numbers<[1], [0], [0], [1], [0, 0, 1, 1], [], []>} : vector<1x256xf32>, vector<256x2xf32>, vector<1x2xf32> -> vector<1x2xf32>
    %c0_47 = arith.constant 0 : index
    %c0_48 = arith.constant 0 : index
    %65 = vector.load %arg14[%c0_47, %c0_48] : memref<1x2xf32, #tpu.memory_space<vmem>>, vector<1x2xf32>
    %66 = arith.addf %64, %65 : vector<1x2xf32>
    %c0_49 = arith.constant 0 : index
    %c0_50 = arith.constant 0 : index
    %c0_51 = arith.constant 0 : index
    %67 = vector.load %arg15[%c0_49, %c0_50, %c0_51] : memref<1x1x2xf32, #tpu.memory_space<vmem>>, vector<1x1x2xf32>
    %68 = vector.shape_cast %67 : vector<1x1x2xf32> to vector<1x2xf32>
    %69 = vector.shape_cast %66 : vector<1x2xf32> to vector<1x1x2xf32>
    tpu.vector_store %arg15[%c0_49, %c0_50, %c0_51], %69 {strides = array<i32>} : memref<1x1x2xf32, #tpu.memory_space<vmem>>, vector<1x1x2xf32>,
    return
  }
  func.func @transform_0(%arg0: i32) -> (i32, i32, i32) {
    %c0_i32 = arith.constant 0 : i32
    %c0_i32_0 = arith.constant 0 : i32
    %c0_i32_1 = arith.constant 0 : i32
    return %arg0, %c0_i32, %c0_i32_0 : i32, i32, i32
  }
  func.func @transform_1(%arg0: i32) -> (i32, i32) {
    %c0_i32 = arith.constant 0 : i32
    %c0_i32_0 = arith.constant 0 : i32
    %c0_i32_1 = arith.constant 0 : i32
    return %c0_i32, %c0_i32_0 : i32, i32
  }
  func.func @transform_2(%arg0: i32) -> (i32, i32) {
    %c0_i32 = arith.constant 0 : i32
    %c0_i32_0 = arith.constant 0 : i32
    %c0_i32_1 = arith.constant 0 : i32
    return %c0_i32, %c0_i32_0 : i32, i32
  }
  func.func @transform_3(%arg0: i32) -> (i32, i32) {
    %c0_i32 = arith.constant 0 : i32
    %c0_i32_0 = arith.constant 0 : i32
    %c0_i32_1 = arith.constant 0 : i32
    return %c0_i32, %c0_i32_0 : i32, i32
  }
  func.func @transform_4(%arg0: i32) -> (i32, i32) {
    %c0_i32 = arith.constant 0 : i32
    %c0_i32_0 = arith.constant 0 : i32
    %c0_i32_1 = arith.constant 0 : i32
    return %c0_i32, %c0_i32_0 : i32, i32
  }
  func.func @transform_5(%arg0: i32) -> (i32, i32) {
    %c0_i32 = arith.constant 0 : i32
    %c0_i32_0 = arith.constant 0 : i32
    %c0_i32_1 = arith.constant 0 : i32
    return %c0_i32, %c0_i32_0 : i32, i32
  }
  func.func @transform_6(%arg0: i32) -> (i32, i32) {
    %c0_i32 = arith.constant 0 : i32
    %c0_i32_0 = arith.constant 0 : i32
    %c0_i32_1 = arith.constant 0 : i32
    return %c0_i32, %c0_i32_0 : i32, i32
  }
  func.func @transform_7(%arg0: i32) -> (i32, i32, i32) {
    %c0_i32 = arith.constant 0 : i32
    %c0_i32_0 = arith.constant 0 : i32
    %c0_i32_1 = arith.constant 0 : i32
    return %arg0, %c0_i32, %c0_i32_0 : i32, i32, i32
  }
  func.func @transform_8(%arg0: i32) -> (i32, i32) {
    %c0_i32 = arith.constant 0 : i32
    %c0_i32_0 = arith.constant 0 : i32
    %c0_i32_1 = arith.constant 0 : i32
    return %c0_i32, %c0_i32_0 : i32, i32
  }
  func.func @transform_9(%arg0: i32) -> (i32, i32) {
    %c0_i32 = arith.constant 0 : i32
    %c0_i32_0 = arith.constant 0 : i32
    %c0_i32_1 = arith.constant 0 : i32
    return %c0_i32, %c0_i32_0 : i32, i32
  }
  func.func @transform_10(%arg0: i32) -> (i32, i32) {
    %c0_i32 = arith.constant 0 : i32
    %c0_i32_0 = arith.constant 0 : i32
    %c0_i32_1 = arith.constant 0 : i32
    return %c0_i32, %c0_i32_0 : i32, i32
  }
  func.func @transform_11(%arg0: i32) -> (i32, i32) {
    %c0_i32 = arith.constant 0 : i32
    %c0_i32_0 = arith.constant 0 : i32
    %c0_i32_1 = arith.constant 0 : i32
    return %c0_i32, %c0_i32_0 : i32, i32
  }
  func.func @transform_12(%arg0: i32) -> (i32, i32) {
    %c0_i32 = arith.constant 0 : i32
    %c0_i32_0 = arith.constant 0 : i32
    %c0_i32_1 = arith.constant 0 : i32
    return %c0_i32, %c0_i32_0 : i32, i32
  }
  func.func @transform_13(%arg0: i32) -> (i32, i32) {
    %c0_i32 = arith.constant 0 : i32
    %c0_i32_0 = arith.constant 0 : i32
    %c0_i32_1 = arith.constant 0 : i32
    return %c0_i32, %c0_i32_0 : i32, i32
  }
  func.func @transform_14(%arg0: i32) -> (i32, i32, i32) {
    %c0_i32 = arith.constant 0 : i32
    %c0_i32_0 = arith.constant 0 : i32
    %c0_i32_1 = arith.constant 0 : i32
    return %arg0, %c0_i32, %c0_i32_0 : i32, i32, i32
  }
}

</mosaic_0001>

<bundles_post_ra>
// kernel: ball_localization_forward.11
= control target key start
LH: loop header
LB: loop body
LE: loop exit
PB: predicated region body
PF: predicated region fallthrough
CT: control target
= control target key end

     0   :  { %s1832_s30 = smov 0   ;;  %s2245_s0 = inlined_call_operand.vmem [shape: bf16[2,256,16], index: 0, kind: input, shape index: {}]   ;;  %s2246_s1 = inlined_call_operand.vmem [shape: bf16[16,8], index: 1, kind: input, shape index: {}]   ;;  %s2247_s2 = inlined_call_operand.vmem [shape: f32[1,8], index: 2, kind: input, shape index: {}]   ;;  %s2248_s3 = inlined_call_operand.vmem [shape: bf16[8,16], index: 3, kind: input, shape index: {}]   ;;  %s2249_s4 = inlined_call_operand.vmem [shape: f32[1,16], index: 4, kind: input, shape index: {}]   ;;  %s2250_s5 = inlined_call_operand.vmem [shape: bf16[16,16], index: 5, kind: input, shape index: {}]   ;;  %s2251_s6 = inlined_call_operand.vmem [shape: f32[1,16], index: 6, kind: input, shape index: {}]   ;;  %s2252_s7 = inlined_call_operand.vmem [shape: bf16[16,72], index: 7, kind: input, shape index: {}]   ;;  %s2253_s8 = inlined_call_operand.vmem [shape: f32[1,72], index: 8, kind: input, shape index: {}]   ;;  %s2254_s9 = inlined_call_operand.vmem [shape: bf16[2,256,72], index: 9, kind: output, shape index: {}]  }
   0x1 LB: > { %s1450_s10 = sadd.s32 4294967295, %s1777_s30   ;;  %p1454_p0 = scmp.ge.s32.totalorder %s1777_s30, 1  ;;  %s1777_s30 = sphi %s1832_s30, %s19_s30  }
   0x2   : > { %p287_p1 = scmp.lt.s32.totalorder %s1777_s30, 3 }
   0x4   : > { %p288_p2 = pnand %p1454_p0, %p287_p1 }
   0x5   : > { %p323_p3 = scmp.lt.s32.totalorder (!%p288_p2), %s1450_s10, 1  ;;  %v1779_v0 = vmov (!%p288_p2), 1065369472   ;;  %v1768_v49 = vld [vmem:[%s2246_s1] sm:$0xff] (!%p288_p2)   ;;  %v1780_v50 = vmov (!%p288_p2), 0.0   ;;  %vm1781_vm0 = vmmov (!%p288_p2), 0  }
   0x6   : > { %291 = sbr.rel (%p288_p2) target bundleno = 1221 (0x4c5), region = 56  ;;  %495 = vmatprep.mubr.bf16.mxu0 (!%p288_p2), %v1779_v0  ;;  %1659 = vmatprep.subr.bf16.mxu1 (!%p288_p2), %v1780_v50  ;;  %v560_v56 = vld [vmem:[%s2248_s3] sm:$0xf] (!%p288_p2)  ;;  %vm566_vm1 = vcmask (!%p288_p2), 1043456   ;;  %vm514_vm2 = vcmask (!%p288_p2), 130048   ;;  %vm562_vm3 = vcmask (!%p288_p2), 64512  }
   0x7   : > { %1660 = vmatpush3.bf16.msra.mxu1 (!%p288_p2), %v1768_v49  ;;  %1661 = vmatprep.mubr.msk.bf16.mxu1 (!%p288_p2), %vm1781_vm0, %v1780_v50  ;;  %v568_v59 = vsel (!%p288_p2), %vm566_vm1, %v560_v56, 0  ;;  %v507_v60 = vld [vmem:[%s2247_s2] sm:$0x1] (!%p288_p2)  ;;  %vm1362_vm4 = vcmask (!%p288_p2), 584704  }
   0x8   : > { %1665 = vmatprep.subr.bf16.mxu1 (!%p288_p2), %v1780_v50 }
   0xd   : > { %s2256_s10 = smov (!%p323_p3, %s1450_s10), 1 }
   0xe   : > { %s1565_s11 = sshll.u32 %s2256_s10, 7 }
   0xf   : > { %s1849_s14 = scalar_lea.vmem %s2245_s0, %s1565_s11  ;;  %s2147_s15 = scalar_lea.vmem %s2254_s9, %s1565_s11 }
  0x10   : > { %v1852_v1 = vld [vmem:[%s1849_s14 + $0x40] sm:$0xf]  ;;  %v1855_v2 = vld [vmem:[%s1849_s14 + $0x44] sm:$0xf]  ;;  %v1866_v6 = vld [vmem:[%s1849_s14 + $0x48] sm:$0xf] }
  0x11   : > { %v1858_v3 = vld [vmem:[%s1849_s14] sm:$0xf]  ;;  %v1467_v4 = vcombine.low %v1852_v1, %v1855_v2  ;;  %v1863_v5 = vld [vmem:[%s1849_s14 + $0x4] sm:$0xf]  ;;  %v1869_v7 = vld [vmem:[%s1849_s14 + $0x4c] sm:$0xf] }
  0x12   : > { %v1459_v8 = vcombine.low %v1858_v3, %v1863_v5  ;;  %v1468_v9 = vcombine.low %v1866_v6, %v1869_v7  ;;  %v1876_v10 = vld [vmem:[%s1849_s14 + $0x8] sm:$0xf]  ;;  %v1879_v11 = vld [vmem:[%s1849_s14 + $0xc] sm:$0xf]  ;;  %v1882_v12 = vld [vmem:[%s1849_s14 + $0x50] sm:$0xf] }
  0x13   : > { %1599 = vmatprep.subr.bf16.mxu0 %v1467_v4  ;;  %v1885_v13 = vld [vmem:[%s1849_s14 + $0x54] sm:$0xf]  ;;  %v1460_v14 = vcombine.low %v1876_v10, %v1879_v11  ;;  %v1892_v16 = vld [vmem:[%s1849_s14 + $0x10] sm:$0xf]  ;;  %v1898_v18 = vld [vmem:[%s1849_s14 + $0x58] sm:$0xf] }
  0x14   : > { %1600 = vmatpush3.bf16.msra.mxu0 %v1459_v8  ;;  %v1469_v15 = vcombine.low %v1882_v12, %v1885_v13  ;;  %v1895_v17 = vld [vmem:[%s1849_s14 + $0x14] sm:$0xf]  ;;  %v1901_v19 = vld [vmem:[%s1849_s14 + $0x5c] sm:$0xf]  ;;  %v1908_v22 = vld [vmem:[%s1849_s14 + $0x18] sm:$0xf] }
  0x15   : > { %1601 = vmatprep.subr.bf16.mxu0 %v1468_v9  ;;  %v1461_v20 = vcombine.low %v1892_v16, %v1895_v17  ;;  %v1470_v21 = vcombine.low %v1898_v18, %v1901_v19  ;;  %v1911_v23 = vld [vmem:[%s1849_s14 + $0x1c] sm:$0xf]  ;;  %v1914_v24 = vld [vmem:[%s1849_s14 + $0x60] sm:$0xf]  ;;  %v1917_v25 = vld [vmem:[%s1849_s14 + $0x64] sm:$0xf] }
  0x16   : > { %v1462_v26 = vcombine.low %v1908_v22, %v1911_v23  ;;  %v1471_v27 = vcombine.low %v1914_v24, %v1917_v25  ;;  %v1924_v28 = vld [vmem:[%s1849_s14 + $0x20] sm:$0xf]  ;;  %v1927_v29 = vld [vmem:[%s1849_s14 + $0x24] sm:$0xf]  ;;  %v1930_v30 = vld [vmem:[%s1849_s14 + $0x68] sm:$0xf] }
  0x17   : > { %v1933_v31 = vld [vmem:[%s1849_s14 + $0x6c] sm:$0xf]  ;;  %v1463_v32 = vcombine.low %v1924_v28, %v1927_v29  ;;  %v1940_v34 = vld [vmem:[%s1849_s14 + $0x28] sm:$0xf]  ;;  %v1946_v36 = vld [vmem:[%s1849_s14 + $0x70] sm:$0xf] }
  0x18   : > { %1602 = vmatpush3.bf16.msra.mxu0 %v1460_v14  ;;  %v1472_v33 = vcombine.low %v1930_v30, %v1933_v31  ;;  %v1943_v35 = vld [vmem:[%s1849_s14 + $0x2c] sm:$0xf]  ;;  %v1949_v37 = vld [vmem:[%s1849_s14 + $0x74] sm:$0xf]  ;;  %v1956_v40 = vld [vmem:[%s1849_s14 + $0x30] sm:$0xf] }
  0x19   : > { %1603 = vmatprep.subr.bf16.mxu0 %v1469_v15  ;;  %v1464_v38 = vcombine.low %v1940_v34, %v1943_v35  ;;  %v1473_v39 = vcombine.low %v1946_v36, %v1949_v37  ;;  %v1959_v41 = vld [vmem:[%s1849_s14 + $0x34] sm:$0xf]  ;;  %v1962_v42 = vld [vmem:[%s1849_s14 + $0x78] sm:$0xf]  ;;  %v1965_v43 = vld [vmem:[%s1849_s14 + $0x7c] sm:$0xf] }
  0x1a   : > { %v1465_v44 = vcombine.low %v1956_v40, %v1959_v41  ;;  %v1474_v45 = vcombine.low %v1962_v42, %v1965_v43  ;;  %v1972_v46 = vld [vmem:[%s1849_s14 + $0x38] sm:$0xf]  ;;  %v1975_v47 = vld [vmem:[%s1849_s14 + $0x3c] sm:$0xf]  ;;  %v1769_v14 = vld [vmem:[%s2250_s5] sm:$0xff]  }
  0x1b   : > { %v1466_v48 = vcombine.low %v1972_v46, %v1975_v47  ;;  %v561_v15 = vld [vmem:[%s2249_s4] sm:$0x1] }
  0x1c   : > { %1604 = vmatpush3.bf16.msra.mxu0 %v1461_v20 }
  0x1d   : > { %1605 = vmatprep.subr.bf16.mxu0 %v1470_v21 }
  0x20   : > { %1606 = vmatpush3.bf16.msra.mxu0 %v1462_v26 }
  0x21   : > { %1607 = vmatprep.subr.bf16.mxu0 %v1471_v27 }
  0x24   : > { %1608 = vmatpush3.bf16.msra.mxu0 %v1463_v32 }
  0x25   : > { %1609 = vmatprep.subr.bf16.mxu0 %v1472_v33  ;;  %v618_v33 = vlaneseq }
  0x28   : > { %1610 = vmatpush3.bf16.msra.mxu0 %v1464_v38 }
  0x29   : > { %1611 = vmatprep.subr.bf16.mxu0 %v1473_v39 }
  0x2c   : > { %1612 = vmatpush3.bf16.msra.mxu0 %v1465_v44 }
  0x2d   : > { %1613 = vmatprep.subr.bf16.mxu0 %v1474_v45  ;;  %v619_v45 = vshrl.u32 %v618_v33, 7 }
  0x30   : > { %1614 = vmatpush3.bf16.msra.mxu0 %v1466_v48 }
  0x33   : > { %496 = vmatmul.mubr.bf16.vlgmr.msra.gmra.mrb[0].mxu0 %v1779_v0 }
 0x106   : > { %v1615_v51 = vpop.f32.mrb[0].mxu0 }
 0x107   : > { %v1616_v52 = vpop.f32.mrb[1].mxu0 }
 0x108   : > { %v1617_v53 = vadd.f32 %v1616_v52, %v1615_v51  ;;  %v1618_v54 = vpop.f32.mrb[2].mxu0 }
 0x109   : > { %v1619_v55 = vpop.f32.mrb[3].mxu0 }
 0x10a   : > { %v503_v57 = vmul.f32 0.00390625, %v1617_v53 }
 0x10c   : > { %v504_v58 = vpack.c.bf16 %v503_v57, %v503_v57 }
 0x10e   : > { %1662 = vmatmul.mubr.msk.bf16.vlgmr.msra.gmra.mrb[0].mxu1 %vm514_vm2, %v504_v58 }
 0x10f   : > { %1666 = vmatpush3.bf16.msra.mxu1 %v568_v59  ;;  %1667 = vmatprep.mubr.msk.bf16.mxu1 %vm1781_vm0, %v1780_v50  ;;  %v620_v50 = vsub.s32 0, %v619_v45 }
 0x110   : > { %1671 = vmatprep.subr.bf16.mxu1 %v1769_v14 }
 0x1e1   : > { %v552_v61 = vpop.f32.mrb[0].mxu1 }
 0x1e2   : > { %v553_v62 = vadd.f32 %v552_v61, %v507_v60  ;;  %v1663_v63 = vpop.f32.mrb[1].mxu1 }
 0x1e3   : > { %v555_v0 = vpop.f32.mrb[2].mxu1 }
 0x1e4   : > { %v558_v4 = vmax.f32 %v553_v62, 0.0  ;;  %v1664_v8 = vpop.f32.mrb[3].mxu1 }
 0x1e6   : > { %v559_v9 = vpack.c.bf16 %v558_v4, %v558_v4 }
 0x1e8   : > { %1668 = vmatmul.mubr.msk.bf16.vlgmr.msra.gmra.mrb[4].mxu1 %vm562_vm3, %v559_v9 }
 0x1e9   : > { %1672 = vmatpush3.bf16.msra.mxu1 %v1769_v14 }
 0x2bb   : > { %v604_v20 = vpop.f32.mrb[4].mxu1 }
 0x2bc   : > { %v605_v21 = vadd.f32 %v604_v20, %v561_v15  ;;  %v1669_v26 = vpop.f32.mrb[5].mxu1 }
 0x2bd   : > { %v607_v27 = vpop.f32.mrb[6].mxu1 }
 0x2be   : > { %v610_v32 = vadd.f32 3.0, %v605_v21  ;;  %v1670_v38 = vpop.f32.mrb[7].mxu1 }
 0x2c0   : > { %v611_v39 = vmax.f32 %v610_v32, 0.0 }
 0x2c2   : > { %v612_v44 = vmin.f32 %v611_v39, 6.0 }
 0x2c4   : > { %v613_v48 = vmul.f32 0.16666667, %v612_v44 }
 0x2c6   : > { %v614_v49 = vpack.c.bf16 %v613_v48, %v613_v48 }
 0x2c8   : > { %v616_v51 = vpack.i.b16 %v614_v49, %v614_v49 }
 0x2ca   : > { %v621_v52 = vrot.slane %v616_v51, %v620_v50 }
 0x2cc   : > { %v1996_v53 = vcombine.low %v621_v52, %v621_v52 }
 0x2ce   : > { %v626_v54 = vmul.bf16 %v1996_v53, %v1858_v3  ;;  %v627_v55 = vmul.bf16 %v1996_v53, %v1863_v5  ;;  %v628_v56 = vmul.bf16 %v1996_v53, %v1876_v10  ;;  %v629_v57 = vmul.bf16 %v1996_v53, %v1879_v11 }
 0x2cf   : > { %v630_v58 = vmul.bf16 %v1996_v53, %v1892_v16  ;;  %v631_v59 = vmul.bf16 %v1996_v53, %v1895_v17  ;;  %v632_v5 = vmul.bf16 %v1996_v53, %v1908_v22  ;;  %v633_v10 = vmul.bf16 %v1996_v53, %v1911_v23 }
 0x2d0   : > { %v1480_v60 = vcombine.low %v626_v54, %v627_v55  ;;  %v1481_v61 = vcombine.low %v628_v56, %v629_v57  ;;  %v634_v11 = vmul.bf16 %v1996_v53, %v1924_v28  ;;  %v635_v16 = vmul.bf16 %v1996_v53, %v1927_v29 }
 0x2d1   : > { %v1482_v3 = vcombine.low %v630_v58, %v631_v59  ;;  %v1483_v17 = vcombine.low %v632_v5, %v633_v10  ;;  %v636_v63 = vmul.bf16 %v1996_v53, %v1940_v34  ;;  %v637_v22 = vmul.bf16 %v1996_v53, %v1943_v35 }
 0x2d2   : > { %1673 = vmatprep.mubr.msk.bf16.mxu1 %vm514_vm2, %v1480_v60  ;;  %v1484_v62 = vcombine.low %v634_v11, %v635_v16  ;;  %v638_v23 = vmul.bf16 %v1996_v53, %v1956_v40  ;;  %v639_v28 = vmul.bf16 %v1996_v53, %v1959_v41  ;;  %v640_v4 = vmul.bf16 %v1996_v53, %v1972_v46 }
 0x2d3   : > { %1674 = vmatmul.mubr.msk.bf16.vlgmr.msra.gmra.mrb[8].mxu1 %vm514_vm2, %v1481_v61  ;;  %v1485_v0 = vcombine.low %v636_v63, %v637_v22  ;;  %v641_v34 = vmul.bf16 %v1996_v53, %v1975_v47  ;;  %v642_v35 = vmul.bf16 %v1996_v53, %v1852_v1  ;;  %v643_v40 = vmul.bf16 %v1996_v53, %v1855_v2 }
 0x2d4   : > { %1677 = vmatprep.mubr.msk.bf16.mxu1 %vm514_vm2, %v1482_v3  ;;  %v1486_v29 = vcombine.low %v638_v23, %v639_v28  ;;  %v644_v9 = vmul.bf16 %v1996_v53, %v1866_v6  ;;  %v645_v46 = vmul.bf16 %v1996_v53, %v1869_v7  ;;  %v646_v47 = vmul.bf16 %v1996_v53, %v1882_v12 }
 0x2d5   : > { %v1487_v8 = vcombine.low %v640_v4, %v641_v34  ;;  %v1488_v41 = vcombine.low %v642_v35, %v643_v40  ;;  %v647_v1 = vmul.bf16 %v1996_v53, %v1885_v13  ;;  %v648_v15 = vmul.bf16 %v1996_v53, %v1898_v18 }
 0x2d6   : > { %v1489_v14 = vcombine.low %v644_v9, %v645_v46  ;;  %v649_v6 = vmul.bf16 %v1996_v53, %v1901_v19  ;;  %v650_v7 = vmul.bf16 %v1996_v53, %v1914_v24  ;;  %v651_v12 = vmul.bf16 %v1996_v53, %v1917_v25 }
 0x2d7   : > { %v1490_v2 = vcombine.low %v646_v47, %v647_v1  ;;  %v652_v21 = vmul.bf16 %v1996_v53, %v1930_v30  ;;  %v653_v18 = vmul.bf16 %v1996_v53, %v1933_v31  ;;  %v654_v19 = vmul.bf16 %v1996_v53, %v1946_v36  ;;  %v1770_v31 = vld [vmem:[%s2252_s7] sm:$0xff]  }
 0x2d8   : > { %v1491_v20 = vcombine.low %v648_v15, %v649_v6  ;;  %v1492_v13 = vcombine.low %v650_v7, %v651_v12  ;;  %v655_v24 = vmul.bf16 %v1996_v53, %v1949_v37  ;;  %v656_v27 = vmul.bf16 %v1996_v53, %v1962_v42  ;;  %1739 = vmatprep.subr.bf16.mxu1 %v1770_v31  ;;  %v2084_v37 = vld [vmem:[%s2251_s6] ss:$0 sm:$0xff] }
 0x2d9   : > { %v1493_v26 = vcombine.low %v652_v21, %v653_v18  ;;  %v657_v30 = vmul.bf16 %v1996_v53, %v1965_v43  ;;  %1705 = vmatprep.subr.bf16.mxu0 %v1770_v31  ;;  %1740 = vmatpush3.bf16.msra.mxu1 %v1770_v31 }
 0x2da   : > { %v1494_v25 = vcombine.low %v654_v19, %v655_v24  ;;  %1706 = vmatpush3.bf16.msra.mxu0 %v1770_v31 }
 0x2db   : > { %1678 = vmatmul.mubr.msk.bf16.gmra.mrb[12].mxu1 %vm514_vm2, %v1483_v17  ;;  %v1495_v32 = vcombine.low %v656_v27, %v657_v30 }
 0x2dc   : > { %1681 = vmatprep.mubr.msk.bf16.mxu1 %vm514_vm2, %v1484_v62 }
 0x2e3   : > { %1682 = vmatmul.mubr.msk.bf16.gmra.mrb[16].mxu1 %vm514_vm2, %v1485_v0 }
 0x2e4   : > { %1685 = vmatprep.mubr.msk.bf16.mxu1 %vm514_vm2, %v1486_v29 }
 0x2eb   : > { %1686 = vmatmul.mubr.msk.bf16.gmra.mrb[20].mxu1 %vm514_vm2, %v1487_v8 }
 0x2ec   : > { %1689 = vmatprep.mubr.msk.bf16.mxu1 %vm514_vm2, %v1488_v41 }
 0x2f3   : > { %1690 = vmatmul.mubr.msk.bf16.gmra.mrb[24].mxu1 %vm514_vm2, %v1489_v14 }
 0x2f4   : > { %1693 = vmatprep.mubr.msk.bf16.mxu1 %vm514_vm2, %v1490_v2 }
 0x2fb   : > { %1694 = vmatmul.mubr.msk.bf16.gmra.mrb[28].mxu1 %vm514_vm2, %v1491_v20 }
 0x2fc   : > { %1697 = vmatprep.mubr.msk.bf16.mxu1 %vm514_vm2, %v1492_v13 }
 0x303   : > { %1698 = vmatmul.mubr.msk.bf16.gmra.mrb[32].mxu1 %vm514_vm2, %v1493_v26 }
 0x304   : > { %1701 = vmatprep.mubr.msk.bf16.mxu1 %vm514_vm2, %v1494_v25 }
 0x30b   : > { %1702 = vmatmul.mubr.msk.bf16.gmra.mrb[36].mxu1 %vm514_vm2, %v1495_v32 }
 0x3a6   : > { %v1675_v36 = vpop.f32.mrb[8].mxu1 }
 0x3a7   : > { %v835_v42 = vpop.f32.mrb[9].mxu1  ;;  %v844_v43 = vadd.f32 %v1675_v36, %v2084_v37 }
 0x3a8   : > { %v1676_v33 = vpop.f32.mrb[10].mxu1  ;;  %v836_v44 = vadd.f32 %v2084_v37, %v835_v42 }
 0x3a9   : > { %v847_v38 = vadd.f32 %v1676_v33, %v2084_v37  ;;  %v838_v39 = vpop.f32.mrb[11].mxu1 }
 0x3aa   : > { %v839_v45 = vadd.f32 %v2084_v37, %v838_v39 }
 0x3ab   : > { %v963_v48 = vpack.c.bf16 %v847_v38, %v844_v43 }
 0x3ac   : > { %v962_v49 = vpack.c.bf16 %v839_v45, %v836_v44 }
 0x3ae   : > { %v1679_v50 = vpop.f32.mrb[12].mxu1  ;;  %1707 = vmatprep.mubr.msk.bf16.mxu0 %vm514_vm2, %v962_v49 }
 0x3af   : > { %v851_v51 = vpop.f32.mrb[13].mxu1  ;;  %1708 = vmatmul.mubr.msk.bf16.vlgmr.msra.gmra.mrb[4].mxu0 %vm514_vm2, %v963_v48  ;;  %v860_v53 = vadd.f32 %v1679_v50, %v2084_v37 }
 0x3b0   : > { %v1680_v52 = vpop.f32.mrb[14].mxu1  ;;  %v852_v56 = vadd.f32 %v2084_v37, %v851_v51 }
 0x3b1   : > { %v863_v54 = vadd.f32 %v1680_v52, %v2084_v37  ;;  %v854_v55 = vpop.f32.mrb[15].mxu1 }
 0x3b2   : > { %v855_v57 = vadd.f32 %v2084_v37, %v854_v55 }
 0x3b3   : > { %v965_v58 = vpack.c.bf16 %v863_v54, %v860_v53 }
 0x3b4   : > { %v964_v59 = vpack.c.bf16 %v855_v57, %v852_v56  ;;  %v2137_v57 = vld [vmem:[%s2253_s8] ss:$0 sm:$0xff] }
 0x3b6   : > { %v1683_v60 = vpop.f32.mrb[16].mxu1  ;;  %1711 = vmatprep.mubr.msk.bf16.mxu0 %vm514_vm2, %v964_v59 }
 0x3b7   : > { %v867_v61 = vpop.f32.mrb[17].mxu1  ;;  %1712 = vmatmul.mubr.msk.bf16.gmra.mrb[8].mxu0 %vm514_vm2, %v965_v58  ;;  %v876_v5 = vadd.f32 %v1683_v60, %v2084_v37 }
 0x3b8   : > { %v1684_v3 = vpop.f32.mrb[18].mxu1  ;;  %v868_v16 = vadd.f32 %v2084_v37, %v867_v61 }
 0x3b9   : > { %v879_v10 = vadd.f32 %v1684_v3, %v2084_v37  ;;  %v870_v11 = vpop.f32.mrb[19].mxu1 }
 0x3ba   : > { %v871_v17 = vadd.f32 %v2084_v37, %v870_v11 }
 0x3bb   : > { %v967_v62 = vpack.c.bf16 %v879_v10, %v876_v5 }
 0x3bc   : > { %v966_v63 = vpack.c.bf16 %v871_v17, %v868_v16 }
 0x3be   : > { %v1687_v22 = vpop.f32.mrb[20].mxu1  ;;  %1715 = vmatprep.mubr.msk.bf16.mxu0 %vm514_vm2, %v966_v63 }
 0x3bf   : > { %v883_v23 = vpop.f32.mrb[21].mxu1  ;;  %1716 = vmatmul.mubr.msk.bf16.gmra.mrb[12].mxu0 %vm514_vm2, %v967_v62  ;;  %v892_v0 = vadd.f32 %v1687_v22, %v2084_v37 }
 0x3c0   : > { %v1688_v28 = vpop.f32.mrb[22].mxu1  ;;  %v884_v34 = vadd.f32 %v2084_v37, %v883_v23 }
 0x3c1   : > { %v895_v29 = vadd.f32 %v1688_v28, %v2084_v37  ;;  %v886_v4 = vpop.f32.mrb[23].mxu1 }
 0x3c2   : > { %v887_v35 = vadd.f32 %v2084_v37, %v886_v4 }
 0x3c3   : > { %v969_v40 = vpack.c.bf16 %v895_v29, %v892_v0 }
 0x3c4   : > { %v968_v8 = vpack.c.bf16 %v887_v35, %v884_v34 }
 0x3c6   : > { %v1691_v41 = vpop.f32.mrb[24].mxu1  ;;  %1719 = vmatprep.mubr.msk.bf16.mxu0 %vm514_vm2, %v968_v8 }
 0x3c7   : > { %v899_v9 = vpop.f32.mrb[25].mxu1  ;;  %1720 = vmatmul.mubr.msk.bf16.gmra.mrb[16].mxu0 %vm514_vm2, %v969_v40  ;;  %v908_v47 = vadd.f32 %v1691_v41, %v2084_v37 }
 0x3c8   : > { %v1692_v46 = vpop.f32.mrb[26].mxu1  ;;  %v900_v2 = vadd.f32 %v2084_v37, %v899_v9 }
 0x3c9   : > { %v911_v1 = vadd.f32 %v1692_v46, %v2084_v37  ;;  %v902_v14 = vpop.f32.mrb[27].mxu1 }
 0x3ca   : > { %v903_v15 = vadd.f32 %v2084_v37, %v902_v14 }
 0x3cb   : > { %v971_v6 = vpack.c.bf16 %v911_v1, %v908_v47 }
 0x3cc   : > { %v970_v7 = vpack.c.bf16 %v903_v15, %v900_v2 }
 0x3ce   : > { %v1695_v12 = vpop.f32.mrb[28].mxu1  ;;  %1723 = vmatprep.mubr.msk.bf16.mxu0 %vm514_vm2, %v970_v7 }
 0x3cf   : > { %v915_v20 = vpop.f32.mrb[29].mxu1  ;;  %1724 = vmatmul.mubr.msk.bf16.gmra.mrb[20].mxu0 %vm514_vm2, %v971_v6  ;;  %v924_v21 = vadd.f32 %v1695_v12, %v2084_v37 }
 0x3d0   : > { %v1696_v13 = vpop.f32.mrb[30].mxu1  ;;  %v916_v24 = vadd.f32 %v2084_v37, %v915_v20 }
 0x3d1   : > { %v927_v18 = vadd.f32 %v1696_v13, %v2084_v37  ;;  %v918_v19 = vpop.f32.mrb[31].mxu1 }
 0x3d2   : > { %v919_v26 = vadd.f32 %v2084_v37, %v918_v19 }
 0x3d3   : > { %v973_v25 = vpack.c.bf16 %v927_v18, %v924_v21 }
 0x3d4   : > { %v972_v27 = vpack.c.bf16 %v919_v26, %v916_v24 }
 0x3d6   : > { %v1699_v30 = vpop.f32.mrb[32].mxu1  ;;  %1727 = vmatprep.mubr.msk.bf16.mxu0 %vm514_vm2, %v972_v27 }
 0x3d7   : > { %v931_v32 = vpop.f32.mrb[33].mxu1  ;;  %1728 = vmatmul.mubr.msk.bf16.gmra.mrb[24].mxu0 %vm514_vm2, %v973_v25  ;;  %v940_v36 = vadd.f32 %v1699_v30, %v2084_v37 }
 0x3d8   : > { %v1700_v31 = vpop.f32.mrb[34].mxu1  ;;  %v932_v43 = vadd.f32 %v2084_v37, %v931_v32 }
 0x3d9   : > { %v943_v42 = vadd.f32 %v1700_v31, %v2084_v37  ;;  %v934_v33 = vpop.f32.mrb[35].mxu1 }
 0x3da   : > { %v935_v38 = vadd.f32 %v2084_v37, %v934_v33 }
 0x3db   : > { %v975_v39 = vpack.c.bf16 %v943_v42, %v940_v36 }
 0x3dc   : > { %v974_v44 = vpack.c.bf16 %v935_v38, %v932_v43 }
 0x3de   : > { %v1703_v45 = vpop.f32.mrb[36].mxu1  ;;  %1731 = vmatprep.mubr.msk.bf16.mxu0 %vm514_vm2, %v974_v44 }
 0x3df   : > { %v947_v48 = vpop.f32.mrb[37].mxu1  ;;  %1732 = vmatmul.mubr.msk.bf16.gmra.mrb[28].mxu0 %vm514_vm2, %v975_v39  ;;  %v956_v50 = vadd.f32 %v1703_v45, %v2084_v37 }
 0x3e0   : > { %v1704_v49 = vpop.f32.mrb[38].mxu1  ;;  %v948_v53 = vadd.f32 %v2084_v37, %v947_v48 }
 0x3e1   : > { %v959_v51 = vadd.f32 %v1704_v49, %v2084_v37  ;;  %v950_v52 = vpop.f32.mrb[39].mxu1 }
 0x3e2   : > { %v951_v54 = vadd.f32 %v2084_v37, %v950_v52 }
 0x3e3   : > { %v977_v55 = vpack.c.bf16 %v959_v51, %v956_v50 }
 0x3e4   : > { %v976_v56 = vpack.c.bf16 %v951_v54, %v948_v53 }
 0x3e6   : > { %1735 = vmatprep.mubr.msk.bf16.mxu1 %vm514_vm2, %v976_v56 }
 0x3e7   : > { %1736 = vmatmul.mubr.msk.bf16.vlgmr.msra.gmra.mrb[40].mxu1 %vm514_vm2, %v977_v55 }
 0x482   : > { %v1709_v58 = vpop.f32.mrb[4].mxu0 }
 0x483   : > { %v1084_v59 = vadd.f32 %v1709_v58, %v2137_v57  ;;  %v1075_v60 = vpop.f32.mrb[5].mxu0 }
 0x484   : > { %v1076_v61 = vadd.f32 %v2137_v57, %v1075_v60  ;;  %v1710_v3 = vpop.f32.mrb[6].mxu0 }
 0x485   : > { %v1204_v5 = vmax.f32 %v1084_v59, 0.0  ;;  %v1087_v37 = vadd.f32 %v1710_v3, %v2137_v57  ;;  %v1078_v10 = vpop.f32.mrb[7].mxu0 }
 0x486   : > { %v1202_v11 = vmax.f32 %v1076_v61, 0.0  ;;  %v1079_v16 = vadd.f32 %v2137_v57, %v1078_v10 }
 0x487   : > { %v1569_v17 = vpack.c.bf16 %v1204_v5, %v1204_v5  ;;  %v1205_v62 = vmax.f32 %v1087_v37, 0.0 }
 0x488   : > { %v1567_v63 = vpack.c.bf16 %v1202_v11, %v1202_v11  ;;  %v1203_v22 = vmax.f32 %v1079_v16, 0.0 }
 0x489   : > { %1365 = vst.msk [vmem:[%s2147_s15 + $0x8] sm:$0xf] %vm1362_vm4, %v1569_v17  ;;  %v1570_v23 = vpack.c.bf16 %v1205_v62, %v1205_v62 }
 0x48a   : > { %1363 = vst.msk [vmem:[%s2147_s15] sm:$0xf] %vm1362_vm4, %v1567_v63  ;;  %v1568_v28 = vpack.c.bf16 %v1203_v22, %v1203_v22  ;;  %v1713_v0 = vpop.f32.mrb[8].mxu0 }
 0x48b   : > { %1366 = vst.msk [vmem:[%s2147_s15 + $0xc] sm:$0xf] %vm1362_vm4, %v1570_v23  ;;  %v1100_v29 = vadd.f32 %v1713_v0, %v2137_v57  ;;  %v1091_v4 = vpop.f32.mrb[9].mxu0 }
 0x48c   : > { %1364 = vst.msk [vmem:[%s2147_s15 + $0x4] sm:$0xf] %vm1362_vm4, %v1568_v28  ;;  %v1092_v34 = vadd.f32 %v2137_v57, %v1091_v4  ;;  %v1714_v35 = vpop.f32.mrb[10].mxu0 }
 0x48d   : > { %v1208_v40 = vmax.f32 %v1100_v29, 0.0  ;;  %v1103_v8 = vadd.f32 %v1714_v35, %v2137_v57  ;;  %v1094_v41 = vpop.f32.mrb[11].mxu0 }
 0x48e   : > { %v1206_v9 = vmax.f32 %v1092_v34, 0.0  ;;  %v1095_v46 = vadd.f32 %v2137_v57, %v1094_v41 }
 0x48f   : > { %v1573_v47 = vpack.c.bf16 %v1208_v40, %v1208_v40  ;;  %v1209_v1 = vmax.f32 %v1103_v8, 0.0 }
 0x490   : > { %v1571_v14 = vpack.c.bf16 %v1206_v9, %v1206_v9  ;;  %v1207_v2 = vmax.f32 %v1095_v46, 0.0 }
 0x491   : > { %1369 = vst.msk [vmem:[%s2147_s15 + $0x18] sm:$0xf] %vm1362_vm4, %v1573_v47  ;;  %v1574_v15 = vpack.c.bf16 %v1209_v1, %v1209_v1 }
 0x492   : > { %1367 = vst.msk [vmem:[%s2147_s15 + $0x10] sm:$0xf] %vm1362_vm4, %v1571_v14  ;;  %v1572_v6 = vpack.c.bf16 %v1207_v2, %v1207_v2  ;;  %v1717_v7 = vpop.f32.mrb[12].mxu0 }
 0x493   : > { %1370 = vst.msk [vmem:[%s2147_s15 + $0x1c] sm:$0xf] %vm1362_vm4, %v1574_v15  ;;  %v1116_v12 = vadd.f32 %v1717_v7, %v2137_v57  ;;  %v1107_v20 = vpop.f32.mrb[13].mxu0 }
 0x494   : > { %1368 = vst.msk [vmem:[%s2147_s15 + $0x14] sm:$0xf] %vm1362_vm4, %v1572_v6  ;;  %v1108_v13 = vadd.f32 %v2137_v57, %v1107_v20  ;;  %v1718_v21 = vpop.f32.mrb[14].mxu0 }
 0x495   : > { %v1212_v18 = vmax.f32 %v1116_v12, 0.0  ;;  %v1119_v19 = vadd.f32 %v1718_v21, %v2137_v57  ;;  %v1110_v24 = vpop.f32.mrb[15].mxu0 }
 0x496   : > { %v1210_v26 = vmax.f32 %v1108_v13, 0.0  ;;  %v1111_v25 = vadd.f32 %v2137_v57, %v1110_v24 }
 0x497   : > { %v1577_v27 = vpack.c.bf16 %v1212_v18, %v1212_v18  ;;  %v1213_v30 = vmax.f32 %v1119_v19, 0.0 }
 0x498   : > { %v1575_v32 = vpack.c.bf16 %v1210_v26, %v1210_v26  ;;  %v1211_v31 = vmax.f32 %v1111_v25, 0.0 }
 0x499   : > { %1373 = vst.msk [vmem:[%s2147_s15 + $0x28] sm:$0xf] %vm1362_vm4, %v1577_v27  ;;  %v1578_v36 = vpack.c.bf16 %v1213_v30, %v1213_v30 }
 0x49a   : > { %1371 = vst.msk [vmem:[%s2147_s15 + $0x20] sm:$0xf] %vm1362_vm4, %v1575_v32  ;;  %v1576_v42 = vpack.c.bf16 %v1211_v31, %v1211_v31  ;;  %v1721_v33 = vpop.f32.mrb[16].mxu0 }
 0x49b   : > { %1374 = vst.msk [vmem:[%s2147_s15 + $0x2c] sm:$0xf] %vm1362_vm4, %v1578_v36  ;;  %v1132_v43 = vadd.f32 %v1721_v33, %v2137_v57  ;;  %v1123_v38 = vpop.f32.mrb[17].mxu0 }
 0x49c   : > { %1372 = vst.msk [vmem:[%s2147_s15 + $0x24] sm:$0xf] %vm1362_vm4, %v1576_v42  ;;  %v1124_v39 = vadd.f32 %v2137_v57, %v1123_v38  ;;  %v1722_v44 = vpop.f32.mrb[18].mxu0 }
 0x49d   : > { %v1216_v45 = vmax.f32 %v1132_v43, 0.0  ;;  %v1135_v48 = vadd.f32 %v1722_v44, %v2137_v57  ;;  %v1126_v49 = vpop.f32.mrb[19].mxu0 }
 0x49e   : > { %v1214_v50 = vmax.f32 %v1124_v39, 0.0  ;;  %v1127_v51 = vadd.f32 %v2137_v57, %v1126_v49 }
 0x49f   : > { %v1581_v52 = vpack.c.bf16 %v1216_v45, %v1216_v45  ;;  %v1217_v53 = vmax.f32 %v1135_v48, 0.0 }
 0x4a0   : > { %v1579_v54 = vpack.c.bf16 %v1214_v50, %v1214_v50  ;;  %v1215_v55 = vmax.f32 %v1127_v51, 0.0 }
 0x4a1   : > { %1377 = vst.msk [vmem:[%s2147_s15 + $0x38] sm:$0xf] %vm1362_vm4, %v1581_v52  ;;  %v1582_v56 = vpack.c.bf16 %v1217_v53, %v1217_v53 }
 0x4a2   : > { %1375 = vst.msk [vmem:[%s2147_s15 + $0x30] sm:$0xf] %vm1362_vm4, %v1579_v54  ;;  %v1580_v58 = vpack.c.bf16 %v1215_v55, %v1215_v55  ;;  %v1725_v59 = vpop.f32.mrb[20].mxu0 }
 0x4a3   : > { %1378 = vst.msk [vmem:[%s2147_s15 + $0x3c] sm:$0xf] %vm1362_vm4, %v1582_v56  ;;  %v1148_v60 = vadd.f32 %v1725_v59, %v2137_v57  ;;  %v1139_v61 = vpop.f32.mrb[21].mxu0 }
 0x4a4   : > { %1376 = vst.msk [vmem:[%s2147_s15 + $0x34] sm:$0xf] %vm1362_vm4, %v1580_v58  ;;  %v1140_v3 = vadd.f32 %v2137_v57, %v1139_v61  ;;  %v1726_v5 = vpop.f32.mrb[22].mxu0 }
 0x4a5   : > { %v1220_v37 = vmax.f32 %v1148_v60, 0.0  ;;  %v1151_v10 = vadd.f32 %v1726_v5, %v2137_v57  ;;  %v1142_v11 = vpop.f32.mrb[23].mxu0 }
 0x4a6   : > { %v1218_v16 = vmax.f32 %v1140_v3, 0.0  ;;  %v1143_v17 = vadd.f32 %v2137_v57, %v1142_v11 }
 0x4a7   : > { %v1585_v62 = vpack.c.bf16 %v1220_v37, %v1220_v37  ;;  %v1221_v63 = vmax.f32 %v1151_v10, 0.0 }
 0x4a8   : > { %v1583_v22 = vpack.c.bf16 %v1218_v16, %v1218_v16  ;;  %v1219_v23 = vmax.f32 %v1143_v17, 0.0 }
 0x4a9   : > { %1381 = vst.msk [vmem:[%s2147_s15 + $0x48] sm:$0xf] %vm1362_vm4, %v1585_v62  ;;  %v1586_v28 = vpack.c.bf16 %v1221_v63, %v1221_v63 }
 0x4aa   : > { %1379 = vst.msk [vmem:[%s2147_s15 + $0x40] sm:$0xf] %vm1362_vm4, %v1583_v22  ;;  %v1584_v0 = vpack.c.bf16 %v1219_v23, %v1219_v23  ;;  %v1729_v29 = vpop.f32.mrb[24].mxu0 }
 0x4ab   : > { %1382 = vst.msk [vmem:[%s2147_s15 + $0x4c] sm:$0xf] %vm1362_vm4, %v1586_v28  ;;  %v1164_v4 = vadd.f32 %v1729_v29, %v2137_v57  ;;  %v1155_v34 = vpop.f32.mrb[25].mxu0 }
 0x4ac   : > { %1380 = vst.msk [vmem:[%s2147_s15 + $0x44] sm:$0xf] %vm1362_vm4, %v1584_v0  ;;  %v1156_v35 = vadd.f32 %v2137_v57, %v1155_v34  ;;  %v1730_v40 = vpop.f32.mrb[26].mxu0 }
 0x4ad   : > { %v1224_v8 = vmax.f32 %v1164_v4, 0.0  ;;  %v1167_v41 = vadd.f32 %v1730_v40, %v2137_v57  ;;  %v1158_v9 = vpop.f32.mrb[27].mxu0 }
 0x4ae   : > { %v1222_v46 = vmax.f32 %v1156_v35, 0.0  ;;  %v1159_v47 = vadd.f32 %v2137_v57, %v1158_v9 }
 0x4af   : > { %v1589_v1 = vpack.c.bf16 %v1224_v8, %v1224_v8  ;;  %v1225_v14 = vmax.f32 %v1167_v41, 0.0 }
 0x4b0   : > { %v1587_v2 = vpack.c.bf16 %v1222_v46, %v1222_v46  ;;  %v1223_v15 = vmax.f32 %v1159_v47, 0.0 }
 0x4b1   : > { %1385 = vst.msk [vmem:[%s2147_s15 + $0x58] sm:$0xf] %vm1362_vm4, %v1589_v1  ;;  %v1590_v6 = vpack.c.bf16 %v1225_v14, %v1225_v14 }
 0x4b2   : > { %1383 = vst.msk [vmem:[%s2147_s15 + $0x50] sm:$0xf] %vm1362_vm4, %v1587_v2  ;;  %v1588_v7 = vpack.c.bf16 %v1223_v15, %v1223_v15  ;;  %v1733_v12 = vpop.f32.mrb[28].mxu0 }
 0x4b3   : > { %1386 = vst.msk [vmem:[%s2147_s15 + $0x5c] sm:$0xf] %vm1362_vm4, %v1590_v6  ;;  %v1180_v20 = vadd.f32 %v1733_v12, %v2137_v57  ;;  %v1171_v13 = vpop.f32.mrb[29].mxu0 }
 0x4b4   : > { %1384 = vst.msk [vmem:[%s2147_s15 + $0x54] sm:$0xf] %vm1362_vm4, %v1588_v7  ;;  %v1172_v21 = vadd.f32 %v2137_v57, %v1171_v13  ;;  %v1734_v18 = vpop.f32.mrb[30].mxu0 }
 0x4b5   : > { %v1228_v19 = vmax.f32 %v1180_v20, 0.0  ;;  %v1183_v24 = vadd.f32 %v1734_v18, %v2137_v57  ;;  %v1174_v26 = vpop.f32.mrb[31].mxu0 }
 0x4b6   : > { %v1226_v25 = vmax.f32 %v1172_v21, 0.0  ;;  %v1175_v27 = vadd.f32 %v2137_v57, %v1174_v26 }
 0x4b7   : > { %v1593_v30 = vpack.c.bf16 %v1228_v19, %v1228_v19  ;;  %v1229_v32 = vmax.f32 %v1183_v24, 0.0 }
 0x4b8   : > { %v1591_v31 = vpack.c.bf16 %v1226_v25, %v1226_v25  ;;  %v1227_v36 = vmax.f32 %v1175_v27, 0.0 }
 0x4b9   : > { %1389 = vst.msk [vmem:[%s2147_s15 + $0x68] sm:$0xf] %vm1362_vm4, %v1593_v30  ;;  %v1594_v42 = vpack.c.bf16 %v1229_v32, %v1229_v32 }
 0x4ba   : > { %1387 = vst.msk [vmem:[%s2147_s15 + $0x60] sm:$0xf] %vm1362_vm4, %v1591_v31  ;;  %v1592_v33 = vpack.c.bf16 %v1227_v36, %v1227_v36  ;;  %v1737_v43 = vpop.f32.mrb[40].mxu1 }
 0x4bb   : > { %1390 = vst.msk [vmem:[%s2147_s15 + $0x6c] sm:$0xf] %vm1362_vm4, %v1594_v42  ;;  %v1196_v38 = vadd.f32 %v1737_v43, %v2137_v57  ;;  %v1187_v39 = vpop.f32.mrb[41].mxu1 }
 0x4bc   : > { %1388 = vst.msk [vmem:[%s2147_s15 + $0x64] sm:$0xf] %vm1362_vm4, %v1592_v33  ;;  %v1188_v44 = vadd.f32 %v2137_v57, %v1187_v39  ;;  %v1738_v45 = vpop.f32.mrb[42].mxu1 }
 0x4bd   : > { %v1232_v48 = vmax.f32 %v1196_v38, 0.0  ;;  %v1199_v49 = vadd.f32 %v1738_v45, %v2137_v57  ;;  %v1190_v50 = vpop.f32.mrb[43].mxu1 }
 0x4be   : > { %v1230_v51 = vmax.f32 %v1188_v44, 0.0  ;;  %v1191_v52 = vadd.f32 %v2137_v57, %v1190_v50 }
 0x4bf   : > { %v1597_v53 = vpack.c.bf16 %v1232_v48, %v1232_v48  ;;  %v1233_v54 = vmax.f32 %v1199_v49, 0.0 }
 0x4c0   : > { %v1595_v55 = vpack.c.bf16 %v1230_v51, %v1230_v51  ;;  %v1231_v56 = vmax.f32 %v1191_v52, 0.0 }
 0x4c1   : > { %1393 = vst.msk [vmem:[%s2147_s15 + $0x78] sm:$0xf] %vm1362_vm4, %v1597_v53  ;;  %v1598_v58 = vpack.c.bf16 %v1233_v54, %v1233_v54 }
 0x4c2   : > { %1391 = vst.msk [vmem:[%s2147_s15 + $0x70] sm:$0xf] %vm1362_vm4, %v1595_v55  ;;  %v1596_v59 = vpack.c.bf16 %v1231_v56, %v1231_v56 }
 0x4c3   : > { %1394 = vst.msk [vmem:[%s2147_s15 + $0x7c] sm:$0xf] %vm1362_vm4, %v1598_v58 }
 0x4c4   : > { %1392 = vst.msk [vmem:[%s2147_s15 + $0x74] sm:$0xf] %vm1362_vm4, %v1596_v59 }
 0x4c5 PF: > { %s19_s30 = sadd.s32 1, %s1777_s30  }
 0x4c6   : > { %p16_p4 = scmp.ge.s32.totalorder %s19_s30, 4  }
 0x4c8   :  { %18 = sbr.rel (!%p16_p4) target bundleno = 1 (0x1), region = 86 }

// kernel: ball_localization_forward.12
= control target key start
LH: loop header
LB: loop body
LE: loop exit
PB: predicated region body
PF: predicated region fallthrough
CT: control target
= control target key end

     0   :  { %12 = vsyncpa [#allocation3], 0  ;;  %s946_s21 = smov 0   ;;  %s1082_s0 = inlined_call_operand.vmem [shape: bf16[2,64,72], index: 0, kind: input, shape index: {}]   ;;  %s1083_s1 = inlined_call_operand.vmem [shape: bf16[72,24], index: 1, kind: input, shape index: {}]   ;;  %s1084_s2 = inlined_call_operand.hbm [shape: f32[1,24], index: 2, kind: input, shape index: {}]   ;;  %s1085_s3 = inlined_call_operand.vmem [shape: bf16[24,88], index: 3, kind: input, shape index: {}]   ;;  %s1086_s4 = inlined_call_operand.vmem [shape: f32[1,88], index: 4, kind: input, shape index: {}]   ;;  %s1087_s5 = inlined_call_operand.vmem [shape: bf16[2,64,88], index: 5, kind: output, shape index: {0}]   ;;  %s1088_s6 = inlined_call_operand.vmem [shape: bf16[2,64,24], index: 6, kind: output, shape index: {1}]  }
   0x1 LB: > { %s952_s22 = sadd.s32 4294967295, %s908_s21   ;;  %p724_p0 = scmp.ge.s32.totalorder %s908_s21, 1  ;;  %s908_s21 = sphi %s946_s21, %s18_s21  }
   0x2   : > { %p185_p1 = scmp.lt.s32.totalorder %s908_s21, 3  ;;  %p1089_p3 = scmp.eq.s32.totalorder %s952_s22, 0 }
   0x3   : > { %s910_s24 = smov [#allocation2]   ;;  %s870_s29 = scalar_lea.hbm %s1084_s2, 16 }
   0x4   : > { %p956_p2 = pnand %p724_p0, %p185_p1  ;;  %s201_s25 = sshll.u32 %s910_s24, 4  ;;  %s202_s25 = int_to_ptr.vmem [resolvable:$true] %s201_s25 }
   0x5   : > { %p871_p6 = scmp.ne.s32.totalorder %s1084_s2, %s870_s29  ;;  %p877_p10 = scmp.lt.u32.totalorder %s870_s29, %s1084_s2 }
   0x6   : > { %s1091_s23 = scalar_select %p956_p2, 1, 0 }
   0x7   : > { %p844_p4 = pneg %p956_p2 }
   0x9   : > { %p965_p5 = pnand %p1089_p3, %p844_p4 }
   0xb   : > { %p872_p7 = pneg %p965_p5 }
   0xd   : > { %p873_p8 = pnand %p872_p7, %p871_p6 }
   0xf   : > { %p874_p9 = pneg %p873_p8 }
  0x11   : > { %p879_p11 = pnand %p877_p10, %p874_p9 }
  0x13   : > { %882 = shalt.err (!%p879_p11)
}
  0x14   : > { %s883_s10 = scalar_lea.vmem %s202_s25, 16  ;;  %s890_s11 = scalar_lea.vmem %s202_s25, 32 }
  0x15   : > { %p884_p12 = scmp.ne.s32.totalorder %s202_s25, %s883_s10  ;;  %p891_p1 = scmp.lt.s32.totalorder %s202_s25, %s202_s25 }
  0x16   : > { %p892_p4 = scmp.lt.s32.totalorder %s890_s11, %s883_s10 }
  0x17   : > { %p886_p13 = pnand %p884_p12, %p872_p7 }
  0x18   : > { %p893_p3 = por %p892_p4, %p891_p1 }
  0x19   : > { %p887_p0 = pneg %p886_p13 }
  0x1b   : > { %p894_p2 = pnand %p893_p3, %p887_p0 }
  0x1d   : > { %897 = shalt.err (!%p894_p2)
}
  0x1e   : > { %847 = dma.hbm_to_vmem [thread:$0]  (!%p965_p5), %s1084_s2, 16, %s202_s25, [#allocation3]  }
  0x1f   : > { %p1093_p6 = scmp.ne.s32.totalorder %s1091_s23, 0 }
  0x20   : > { %p1094_p8 = scmp.eq.s32.totalorder (!%p1093_p6), %s952_s22, 0 }
  0x21   : > { %228 = sbr.rel (%p1093_p6) target bundleno = 512 (0x200), region = 40 }
  0x28   : > { %903 = dma.done.wait (%p1094_p8), [#allocation3], 16   ;;  %p1095_p7 = pmov %p1094_p8 }
  0x29   : > { %p263_p9 = scmp.lt.s32.totalorder %s952_s22, 1  ;;  %v859_v0 = vld [vmem:[%s1083_s1] sm:$0xff]   ;;  %v860_v1 = vld [vmem:[%s1083_s1 + $0x8] sm:$0xff]   ;;  %v861_v2 = vld [vmem:[%s1083_s1 + $0x10] sm:$0xff]   ;;  %vm350_vm0 = vcmask 588800   ;;  %vm363_vm1 = vcmask 1043456  }
  0x2a   : > { %905 = vsyncadd (%p1095_p7), [#allocation3], 4294967280  ;;  %808 = vmatprep.subr.bf16.mxu0 %v859_v0  ;;  %v862_v4 = vld [vmem:[%s1083_s1 + $0x18] sm:$0xff]   ;;  %v863_v5 = vld [vmem:[%s1083_s1 + $0x20] ss:$0 sps:$4 sm:$0xff]   ;;  %vm613_vm2 = vcmask 191488  }
  0x2b   : > { %s1097_s22 = smov (!%p263_p9, %s952_s22), 1  ;;  %809 = vmatpush3.bf16.msra.mxu0 %v859_v0  ;;  %v365_v6 = vsel %vm363_vm1, %v863_v5, 0  ;;  %v868_v10 = vld [vmem:[%s1085_s3] sm:$0xff]   ;;  %v869_v11 = vld [vmem:[%s1085_s3 + $0x8] ss:$0 sps:$4 sm:$0xff]   ;;  %vm455_vm3 = vcmask 195584  }
  0x2c   : > { %s993_s14 = sshll.u32 %s1097_s22, 5  ;;  %810 = vmatprep.subr.bf16.mxu0 %v860_v1  ;;  %826 = vmatprep.subr.bf16.mxu1 %v868_v10  ;;  %v469_v12 = vsel %vm363_vm1, %v869_v11, 0  ;;  %v735_v13 = vld [vmem:[#allocation2] ss:$0 sm:$0xff]  ;;  %vm576_vm4 = vcmask 715776  }
  0x2d   : > { %s267_s23 = scalar_lea.vmem %s1082_s0, %s993_s14  ;;  %827 = vmatpush3.bf16.msra.mxu1 %v868_v10  ;;  %s1032_s11 = scalar_lea.vmem %s1088_s6, %s993_s14  ;;  %v749_v42 = vld [vmem:[%s1086_s4] ss:$0 sm:$0xff] }
  0x2e   : > { %v864_v3 = vld [vmem:[%s267_s23] sm:$0xff]   ;;  %v865_v7 = vld [vmem:[%s267_s23 + $0x8] sm:$0xff]   ;;  %v866_v8 = vld [vmem:[%s267_s23 + $0x10] sm:$0xff]   ;;  %839 = vmatprep.subr.msk.bf16.mxu1 %vm363_vm1, %v869_v11  ;;  %s1061_s17 = scalar_lea.vmem %s1087_s5, %s993_s14 }
  0x2f   : > { %811 = vmatpush3.bf16.msra.mxu0 %v860_v1  ;;  %818 = vmatprep.mubr.msk.bf16.mxu0 %vm350_vm0, %v864_v3  ;;  %v867_v9 = vld [vmem:[%s267_s23 + $0x18] sm:$0xff]  }
  0x30   : > { %812 = vmatprep.subr.bf16.mxu0 %v861_v2 }
  0x31   : > { %829 = vmatpush3.bf16.msra.mxu1 %v469_v12 }
  0x33   : > { %813 = vmatpush3.bf16.msra.mxu0 %v861_v2 }
  0x34   : > { %814 = vmatprep.subr.bf16.mxu0 %v862_v4 }
  0x37   : > { %815 = vmatpush3.bf16.msra.mxu0 %v862_v4 }
  0x38   : > { %838 = vmatprep.subr.msk.bf16.mxu0 %vm363_vm1, %v863_v5 }
  0x3b   : > { %817 = vmatpush3.bf16.msra.mxu0 %v365_v6 }
  0x3e   : > { %819 = vmatmul.mubr.msk.bf16.vlgmr.msra.gmra.mrb[0].mxu0 %vm350_vm0, %v865_v7 }
  0x3f   : > { %822 = vmatprep.mubr.msk.bf16.mxu0 %vm350_vm0, %v866_v8 }
  0x46   : > { %823 = vmatmul.mubr.msk.bf16.gmra.mrb[4].mxu0 %vm350_vm0, %v867_v9 }
 0x111   : > { %v820_v14 = vpop.f32.mrb[0].mxu0 }
 0x112   : > { %v410_v15 = vadd.f32 %v820_v14, %v735_v13  ;;  %v401_v16 = vpop.f32.mrb[1].mxu0 }
 0x113   : > { %v402_v17 = vadd.f32 %v735_v13, %v401_v16  ;;  %v821_v18 = vpop.f32.mrb[2].mxu0 }
 0x114   : > { %v787_v19 = vpack.c.bf16 %v410_v15, %v410_v15  ;;  %v413_v20 = vadd.f32 %v821_v18, %v735_v13  ;;  %v404_v21 = vpop.f32.mrb[3].mxu0 }
 0x115   : > { %v785_v22 = vpack.c.bf16 %v402_v17, %v402_v17  ;;  %v405_v23 = vadd.f32 %v735_v13, %v404_v21 }
 0x116   : > { %616 = vst.msk [vmem:[%s1032_s11 + $0x8] sm:$0xf] %vm613_vm2, %v787_v19  ;;  %v433_v24 = vpack.c.bf16 %v413_v20, %v410_v15  ;;  %v788_v25 = vpack.c.bf16 %v413_v20, %v413_v20 }
 0x117   : > { %614 = vst.msk [vmem:[%s1032_s11] sm:$0xf] %vm613_vm2, %v785_v22  ;;  %v786_v26 = vpack.c.bf16 %v405_v23, %v405_v23  ;;  %v432_v27 = vpack.c.bf16 %v405_v23, %v402_v17 }
 0x118   : > { %617 = vst.msk [vmem:[%s1032_s11 + $0xc] sm:$0xf] %vm613_vm2, %v788_v25 }
 0x119   : > { %615 = vst.msk [vmem:[%s1032_s11 + $0x4] sm:$0xf] %vm613_vm2, %v786_v26  ;;  %v824_v28 = vpop.f32.mrb[4].mxu0  ;;  %830 = vmatprep.mubr.msk.bf16.mxu1 %vm455_vm3, %v432_v27 }
 0x11a   : > { %v426_v29 = vadd.f32 %v824_v28, %v735_v13  ;;  %v417_v30 = vpop.f32.mrb[5].mxu0  ;;  %831 = vmatmul.mubr.msk.bf16.vlgmr.msra.gmra.mrb[0].mxu1 %vm455_vm3, %v433_v24 }
 0x11b   : > { %v418_v31 = vadd.f32 %v735_v13, %v417_v30  ;;  %v825_v32 = vpop.f32.mrb[6].mxu0 }
 0x11c   : > { %v791_v33 = vpack.c.bf16 %v426_v29, %v426_v29  ;;  %v429_v34 = vadd.f32 %v825_v32, %v735_v13  ;;  %v420_v35 = vpop.f32.mrb[7].mxu0 }
 0x11d   : > { %v789_v36 = vpack.c.bf16 %v418_v31, %v418_v31  ;;  %v421_v37 = vadd.f32 %v735_v13, %v420_v35 }
 0x11e   : > { %620 = vst.msk [vmem:[%s1032_s11 + $0x18] sm:$0xf] %vm613_vm2, %v791_v33  ;;  %v435_v38 = vpack.c.bf16 %v429_v34, %v426_v29  ;;  %v792_v39 = vpack.c.bf16 %v429_v34, %v429_v34 }
 0x11f   : > { %618 = vst.msk [vmem:[%s1032_s11 + $0x10] sm:$0xf] %vm613_vm2, %v789_v36  ;;  %v434_v40 = vpack.c.bf16 %v421_v37, %v418_v31  ;;  %v790_v41 = vpack.c.bf16 %v421_v37, %v421_v37 }
 0x120   : > { %621 = vst.msk [vmem:[%s1032_s11 + $0x1c] sm:$0xf] %vm613_vm2, %v792_v39 }
 0x121   : > { %619 = vst.msk [vmem:[%s1032_s11 + $0x14] sm:$0xf] %vm613_vm2, %v790_v41  ;;  %834 = vmatprep.mubr.msk.bf16.mxu1 %vm455_vm3, %v434_v40 }
 0x122   : > { %835 = vmatmul.mubr.msk.bf16.gmra.mrb[4].mxu1 %vm455_vm3, %v435_v38 }
 0x1ed   : > { %v832_v43 = vpop.f32.mrb[0].mxu1 }
 0x1ee   : > { %v514_v44 = vadd.f32 %v832_v43, %v749_v42  ;;  %v505_v45 = vpop.f32.mrb[1].mxu1 }
 0x1ef   : > { %v506_v46 = vadd.f32 %v749_v42, %v505_v45  ;;  %v833_v47 = vpop.f32.mrb[2].mxu1 }
 0x1f0   : > { %v538_v48 = vmax.f32 %v514_v44, 0.0  ;;  %v517_v49 = vadd.f32 %v833_v47, %v749_v42  ;;  %v508_v50 = vpop.f32.mrb[3].mxu1 }
 0x1f1   : > { %v536_v51 = vmax.f32 %v506_v46, 0.0  ;;  %v509_v52 = vadd.f32 %v749_v42, %v508_v50 }
 0x1f2   : > { %v779_v53 = vpack.c.bf16 %v538_v48, %v538_v48  ;;  %v539_v54 = vmax.f32 %v517_v49, 0.0 }
 0x1f3   : > { %v777_v55 = vpack.c.bf16 %v536_v51, %v536_v51  ;;  %v537_v56 = vmax.f32 %v509_v52, 0.0 }
 0x1f4   : > { %579 = vst.msk [vmem:[%s1061_s17 + $0x8] sm:$0xf] %vm576_vm4, %v779_v53  ;;  %v780_v57 = vpack.c.bf16 %v539_v54, %v539_v54 }
 0x1f5   : > { %577 = vst.msk [vmem:[%s1061_s17] sm:$0xf] %vm576_vm4, %v777_v55  ;;  %v778_v58 = vpack.c.bf16 %v537_v56, %v537_v56  ;;  %v836_v59 = vpop.f32.mrb[4].mxu1 }
 0x1f6   : > { %580 = vst.msk [vmem:[%s1061_s17 + $0xc] sm:$0xf] %vm576_vm4, %v780_v57  ;;  %v530_v60 = vadd.f32 %v836_v59, %v749_v42  ;;  %v521_v61 = vpop.f32.mrb[5].mxu1 }
 0x1f7   : > { %578 = vst.msk [vmem:[%s1061_s17 + $0x4] sm:$0xf] %vm576_vm4, %v778_v58  ;;  %v522_v62 = vadd.f32 %v749_v42, %v521_v61  ;;  %v837_v63 = vpop.f32.mrb[6].mxu1 }
 0x1f8   : > { %v542_v0 = vmax.f32 %v530_v60, 0.0  ;;  %v533_v1 = vadd.f32 %v837_v63, %v749_v42  ;;  %v524_v2 = vpop.f32.mrb[7].mxu1 }
 0x1f9   : > { %v540_v3 = vmax.f32 %v522_v62, 0.0  ;;  %v525_v4 = vadd.f32 %v749_v42, %v524_v2 }
 0x1fa   : > { %v783_v5 = vpack.c.bf16 %v542_v0, %v542_v0  ;;  %v543_v6 = vmax.f32 %v533_v1, 0.0 }
 0x1fb   : > { %v781_v7 = vpack.c.bf16 %v540_v3, %v540_v3  ;;  %v541_v8 = vmax.f32 %v525_v4, 0.0 }
 0x1fc   : > { %583 = vst.msk [vmem:[%s1061_s17 + $0x18] sm:$0xf] %vm576_vm4, %v783_v5  ;;  %v784_v9 = vpack.c.bf16 %v543_v6, %v543_v6 }
 0x1fd   : > { %581 = vst.msk [vmem:[%s1061_s17 + $0x10] sm:$0xf] %vm576_vm4, %v781_v7  ;;  %v782_v10 = vpack.c.bf16 %v541_v8, %v541_v8 }
 0x1fe   : > { %584 = vst.msk [vmem:[%s1061_s17 + $0x1c] sm:$0xf] %vm576_vm4, %v784_v9 }
 0x1ff   : > { %582 = vst.msk [vmem:[%s1061_s17 + $0x14] sm:$0xf] %vm576_vm4, %v782_v10 }
 0x200 PF: > { %s18_s21 = sadd.s32 1, %s908_s21  }
 0x201   : > { %p15_p2 = scmp.ge.s32.totalorder %s18_s21, 4  }
 0x203   :  { %17 = sbr.rel (!%p15_p2) target bundleno = 1 (0x1), region = 87 }
 0x20a   :  { %659 = vsyncpa [#allocation3], 1 }
 0x20b   :  { %661 = vsyncpa [#allocation3 + $0x1], 1 }

// kernel: ball_localization_forward.13
= control target key start
LH: loop header
LB: loop body
LE: loop exit
PB: predicated region body
PF: predicated region fallthrough
CT: control target
= control target key end

     0   :  { %11 = vsyncpa [#allocation3], 0  ;;  %s1191_s0 = inlined_call_operand.vmem [shape: bf16[2,64,88], index: 0, kind: input, shape index: {}]   ;;  %s1192_s1 = inlined_call_operand.vmem [shape: bf16[88,24], index: 1, kind: input, shape index: {}]   ;;  %s1193_s2 = inlined_call_operand.hbm [shape: f32[1,24], index: 2, kind: input, shape index: {}]   ;;  %s1194_s3 = inlined_call_operand.vmem [shape: bf16[2,64,24], index: 3, kind: input, shape index: {}]   ;;  %s1195_s4 = inlined_call_operand.vmem [shape: bf16[24,96], index: 4, kind: input, shape index: {}]   ;;  %s1196_s5 = inlined_call_operand.hbm [shape: f32[1,96], index: 5, kind: input, shape index: {}]   ;;  %s1197_s6 = inlined_call_operand.vmem [shape: bf16[2,64,96], index: 6, kind: output, shape index: {}]  }
   0x1   :  { %12 = vsyncpa [#allocation5], 0  ;;  %s1035_s21 = smov 0  }
   0x2 LB: > { %s1041_s22 = sadd.s32 4294967295, %s996_s21   ;;  %p760_p0 = scmp.ge.s32.totalorder %s996_s21, 1  ;;  %s996_s21 = sphi %s1035_s21, %s18_s21  }
   0x3   : > { %p185_p1 = scmp.lt.s32.totalorder %s996_s21, 3  ;;  %p1198_p2 = scmp.eq.s32.totalorder %s1041_s22, 0 }
   0x4   : > { %s998_s24 = smov [#allocation2]   ;;  %s999_s26 = smov [#allocation4]  }
   0x5   : > { %p1046_p3 = pnand %p760_p0, %p185_p1  ;;  %s201_s25 = sshll.u32 %s998_s24, 4  ;;  %s202_s25 = int_to_ptr.vmem [resolvable:$true] %s201_s25 }
   0x6   : > { %s215_s27 = sshll.u32 %s999_s26, 4  ;;  %s926_s7 = scalar_lea.hbm %s1193_s2, 16  ;;  %s1058_s27 = int_to_ptr.vmem [resolvable:$true] %s215_s27 }
   0x7   : > { %s1200_s23 = scalar_select %p1046_p3, 1, 0 }
   0x8   : > { %p893_p4 = pneg %p1046_p3  ;;  %p927_p6 = scmp.ne.s32.totalorder %s1193_s2, %s926_s7 }
   0x9   : > { %p933_p10 = scmp.lt.u32.totalorder %s926_s7, %s1193_s2 }
   0xa   : > { %p1054_p5 = pnand %p1198_p2, %p893_p4 }
   0xc   : > { %p928_p7 = pneg %p1054_p5 }
   0xe   : > { %p929_p8 = pnand %p928_p7, %p927_p6 }
  0x10   : > { %p930_p9 = pneg %p929_p8 }
  0x12   : > { %p935_p11 = pnand %p933_p10, %p930_p9 }
  0x14   : > { %938 = shalt.err (!%p935_p11)
}
  0x15   : > { %s939_s12 = scalar_lea.vmem %s202_s25, 16  ;;  %s946_s13 = scalar_lea.vmem %s202_s25, 32 }
  0x16   : > { %p940_p12 = scmp.ne.s32.totalorder %s202_s25, %s939_s12  ;;  %p947_p1 = scmp.lt.s32.totalorder %s202_s25, %s202_s25 }
  0x17   : > { %p948_p4 = scmp.lt.s32.totalorder %s946_s13, %s939_s12 }
  0x18   : > { %p942_p13 = pnand %p940_p12, %p928_p7 }
  0x19   : > { %p949_p2 = por %p948_p4, %p947_p1 }
  0x1a   : > { %p943_p0 = pneg %p942_p13 }
  0x1c   : > { %p950_p3 = pnand %p949_p2, %p943_p0 }
  0x1e   : > { %953 = shalt.err (!%p950_p3)
}
  0x1f   : > { %896 = dma.hbm_to_vmem [thread:$0]  (!%p1054_p5), %s1193_s2, 16, %s202_s25, [#allocation3]  }
  0x20   : > { %s954_s18 = scalar_lea.hbm %s1196_s5, 16 }
  0x21   : > { %p955_p6 = scmp.ne.s32.totalorder %s1196_s5, %s954_s18  ;;  %p961_p3 = scmp.lt.u32.totalorder %s954_s18, %s1196_s5 }
  0x23   : > { %p957_p8 = pnand %p955_p6, %p928_p7 }
  0x25   : > { %p958_p2 = pneg %p957_p8 }
  0x27   : > { %p963_p9 = pnand %p961_p3, %p958_p2 }
  0x29   : > { %966 = shalt.err (!%p963_p9)
}
  0x2a   : > { %s967_s25 = scalar_lea.vmem %s1058_s27, 16  ;;  %s974_s29 = scalar_lea.vmem %s1058_s27, 32 }
  0x2b   : > { %p968_p10 = scmp.ne.s32.totalorder %s1058_s27, %s967_s25  ;;  %p975_p13 = scmp.lt.s32.totalorder %s1058_s27, %s1058_s27 }
  0x2c   : > { %p976_p0 = scmp.lt.s32.totalorder %s974_s29, %s967_s25 }
  0x2d   : > { %p970_p11 = pnand %p968_p10, %p928_p7 }
  0x2e   : > { %p977_p1 = por %p976_p0, %p975_p13 }
  0x2f   : > { %p971_p12 = pneg %p970_p11 }
  0x31   : > { %p978_p4 = pnand %p977_p1, %p971_p12 }
  0x33   : > { %981 = shalt.err (!%p978_p4)
}
  0x34   : > { %899 = dma.hbm_to_vmem [thread:$0]  (!%p1054_p5), %s1196_s5, 16, %s1058_s27, [#allocation5]  }
  0x35   : > { %p1202_p6 = scmp.ne.s32.totalorder %s1200_s23, 0 }
  0x36   : > { %p1203_p7 = scmp.eq.s32.totalorder (!%p1202_p6), %s1041_s22, 0 }
  0x37   : > { %244 = sbr.rel (%p1202_p6) target bundleno = 551 (0x227), region = 44 }
  0x3e   : > { %987 = dma.done.wait (%p1203_p7), [#allocation3], 16   ;;  %p1204_p8 = pmov %p1203_p7 }
  0x3f   : > { %p1205_p2 = pmov %p1203_p7 }
  0x40   : > { %989 = vsyncadd (%p1204_p8), [#allocation3], 4294967280 }
  0x41   : > { %991 = dma.done.wait (%p1205_p2), [#allocation5], 16   ;;  %p1206_p3 = pmov %p1205_p2 }
  0x42   : > { %p283_p9 = scmp.lt.s32.totalorder %s1041_s22, 1  ;;  %v914_v0 = vld [vmem:[%s1192_s1] sm:$0xff]   ;;  %v915_v1 = vld [vmem:[%s1192_s1 + $0x8] sm:$0xff]   ;;  %v916_v2 = vld [vmem:[%s1192_s1 + $0x10] sm:$0xff]   ;;  %vm378_vm0 = vcmask 719872   ;;  %vm391_vm1 = vcmask 1043456  }
  0x43   : > { %993 = vsyncadd (%p1206_p3), [#allocation5], 4294967280  ;;  %851 = vmatprep.subr.bf16.mxu0 %v914_v0  ;;  %v917_v4 = vld [vmem:[%s1192_s1 + $0x18] sm:$0xff]   ;;  %v918_v5 = vld [vmem:[%s1192_s1 + $0x20] sm:$0xff]   ;;  %vm507_vm2 = vcmask 195584   ;;  %vm660_vm3 = vcmask 781312  }
  0x44   : > { %s1208_s22 = smov (!%p283_p9, %s1041_s22), 1  ;;  %852 = vmatpush3.bf16.msra.mxu0 %v914_v0  ;;  %v919_v6 = vld [vmem:[%s1192_s1 + $0x28] ss:$0 sps:$4 sm:$0xff]   ;;  %v924_v11 = vld [vmem:[%s1195_s4] sm:$0xff]  }
  0x45   : > { %s1123_s23 = sshll.u32 %s1208_s22, 5  ;;  %853 = vmatprep.subr.bf16.mxu0 %v915_v1  ;;  %v393_v7 = vsel %vm391_vm1, %v919_v6, 0  ;;  %871 = vmatprep.subr.bf16.mxu1 %v924_v11  ;;  %v925_v12 = vld [vmem:[%s1195_s4 + $0x8] ss:$0 sps:$4 sm:$0xff]   ;;  %v773_v16 = vld [vmem:[#allocation2] ss:$0 sm:$0xff] }
  0x46   : > { %s287_s12 = scalar_lea.vmem %s1191_s0, %s1123_s23  ;;  %872 = vmatpush3.bf16.msra.mxu1 %v924_v11  ;;  %v521_v13 = vsel %vm391_vm1, %v925_v12, 0  ;;  %s292_s7 = scalar_lea.vmem %s1194_s3, %s1123_s23  ;;  %v788_v55 = vld [vmem:[#allocation4] ss:$0 sm:$0xff] }
  0x47   : > { %v920_v3 = vld [vmem:[%s287_s12] sm:$0xff]   ;;  %v921_v8 = vld [vmem:[%s287_s12 + $0x8] sm:$0xff]   ;;  %v922_v9 = vld [vmem:[%s287_s12 + $0x10] sm:$0xff]   ;;  %884 = vmatprep.subr.msk.bf16.mxu1 %vm391_vm1, %v925_v12  ;;  %s1170_s8 = scalar_lea.vmem %s1197_s6, %s1123_s23 }
  0x48   : > { %854 = vmatpush3.bf16.msra.mxu0 %v915_v1  ;;  %863 = vmatprep.mubr.msk.bf16.mxu0 %vm378_vm0, %v920_v3  ;;  %v923_v10 = vld [vmem:[%s287_s12 + $0x18] sm:$0xff]   ;;  %v832_v14 = vld [vmem:[%s292_s7 + $0x8] sm:$0xff]   ;;  %v817_v15 = vld [vmem:[%s292_s7] sm:$0xff]  }
  0x49   : > { %855 = vmatprep.subr.bf16.mxu0 %v916_v2  ;;  %v822_v17 = vunpack.c.l.bf16 %v832_v14  ;;  %v818_v19 = vunpack.c.l.bf16 %v817_v15  ;;  %v823_v22 = vunpack.c.h.bf16 %v832_v14  ;;  %v819_v25 = vunpack.c.h.bf16 %v817_v15  ;;  %v834_v31 = vld [vmem:[%s292_s7 + $0x18] sm:$0xff]   ;;  %v833_v33 = vld [vmem:[%s292_s7 + $0x10] sm:$0xff]  }
  0x4a   : > { %874 = vmatpush3.bf16.msra.mxu1 %v521_v13  ;;  %v830_v36 = vunpack.c.l.bf16 %v834_v31  ;;  %v826_v38 = vunpack.c.l.bf16 %v833_v33  ;;  %v831_v42 = vunpack.c.h.bf16 %v834_v31  ;;  %v827_v45 = vunpack.c.h.bf16 %v833_v33 }
  0x4c   : > { %856 = vmatpush3.bf16.msra.mxu0 %v916_v2 }
  0x4d   : > { %857 = vmatprep.subr.bf16.mxu0 %v917_v4 }
  0x50   : > { %858 = vmatpush3.bf16.msra.mxu0 %v917_v4 }
  0x51   : > { %859 = vmatprep.subr.bf16.mxu0 %v918_v5 }
  0x54   : > { %860 = vmatpush3.bf16.msra.mxu0 %v918_v5 }
  0x55   : > { %883 = vmatprep.subr.msk.bf16.mxu0 %vm391_vm1, %v919_v6 }
  0x58   : > { %862 = vmatpush3.bf16.msra.mxu0 %v393_v7 }
  0x5b   : > { %864 = vmatmul.mubr.msk.bf16.vlgmr.msra.gmra.mrb[0].mxu0 %vm378_vm0, %v921_v8 }
  0x5c   : > { %867 = vmatprep.mubr.msk.bf16.mxu0 %vm378_vm0, %v922_v9 }
  0x63   : > { %868 = vmatmul.mubr.msk.bf16.gmra.mrb[4].mxu0 %vm378_vm0, %v923_v10 }
 0x12e   : > { %v865_v18 = vpop.f32.mrb[0].mxu0 }
 0x12f   : > { %v438_v20 = vadd.f32 %v865_v18, %v773_v16  ;;  %v429_v21 = vpop.f32.mrb[1].mxu0 }
 0x130   : > { %v430_v23 = vadd.f32 %v773_v16, %v429_v21  ;;  %v866_v24 = vpop.f32.mrb[2].mxu0 }
 0x131   : > { %v478_v26 = vadd.f32 %v822_v17, %v438_v20  ;;  %v441_v27 = vadd.f32 %v866_v24, %v773_v16  ;;  %v432_v28 = vpop.f32.mrb[3].mxu0 }
 0x132   : > { %v476_v29 = vadd.f32 %v818_v19, %v430_v23  ;;  %v433_v30 = vadd.f32 %v773_v16, %v432_v28 }
 0x133   : > { %v479_v32 = vadd.f32 %v823_v22, %v441_v27 }
 0x134   : > { %v477_v34 = vadd.f32 %v819_v25, %v433_v30 }
 0x135   : > { %v485_v35 = vpack.c.bf16 %v479_v32, %v478_v26 }
 0x136   : > { %v869_v37 = vpop.f32.mrb[4].mxu0  ;;  %v484_v39 = vpack.c.bf16 %v477_v34, %v476_v29 }
 0x137   : > { %v454_v40 = vadd.f32 %v869_v37, %v773_v16  ;;  %v445_v41 = vpop.f32.mrb[5].mxu0 }
 0x138   : > { %v446_v43 = vadd.f32 %v773_v16, %v445_v41  ;;  %v870_v44 = vpop.f32.mrb[6].mxu0  ;;  %875 = vmatprep.mubr.msk.bf16.mxu1 %vm507_vm2, %v484_v39 }
 0x139   : > { %v482_v46 = vadd.f32 %v830_v36, %v454_v40  ;;  %v457_v47 = vadd.f32 %v870_v44, %v773_v16  ;;  %v448_v48 = vpop.f32.mrb[7].mxu0  ;;  %876 = vmatmul.mubr.msk.bf16.vlgmr.msra.gmra.mrb[0].mxu1 %vm507_vm2, %v485_v35 }
 0x13a   : > { %v480_v49 = vadd.f32 %v826_v38, %v446_v43  ;;  %v449_v50 = vadd.f32 %v773_v16, %v448_v48 }
 0x13b   : > { %v483_v51 = vadd.f32 %v831_v42, %v457_v47 }
 0x13c   : > { %v481_v52 = vadd.f32 %v827_v45, %v449_v50 }
 0x13d   : > { %v487_v53 = vpack.c.bf16 %v483_v51, %v482_v46 }
 0x13e   : > { %v486_v54 = vpack.c.bf16 %v481_v52, %v480_v49 }
 0x140   : > { %879 = vmatprep.mubr.msk.bf16.mxu1 %vm507_vm2, %v486_v54 }
 0x141   : > { %880 = vmatmul.mubr.msk.bf16.gmra.mrb[4].mxu1 %vm507_vm2, %v487_v53 }
 0x20c   : > { %v877_v56 = vpop.f32.mrb[0].mxu1 }
 0x20d   : > { %v566_v57 = vadd.f32 %v877_v56, %v788_v55  ;;  %v557_v58 = vpop.f32.mrb[1].mxu1 }
 0x20e   : > { %v558_v59 = vadd.f32 %v788_v55, %v557_v58  ;;  %v878_v60 = vpop.f32.mrb[2].mxu1 }
 0x20f   : > { %v590_v61 = vadd.f32 3.0, %v566_v57  ;;  %v569_v62 = vadd.f32 %v878_v60, %v788_v55  ;;  %v560_v63 = vpop.f32.mrb[3].mxu1 }
 0x210   : > { %v588_v0 = vadd.f32 3.0, %v558_v59  ;;  %v561_v1 = vadd.f32 %v788_v55, %v560_v63 }
 0x211   : > { %v598_v2 = vmax.f32 %v590_v61, 0.0  ;;  %v591_v3 = vadd.f32 3.0, %v569_v62 }
 0x212   : > { %v596_v4 = vmax.f32 %v588_v0, 0.0  ;;  %v589_v5 = vadd.f32 3.0, %v561_v1 }
 0x213   : > { %v606_v6 = vmin.f32 %v598_v2, 6.0  ;;  %v599_v7 = vmax.f32 %v591_v3, 0.0 }
 0x214   : > { %v604_v8 = vmin.f32 %v596_v4, 6.0  ;;  %v597_v9 = vmax.f32 %v589_v5, 0.0  ;;  %v881_v10 = vpop.f32.mrb[4].mxu1 }
 0x215   : > { %v614_v11 = vmul.f32 %v606_v6, %v566_v57  ;;  %v607_v12 = vmin.f32 %v599_v7, 6.0  ;;  %v582_v13 = vadd.f32 %v881_v10, %v788_v55  ;;  %v573_v14 = vpop.f32.mrb[5].mxu1 }
 0x216   : > { %v612_v15 = vmul.f32 %v604_v8, %v558_v59  ;;  %v605_v16 = vmin.f32 %v597_v9, 6.0  ;;  %v574_v17 = vadd.f32 %v788_v55, %v573_v14  ;;  %v882_v18 = vpop.f32.mrb[6].mxu1 }
 0x217   : > { %v622_v19 = vmul.f32 0.16666667, %v614_v11  ;;  %v615_v20 = vmul.f32 %v607_v12, %v569_v62  ;;  %v594_v21 = vadd.f32 3.0, %v582_v13  ;;  %v585_v22 = vadd.f32 %v882_v18, %v788_v55  ;;  %v576_v23 = vpop.f32.mrb[7].mxu1 }
 0x218   : > { %v620_v24 = vmul.f32 0.16666667, %v612_v15  ;;  %v613_v25 = vmul.f32 %v605_v16, %v561_v1  ;;  %v592_v26 = vadd.f32 3.0, %v574_v17  ;;  %v577_v27 = vadd.f32 %v788_v55, %v576_v23 }
 0x219   : > { %v810_v28 = vpack.c.bf16 %v622_v19, %v622_v19  ;;  %v623_v29 = vmul.f32 0.16666667, %v615_v20  ;;  %v602_v30 = vmax.f32 %v594_v21, 0.0  ;;  %v595_v31 = vadd.f32 3.0, %v585_v22 }
 0x21a   : > { %v808_v32 = vpack.c.bf16 %v620_v24, %v620_v24  ;;  %v621_v33 = vmul.f32 0.16666667, %v613_v25  ;;  %v600_v34 = vmax.f32 %v592_v26, 0.0  ;;  %v593_v35 = vadd.f32 3.0, %v577_v27 }
 0x21b   : > { %663 = vst.msk [vmem:[%s1170_s8 + $0x8] sm:$0xf] %vm660_vm3, %v810_v28  ;;  %v811_v36 = vpack.c.bf16 %v623_v29, %v623_v29  ;;  %v610_v37 = vmin.f32 %v602_v30, 6.0  ;;  %v603_v38 = vmax.f32 %v595_v31, 0.0 }
 0x21c   : > { %661 = vst.msk [vmem:[%s1170_s8] sm:$0xf] %vm660_vm3, %v808_v32  ;;  %v809_v39 = vpack.c.bf16 %v621_v33, %v621_v33  ;;  %v608_v40 = vmin.f32 %v600_v34, 6.0  ;;  %v601_v41 = vmax.f32 %v593_v35, 0.0 }
 0x21d   : > { %664 = vst.msk [vmem:[%s1170_s8 + $0xc] sm:$0xf] %vm660_vm3, %v811_v36  ;;  %v618_v42 = vmul.f32 %v610_v37, %v582_v13  ;;  %v611_v43 = vmin.f32 %v603_v38, 6.0 }
 0x21e   : > { %662 = vst.msk [vmem:[%s1170_s8 + $0x4] sm:$0xf] %vm660_vm3, %v809_v39  ;;  %v616_v44 = vmul.f32 %v608_v40, %v574_v17  ;;  %v609_v45 = vmin.f32 %v601_v41, 6.0 }
 0x21f   : > { %v626_v46 = vmul.f32 0.16666667, %v618_v42  ;;  %v619_v47 = vmul.f32 %v611_v43, %v585_v22 }
 0x220   : > { %v624_v48 = vmul.f32 0.16666667, %v616_v44  ;;  %v617_v49 = vmul.f32 %v609_v45, %v577_v27 }
 0x221   : > { %v814_v50 = vpack.c.bf16 %v626_v46, %v626_v46  ;;  %v627_v51 = vmul.f32 0.16666667, %v619_v47 }
 0x222   : > { %v812_v52 = vpack.c.bf16 %v624_v48, %v624_v48  ;;  %v625_v53 = vmul.f32 0.16666667, %v617_v49 }
 0x223   : > { %667 = vst.msk [vmem:[%s1170_s8 + $0x18] sm:$0xf] %vm660_vm3, %v814_v50  ;;  %v815_v54 = vpack.c.bf16 %v627_v51, %v627_v51 }
 0x224   : > { %665 = vst.msk [vmem:[%s1170_s8 + $0x10] sm:$0xf] %vm660_vm3, %v812_v52  ;;  %v813_v55 = vpack.c.bf16 %v625_v53, %v625_v53 }
 0x225   : > { %668 = vst.msk [vmem:[%s1170_s8 + $0x1c] sm:$0xf] %vm660_vm3, %v815_v54 }
 0x226   : > { %666 = vst.msk [vmem:[%s1170_s8 + $0x14] sm:$0xf] %vm660_vm3, %v813_v55 }
 0x227 PF: > { %s18_s21 = sadd.s32 1, %s996_s21  }
 0x228   : > { %p15_p5 = scmp.ge.s32.totalorder %s18_s21, 4  }
 0x22a   :  { %17 = sbr.rel (!%p15_p5) target bundleno = 2 (0x2), region = 86 }
 0x231   :  { %690 = vsyncpa [#allocation3], 1 }
 0x232   :  { %692 = vsyncpa [#allocation3 + $0x1], 1 }
 0x233   :  { %693 = vsyncpa [#allocation5], 1 }

// kernel: ball_localization_forward.14
= control target key start
LH: loop header
LB: loop body
LE: loop exit
PB: predicated region body
PF: predicated region fallthrough
CT: control target
= control target key end

     0   :  { %16 = vsyncpa [#allocation3], 0  ;;  %s1229_s13 = smov 0   ;;  %s1399_s0 = inlined_call_operand.vmem [shape: bf16[2,16,96], index: 0, kind: input, shape index: {}]   ;;  %s1400_s1 = inlined_call_operand.vmem [shape: bf16[96,24], index: 1, kind: input, shape index: {}]   ;;  %s1401_s2 = inlined_call_operand.vmem [shape: f32[1,24], index: 2, kind: input, shape index: {}]   ;;  %s1402_s3 = inlined_call_operand.vmem [shape: bf16[24,96], index: 3, kind: input, shape index: {}]   ;;  %s1403_s4 = inlined_call_operand.vmem [shape: f32[1,96], index: 4, kind: input, shape index: {}]   ;;  %s1404_s5 = inlined_call_operand.vmem [shape: bf16[96,40], index: 5, kind: input, shape index: {}]   ;;  %s1405_s6 = inlined_call_operand.hbm [shape: f32[1,40], index: 6, kind: input, shape index: {}]   ;;  %s1406_s7 = inlined_call_operand.vmem [shape: bf16[40,240], index: 7, kind: input, shape index: {}]   ;;  %s1407_s8 = inlined_call_operand.vmem [shape: f32[1,240], index: 8, kind: input, shape index: {}]   ;;  %s1408_s9 = inlined_call_operand.vmem [shape: bf16[2,16,240], index: 9, kind: output, shape index: {0}]   ;;  %s1409_s10 = inlined_call_operand.vmem [shape: bf16[2,16,40], index: 10, kind: output, shape index: {1}]  }
   0x1 LB: > { %s1235_s14 = sadd.s32 4294967295, %s1167_s13   ;;  %p964_p0 = scmp.ge.s32.totalorder %s1167_s13, 1  ;;  %s1167_s13 = sphi %s1229_s13, %s22_s13  }
   0x2   : > { %p273_p1 = scmp.lt.s32.totalorder %s1167_s13, 3  ;;  %p1410_p3 = scmp.eq.s32.totalorder %s1235_s14, 0 }
   0x3   : > { %s1169_s16 = smov [#allocation2]   ;;  %s1129_s21 = scalar_lea.hbm %s1405_s6, 16 }
   0x4   : > { %p1239_p2 = pnand %p964_p0, %p273_p1  ;;  %s301_s17 = sshll.u32 %s1169_s16, 4  ;;  %s302_s17 = int_to_ptr.vmem [resolvable:$true] %s301_s17 }
   0x5   : > { %p1130_p6 = scmp.ne.s32.totalorder %s1405_s6, %s1129_s21  ;;  %p1136_p10 = scmp.lt.u32.totalorder %s1129_s21, %s1405_s6 }
   0x6   : > { %s1412_s15 = scalar_select %p1239_p2, 1, 0 }
   0x7   : > { %p1087_p4 = pneg %p1239_p2 }
   0x9   : > { %p1248_p5 = pnand %p1410_p3, %p1087_p4 }
   0xb   : > { %p1131_p7 = pneg %p1248_p5 }
   0xd   : > { %p1132_p8 = pnand %p1131_p7, %p1130_p6 }
   0xf   : > { %p1133_p9 = pneg %p1132_p8 }
  0x11   : > { %p1138_p11 = pnand %p1136_p10, %p1133_p9 }
  0x13   : > { %1141 = shalt.err (!%p1138_p11)
}
  0x14   : > { %s1142_s26 = scalar_lea.vmem %s302_s17, 16  ;;  %s1149_s27 = scalar_lea.vmem %s302_s17, 32 }
  0x15   : > { %p1143_p12 = scmp.ne.s32.totalorder %s302_s17, %s1142_s26  ;;  %p1150_p1 = scmp.lt.s32.totalorder %s302_s17, %s302_s17 }
  0x16   : > { %p1151_p4 = scmp.lt.s32.totalorder %s1149_s27, %s1142_s26 }
  0x17   : > { %p1145_p13 = pnand %p1143_p12, %p1131_p7 }
  0x18   : > { %p1152_p3 = por %p1151_p4, %p1150_p1 }
  0x19   : > { %p1146_p0 = pneg %p1145_p13 }
  0x1b   : > { %p1153_p2 = pnand %p1152_p3, %p1146_p0 }
  0x1d   : > { %1156 = shalt.err (!%p1153_p2)
}
  0x1e   : > { %1090 = dma.hbm_to_vmem [thread:$0]  (!%p1248_p5), %s1405_s6, 16, %s302_s17, [#allocation3]  }
  0x1f   : > { %p1414_p6 = scmp.ne.s32.totalorder %s1412_s15, 0 }
  0x20   : > { %p1415_p8 = scmp.eq.s32.totalorder (!%p1414_p6), %s1235_s14, 0 }
  0x21   : > { %328 = sbr.rel (%p1414_p6) target bundleno = 1168 (0x490), region = 56 }
  0x28   : > { %1162 = dma.done.wait (%p1415_p8), [#allocation3], 16   ;;  %p1416_p7 = pmov %p1415_p8 }
  0x29   : > { %p371_p9 = scmp.lt.s32.totalorder %s1235_s14, 1  ;;  %v1170_v0 = vmov 0.0   ;;  %vm1171_vm0 = vmmov 0   ;;  %v1107_v4 = vld [vmem:[%s1400_s1] sm:$0xff]   ;;  %vm396_vm1 = vcmask 130048   ;;  %v1108_v5 = vld [vmem:[%s1400_s1 + $0x8] sm:$0xff]   ;;  %v606_v44 = vlaneseq }
  0x2a   : > { %1164 = vsyncadd (%p1416_p7), [#allocation3], 4294967280  ;;  %1037 = vmatprep.subr.bf16.mxu0 %v1170_v0  ;;  %1039 = vmatprep.mubr.msk.bf16.mxu0 %vm1171_vm0, %v1170_v0  ;;  %v1109_v6 = vld [vmem:[%s1400_s1 + $0x10] sm:$0xff]   ;;  %v1172_v7 = vmov 1065369472   ;;  %v1110_v8 = vld [vmem:[%s1400_s1 + $0x18] sm:$0xff]  }
  0x2b   : > { %s1418_s14 = smov (!%p371_p9, %s1235_s14), 1  ;;  %1043 = vmatprep.subr.bf16.mxu1 %v1170_v0  ;;  %1055 = vmatprep.mubr.msk.bf16.mxu1 %vm1171_vm0, %v1170_v0  ;;  %v1111_v9 = vld [vmem:[%s1400_s1 + $0x20] sm:$0xff]   ;;  %v1112_v10 = vld [vmem:[%s1400_s1 + $0x28] sm:$0xff]   ;;  %vm491_vm2 = vcmask 785408   ;;  %vm554_vm3 = vcmask 1043456   ;;  %vm550_vm4 = vcmask 195584  }
  0x2c   : > { %s1011_s30 = sshll.u32 %s1418_s14, 3  ;;  %1044 = vmatpush3.bf16.msra.mxu1 %v1107_v4  ;;  %v1113_v11 = vld [vmem:[%s1402_s3] sm:$0xff]   ;;  %v1114_v18 = vld [vmem:[%s1402_s3 + $0x8] ss:$0 sps:$4 sm:$0xff]   ;;  %v1117_v30 = vld [vmem:[%s1404_s5 + $0x10] sm:$0xff]   ;;  %v607_v48 = vshrl.u32 %v606_v44, 7 }
  0x2d   : > { %s375_s15 = scalar_lea.vmem %s1399_s0, %s1011_s30  ;;  %1045 = vmatprep.subr.bf16.mxu1 %v1170_v0  ;;  %v556_v19 = vsel %vm554_vm3, %v1114_v18, 0  ;;  %v454_v20 = vld [vmem:[%s1401_s2] sm:$0x1]  ;;  %v1116_v29 = vld [vmem:[%s1404_s5 + $0x8] sm:$0xff]   ;;  %v1118_v31 = vld [vmem:[%s1404_s5 + $0x18] sm:$0xff]   ;;  %v1173_v62 = vmov 0   ;;  %s385_s26 = scalar_lea.vmem %s1409_s10, %s1011_s30 }
  0x2e   : > { %v1290_v1 = vld [vmem:[%s375_s15] sm:$0xf]  ;;  %v1292_v2 = vld [vmem:[%s375_s15 + $0x4] sm:$0xf]  ;;  %v1120_v33 = vld [vmem:[%s1404_s5 + $0x28] sm:$0xff]   ;;  %v608_v51 = vsub.s32 0, %v607_v48 }
  0x2f   : > { %v975_v3 = vcombine.low %v1290_v1, %v1292_v2  ;;  %v1115_v28 = vld [vmem:[%s1404_s5] sm:$0xff]   ;;  %v1126_v36 = vld [vmem:[%s1406_s7 + $0x14] ss:$8 sps:$4 sm:$0xff]   ;;  %v1124_v37 = vld [vmem:[%s1406_s7 + $0x10] ss:$8 sps:$4 sm:$0xff]   ;;  %vm859_vm5 = vcmask 322560  }
  0x30   : > { %1046 = vmatpush3.bf16.msra.mxu1 %v1108_v5  ;;  %v1119_v32 = vld [vmem:[%s1404_s5 + $0x20] sm:$0xff]   ;;  %vm763_vm6 = vcmask 326656   ;;  %s1012_s30 = sshll.u32 %s1418_s14, 4  ;;  %vm848_vm7 = vcmask 916484  }
  0x31   : > { %1038 = vmatpush3.bf16.msra.mxu0 %v975_v3  ;;  %1047 = vmatprep.subr.bf16.mxu1 %v1170_v0  ;;  %v1121_v34 = vld [vmem:[%s1406_s7] ss:$8 sps:$4 sm:$0xff]   ;;  %v1123_v35 = vld [vmem:[%s1406_s7 + $0x4] ss:$8 sps:$4 sm:$0xff]   ;;  %s380_s12 = scalar_lea.vmem %s1408_s9, %s1012_s30  ;;  %vm849_vm8 = vmor %vm848_vm7, %vm554_vm3 }
  0x32   : > { %1059 = vmatprep.subr.bf16.mxu0 %v1170_v0  ;;  %v540_v38 = vld [vmem:[%s1403_s4] sm:$0x1] }
  0x33   : > { %v725_v58 = vld [vmem:[%s1406_s7 + $0x20] sm:$0xff] }
  0x34   : > { %1040 = vmatmul.mubr.msk.bf16.vlgmr.msra.gmra.mrb[0].mxu0 %vm396_vm1, %v1172_v7  ;;  %1048 = vmatpush3.bf16.msra.mxu1 %v1109_v6  ;;  %v1002_v59 = vcombine.high %v725_v58, %v725_v58  ;;  %v1001_v60 = vcombine.low %v725_v58, %v725_v58  ;;  %v988_v63 = vld [vmem:[#allocation2] ss:$0 sm:$0xff] }
  0x35   : > { %1063 = vmatprep.mubr.msk.bf16.mxu0 %vm1171_vm0, %v1170_v0  ;;  %1049 = vmatprep.subr.bf16.mxu1 %v1170_v0 }
  0x36   : > { %1060 = vmatpush3.bf16.msra.mxu0 %v1113_v11  ;;  %v768_v61 = vsel %vm554_vm3, %v1001_v60, 0 }
  0x37   : > { %1061 = vmatprep.subr.bf16.mxu0 %v1170_v0 }
  0x38   : > { %1050 = vmatpush3.bf16.msra.mxu1 %v1110_v8 }
  0x39   : > { %1051 = vmatprep.subr.bf16.mxu1 %v1170_v0 }
  0x3a   : > { %1062 = vmatpush3.bf16.msra.mxu0 %v556_v19 }
  0x3b   : > { %1067 = vmatprep.subr.bf16.mxu0 %v1170_v0 }
  0x3c   : > { %1052 = vmatpush3.bf16.msra.mxu1 %v1111_v9  ;;  %v726_v9 = vld [vmem:[%s1407_s8] sm:$0x3] }
  0x3d   : > { %1053 = vmatprep.subr.bf16.mxu1 %v1170_v0  ;;  %v731_v11 = vrot.slane %v726_v9, %v608_v51 }
  0x40   : > { %1054 = vmatpush3.bf16.msra.mxu1 %v1112_v10  ;;  %v734_v10 = vsub.s32 1, %v607_v48 }
  0x41   : > { %773 = vmatprep.subr.bf16.mxu1 %v1123_v35 }
 0x107   : > { %v434_v12 = vpop.f32.mrb[0].mxu0 }
 0x108   : > { %v440_v13 = vmul.f32 0.0625, %v434_v12  ;;  %v1041_v14 = vpop.f32.mrb[1].mxu0  ;;  %v735_v12 = vrot.slane %v726_v9, %v734_v10 }
 0x109   : > { %v437_v15 = vpop.f32.mrb[2].mxu0 }
 0x10a   : > { %v441_v16 = vpack.c.bf16 %v440_v13, %v440_v13  ;;  %v1042_v17 = vpop.f32.mrb[3].mxu0 }
 0x10c   : > { %1056 = vmatmul.mubr.msk.bf16.vlgmr.msra.gmra.mrb[0].mxu1 %vm491_vm2, %v441_v16 }
 0x10d   : > { %774 = vmatpush1.bf16.msra.mxu1 %v1121_v34  ;;  %805 = vmatprep.mubr.bf16.mxu1 %v1173_v62 }
 0x10e   : > { %775 = vmatprep.subr.bf16.mxu1 %v1126_v36 }
 0x111   : > { %776 = vmatpush1.bf16.msra.mxu1 %v1124_v37 }
 0x112   : > { %1003 = vmatprep.subr.msk.bf16.mxu1 %vm554_vm3, %v1002_v59 }
 0x115   : > { %778 = vmatpush1.bf16.msra.mxu1 %v768_v61 }
 0x1df   : > { %v529_v21 = vpop.f32.mrb[0].mxu1 }
 0x1e0   : > { %v530_v22 = vadd.f32 %v529_v21, %v454_v20  ;;  %v1057_v23 = vpop.f32.mrb[1].mxu1 }
 0x1e1   : > { %v532_v24 = vpop.f32.mrb[2].mxu1 }
 0x1e2   : > { %v535_v25 = vmax.f32 %v530_v22, 0.0  ;;  %v1058_v26 = vpop.f32.mrb[3].mxu1 }
 0x1e4   : > { %v536_v27 = vpack.c.bf16 %v535_v25, %v535_v25 }
 0x1e6   : > { %1064 = vmatmul.mubr.msk.bf16.vlgmr.msra.gmra.mrb[4].mxu0 %vm550_vm4, %v536_v27 }
 0x1e7   : > { %1079 = vmatprep.mubr.msk.bf16.mxu0 %vm1171_vm0, %v1170_v0  ;;  %1068 = vmatpush3.bf16.msra.mxu0 %v1115_v28 }
 0x1e8   : > { %1069 = vmatprep.subr.bf16.mxu0 %v1170_v0 }
 0x1eb   : > { %1070 = vmatpush3.bf16.msra.mxu0 %v1116_v29 }
 0x1ec   : > { %1071 = vmatprep.subr.bf16.mxu0 %v1170_v0 }
 0x1ef   : > { %1072 = vmatpush3.bf16.msra.mxu0 %v1117_v30 }
 0x1f0   : > { %1073 = vmatprep.subr.bf16.mxu0 %v1170_v0 }
 0x1f3   : > { %1074 = vmatpush3.bf16.msra.mxu0 %v1118_v31 }
 0x1f4   : > { %1075 = vmatprep.subr.bf16.mxu0 %v1170_v0 }
 0x1f7   : > { %1076 = vmatpush3.bf16.msra.mxu0 %v1119_v32 }
 0x1f8   : > { %1077 = vmatprep.subr.bf16.mxu0 %v1170_v0 }
 0x1fb   : > { %1078 = vmatpush3.bf16.msra.mxu0 %v1120_v33 }
 0x2b9   : > { %v592_v39 = vpop.f32.mrb[4].mxu0 }
 0x2ba   : > { %v593_v40 = vadd.f32 %v592_v39, %v540_v38  ;;  %v1065_v41 = vpop.f32.mrb[5].mxu0 }
 0x2bb   : > { %v595_v42 = vpop.f32.mrb[6].mxu0 }
 0x2bc   : > { %v598_v43 = vadd.f32 3.0, %v593_v40  ;;  %v1066_v45 = vpop.f32.mrb[7].mxu0 }
 0x2be   : > { %v599_v46 = vmax.f32 %v598_v43, 0.0 }
 0x2c0   : > { %v600_v47 = vmin.f32 %v599_v46, 6.0 }
 0x2c2   : > { %v601_v49 = vmul.f32 0.16666667, %v600_v47 }
 0x2c4   : > { %v602_v50 = vpack.c.bf16 %v601_v49, %v601_v49 }
 0x2c6   : > { %v604_v52 = vpack.i.b16 %v602_v50, %v602_v50 }
 0x2c8   : > { %v609_v53 = vrot.slane %v604_v52, %v608_v51 }
 0x2ca   : > { %v987_v54 = vcombine.low %v609_v53, %v609_v53 }
 0x2cc   : > { %v614_v55 = vmul.bf16 %v987_v54, %v1290_v1  ;;  %v615_v56 = vmul.bf16 %v987_v54, %v1292_v2 }
 0x2ce   : > { %v989_v57 = vcombine.low %v614_v55, %v615_v56 }
 0x2d0   : > { %1080 = vmatmul.mubr.msk.bf16.vlgmr.msra.gmra.mrb[8].mxu0 %vm491_vm2, %v989_v57 }
 0x3a3   : > { %v713_v0 = vpop.f32.mrb[8].mxu0 }
 0x3a4   : > { %v714_v1 = vadd.f32 %v988_v63, %v713_v0  ;;  %v1081_v2 = vpop.f32.mrb[9].mxu0 }
 0x3a5   : > { %v716_v3 = vpop.f32.mrb[10].mxu0 }
 0x3a6   : > { %v1016_v4 = vpack.c.bf16 %v714_v1, %v714_v1  ;;  %v717_v5 = vadd.f32 %v988_v63, %v716_v3  ;;  %v1082_v6 = vpop.f32.mrb[11].mxu0 }
 0x3a8   : > { %860 = vst.msk [vmem:[%s385_s26] sm:$0xf] %vm859_vm5, %v1016_v4  ;;  %v720_v7 = vpack.c.bf16 %v717_v5, %v714_v1  ;;  %v1017_v8 = vpack.c.bf16 %v717_v5, %v717_v5 }
 0x3aa   : > { %861 = vst.msk [vmem:[%s385_s26 + $0x4] sm:$0xf] %vm859_vm5, %v1017_v8  ;;  %1004 = vmatmul.mubr.msk.bf16.vlgmr.msra.gmra.mrb[4].mxu1 %vm763_vm6, %v720_v7 }
 0x47d   : > { %v807_v13 = vpop.f32.mrb[4].mxu1 }
 0x47e   : > { %v808_v14 = vadd.f32 %v807_v13, %v731_v11  ;;  %v809_v15 = vpop.f32.mrb[5].mxu1 }
 0x47f   : > { %v810_v16 = vadd.f32 %v809_v15, %v735_v12  ;;  %v811_v17 = vpop.f32.mrb[6].mxu1 }
 0x480   : > { %v816_v18 = vadd.f32 3.0, %v808_v14  ;;  %v812_v19 = vadd.f32 %v811_v17, %v731_v11  ;;  %v813_v20 = vpop.f32.mrb[7].mxu1 }
 0x481   : > { %v817_v21 = vadd.f32 3.0, %v810_v16  ;;  %v814_v22 = vadd.f32 %v813_v20, %v735_v12 }
 0x482   : > { %v820_v23 = vmax.f32 %v816_v18, 0.0  ;;  %v818_v24 = vadd.f32 3.0, %v812_v19 }
 0x483   : > { %v821_v25 = vmax.f32 %v817_v21, 0.0  ;;  %v819_v26 = vadd.f32 3.0, %v814_v22 }
 0x484   : > { %v824_v27 = vmin.f32 %v820_v23, 6.0  ;;  %v822_v28 = vmax.f32 %v818_v24, 0.0 }
 0x485   : > { %v825_v29 = vmin.f32 %v821_v25, 6.0  ;;  %v823_v30 = vmax.f32 %v819_v26, 0.0 }
 0x486   : > { %v828_v31 = vmul.f32 %v824_v27, %v808_v14  ;;  %v826_v32 = vmin.f32 %v822_v28, 6.0 }
 0x487   : > { %v829_v33 = vmul.f32 %v825_v29, %v810_v16  ;;  %v827_v34 = vmin.f32 %v823_v30, 6.0 }
 0x488   : > { %v832_v35 = vmul.f32 0.16666667, %v828_v31  ;;  %v830_v36 = vmul.f32 %v826_v32, %v812_v19 }
 0x489   : > { %v833_v37 = vmul.f32 0.16666667, %v829_v33  ;;  %v831_v38 = vmul.f32 %v827_v34, %v814_v22 }
 0x48a   : > { %v834_v39 = vmul.f32 0.16666667, %v830_v36 }
 0x48b   : > { %v1014_v40 = vpack.c.bf16 %v833_v37, %v832_v35  ;;  %v835_v41 = vmul.f32 0.16666667, %v831_v38 }
 0x48d   : > { %850 = vst.msk [vmem:[%s380_s12] sm:$0xff] %vm849_vm8, %v1014_v40  ;;  %v1015_v42 = vpack.c.bf16 %v835_v41, %v834_v39 }
 0x48f   : > { %851 = vst.msk [vmem:[%s380_s12 + $0x8] sm:$0xff] %vm849_vm8, %v1015_v42 }
 0x490 PF: > { %s22_s13 = sadd.s32 1, %s1167_s13  }
 0x491   : > { %p19_p2 = scmp.ge.s32.totalorder %s22_s13, 4  }
 0x493   :  { %21 = sbr.rel (!%p19_p2) target bundleno = 1 (0x1), region = 103 }
 0x49a   :  { %899 = vsyncpa [#allocation3], 1 }
 0x49b   :  { %901 = vsyncpa [#allocation3 + $0x1], 1 }

// kernel: ball_localization_forward.15
= control target key start
LH: loop header
LB: loop body
LE: loop exit
PB: predicated region body
PF: predicated region fallthrough
CT: control target
= control target key end

     0   :  { %17 = vsyncpa [#allocation3], 0  ;;  %s1878_s0 = inlined_call_operand.vmem [shape: bf16[2,16,240], index: 0, kind: input, shape index: {}]   ;;  %s1879_s1 = inlined_call_operand.vmem [shape: bf16[240,64], index: 1, kind: input, shape index: {}]   ;;  %s1880_s2 = inlined_call_operand.vmem [shape: f32[1,64], index: 2, kind: input, shape index: {}]   ;;  %s1881_s3 = inlined_call_operand.vmem [shape: bf16[64,240], index: 3, kind: input, shape index: {}]   ;;  %s1882_s4 = inlined_call_operand.vmem [shape: f32[1,240], index: 4, kind: input, shape index: {}]   ;;  %s1883_s5 = inlined_call_operand.vmem [shape: bf16[240,40], index: 5, kind: input, shape index: {}]   ;;  %s1884_s6 = inlined_call_operand.hbm [shape: f32[1,40], index: 6, kind: input, shape index: {}]   ;;  %s1885_s7 = inlined_call_operand.vmem [shape: bf16[2,16,40], index: 7, kind: input, shape index: {}]   ;;  %s1886_s8 = inlined_call_operand.vmem [shape: bf16[40,240], index: 8, kind: input, shape index: {}]   ;;  %s1887_s9 = inlined_call_operand.hbm [shape: f32[1,240], index: 9, kind: input, shape index: {}]   ;;  %s1888_s10 = inlined_call_operand.vmem [shape: bf16[2,16,240], index: 10, kind: output, shape index: {0}]   ;;  %s1889_s11 = inlined_call_operand.vmem [shape: bf16[2,16,40], index: 11, kind: output, shape index: {1}]  }
   0x1   :  { %18 = vsyncpa [#allocation5], 0  ;;  %s1574_s17 = smov 0  }
   0x2 LB: > { %s1580_s18 = sadd.s32 4294967295, %s1508_s17   ;;  %p1266_p0 = scmp.ge.s32.totalorder %s1508_s17, 1  ;;  %s1508_s17 = sphi %s1574_s17, %s24_s17  }
   0x3   : > { %p301_p1 = scmp.lt.s32.totalorder %s1508_s17, 3  ;;  %p1890_p2 = scmp.eq.s32.totalorder %s1580_s18, 0 }
   0x4   : > { %s1510_s20 = smov [#allocation2]   ;;  %s1511_s22 = smov [#allocation4]  }
   0x5   : > { %p1585_p3 = pnand %p1266_p0, %p301_p1  ;;  %s329_s21 = sshll.u32 %s1510_s20, 4  ;;  %s330_s21 = int_to_ptr.vmem [resolvable:$true] %s329_s21 }
   0x6   : > { %s343_s23 = sshll.u32 %s1511_s22, 4  ;;  %s1438_s27 = scalar_lea.hbm %s1884_s6, 16  ;;  %s1597_s23 = int_to_ptr.vmem [resolvable:$true] %s343_s23 }
   0x7   : > { %s1892_s19 = scalar_select %p1585_p3, 1, 0 }
   0x8   : > { %p1363_p4 = pneg %p1585_p3  ;;  %p1439_p6 = scmp.ne.s32.totalorder %s1884_s6, %s1438_s27 }
   0x9   : > { %p1445_p10 = scmp.lt.u32.totalorder %s1438_s27, %s1884_s6 }
   0xa   : > { %p1593_p5 = pnand %p1890_p2, %p1363_p4 }
   0xc   : > { %p1440_p7 = pneg %p1593_p5 }
   0xe   : > { %p1441_p8 = pnand %p1440_p7, %p1439_p6 }
  0x10   : > { %p1442_p9 = pneg %p1441_p8 }
  0x12   : > { %p1447_p11 = pnand %p1445_p10, %p1442_p9 }
  0x14   : > { %1450 = shalt.err (!%p1447_p11)
}
  0x15   : > { %s1451_s13 = scalar_lea.vmem %s330_s21, 16  ;;  %s1458_s14 = scalar_lea.vmem %s330_s21, 32 }
  0x16   : > { %p1452_p12 = scmp.ne.s32.totalorder %s330_s21, %s1451_s13  ;;  %p1459_p1 = scmp.lt.s32.totalorder %s330_s21, %s330_s21 }
  0x17   : > { %p1460_p4 = scmp.lt.s32.totalorder %s1458_s14, %s1451_s13 }
  0x18   : > { %p1454_p13 = pnand %p1452_p12, %p1440_p7 }
  0x19   : > { %p1461_p2 = por %p1460_p4, %p1459_p1 }
  0x1a   : > { %p1455_p0 = pneg %p1454_p13 }
  0x1c   : > { %p1462_p3 = pnand %p1461_p2, %p1455_p0 }
  0x1e   : > { %1465 = shalt.err (!%p1462_p3)
}
  0x1f   : > { %1366 = dma.hbm_to_vmem [thread:$0]  (!%p1593_p5), %s1884_s6, 16, %s330_s21, [#allocation3]  }
  0x20   : > { %s1466_s25 = scalar_lea.hbm %s1887_s9, 32 }
  0x21   : > { %p1467_p6 = scmp.ne.s32.totalorder %s1887_s9, %s1466_s25  ;;  %p1473_p3 = scmp.lt.u32.totalorder %s1466_s25, %s1887_s9 }
  0x23   : > { %p1469_p8 = pnand %p1467_p6, %p1440_p7 }
  0x25   : > { %p1470_p2 = pneg %p1469_p8 }
  0x27   : > { %p1475_p9 = pnand %p1473_p3, %p1470_p2 }
  0x29   : > { %1478 = shalt.err (!%p1475_p9)
}
  0x2a   : > { %s1479_s21 = scalar_lea.vmem %s1597_s23, 32  ;;  %p1487_p13 = scmp.lt.s32.totalorder %s1597_s23, %s1597_s23 }
  0x2b   : > { %p1480_p10 = scmp.ne.s32.totalorder %s1597_s23, %s1479_s21  ;;  %p1488_p0 = scmp.lt.s32.totalorder %s1479_s21, %s1479_s21 }
  0x2d   : > { %p1482_p11 = pnand %p1480_p10, %p1440_p7  ;;  %p1489_p1 = por %p1488_p0, %p1487_p13 }
  0x2f   : > { %p1483_p12 = pneg %p1482_p11 }
  0x31   : > { %p1490_p4 = pnand %p1489_p1, %p1483_p12 }
  0x33   : > { %1493 = shalt.err (!%p1490_p4)
}
  0x34   : > { %1369 = dma.hbm_to_vmem [thread:$0]  (!%p1593_p5), %s1887_s9, 32, %s1597_s23, [#allocation5]  }
  0x35   : > { %p1894_p6 = scmp.ne.s32.totalorder %s1892_s19, 0 }
  0x36   : > { %p1895_p8 = scmp.eq.s32.totalorder (!%p1894_p6), %s1580_s18, 0 }
  0x37   : > { %372 = sbr.rel (%p1894_p6) target bundleno = 1201 (0x4b1), region = 60 }
  0x3e   : > { %1499 = dma.done.wait (%p1895_p8), [#allocation3], 16   ;;  %p1896_p7 = pmov %p1895_p8 }
  0x40   : > { %1501 = vsyncadd (%p1896_p7), [#allocation3], 4294967280  ;;  %p1897_p2 = pmov %p1896_p7 }
  0x42   : > { %1503 = dma.done.wait (%p1897_p2), [#allocation5], 32   ;;  %p1898_p3 = pmov %p1897_p2 }
  0x43   : > { %p426_p9 = scmp.lt.s32.totalorder %s1580_s18, 1  ;;  %v1512_v0 = vmov 0   ;;  %vm460_vm0 = vcmask 130048   ;;  %v1388_v5 = vld [vmem:[%s1879_s1] sm:$0xff]   ;;  %v1513_v6 = vmov 1065369472   ;;  %v726_v62 = vlaneseq }
  0x44   : > { %1505 = vsyncadd (%p1898_p3), [#allocation5], 4294967264  ;;  %496 = vmatprep.mubr.bf16.mxu1 %v1512_v0  ;;  %772 = vmatprep.mubr.bf16.mxu0 %v1512_v0  ;;  %v1389_v7 = vld [vmem:[%s1879_s1 + $0x8] sm:$0xff]   ;;  %v1390_v8 = vld [vmem:[%s1879_s1 + $0x10] sm:$0xff]   ;;  %vm630_vm1 = vcmask 916480   ;;  %vm736_vm2 = vcmask 523264  }
  0x45   : > { %s1900_s18 = smov (!%p426_p9, %s1580_s18), 1  ;;  %v1391_v9 = vld [vmem:[%s1879_s1 + $0x18] sm:$0xff]   ;;  %v1392_v10 = vld [vmem:[%s1879_s1 + $0x20] sm:$0xff]   ;;  %v1393_v11 = vld [vmem:[%s1879_s1 + $0x28] sm:$0xff]   ;;  %v1831_v63 = vshrl.u32 %v726_v62, 7  ;;  %vm1046_vm3 = vcmask 1043456  }
  0x46   : > { %s1343_s19 = sshll.u32 %s1900_s18, 4  ;;  %v1394_v12 = vld [vmem:[%s1879_s1 + $0x30] sm:$0xff]   ;;  %v1395_v13 = vld [vmem:[%s1879_s1 + $0x38] sm:$0xff]   ;;  %v1396_v14 = vld [vmem:[%s1879_s1 + $0x40] sm:$0xff]   ;;  %s1344_s21 = sshll.u32 %s1900_s18, 3  ;;  %vm1139_vm4 = vcmask 322560  }
  0x47   : > { %s430_s13 = scalar_lea.vmem %s1878_s0, %s1343_s19  ;;  %v1397_v15 = vld [vmem:[%s1879_s1 + $0x48] sm:$0xff]   ;;  %v1398_v16 = vld [vmem:[%s1879_s1 + $0x50] sm:$0xff]   ;;  %v1399_v17 = vld [vmem:[%s1879_s1 + $0x58] sm:$0xff]   ;;  %s435_s23 = scalar_lea.vmem %s1885_s7, %s1344_s21  ;;  %vm1042_vm5 = vcmask 326656   ;;  %vm1128_vm6 = vcmask 916484  }
  0x48   : > { %v1668_v1 = vld [vmem:[%s430_s13] sm:$0xff]  ;;  %v1670_v2 = vld [vmem:[%s430_s13 + $0x8] sm:$0xff]  ;;  %v1402_v20 = vld [vmem:[%s1879_s1 + $0x70] sm:$0xff]   ;;  %s445_s14 = scalar_lea.vmem %s1889_s11, %s1344_s21  ;;  %s440_s20 = scalar_lea.vmem %s1888_s10, %s1343_s19 }
  0x49   : > { %v1282_v3 = vcombine.high %v1668_v1, %v1670_v2  ;;  %v1281_v4 = vcombine.low %v1668_v1, %v1670_v2  ;;  %v1400_v18 = vld [vmem:[%s1879_s1 + $0x60] sm:$0xff]   ;;  %v1401_v19 = vld [vmem:[%s1879_s1 + $0x68] sm:$0xff]   ;;  %v1406_v23 = vld [vmem:[%s1881_s3 + $0x14] ss:$8 sps:$4 sm:$0xff]  }
  0x4a   : > { %v1403_v21 = vld [vmem:[%s1881_s3 + $0x4] ss:$8 sps:$4 sm:$0xff]   ;;  %v1405_v22 = vld [vmem:[%s1881_s3] ss:$8 sps:$4 sm:$0xff]   ;;  %v1408_v24 = vld [vmem:[%s1881_s3 + $0x10] ss:$8 sps:$4 sm:$0xff]  }
  0x4b   : > { %464 = vmatprep.subr.bf16.mxu1 %v1282_v3  ;;  %740 = vmatprep.subr.bf16.mxu0 %v1403_v21  ;;  %v1409_v25 = vld [vmem:[%s1881_s3 + $0x24] ss:$8 sps:$4 sm:$0xff]   ;;  %v1411_v34 = vld [vmem:[%s1881_s3 + $0x20] ss:$8 sps:$4 sm:$0xff]   ;;  %v1412_v35 = vld [vmem:[%s1881_s3 + $0x34] ss:$8 sps:$4 sm:$0xff]  }
  0x4c   : > { %465 = vmatpush1.bf16.msra.mxu1 %v1281_v4  ;;  %741 = vmatpush1.bf16.msra.mxu0 %v1405_v22  ;;  %v1414_v36 = vld [vmem:[%s1881_s3 + $0x30] ss:$8 sps:$4 sm:$0xff]   ;;  %v539_v37 = vld [vmem:[%s1880_s2] sm:$0x1]  ;;  %v1416_v46 = vld [vmem:[%s1883_s5 + $0x8] sm:$0xff]   ;;  %v1834_v3 = vsub.s32 0, %v1831_v63 }
  0x4d   : > { %634 = vmatprep.subr.bf16.mxu1 %v1512_v0  ;;  %742 = vmatprep.subr.bf16.mxu0 %v1406_v23  ;;  %v1415_v44 = vld [vmem:[%s1883_s5] sm:$0xff]   ;;  %v1417_v47 = vld [vmem:[%s1883_s5 + $0x10] sm:$0xff]   ;;  %v1418_v48 = vld [vmem:[%s1883_s5 + $0x18] sm:$0xff]   ;;  %v732_v4 = vsub.s32 1, %v1831_v63 }
  0x4e   : > { %v1419_v49 = vld [vmem:[%s1883_s5 + $0x20] sm:$0xff]   ;;  %v1420_v50 = vld [vmem:[%s1883_s5 + $0x28] sm:$0xff]   ;;  %v1421_v51 = vld [vmem:[%s1883_s5 + $0x30] sm:$0xff]  }
  0x4f   : > { %1283 = vmatmul.mubr.msk.bf16.vlgmr.msra.gmra.mrb[0].mxu1 %vm460_vm0, %v1513_v6  ;;  %v1422_v52 = vld [vmem:[%s1883_s5 + $0x38] sm:$0xff]   ;;  %v1423_v53 = vld [vmem:[%s1883_s5 + $0x40] sm:$0xff]   ;;  %v1424_v54 = vld [vmem:[%s1883_s5 + $0x48] sm:$0xff]  }
  0x50   : > { %635 = vmatpush1.bf16.msra.mxu1 %v1388_v5  ;;  %743 = vmatpush1.bf16.msra.mxu0 %v1408_v24  ;;  %v1425_v55 = vld [vmem:[%s1883_s5 + $0x50] sm:$0xff]   ;;  %v1426_v56 = vld [vmem:[%s1883_s5 + $0x58] sm:$0xff]   ;;  %v1427_v57 = vld [vmem:[%s1883_s5 + $0x60] sm:$0xff]  }
  0x51   : > { %636 = vmatprep.subr.bf16.mxu1 %v1512_v0  ;;  %744 = vmatprep.subr.bf16.mxu0 %v1409_v25  ;;  %v1428_v58 = vld [vmem:[%s1883_s5 + $0x68] sm:$0xff]   ;;  %v1429_v59 = vld [vmem:[%s1883_s5 + $0x70] sm:$0xff]   ;;  %vm1129_vm7 = vmor %vm1128_vm6, %vm1046_vm3 }
  0x52   : > { %v1430_v60 = vld [vmem:[%s1886_s8] ss:$8 sps:$4 sm:$0xff]   ;;  %v1432_v61 = vld [vmem:[%s1886_s8 + $0x4] ss:$8 sps:$4 sm:$0xff]  }
  0x54   : > { %637 = vmatpush1.bf16.msra.mxu1 %v1389_v7  ;;  %745 = vmatpush1.bf16.msra.mxu0 %v1411_v34 }
  0x55   : > { %638 = vmatprep.subr.bf16.mxu1 %v1512_v0  ;;  %746 = vmatprep.subr.bf16.mxu0 %v1412_v35 }
  0x58   : > { %639 = vmatpush1.bf16.msra.mxu1 %v1390_v8  ;;  %747 = vmatpush1.bf16.msra.mxu0 %v1414_v36  ;;  %v1352_v36 = vld [vmem:[%s435_s23] sm:$0xff]  }
  0x59   : > { %640 = vmatprep.subr.bf16.mxu1 %v1512_v0  ;;  %952 = vmatprep.subr.bf16.mxu0 %v1512_v0 }
  0x5c   : > { %641 = vmatpush1.bf16.msra.mxu1 %v1391_v9 }
  0x5d   : > { %642 = vmatprep.subr.bf16.mxu1 %v1512_v0 }
  0x60   : > { %643 = vmatpush1.bf16.msra.mxu1 %v1392_v10 }
  0x61   : > { %644 = vmatprep.subr.bf16.mxu1 %v1512_v0 }
  0x64   : > { %645 = vmatpush1.bf16.msra.mxu1 %v1393_v11 }
  0x65   : > { %646 = vmatprep.subr.bf16.mxu1 %v1512_v0 }
  0x68   : > { %647 = vmatpush1.bf16.msra.mxu1 %v1394_v12 }
  0x69   : > { %648 = vmatprep.subr.bf16.mxu1 %v1512_v0 }
  0x6c   : > { %649 = vmatpush1.bf16.msra.mxu1 %v1395_v13 }
  0x6d   : > { %650 = vmatprep.subr.bf16.mxu1 %v1512_v0 }
  0x70   : > { %651 = vmatpush1.bf16.msra.mxu1 %v1396_v14 }
  0x71   : > { %652 = vmatprep.subr.bf16.mxu1 %v1512_v0 }
  0x74   : > { %653 = vmatpush1.bf16.msra.mxu1 %v1397_v15 }
  0x75   : > { %654 = vmatprep.subr.bf16.mxu1 %v1512_v0 }
  0x78   : > { %655 = vmatpush1.bf16.msra.mxu1 %v1398_v16 }
  0x79   : > { %656 = vmatprep.subr.bf16.mxu1 %v1512_v0 }
  0x7c   : > { %657 = vmatpush1.bf16.msra.mxu1 %v1399_v17 }
  0x7d   : > { %658 = vmatprep.subr.bf16.mxu1 %v1512_v0 }
  0x80   : > { %659 = vmatpush1.bf16.msra.mxu1 %v1400_v18 }
  0x81   : > { %660 = vmatprep.subr.bf16.mxu1 %v1512_v0 }
  0x84   : > { %661 = vmatpush1.bf16.msra.mxu1 %v1401_v19 }
  0x85   : > { %662 = vmatprep.subr.bf16.mxu1 %v1512_v0 }
  0x88   : > { %663 = vmatpush1.bf16.msra.mxu1 %v1402_v20 }
  0x89   : > { %1053 = vmatprep.subr.bf16.mxu1 %v1432_v61 }
 0x122   : > { %v498_v26 = vpop.f32.mrb[0].mxu1 }
 0x123   : > { %v505_v27 = vmul.f32 0.0625, %v498_v26  ;;  %v500_v28 = vpop.f32.mrb[1].mxu1 }
 0x124   : > { %v506_v29 = vmul.f32 0.0625, %v500_v28  ;;  %v502_v30 = vpop.f32.mrb[2].mxu1 }
 0x125   : > { %v503_v31 = vpop.f32.mrb[3].mxu1  ;;  %v507_v33 = vpack.c.bf16 %v505_v27, %v505_v27 }
 0x126   : > { %v508_v32 = vpack.c.bf16 %v506_v29, %v506_v29 }
 0x128   : > { %1299 = vmatprep.mubr.msk.bf16.mxu1 %vm630_vm1, %v508_v32  ;;  %v1435_v32 = vld [vmem:[%s1886_s8 + $0x14] ss:$8 sps:$4 sm:$0xff]  }
 0x129   : > { %667 = vmatmul.mubr.bf16.vlgmr.msra.gmra.mrb[4].mxu1 %v507_v33  ;;  %v1433_v33 = vld [vmem:[%s1886_s8 + $0x10] ss:$8 sps:$4 sm:$0xff]  }
 0x12a   : > { %1085 = vmatprep.mubr.bf16.mxu1 %v1512_v0  ;;  %1054 = vmatpush1.bf16.msra.mxu1 %v1430_v60 }
 0x12b   : > { %1055 = vmatprep.subr.bf16.mxu1 %v1435_v32 }
 0x12e   : > { %1056 = vmatpush1.bf16.msra.mxu1 %v1433_v33 }
 0x1fc   : > { %v668_v38 = vpop.f32.mrb[4].mxu1 }
 0x1fd   : > { %v669_v39 = vadd.f32 %v668_v38, %v539_v37  ;;  %v670_v40 = vpop.f32.mrb[5].mxu1  ;;  %v1310_v37 = vld [vmem:[#allocation2] ss:$0 sm:$0xff]  ;;  %v1353_v38 = vunpack.c.l.bf16 %v1352_v36 }
 0x1fe   : > { %v671_v41 = vpop.f32.mrb[6].mxu1 }
 0x1ff   : > { %v674_v42 = vmax.f32 %v669_v39, 0.0  ;;  %v672_v43 = vpop.f32.mrb[7].mxu1 }
 0x201   : > { %v675_v45 = vpack.c.bf16 %v674_v42, %v674_v42  ;;  %v1354_v42 = vunpack.c.h.bf16 %v1352_v36 }
 0x203   : > { %1308 = vmatmul.mubr.msk.bf16.vlgmr.msra.gmra.mrb[0].mxu0 %vm736_vm2, %v675_v45 }
 0x204   : > { %953 = vmatpush1.bf16.msra.mxu0 %v1415_v44 }
 0x205   : > { %954 = vmatprep.subr.bf16.mxu0 %v1512_v0 }
 0x208   : > { %955 = vmatpush1.bf16.msra.mxu0 %v1416_v46 }
 0x209   : > { %956 = vmatprep.subr.bf16.mxu0 %v1512_v0 }
 0x20c   : > { %957 = vmatpush1.bf16.msra.mxu0 %v1417_v47 }
 0x20d   : > { %958 = vmatprep.subr.bf16.mxu0 %v1512_v0 }
 0x210   : > { %959 = vmatpush1.bf16.msra.mxu0 %v1418_v48 }
 0x211   : > { %960 = vmatprep.subr.bf16.mxu0 %v1512_v0 }
 0x214   : > { %961 = vmatpush1.bf16.msra.mxu0 %v1419_v49 }
 0x215   : > { %962 = vmatprep.subr.bf16.mxu0 %v1512_v0 }
 0x218   : > { %963 = vmatpush1.bf16.msra.mxu0 %v1420_v50 }
 0x219   : > { %964 = vmatprep.subr.bf16.mxu0 %v1512_v0 }
 0x21c   : > { %965 = vmatpush1.bf16.msra.mxu0 %v1421_v51  ;;  %v1005_v51 = vld [vmem:[#allocation4] sm:$0x3] }
 0x21d   : > { %966 = vmatprep.subr.bf16.mxu0 %v1512_v0 }
 0x220   : > { %967 = vmatpush1.bf16.msra.mxu0 %v1422_v52  ;;  %v1010_v52 = vrot.slane %v1005_v51, %v1834_v3 }
 0x221   : > { %968 = vmatprep.subr.bf16.mxu0 %v1512_v0 }
 0x224   : > { %969 = vmatpush1.bf16.msra.mxu0 %v1423_v53  ;;  %v1014_v53 = vrot.slane %v1005_v51, %v732_v4 }
 0x225   : > { %970 = vmatprep.subr.bf16.mxu0 %v1512_v0 }
 0x228   : > { %971 = vmatpush1.bf16.msra.mxu0 %v1424_v54 }
 0x229   : > { %972 = vmatprep.subr.bf16.mxu0 %v1512_v0 }
 0x22c   : > { %973 = vmatpush1.bf16.msra.mxu0 %v1425_v55 }
 0x22d   : > { %974 = vmatprep.subr.bf16.mxu0 %v1512_v0 }
 0x230   : > { %975 = vmatpush1.bf16.msra.mxu0 %v1426_v56 }
 0x231   : > { %976 = vmatprep.subr.bf16.mxu0 %v1512_v0 }
 0x234   : > { %977 = vmatpush1.bf16.msra.mxu0 %v1427_v57 }
 0x235   : > { %978 = vmatprep.subr.bf16.mxu0 %v1512_v0 }
 0x238   : > { %979 = vmatpush1.bf16.msra.mxu0 %v1428_v58 }
 0x239   : > { %980 = vmatprep.subr.bf16.mxu0 %v1512_v0  ;;  %v684_v0 = vld [vmem:[%s1882_s4] sm:$0x3] }
 0x23a   : > { %v729_v5 = vrot.slane %v684_v0, %v1834_v3  ;;  %v733_v6 = vrot.slane %v684_v0, %v732_v4 }
 0x23c   : > { %981 = vmatpush1.bf16.msra.mxu0 %v1429_v59 }
 0x2d6   : > { %v774_v7 = vpop.f32.mrb[0].mxu0 }
 0x2d7   : > { %v775_v8 = vadd.f32 %v774_v7, %v729_v5  ;;  %v776_v9 = vpop.f32.mrb[1].mxu0 }
 0x2d8   : > { %v777_v10 = vadd.f32 %v776_v9, %v733_v6  ;;  %v778_v11 = vpop.f32.mrb[2].mxu0 }
 0x2d9   : > { %v781_v12 = vadd.f32 3.0, %v775_v8  ;;  %v779_v13 = vpop.f32.mrb[3].mxu0 }
 0x2da   : > { %v782_v14 = vadd.f32 3.0, %v777_v10 }
 0x2db   : > { %v783_v15 = vmax.f32 %v781_v12, 0.0 }
 0x2dc   : > { %v784_v16 = vmax.f32 %v782_v14, 0.0 }
 0x2dd   : > { %v785_v17 = vmin.f32 %v783_v15, 6.0 }
 0x2de   : > { %v786_v18 = vmin.f32 %v784_v16, 6.0 }
 0x2df   : > { %v787_v19 = vmul.f32 0.16666667, %v785_v17 }
 0x2e0   : > { %v788_v20 = vmul.f32 0.16666667, %v786_v18 }
 0x2e1   : > { %v789_v21 = vpack.c.bf16 %v787_v19, %v787_v19 }
 0x2e2   : > { %v790_v22 = vpack.c.bf16 %v788_v20, %v788_v20 }
 0x2e3   : > { %v792_v23 = vpack.i.b16 %v789_v21, %v789_v21 }
 0x2e4   : > { %v799_v24 = vpack.i.b16 %v790_v22, %v790_v22 }
 0x2e5   : > { %v797_v25 = vrot.slane %v792_v23, %v1834_v3 }
 0x2e6   : > { %v804_v26 = vrot.slane %v799_v24, %v1834_v3 }
 0x2e8   : > { %v1309_v27 = vcombine.low %v797_v25, %v804_v26 }
 0x2ea   : > { %v811_v28 = vmul.bf16 %v1309_v27, %v1668_v1  ;;  %v812_v29 = vmul.bf16 %v1309_v27, %v1670_v2  ;;  %v1004_v1 = vld [vmem:[%s1886_s8 + $0x20] sm:$0xff] }
 0x2eb   : > { %v1334_v2 = vcombine.high %v1004_v1, %v1004_v1  ;;  %v1333_v34 = vcombine.low %v1004_v1, %v1004_v1 }
 0x2ec   : > { %v1312_v30 = vcombine.high %v811_v28, %v812_v29  ;;  %v1311_v31 = vcombine.low %v811_v28, %v812_v29 }
 0x2ed   : > { %1335 = vmatprep.subr.msk.bf16.mxu1 %vm1046_vm3, %v1334_v2  ;;  %v1048_v35 = vsel %vm1046_vm3, %v1333_v34, 0 }
 0x2ee   : > { %1328 = vmatprep.mubr.msk.bf16.mxu0 %vm630_vm1, %v1312_v30  ;;  %1058 = vmatpush1.bf16.msra.mxu1 %v1048_v35 }
 0x2ef   : > { %985 = vmatmul.mubr.bf16.vlgmr.msra.gmra.mrb[4].mxu0 %v1311_v31 }
 0x3c2   : > { %v986_v39 = vpop.f32.mrb[4].mxu0 }
 0x3c3   : > { %v987_v40 = vadd.f32 %v1310_v37, %v986_v39  ;;  %v988_v41 = vpop.f32.mrb[5].mxu0 }
 0x3c4   : > { %v989_v43 = vpop.f32.mrb[6].mxu0 }
 0x3c5   : > { %v997_v44 = vadd.f32 %v1353_v38, %v987_v40  ;;  %v990_v45 = vadd.f32 %v1310_v37, %v989_v43  ;;  %v991_v46 = vpop.f32.mrb[7].mxu0 }
 0x3c7   : > { %v1349_v47 = vpack.c.bf16 %v997_v44, %v997_v44  ;;  %v998_v48 = vadd.f32 %v1354_v42, %v990_v45 }
 0x3c9   : > { %1140 = vst.msk [vmem:[%s445_s14] sm:$0xf] %vm1139_vm4, %v1349_v47  ;;  %v999_v49 = vpack.c.bf16 %v998_v48, %v997_v44  ;;  %v1350_v50 = vpack.c.bf16 %v998_v48, %v998_v48 }
 0x3cb   : > { %1141 = vst.msk [vmem:[%s445_s14 + $0x4] sm:$0xf] %vm1139_vm4, %v1350_v50  ;;  %1336 = vmatmul.mubr.msk.bf16.vlgmr.msra.gmra.mrb[8].mxu1 %vm1042_vm5, %v999_v49 }
 0x49e   : > { %v1087_v54 = vpop.f32.mrb[8].mxu1 }
 0x49f   : > { %v1088_v55 = vadd.f32 %v1087_v54, %v1010_v52  ;;  %v1089_v56 = vpop.f32.mrb[9].mxu1 }
 0x4a0   : > { %v1090_v57 = vadd.f32 %v1089_v56, %v1014_v53  ;;  %v1091_v58 = vpop.f32.mrb[10].mxu1 }
 0x4a1   : > { %v1096_v59 = vadd.f32 3.0, %v1088_v55  ;;  %v1092_v60 = vadd.f32 %v1091_v58, %v1010_v52  ;;  %v1093_v61 = vpop.f32.mrb[11].mxu1 }
 0x4a2   : > { %v1097_v62 = vadd.f32 3.0, %v1090_v57  ;;  %v1094_v0 = vadd.f32 %v1093_v61, %v1014_v53 }
 0x4a3   : > { %v1100_v5 = vmax.f32 %v1096_v59, 0.0  ;;  %v1098_v6 = vadd.f32 3.0, %v1092_v60 }
 0x4a4   : > { %v1101_v7 = vmax.f32 %v1097_v62, 0.0  ;;  %v1099_v8 = vadd.f32 3.0, %v1094_v0 }
 0x4a5   : > { %v1104_v9 = vmin.f32 %v1100_v5, 6.0  ;;  %v1102_v3 = vmax.f32 %v1098_v6, 0.0 }
 0x4a6   : > { %v1105_v10 = vmin.f32 %v1101_v7, 6.0  ;;  %v1103_v63 = vmax.f32 %v1099_v8, 0.0 }
 0x4a7   : > { %v1108_v4 = vmul.f32 %v1104_v9, %v1088_v55  ;;  %v1106_v11 = vmin.f32 %v1102_v3, 6.0 }
 0x4a8   : > { %v1109_v12 = vmul.f32 %v1105_v10, %v1090_v57  ;;  %v1107_v13 = vmin.f32 %v1103_v63, 6.0 }
 0x4a9   : > { %v1112_v14 = vmul.f32 0.16666667, %v1108_v4  ;;  %v1110_v15 = vmul.f32 %v1106_v11, %v1092_v60 }
 0x4aa   : > { %v1113_v16 = vmul.f32 0.16666667, %v1109_v12  ;;  %v1111_v17 = vmul.f32 %v1107_v13, %v1094_v0 }
 0x4ab   : > { %v1114_v18 = vmul.f32 0.16666667, %v1110_v15 }
 0x4ac   : > { %v1347_v19 = vpack.c.bf16 %v1113_v16, %v1112_v14  ;;  %v1115_v20 = vmul.f32 0.16666667, %v1111_v17 }
 0x4ae   : > { %1130 = vst.msk [vmem:[%s440_s20] sm:$0xff] %vm1129_vm7, %v1347_v19  ;;  %v1348_v21 = vpack.c.bf16 %v1115_v20, %v1114_v18 }
 0x4b0   : > { %1131 = vst.msk [vmem:[%s440_s20 + $0x8] sm:$0xff] %vm1129_vm7, %v1348_v21 }
 0x4b1 PF: > { %s24_s17 = sadd.s32 1, %s1508_s17  }
 0x4b2   : > { %p21_p5 = scmp.ge.s32.totalorder %s24_s17, 4  }
 0x4b4   :  { %23 = sbr.rel (!%p21_p5) target bundleno = 2 (0x2), region = 114 }
 0x4bb   :  { %1179 = vsyncpa [#allocation3], 1 }
 0x4bc   :  { %1181 = vsyncpa [#allocation3 + $0x1], 1 }
 0x4bd   :  { %1182 = vsyncpa [#allocation5], 1 }

// kernel: ball_localization_forward.16
= control target key start
LH: loop header
LB: loop body
LE: loop exit
PB: predicated region body
PF: predicated region fallthrough
CT: control target
= control target key end

     0   :  { %15 = vsyncpa [#allocation3], 0  ;;  %s1732_s0 = inlined_call_operand.vmem [shape: bf16[2,16,240], index: 0, kind: input, shape index: {}]   ;;  %s1733_s1 = inlined_call_operand.vmem [shape: bf16[240,64], index: 1, kind: input, shape index: {}]   ;;  %s1734_s2 = inlined_call_operand.vmem [shape: f32[1,64], index: 2, kind: input, shape index: {}]   ;;  %s1735_s3 = inlined_call_operand.vmem [shape: bf16[64,240], index: 3, kind: input, shape index: {}]   ;;  %s1736_s4 = inlined_call_operand.vmem [shape: f32[1,240], index: 4, kind: input, shape index: {}]   ;;  %s1737_s5 = inlined_call_operand.vmem [shape: bf16[240,40], index: 5, kind: input, shape index: {}]   ;;  %s1738_s6 = inlined_call_operand.hbm [shape: f32[1,40], index: 6, kind: input, shape index: {}]   ;;  %s1739_s7 = inlined_call_operand.vmem [shape: bf16[2,16,40], index: 7, kind: input, shape index: {}]   ;;  %s1740_s8 = inlined_call_operand.vmem [shape: bf16[40,120], index: 8, kind: input, shape index: {}]   ;;  %s1741_s9 = inlined_call_operand.hbm [shape: f32[1,120], index: 9, kind: input, shape index: {}]   ;;  %s1742_s10 = inlined_call_operand.vmem [shape: bf16[2,16,120], index: 10, kind: output, shape index: {}]  }
   0x1   :  { %16 = vsyncpa [#allocation5], 0  ;;  %s1454_s13 = smov 0  }
   0x2 LB: > { %s1460_s14 = sadd.s32 4294967295, %s1391_s13   ;;  %p1148_p0 = scmp.ge.s32.totalorder %s1391_s13, 1  ;;  %s1391_s13 = sphi %s1454_s13, %s22_s13  }
   0x3   : > { %p273_p1 = scmp.lt.s32.totalorder %s1391_s13, 3  ;;  %p1743_p2 = scmp.eq.s32.totalorder %s1460_s14, 0 }
   0x4   : > { %s1393_s16 = smov [#allocation2]   ;;  %s1394_s18 = smov [#allocation4]  }
   0x5   : > { %p1465_p3 = pnand %p1148_p0, %p273_p1  ;;  %s301_s17 = sshll.u32 %s1393_s16, 4  ;;  %s302_s17 = int_to_ptr.vmem [resolvable:$true] %s301_s17 }
   0x6   : > { %s315_s19 = sshll.u32 %s1394_s18, 4  ;;  %s1321_s23 = scalar_lea.hbm %s1738_s6, 16  ;;  %s1477_s19 = int_to_ptr.vmem [resolvable:$true] %s315_s19 }
   0x7   : > { %s1745_s15 = scalar_select %p1465_p3, 1, 0 }
   0x8   : > { %p1249_p4 = pneg %p1465_p3  ;;  %p1322_p6 = scmp.ne.s32.totalorder %s1738_s6, %s1321_s23 }
   0x9   : > { %p1328_p10 = scmp.lt.u32.totalorder %s1321_s23, %s1738_s6 }
   0xa   : > { %p1473_p5 = pnand %p1743_p2, %p1249_p4 }
   0xc   : > { %p1323_p7 = pneg %p1473_p5 }
   0xe   : > { %p1324_p8 = pnand %p1323_p7, %p1322_p6 }
  0x10   : > { %p1325_p9 = pneg %p1324_p8 }
  0x12   : > { %p1330_p11 = pnand %p1328_p10, %p1325_p9 }
  0x14   : > { %1333 = shalt.err (!%p1330_p11)
}
  0x15   : > { %s1334_s28 = scalar_lea.vmem %s302_s17, 16  ;;  %s1341_s29 = scalar_lea.vmem %s302_s17, 32 }
  0x16   : > { %p1335_p12 = scmp.ne.s32.totalorder %s302_s17, %s1334_s28  ;;  %p1342_p1 = scmp.lt.s32.totalorder %s302_s17, %s302_s17 }
  0x17   : > { %p1343_p4 = scmp.lt.s32.totalorder %s1341_s29, %s1334_s28 }
  0x18   : > { %p1337_p13 = pnand %p1335_p12, %p1323_p7 }
  0x19   : > { %p1344_p2 = por %p1343_p4, %p1342_p1 }
  0x1a   : > { %p1338_p0 = pneg %p1337_p13 }
  0x1c   : > { %p1345_p3 = pnand %p1344_p2, %p1338_p0 }
  0x1e   : > { %1348 = shalt.err (!%p1345_p3)
}
  0x1f   : > { %1252 = dma.hbm_to_vmem [thread:$0]  (!%p1473_p5), %s1738_s6, 16, %s302_s17, [#allocation3]  }
  0x20   : > { %s1349_s18 = scalar_lea.hbm %s1741_s9, 16 }
  0x21   : > { %p1350_p6 = scmp.ne.s32.totalorder %s1741_s9, %s1349_s18  ;;  %p1356_p3 = scmp.lt.u32.totalorder %s1349_s18, %s1741_s9 }
  0x23   : > { %p1352_p8 = pnand %p1350_p6, %p1323_p7 }
  0x25   : > { %p1353_p2 = pneg %p1352_p8 }
  0x27   : > { %p1358_p9 = pnand %p1356_p3, %p1353_p2 }
  0x29   : > { %1361 = shalt.err (!%p1358_p9)
}
  0x2a   : > { %s1362_s17 = scalar_lea.vmem %s1477_s19, 16  ;;  %s1369_s25 = scalar_lea.vmem %s1477_s19, 32 }
  0x2b   : > { %p1363_p10 = scmp.ne.s32.totalorder %s1477_s19, %s1362_s17  ;;  %p1370_p13 = scmp.lt.s32.totalorder %s1477_s19, %s1477_s19 }
  0x2c   : > { %p1371_p0 = scmp.lt.s32.totalorder %s1369_s25, %s1362_s17 }
  0x2d   : > { %p1365_p11 = pnand %p1363_p10, %p1323_p7 }
  0x2e   : > { %p1372_p1 = por %p1371_p0, %p1370_p13 }
  0x2f   : > { %p1366_p12 = pneg %p1365_p11 }
  0x31   : > { %p1373_p4 = pnand %p1372_p1, %p1366_p12 }
  0x33   : > { %1376 = shalt.err (!%p1373_p4)
}
  0x34   : > { %1255 = dma.hbm_to_vmem [thread:$0]  (!%p1473_p5), %s1741_s9, 16, %s1477_s19, [#allocation5]  }
  0x35   : > { %p1747_p6 = scmp.ne.s32.totalorder %s1745_s15, 0 }
  0x36   : > { %p1748_p7 = scmp.eq.s32.totalorder (!%p1747_p6), %s1460_s14, 0 }
  0x37   : > { %344 = sbr.rel (%p1747_p6) target bundleno = 1199 (0x4af), region = 60 }
  0x3e   : > { %1382 = dma.done.wait (%p1748_p7), [#allocation3], 16   ;;  %p1749_p8 = pmov %p1748_p7 }
  0x3f   : > { %p1750_p2 = pmov %p1748_p7 }
  0x40   : > { %1384 = vsyncadd (%p1749_p8), [#allocation3], 4294967280 }
  0x41   : > { %1386 = dma.done.wait (%p1750_p2), [#allocation5], 16   ;;  %p1751_p3 = pmov %p1750_p2 }
  0x42   : > { %p391_p9 = scmp.lt.s32.totalorder %s1460_s14, 1  ;;  %v1395_v0 = vmov 0   ;;  %vm420_vm0 = vcmask 130048   ;;  %v1276_v5 = vld [vmem:[%s1733_s1] sm:$0xff]   ;;  %v1396_v6 = vmov 1065369472   ;;  %v686_v62 = vlaneseq }
  0x43   : > { %1388 = vsyncadd (%p1751_p3), [#allocation5], 4294967280  ;;  %456 = vmatprep.mubr.bf16.mxu1 %v1395_v0  ;;  %732 = vmatprep.mubr.bf16.mxu0 %v1395_v0  ;;  %v1277_v7 = vld [vmem:[%s1733_s1 + $0x8] sm:$0xff]   ;;  %v1278_v8 = vld [vmem:[%s1733_s1 + $0x10] sm:$0xff]   ;;  %vm590_vm1 = vcmask 916480   ;;  %vm696_vm2 = vcmask 523264  }
  0x44   : > { %s1753_s14 = smov (!%p391_p9, %s1460_s14), 1  ;;  %v1279_v9 = vld [vmem:[%s1733_s1 + $0x18] sm:$0xff]   ;;  %v1280_v10 = vld [vmem:[%s1733_s1 + $0x20] sm:$0xff]   ;;  %v1281_v11 = vld [vmem:[%s1733_s1 + $0x28] sm:$0xff]   ;;  %v1397_v61 = vmov 0.0   ;;  %v687_v63 = vshrl.u32 %v686_v62, 7 }
  0x45   : > { %s1218_s15 = sshll.u32 %s1753_s14, 4  ;;  %v1282_v12 = vld [vmem:[%s1733_s1 + $0x30] sm:$0xff]   ;;  %v1283_v13 = vld [vmem:[%s1733_s1 + $0x38] sm:$0xff]   ;;  %v1284_v14 = vld [vmem:[%s1733_s1 + $0x40] sm:$0xff]   ;;  %vm991_vm3 = vcmask 1043456   ;;  %vm1398_vm4 = vmmov 0  }
  0x46   : > { %s395_s28 = scalar_lea.vmem %s1732_s0, %s1218_s15  ;;  %v1285_v15 = vld [vmem:[%s1733_s1 + $0x48] sm:$0xff]   ;;  %v1286_v16 = vld [vmem:[%s1733_s1 + $0x50] sm:$0xff]   ;;  %v1287_v17 = vld [vmem:[%s1733_s1 + $0x58] sm:$0xff]   ;;  %s1219_s15 = sshll.u32 %s1753_s14, 3  ;;  %vm987_vm5 = vcmask 326656   ;;  %vm1054_vm6 = vcmask 977920  }
  0x47   : > { %v1547_v1 = vld [vmem:[%s395_s28] sm:$0xff]  ;;  %v1549_v2 = vld [vmem:[%s395_s28 + $0x8] sm:$0xff]  ;;  %v1290_v20 = vld [vmem:[%s1733_s1 + $0x70] sm:$0xff]   ;;  %s400_s28 = scalar_lea.vmem %s1739_s7, %s1219_s15  ;;  %s405_s11 = scalar_lea.vmem %s1742_s10, %s1219_s15 }
  0x48   : > { %v1162_v3 = vcombine.high %v1547_v1, %v1549_v2  ;;  %v1161_v4 = vcombine.low %v1547_v1, %v1549_v2  ;;  %v1288_v18 = vld [vmem:[%s1733_s1 + $0x60] sm:$0xff]   ;;  %v1289_v19 = vld [vmem:[%s1733_s1 + $0x68] sm:$0xff]   ;;  %v1294_v23 = vld [vmem:[%s1735_s3 + $0x14] ss:$8 sps:$4 sm:$0xff]  }
  0x49   : > { %v1291_v21 = vld [vmem:[%s1735_s3 + $0x4] ss:$8 sps:$4 sm:$0xff]   ;;  %v1293_v22 = vld [vmem:[%s1735_s3] ss:$8 sps:$4 sm:$0xff]   ;;  %v1296_v24 = vld [vmem:[%s1735_s3 + $0x10] ss:$8 sps:$4 sm:$0xff]  }
  0x4a   : > { %424 = vmatprep.subr.bf16.mxu1 %v1162_v3  ;;  %700 = vmatprep.subr.bf16.mxu0 %v1291_v21  ;;  %v1297_v25 = vld [vmem:[%s1735_s3 + $0x24] ss:$8 sps:$4 sm:$0xff]   ;;  %v1299_v34 = vld [vmem:[%s1735_s3 + $0x20] ss:$8 sps:$4 sm:$0xff]   ;;  %v1300_v35 = vld [vmem:[%s1735_s3 + $0x34] ss:$8 sps:$4 sm:$0xff]  }
  0x4b   : > { %425 = vmatpush1.bf16.msra.mxu1 %v1161_v4  ;;  %701 = vmatpush1.bf16.msra.mxu0 %v1293_v22  ;;  %v1302_v36 = vld [vmem:[%s1735_s3 + $0x30] ss:$8 sps:$4 sm:$0xff]   ;;  %v499_v37 = vld [vmem:[%s1734_s2] sm:$0x1]  ;;  %v1304_v46 = vld [vmem:[%s1737_s5 + $0x8] sm:$0xff]   ;;  %v688_v3 = vsub.s32 0, %v687_v63 }
  0x4c   : > { %594 = vmatprep.subr.bf16.mxu1 %v1395_v0  ;;  %702 = vmatprep.subr.bf16.mxu0 %v1294_v23  ;;  %v1303_v44 = vld [vmem:[%s1737_s5] sm:$0xff]   ;;  %v1305_v47 = vld [vmem:[%s1737_s5 + $0x10] sm:$0xff]   ;;  %v1306_v48 = vld [vmem:[%s1737_s5 + $0x18] sm:$0xff]  }
  0x4d   : > { %v1307_v49 = vld [vmem:[%s1737_s5 + $0x20] sm:$0xff]   ;;  %v1308_v50 = vld [vmem:[%s1737_s5 + $0x28] sm:$0xff]   ;;  %v1309_v51 = vld [vmem:[%s1737_s5 + $0x30] sm:$0xff]  }
  0x4e   : > { %1163 = vmatmul.mubr.msk.bf16.vlgmr.msra.gmra.mrb[0].mxu1 %vm420_vm0, %v1396_v6  ;;  %v1310_v52 = vld [vmem:[%s1737_s5 + $0x38] sm:$0xff]   ;;  %v1311_v53 = vld [vmem:[%s1737_s5 + $0x40] sm:$0xff]   ;;  %v1312_v54 = vld [vmem:[%s1737_s5 + $0x48] sm:$0xff]  }
  0x4f   : > { %595 = vmatpush1.bf16.msra.mxu1 %v1276_v5  ;;  %703 = vmatpush1.bf16.msra.mxu0 %v1296_v24  ;;  %v1313_v55 = vld [vmem:[%s1737_s5 + $0x50] sm:$0xff]   ;;  %v1314_v56 = vld [vmem:[%s1737_s5 + $0x58] sm:$0xff]   ;;  %v1315_v57 = vld [vmem:[%s1737_s5 + $0x60] sm:$0xff]   ;;  %v692_v5 = vsub.s32 1, %v687_v63 }
  0x50   : > { %596 = vmatprep.subr.bf16.mxu1 %v1395_v0  ;;  %704 = vmatprep.subr.bf16.mxu0 %v1297_v25  ;;  %v1316_v58 = vld [vmem:[%s1737_s5 + $0x68] sm:$0xff]   ;;  %v1317_v59 = vld [vmem:[%s1737_s5 + $0x70] sm:$0xff]   ;;  %v1318_v60 = vld [vmem:[%s1740_s8] sm:$0xff]  }
  0x51   : > { %v644_v4 = vld [vmem:[%s1736_s4] sm:$0x3] }
  0x52   : > { %v689_v6 = vrot.slane %v644_v4, %v688_v3 }
  0x53   : > { %597 = vmatpush1.bf16.msra.mxu1 %v1277_v7  ;;  %705 = vmatpush1.bf16.msra.mxu0 %v1299_v34  ;;  %v693_v7 = vrot.slane %v644_v4, %v692_v5  ;;  %v1224_v34 = vld [vmem:[%s400_s28] sm:$0xff]  }
  0x54   : > { %598 = vmatprep.subr.bf16.mxu1 %v1395_v0  ;;  %706 = vmatprep.subr.bf16.mxu0 %v1300_v35 }
  0x57   : > { %599 = vmatpush1.bf16.msra.mxu1 %v1278_v8  ;;  %707 = vmatpush1.bf16.msra.mxu0 %v1302_v36 }
  0x58   : > { %600 = vmatprep.subr.bf16.mxu1 %v1395_v0  ;;  %912 = vmatprep.subr.bf16.mxu0 %v1395_v0 }
  0x5b   : > { %601 = vmatpush1.bf16.msra.mxu1 %v1279_v9 }
  0x5c   : > { %602 = vmatprep.subr.bf16.mxu1 %v1395_v0 }
  0x5f   : > { %603 = vmatpush1.bf16.msra.mxu1 %v1280_v10 }
  0x60   : > { %604 = vmatprep.subr.bf16.mxu1 %v1395_v0 }
  0x63   : > { %605 = vmatpush1.bf16.msra.mxu1 %v1281_v11 }
  0x64   : > { %606 = vmatprep.subr.bf16.mxu1 %v1395_v0 }
  0x67   : > { %607 = vmatpush1.bf16.msra.mxu1 %v1282_v12 }
  0x68   : > { %608 = vmatprep.subr.bf16.mxu1 %v1395_v0 }
  0x6b   : > { %609 = vmatpush1.bf16.msra.mxu1 %v1283_v13 }
  0x6c   : > { %610 = vmatprep.subr.bf16.mxu1 %v1395_v0 }
  0x6f   : > { %611 = vmatpush1.bf16.msra.mxu1 %v1284_v14 }
  0x70   : > { %612 = vmatprep.subr.bf16.mxu1 %v1395_v0 }
  0x73   : > { %613 = vmatpush1.bf16.msra.mxu1 %v1285_v15 }
  0x74   : > { %614 = vmatprep.subr.bf16.mxu1 %v1395_v0 }
  0x77   : > { %615 = vmatpush1.bf16.msra.mxu1 %v1286_v16 }
  0x78   : > { %616 = vmatprep.subr.bf16.mxu1 %v1395_v0 }
  0x7b   : > { %617 = vmatpush1.bf16.msra.mxu1 %v1287_v17 }
  0x7c   : > { %618 = vmatprep.subr.bf16.mxu1 %v1395_v0 }
  0x7f   : > { %619 = vmatpush1.bf16.msra.mxu1 %v1288_v18 }
  0x80   : > { %620 = vmatprep.subr.bf16.mxu1 %v1395_v0 }
  0x83   : > { %621 = vmatpush1.bf16.msra.mxu1 %v1289_v19 }
  0x84   : > { %622 = vmatprep.subr.bf16.mxu1 %v1395_v0 }
  0x87   : > { %623 = vmatpush1.bf16.msra.mxu1 %v1290_v20 }
  0x88   : > { %1231 = vmatprep.subr.bf16.mxu1 %v1397_v61 }
 0x121   : > { %v458_v26 = vpop.f32.mrb[0].mxu1 }
 0x122   : > { %v465_v27 = vmul.f32 0.0625, %v458_v26  ;;  %v460_v28 = vpop.f32.mrb[1].mxu1 }
 0x123   : > { %v466_v29 = vmul.f32 0.0625, %v460_v28  ;;  %v462_v30 = vpop.f32.mrb[2].mxu1 }
 0x124   : > { %v463_v31 = vpop.f32.mrb[3].mxu1  ;;  %v467_v33 = vpack.c.bf16 %v465_v27, %v465_v27 }
 0x125   : > { %v468_v32 = vpack.c.bf16 %v466_v29, %v466_v29 }
 0x127   : > { %1179 = vmatprep.mubr.msk.bf16.mxu1 %vm590_vm1, %v468_v32  ;;  %v1319_v32 = vld [vmem:[%s1740_s8 + $0x8] sm:$0xff]  }
 0x128   : > { %627 = vmatmul.mubr.bf16.vlgmr.msra.gmra.mrb[4].mxu1 %v467_v33  ;;  %v1320_v33 = vld [vmem:[%s1740_s8 + $0x10] ss:$0 sps:$4 sm:$0xff]  }
 0x129   : > { %1232 = vmatpush3.bf16.msra.mxu1 %v1318_v60  ;;  %1237 = vmatprep.mubr.msk.bf16.mxu1 %vm1398_vm4, %v1397_v61 }
 0x12a   : > { %1233 = vmatprep.subr.bf16.mxu1 %v1397_v61 }
 0x12d   : > { %1234 = vmatpush3.bf16.msra.mxu1 %v1319_v32 }
 0x12e   : > { %1235 = vmatprep.subr.bf16.mxu1 %v1397_v61 }
 0x1fb   : > { %v628_v38 = vpop.f32.mrb[4].mxu1 }
 0x1fc   : > { %v629_v39 = vadd.f32 %v628_v38, %v499_v37  ;;  %v630_v40 = vpop.f32.mrb[5].mxu1  ;;  %v1225_v37 = vunpack.c.l.bf16 %v1224_v34 }
 0x1fd   : > { %v631_v41 = vpop.f32.mrb[6].mxu1 }
 0x1fe   : > { %v634_v42 = vmax.f32 %v629_v39, 0.0  ;;  %v632_v43 = vpop.f32.mrb[7].mxu1  ;;  %v1226_v39 = vunpack.c.h.bf16 %v1224_v34 }
 0x200   : > { %v635_v45 = vpack.c.bf16 %v634_v42, %v634_v42 }
 0x202   : > { %1188 = vmatmul.mubr.msk.bf16.vlgmr.msra.gmra.mrb[0].mxu0 %vm696_vm2, %v635_v45 }
 0x203   : > { %913 = vmatpush1.bf16.msra.mxu0 %v1303_v44 }
 0x204   : > { %914 = vmatprep.subr.bf16.mxu0 %v1395_v0 }
 0x207   : > { %915 = vmatpush1.bf16.msra.mxu0 %v1304_v46  ;;  %v1209_v46 = vld [vmem:[#allocation4] ss:$0 sm:$0xff] }
 0x208   : > { %916 = vmatprep.subr.bf16.mxu0 %v1395_v0 }
 0x20b   : > { %917 = vmatpush1.bf16.msra.mxu0 %v1305_v47 }
 0x20c   : > { %918 = vmatprep.subr.bf16.mxu0 %v1395_v0 }
 0x20f   : > { %919 = vmatpush1.bf16.msra.mxu0 %v1306_v48 }
 0x210   : > { %920 = vmatprep.subr.bf16.mxu0 %v1395_v0 }
 0x213   : > { %921 = vmatpush1.bf16.msra.mxu0 %v1307_v49 }
 0x214   : > { %922 = vmatprep.subr.bf16.mxu0 %v1395_v0 }
 0x217   : > { %923 = vmatpush1.bf16.msra.mxu0 %v1308_v50 }
 0x218   : > { %924 = vmatprep.subr.bf16.mxu0 %v1395_v0 }
 0x21b   : > { %925 = vmatpush1.bf16.msra.mxu0 %v1309_v51 }
 0x21c   : > { %926 = vmatprep.subr.bf16.mxu0 %v1395_v0 }
 0x21f   : > { %927 = vmatpush1.bf16.msra.mxu0 %v1310_v52 }
 0x220   : > { %928 = vmatprep.subr.bf16.mxu0 %v1395_v0 }
 0x223   : > { %929 = vmatpush1.bf16.msra.mxu0 %v1311_v53 }
 0x224   : > { %930 = vmatprep.subr.bf16.mxu0 %v1395_v0 }
 0x227   : > { %931 = vmatpush1.bf16.msra.mxu0 %v1312_v54 }
 0x228   : > { %932 = vmatprep.subr.bf16.mxu0 %v1395_v0 }
 0x22b   : > { %933 = vmatpush1.bf16.msra.mxu0 %v1313_v55 }
 0x22c   : > { %934 = vmatprep.subr.bf16.mxu0 %v1395_v0 }
 0x22f   : > { %935 = vmatpush1.bf16.msra.mxu0 %v1314_v56 }
 0x230   : > { %936 = vmatprep.subr.bf16.mxu0 %v1395_v0 }
 0x233   : > { %937 = vmatpush1.bf16.msra.mxu0 %v1315_v57 }
 0x234   : > { %938 = vmatprep.subr.bf16.mxu0 %v1395_v0 }
 0x237   : > { %939 = vmatpush1.bf16.msra.mxu0 %v1316_v58 }
 0x238   : > { %940 = vmatprep.subr.bf16.mxu0 %v1395_v0 }
 0x23b   : > { %941 = vmatpush1.bf16.msra.mxu0 %v1317_v59 }
 0x2d5   : > { %v734_v0 = vpop.f32.mrb[0].mxu0 }
 0x2d6   : > { %v735_v8 = vadd.f32 %v734_v0, %v689_v6  ;;  %v736_v9 = vpop.f32.mrb[1].mxu0 }
 0x2d7   : > { %v737_v10 = vadd.f32 %v736_v9, %v693_v7  ;;  %v738_v11 = vpop.f32.mrb[2].mxu0 }
 0x2d8   : > { %v741_v12 = vadd.f32 3.0, %v735_v8  ;;  %v739_v13 = vpop.f32.mrb[3].mxu0 }
 0x2d9   : > { %v742_v14 = vadd.f32 3.0, %v737_v10 }
 0x2da   : > { %v743_v15 = vmax.f32 %v741_v12, 0.0 }
 0x2db   : > { %v744_v16 = vmax.f32 %v742_v14, 0.0 }
 0x2dc   : > { %v745_v17 = vmin.f32 %v743_v15, 6.0 }
 0x2dd   : > { %v746_v18 = vmin.f32 %v744_v16, 6.0 }
 0x2de   : > { %v747_v19 = vmul.f32 0.16666667, %v745_v17 }
 0x2df   : > { %v748_v20 = vmul.f32 0.16666667, %v746_v18 }
 0x2e0   : > { %v749_v21 = vpack.c.bf16 %v747_v19, %v747_v19 }
 0x2e1   : > { %v750_v22 = vpack.c.bf16 %v748_v20, %v748_v20 }
 0x2e2   : > { %v752_v23 = vpack.i.b16 %v749_v21, %v749_v21 }
 0x2e3   : > { %v759_v24 = vpack.i.b16 %v750_v22, %v750_v22 }
 0x2e4   : > { %v757_v25 = vrot.slane %v752_v23, %v688_v3 }
 0x2e5   : > { %v764_v26 = vrot.slane %v759_v24, %v688_v3 }
 0x2e7   : > { %v1189_v27 = vcombine.low %v757_v25, %v764_v26 }
 0x2e9   : > { %v771_v28 = vmul.bf16 %v1189_v27, %v1547_v1  ;;  %v772_v29 = vmul.bf16 %v1189_v27, %v1549_v2  ;;  %v993_v1 = vsel %vm991_vm3, %v1320_v33, 0  ;;  %v1190_v2 = vld [vmem:[#allocation2] ss:$0 sm:$0xff] }
 0x2ea   : > { %1236 = vmatpush3.bf16.msra.mxu1 %v993_v1 }
 0x2eb   : > { %v1192_v30 = vcombine.high %v771_v28, %v772_v29  ;;  %v1191_v31 = vcombine.low %v771_v28, %v772_v29 }
 0x2ed   : > { %1208 = vmatprep.mubr.msk.bf16.mxu0 %vm590_vm1, %v1192_v30 }
 0x2ee   : > { %945 = vmatmul.mubr.bf16.vlgmr.msra.gmra.mrb[4].mxu0 %v1191_v31 }
 0x3c1   : > { %v946_v35 = vpop.f32.mrb[4].mxu0 }
 0x3c2   : > { %v947_v36 = vadd.f32 %v1190_v2, %v946_v35  ;;  %v948_v38 = vpop.f32.mrb[5].mxu0 }
 0x3c3   : > { %v949_v40 = vpop.f32.mrb[6].mxu0 }
 0x3c4   : > { %v950_v41 = vadd.f32 %v1190_v2, %v949_v40  ;;  %v951_v42 = vpop.f32.mrb[7].mxu0  ;;  %v957_v43 = vadd.f32 %v1225_v37, %v947_v36 }
 0x3c6   : > { %v958_v44 = vadd.f32 %v1226_v39, %v950_v41 }
 0x3c8   : > { %v959_v45 = vpack.c.bf16 %v958_v44, %v957_v43 }
 0x3ca   : > { %1238 = vmatmul.mubr.msk.bf16.vlgmr.msra.gmra.mrb[8].mxu1 %vm987_vm5, %v959_v45 }
 0x49d   : > { %v1029_v47 = vpop.f32.mrb[8].mxu1 }
 0x49e   : > { %v1030_v48 = vadd.f32 %v1209_v46, %v1029_v47  ;;  %v1239_v49 = vpop.f32.mrb[9].mxu1 }
 0x49f   : > { %v1032_v50 = vpop.f32.mrb[10].mxu1 }
 0x4a0   : > { %v1036_v51 = vadd.f32 3.0, %v1030_v48  ;;  %v1033_v52 = vadd.f32 %v1209_v46, %v1032_v50  ;;  %v1240_v53 = vpop.f32.mrb[11].mxu1 }
 0x4a2   : > { %v1038_v54 = vmax.f32 %v1036_v51, 0.0  ;;  %v1037_v55 = vadd.f32 3.0, %v1033_v52 }
 0x4a4   : > { %v1040_v56 = vmin.f32 %v1038_v54, 6.0  ;;  %v1039_v57 = vmax.f32 %v1037_v55, 0.0 }
 0x4a6   : > { %v1042_v58 = vmul.f32 %v1040_v56, %v1030_v48  ;;  %v1041_v59 = vmin.f32 %v1039_v57, 6.0 }
 0x4a8   : > { %v1044_v60 = vmul.f32 0.16666667, %v1042_v58  ;;  %v1043_v61 = vmul.f32 %v1041_v59, %v1033_v52 }
 0x4aa   : > { %v1221_v62 = vpack.c.bf16 %v1044_v60, %v1044_v60  ;;  %v1045_v63 = vmul.f32 0.16666667, %v1043_v61 }
 0x4ac   : > { %1055 = vst.msk [vmem:[%s405_s11] sm:$0xf] %vm1054_vm6, %v1221_v62  ;;  %v1222_v3 = vpack.c.bf16 %v1045_v63, %v1045_v63 }
 0x4ae   : > { %1056 = vst.msk [vmem:[%s405_s11 + $0x4] sm:$0xf] %vm1054_vm6, %v1222_v3 }
 0x4af PF: > { %s22_s13 = sadd.s32 1, %s1391_s13  }
 0x4b0   : > { %p19_p5 = scmp.ge.s32.totalorder %s22_s13, 4  }
 0x4b2   :  { %21 = sbr.rel (!%p19_p5) target bundleno = 2 (0x2), region = 102 }
 0x4b9   :  { %1078 = vsyncpa [#allocation3], 1 }
 0x4ba   :  { %1080 = vsyncpa [#allocation3 + $0x1], 1 }
 0x4bb   :  { %1081 = vsyncpa [#allocation5], 1 }

// kernel: ball_localization_forward.17
= control target key start
LH: loop header
LB: loop body
LE: loop exit
PB: predicated region body
PF: predicated region fallthrough
CT: control target
= control target key end

     0   :  { %16 = vsyncpa [#allocation3], 0  ;;  %s1280_s13 = smov 0   ;;  %s1468_s0 = inlined_call_operand.vmem [shape: bf16[2,16,120], index: 0, kind: input, shape index: {}]   ;;  %s1469_s1 = inlined_call_operand.vmem [shape: bf16[120,32], index: 1, kind: input, shape index: {}]   ;;  %s1470_s2 = inlined_call_operand.vmem [shape: f32[1,32], index: 2, kind: input, shape index: {}]   ;;  %s1471_s3 = inlined_call_operand.vmem [shape: bf16[32,120], index: 3, kind: input, shape index: {}]   ;;  %s1472_s4 = inlined_call_operand.vmem [shape: f32[1,120], index: 4, kind: input, shape index: {}]   ;;  %s1473_s5 = inlined_call_operand.vmem [shape: bf16[120,48], index: 5, kind: input, shape index: {}]   ;;  %s1474_s6 = inlined_call_operand.hbm [shape: f32[1,48], index: 6, kind: input, shape index: {}]   ;;  %s1475_s7 = inlined_call_operand.vmem [shape: bf16[48,144], index: 7, kind: input, shape index: {}]   ;;  %s1476_s8 = inlined_call_operand.vmem [shape: f32[1,144], index: 8, kind: input, shape index: {}]   ;;  %s1477_s9 = inlined_call_operand.vmem [shape: bf16[2,16,144], index: 9, kind: output, shape index: {0}]   ;;  %s1478_s10 = inlined_call_operand.vmem [shape: bf16[2,16,48], index: 10, kind: output, shape index: {1}]  }
   0x1 LB: > { %s1286_s14 = sadd.s32 4294967295, %s1218_s13   ;;  %p995_p0 = scmp.ge.s32.totalorder %s1218_s13, 1  ;;  %s1218_s13 = sphi %s1280_s13, %s22_s13  }
   0x2   : > { %p273_p1 = scmp.lt.s32.totalorder %s1218_s13, 3  ;;  %p1479_p3 = scmp.eq.s32.totalorder %s1286_s14, 0 }
   0x3   : > { %s1220_s16 = smov [#allocation2]   ;;  %s1180_s21 = scalar_lea.hbm %s1474_s6, 16 }
   0x4   : > { %p1290_p2 = pnand %p995_p0, %p273_p1  ;;  %s301_s17 = sshll.u32 %s1220_s16, 4  ;;  %s302_s17 = int_to_ptr.vmem [resolvable:$true] %s301_s17 }
   0x5   : > { %p1181_p6 = scmp.ne.s32.totalorder %s1474_s6, %s1180_s21  ;;  %p1187_p10 = scmp.lt.u32.totalorder %s1180_s21, %s1474_s6 }
   0x6   : > { %s1481_s15 = scalar_select %p1290_p2, 1, 0 }
   0x7   : > { %p1133_p4 = pneg %p1290_p2 }
   0x9   : > { %p1299_p5 = pnand %p1479_p3, %p1133_p4 }
   0xb   : > { %p1182_p7 = pneg %p1299_p5 }
   0xd   : > { %p1183_p8 = pnand %p1182_p7, %p1181_p6 }
   0xf   : > { %p1184_p9 = pneg %p1183_p8 }
  0x11   : > { %p1189_p11 = pnand %p1187_p10, %p1184_p9 }
  0x13   : > { %1192 = shalt.err (!%p1189_p11)
}
  0x14   : > { %s1193_s26 = scalar_lea.vmem %s302_s17, 16  ;;  %s1200_s27 = scalar_lea.vmem %s302_s17, 32 }
  0x15   : > { %p1194_p12 = scmp.ne.s32.totalorder %s302_s17, %s1193_s26  ;;  %p1201_p1 = scmp.lt.s32.totalorder %s302_s17, %s302_s17 }
  0x16   : > { %p1202_p4 = scmp.lt.s32.totalorder %s1200_s27, %s1193_s26 }
  0x17   : > { %p1196_p13 = pnand %p1194_p12, %p1182_p7 }
  0x18   : > { %p1203_p3 = por %p1202_p4, %p1201_p1 }
  0x19   : > { %p1197_p0 = pneg %p1196_p13 }
  0x1b   : > { %p1204_p2 = pnand %p1203_p3, %p1197_p0 }
  0x1d   : > { %1207 = shalt.err (!%p1204_p2)
}
  0x1e   : > { %1136 = dma.hbm_to_vmem [thread:$0]  (!%p1299_p5), %s1474_s6, 16, %s302_s17, [#allocation3]  }
  0x1f   : > { %p1483_p6 = scmp.ne.s32.totalorder %s1481_s15, 0 }
  0x20   : > { %p1484_p8 = scmp.eq.s32.totalorder (!%p1483_p6), %s1286_s14, 0 }
  0x21   : > { %328 = sbr.rel (%p1483_p6) target bundleno = 1168 (0x490), region = 56 }
  0x28   : > { %1213 = dma.done.wait (%p1484_p8), [#allocation3], 16   ;;  %p1485_p7 = pmov %p1484_p8 }
  0x29   : > { %p371_p9 = scmp.lt.s32.totalorder %s1286_s14, 1  ;;  %v1221_v0 = vmov 0.0   ;;  %vm1222_vm0 = vmmov 0   ;;  %v1153_v4 = vld [vmem:[%s1469_s1] sm:$0xff]   ;;  %vm396_vm1 = vcmask 130048   ;;  %v1154_v5 = vld [vmem:[%s1469_s1 + $0x8] sm:$0xff]   ;;  %v622_v49 = vlaneseq }
  0x2a   : > { %1215 = vsyncadd (%p1485_p7), [#allocation3], 4294967280  ;;  %1075 = vmatprep.subr.bf16.mxu0 %v1221_v0  ;;  %1077 = vmatprep.mubr.msk.bf16.mxu0 %vm1222_vm0, %v1221_v0  ;;  %v1223_v6 = vmov 1065369472   ;;  %v1155_v7 = vld [vmem:[%s1469_s1 + $0x10] sm:$0xff]   ;;  %v1156_v8 = vld [vmem:[%s1469_s1 + $0x18] sm:$0xff]  }
  0x2b   : > { %s1487_s14 = smov (!%p371_p9, %s1286_s14), 1  ;;  %1081 = vmatprep.subr.bf16.mxu1 %v1221_v0  ;;  %1097 = vmatprep.mubr.msk.bf16.mxu1 %vm1222_vm0, %v1221_v0  ;;  %v1157_v9 = vld [vmem:[%s1469_s1 + $0x20] sm:$0xff]   ;;  %v1158_v10 = vld [vmem:[%s1469_s1 + $0x28] sm:$0xff]   ;;  %v1159_v11 = vld [vmem:[%s1469_s1 + $0x30] sm:$0xff]   ;;  %vm507_vm2 = vcmask 1043456   ;;  %vm503_vm3 = vcmask 982016  }
  0x2c   : > { %s1045_s30 = sshll.u32 %s1487_s14, 3  ;;  %1082 = vmatpush3.bf16.msra.mxu1 %v1153_v4  ;;  %v1160_v12 = vld [vmem:[%s1469_s1 + $0x38] ss:$0 sps:$4 sm:$0xff]   ;;  %v1161_v14 = vld [vmem:[%s1471_s3] sm:$0xff]   ;;  %v1162_v21 = vld [vmem:[%s1471_s3 + $0x8] sm:$0xff]   ;;  %vm570_vm4 = vcmask 261120  }
  0x2d   : > { %s375_s15 = scalar_lea.vmem %s1468_s0, %s1045_s30  ;;  %1083 = vmatprep.subr.bf16.mxu1 %v1221_v0  ;;  %v509_v13 = vsel %vm507_vm2, %v1160_v12, 0  ;;  %v457_v22 = vld [vmem:[%s1470_s2] sm:$0x1]  ;;  %v1164_v31 = vld [vmem:[%s1473_s5 + $0x8] sm:$0xff]   ;;  %v1165_v32 = vld [vmem:[%s1473_s5 + $0x10] sm:$0xff]   ;;  %v623_v53 = vshrl.u32 %v622_v49, 7  ;;  %s385_s19 = scalar_lea.vmem %s1478_s10, %s1045_s30 }
  0x2e   : > { %v1341_v1 = vld [vmem:[%s375_s15] sm:$0xf]  ;;  %v1343_v2 = vld [vmem:[%s375_s15 + $0x4] sm:$0xf]  ;;  %v1166_v33 = vld [vmem:[%s1473_s5 + $0x18] sm:$0xff]   ;;  %vm890_vm5 = vcmask 388096  }
  0x2f   : > { %v1006_v3 = vcombine.low %v1341_v1, %v1343_v2  ;;  %v1163_v29 = vld [vmem:[%s1473_s5] sm:$0xff]   ;;  %v1168_v35 = vld [vmem:[%s1473_s5 + $0x28] sm:$0xff]   ;;  %v1169_v36 = vld [vmem:[%s1473_s5 + $0x30] sm:$0xff]   ;;  %v624_v56 = vsub.s32 0, %v623_v53  ;;  %vm800_vm6 = vcmask 392192   ;;  %s1046_s30 = sshll.u32 %s1487_s14, 4 }
  0x30   : > { %1084 = vmatpush3.bf16.msra.mxu1 %v1154_v5  ;;  %v1167_v34 = vld [vmem:[%s1473_s5 + $0x20] sm:$0xff]   ;;  %v1170_v37 = vld [vmem:[%s1473_s5 + $0x38] ss:$0 sps:$4 sm:$0xff]   ;;  %v1176_v41 = vld [vmem:[%s1475_s7 + $0x14] ss:$8 sps:$4 sm:$0xff]   ;;  %vm879_vm7 = vcmask 130052   ;;  %s380_s24 = scalar_lea.vmem %s1477_s9, %s1046_s30 }
  0x31   : > { %1076 = vmatpush3.bf16.msra.mxu0 %v1006_v3  ;;  %1085 = vmatprep.subr.bf16.mxu1 %v1221_v0  ;;  %v708_v38 = vsel %vm507_vm2, %v1170_v37, 0  ;;  %v1171_v39 = vld [vmem:[%s1475_s7] ss:$8 sps:$4 sm:$0xff]   ;;  %v1173_v40 = vld [vmem:[%s1475_s7 + $0x4] ss:$8 sps:$4 sm:$0xff]   ;;  %v1224_v3 = vmov 0   ;;  %vm880_vm8 = vmor %vm879_vm7, %vm507_vm2 }
  0x32   : > { %1101 = vmatprep.subr.bf16.mxu0 %v1221_v0  ;;  %v1174_v42 = vld [vmem:[%s1475_s7 + $0x10] ss:$8 sps:$4 sm:$0xff]   ;;  %v557_v43 = vld [vmem:[%s1472_s4] sm:$0x1]  ;;  %v1179_v63 = vld [vmem:[%s1475_s7 + $0x24] ss:$8 sps:$4 sm:$0xff]  }
  0x33   : > { %v1021_v4 = vld [vmem:[#allocation2] ss:$0 sm:$0xff] }
  0x34   : > { %1078 = vmatmul.mubr.msk.bf16.vlgmr.msra.gmra.mrb[0].mxu0 %vm396_vm1, %v1223_v6  ;;  %1086 = vmatpush3.bf16.msra.mxu1 %v1155_v7  ;;  %v758_v12 = vld [vmem:[%s1476_s8] sm:$0x3] }
  0x35   : > { %1105 = vmatprep.mubr.msk.bf16.mxu0 %vm1222_vm0, %v1221_v0  ;;  %1087 = vmatprep.subr.bf16.mxu1 %v1221_v0 }
  0x36   : > { %1102 = vmatpush3.bf16.msra.mxu0 %v1161_v14  ;;  %v763_v14 = vrot.slane %v758_v12, %v624_v56 }
  0x37   : > { %1103 = vmatprep.subr.bf16.mxu0 %v1221_v0 }
  0x38   : > { %1088 = vmatpush3.bf16.msra.mxu1 %v1156_v8 }
  0x39   : > { %1089 = vmatprep.subr.bf16.mxu1 %v1221_v0 }
  0x3a   : > { %1104 = vmatpush3.bf16.msra.mxu0 %v1162_v21 }
  0x3b   : > { %1109 = vmatprep.subr.bf16.mxu0 %v1221_v0 }
  0x3c   : > { %1090 = vmatpush3.bf16.msra.mxu1 %v1157_v9 }
  0x3d   : > { %1091 = vmatprep.subr.bf16.mxu1 %v1221_v0 }
  0x40   : > { %1092 = vmatpush3.bf16.msra.mxu1 %v1158_v10 }
  0x41   : > { %1093 = vmatprep.subr.bf16.mxu1 %v1221_v0 }
  0x44   : > { %1094 = vmatpush3.bf16.msra.mxu1 %v1159_v11 }
  0x45   : > { %1095 = vmatprep.subr.bf16.mxu1 %v1221_v0 }
  0x48   : > { %1096 = vmatpush3.bf16.msra.mxu1 %v509_v13  ;;  %v766_v13 = vsub.s32 1, %v623_v53 }
  0x49   : > { %804 = vmatprep.subr.bf16.mxu1 %v1173_v40 }
 0x107   : > { %v434_v15 = vpop.f32.mrb[0].mxu0 }
 0x108   : > { %v440_v16 = vmul.f32 0.0625, %v434_v15  ;;  %v1079_v17 = vpop.f32.mrb[1].mxu0  ;;  %v767_v15 = vrot.slane %v758_v12, %v766_v13 }
 0x109   : > { %v437_v18 = vpop.f32.mrb[2].mxu0 }
 0x10a   : > { %v441_v19 = vpack.c.bf16 %v440_v16, %v440_v16  ;;  %v1080_v20 = vpop.f32.mrb[3].mxu0 }
 0x10c   : > { %1098 = vmatmul.mubr.msk.bf16.vlgmr.msra.gmra.mrb[0].mxu1 %vm503_vm3, %v441_v19 }
 0x10d   : > { %805 = vmatpush1.bf16.msra.mxu1 %v1171_v39  ;;  %836 = vmatprep.mubr.bf16.mxu1 %v1224_v3 }
 0x10e   : > { %806 = vmatprep.subr.bf16.mxu1 %v1176_v41 }
 0x111   : > { %807 = vmatpush1.bf16.msra.mxu1 %v1174_v42 }
 0x112   : > { %808 = vmatprep.subr.bf16.mxu1 %v1179_v63 }
 0x1df   : > { %v545_v23 = vpop.f32.mrb[0].mxu1 }
 0x1e0   : > { %v546_v24 = vadd.f32 %v545_v23, %v457_v22  ;;  %v1099_v25 = vpop.f32.mrb[1].mxu1 }
 0x1e1   : > { %v548_v26 = vpop.f32.mrb[2].mxu1 }
 0x1e2   : > { %v551_v27 = vmax.f32 %v546_v24, 0.0  ;;  %v1100_v28 = vpop.f32.mrb[3].mxu1 }
 0x1e4   : > { %v552_v30 = vpack.c.bf16 %v551_v27, %v551_v27 }
 0x1e6   : > { %1106 = vmatmul.mubr.msk.bf16.vlgmr.msra.gmra.mrb[4].mxu0 %vm570_vm4, %v552_v30 }
 0x1e7   : > { %1110 = vmatpush3.bf16.msra.mxu0 %v1163_v29  ;;  %1125 = vmatprep.mubr.msk.bf16.mxu0 %vm1222_vm0, %v1221_v0 }
 0x1e8   : > { %1111 = vmatprep.subr.bf16.mxu0 %v1221_v0 }
 0x1eb   : > { %1112 = vmatpush3.bf16.msra.mxu0 %v1164_v31 }
 0x1ec   : > { %1113 = vmatprep.subr.bf16.mxu0 %v1221_v0 }
 0x1ef   : > { %1114 = vmatpush3.bf16.msra.mxu0 %v1165_v32 }
 0x1f0   : > { %1115 = vmatprep.subr.bf16.mxu0 %v1221_v0 }
 0x1f3   : > { %1116 = vmatpush3.bf16.msra.mxu0 %v1166_v33 }
 0x1f4   : > { %1117 = vmatprep.subr.bf16.mxu0 %v1221_v0 }
 0x1f7   : > { %1118 = vmatpush3.bf16.msra.mxu0 %v1167_v34 }
 0x1f8   : > { %1119 = vmatprep.subr.bf16.mxu0 %v1221_v0 }
 0x1fb   : > { %1120 = vmatpush3.bf16.msra.mxu0 %v1168_v35 }
 0x1fc   : > { %1121 = vmatprep.subr.bf16.mxu0 %v1221_v0 }
 0x1ff   : > { %1122 = vmatpush3.bf16.msra.mxu0 %v1169_v36 }
 0x200   : > { %1123 = vmatprep.subr.bf16.mxu0 %v1221_v0  ;;  %v1177_v0 = vld [vmem:[%s1475_s7 + $0x20] ss:$8 sps:$4 sm:$0xff]  }
 0x201   : > { %809 = vmatpush1.bf16.msra.mxu1 %v1177_v0 }
 0x203   : > { %1124 = vmatpush3.bf16.msra.mxu0 %v708_v38 }
 0x2b9   : > { %v608_v44 = vpop.f32.mrb[4].mxu0 }
 0x2ba   : > { %v609_v45 = vadd.f32 %v608_v44, %v557_v43  ;;  %v1107_v46 = vpop.f32.mrb[5].mxu0 }
 0x2bb   : > { %v611_v47 = vpop.f32.mrb[6].mxu0 }
 0x2bc   : > { %v614_v48 = vadd.f32 3.0, %v609_v45  ;;  %v1108_v50 = vpop.f32.mrb[7].mxu0 }
 0x2be   : > { %v615_v51 = vmax.f32 %v614_v48, 0.0 }
 0x2c0   : > { %v616_v52 = vmin.f32 %v615_v51, 6.0 }
 0x2c2   : > { %v617_v54 = vmul.f32 0.16666667, %v616_v52 }
 0x2c4   : > { %v618_v55 = vpack.c.bf16 %v617_v54, %v617_v54 }
 0x2c6   : > { %v620_v57 = vpack.i.b16 %v618_v55, %v618_v55 }
 0x2c8   : > { %v625_v58 = vrot.slane %v620_v57, %v624_v56 }
 0x2ca   : > { %v1020_v59 = vcombine.low %v625_v58, %v625_v58 }
 0x2cc   : > { %v630_v60 = vmul.bf16 %v1020_v59, %v1341_v1  ;;  %v631_v61 = vmul.bf16 %v1020_v59, %v1343_v2 }
 0x2ce   : > { %v1022_v62 = vcombine.low %v630_v60, %v631_v61 }
 0x2d0   : > { %1126 = vmatmul.mubr.msk.bf16.vlgmr.msra.gmra.mrb[8].mxu0 %vm503_vm3, %v1022_v62 }
 0x3a3   : > { %v744_v5 = vpop.f32.mrb[8].mxu0 }
 0x3a4   : > { %v745_v1 = vadd.f32 %v1021_v4, %v744_v5  ;;  %v1127_v6 = vpop.f32.mrb[9].mxu0 }
 0x3a5   : > { %v747_v2 = vpop.f32.mrb[10].mxu0 }
 0x3a6   : > { %v1050_v7 = vpack.c.bf16 %v745_v1, %v745_v1  ;;  %v748_v8 = vadd.f32 %v1021_v4, %v747_v2  ;;  %v1128_v9 = vpop.f32.mrb[11].mxu0 }
 0x3a8   : > { %891 = vst.msk [vmem:[%s385_s19] sm:$0xf] %vm890_vm5, %v1050_v7  ;;  %v751_v10 = vpack.c.bf16 %v748_v8, %v745_v1  ;;  %v1051_v11 = vpack.c.bf16 %v748_v8, %v748_v8 }
 0x3aa   : > { %892 = vst.msk [vmem:[%s385_s19 + $0x4] sm:$0xf] %vm890_vm5, %v1051_v11  ;;  %1038 = vmatmul.mubr.msk.bf16.vlgmr.msra.gmra.mrb[4].mxu1 %vm800_vm6, %v751_v10 }
 0x47d   : > { %v838_v16 = vpop.f32.mrb[4].mxu1 }
 0x47e   : > { %v839_v17 = vadd.f32 %v838_v16, %v763_v14  ;;  %v840_v18 = vpop.f32.mrb[5].mxu1 }
 0x47f   : > { %v841_v19 = vadd.f32 %v840_v18, %v767_v15  ;;  %v842_v20 = vpop.f32.mrb[6].mxu1 }
 0x480   : > { %v847_v21 = vadd.f32 3.0, %v839_v17  ;;  %v843_v22 = vadd.f32 %v842_v20, %v763_v14  ;;  %v844_v23 = vpop.f32.mrb[7].mxu1 }
 0x481   : > { %v848_v24 = vadd.f32 3.0, %v841_v19  ;;  %v845_v25 = vadd.f32 %v844_v23, %v767_v15 }
 0x482   : > { %v851_v26 = vmax.f32 %v847_v21, 0.0  ;;  %v849_v27 = vadd.f32 3.0, %v843_v22 }
 0x483   : > { %v852_v28 = vmax.f32 %v848_v24, 0.0  ;;  %v850_v29 = vadd.f32 3.0, %v845_v25 }
 0x484   : > { %v855_v30 = vmin.f32 %v851_v26, 6.0  ;;  %v853_v31 = vmax.f32 %v849_v27, 0.0 }
 0x485   : > { %v856_v32 = vmin.f32 %v852_v28, 6.0  ;;  %v854_v33 = vmax.f32 %v850_v29, 0.0 }
 0x486   : > { %v859_v34 = vmul.f32 %v855_v30, %v839_v17  ;;  %v857_v35 = vmin.f32 %v853_v31, 6.0 }
 0x487   : > { %v860_v36 = vmul.f32 %v856_v32, %v841_v19  ;;  %v858_v37 = vmin.f32 %v854_v33, 6.0 }
 0x488   : > { %v863_v38 = vmul.f32 0.16666667, %v859_v34  ;;  %v861_v39 = vmul.f32 %v857_v35, %v843_v22 }
 0x489   : > { %v864_v40 = vmul.f32 0.16666667, %v860_v36  ;;  %v862_v41 = vmul.f32 %v858_v37, %v845_v25 }
 0x48a   : > { %v865_v42 = vmul.f32 0.16666667, %v861_v39 }
 0x48b   : > { %v1048_v43 = vpack.c.bf16 %v864_v40, %v863_v38  ;;  %v866_v44 = vmul.f32 0.16666667, %v862_v41 }
 0x48d   : > { %881 = vst.msk [vmem:[%s380_s24] sm:$0xff] %vm880_vm8, %v1048_v43  ;;  %v1049_v45 = vpack.c.bf16 %v866_v44, %v865_v42 }
 0x48f   : > { %882 = vst.msk [vmem:[%s380_s24 + $0x8] sm:$0xff] %vm880_vm8, %v1049_v45 }
 0x490 PF: > { %s22_s13 = sadd.s32 1, %s1218_s13  }
 0x491   : > { %p19_p2 = scmp.ge.s32.totalorder %s22_s13, 4  }
 0x493   :  { %21 = sbr.rel (!%p19_p2) target bundleno = 1 (0x1), region = 103 }
 0x49a   :  { %930 = vsyncpa [#allocation3], 1 }
 0x49b   :  { %932 = vsyncpa [#allocation3 + $0x1], 1 }

// kernel: ball_localization_forward.18
= control target key start
LH: loop header
LB: loop body
LE: loop exit
PB: predicated region body
PF: predicated region fallthrough
CT: control target
= control target key end

     0   :  { %s1319_s13 = smov 0   ;;  %s1501_s0 = inlined_call_operand.vmem [shape: bf16[2,16,144], index: 0, kind: input, shape index: {}]   ;;  %s1502_s1 = inlined_call_operand.vmem [shape: bf16[144,40], index: 1, kind: input, shape index: {}]   ;;  %s1503_s2 = inlined_call_operand.vmem [shape: f32[1,40], index: 2, kind: input, shape index: {}]   ;;  %s1504_s3 = inlined_call_operand.vmem [shape: bf16[40,144], index: 3, kind: input, shape index: {}]   ;;  %s1505_s4 = inlined_call_operand.vmem [shape: f32[1,144], index: 4, kind: input, shape index: {}]   ;;  %s1506_s5 = inlined_call_operand.vmem [shape: bf16[144,48], index: 5, kind: input, shape index: {}]   ;;  %s1507_s6 = inlined_call_operand.vmem [shape: f32[1,48], index: 6, kind: input, shape index: {}]   ;;  %s1508_s7 = inlined_call_operand.vmem [shape: bf16[2,16,48], index: 7, kind: input, shape index: {}]   ;;  %s1509_s8 = inlined_call_operand.vmem [shape: bf16[48,288], index: 8, kind: input, shape index: {}]   ;;  %s1510_s9 = inlined_call_operand.vmem [shape: f32[1,288], index: 9, kind: input, shape index: {}]   ;;  %s1511_s10 = inlined_call_operand.vmem [shape: bf16[2,16,288], index: 10, kind: output, shape index: {}]  }
   0x1 LB: > { %s1113_s14 = sadd.s32 4294967295, %s1258_s13   ;;  %p1117_p0 = scmp.ge.s32.totalorder %s1258_s13, 1  ;;  %s1258_s13 = sphi %s1319_s13, %s20_s13  }
   0x2   : > { %p322_p1 = scmp.lt.s32.totalorder %s1258_s13, 3 }
   0x4   : > { %p323_p2 = pnand %p1117_p0, %p322_p1 }
   0x5   : > { %p365_p3 = scmp.lt.s32.totalorder (!%p323_p2), %s1113_s14, 1  ;;  %v1214_v0 = vld [vmem:[%s1502_s1] sm:$0xff] (!%p323_p2)   ;;  %v1260_v1 = vmov (!%p323_p2), 0   ;;  %v1215_v2 = vld [vmem:[%s1502_s1 + $0x8] sm:$0xff] (!%p323_p2)   ;;  %v1216_v3 = vld [vmem:[%s1502_s1 + $0x10] sm:$0xff] (!%p323_p2)   ;;  %vm394_vm0 = vcmask (!%p323_p2), 130048   ;;  %v593_v50 = vlaneseq (!%p323_p2) }
   0x6   : > { %326 = sbr.rel (%p323_p2) target bundleno = 1156 (0x484), region = 60  ;;  %430 = vmatprep.mubr.bf16.mxu0 (!%p323_p2), %v1260_v1  ;;  %519 = vmatprep.subr.bf16.mxu1 (!%p323_p2), %v1260_v1  ;;  %v1217_v8 = vld [vmem:[%s1502_s1 + $0x18] sm:$0xff] (!%p323_p2)   ;;  %v1218_v9 = vld [vmem:[%s1502_s1 + $0x20] sm:$0xff] (!%p323_p2)   ;;  %v1261_v10 = vmov (!%p323_p2), 1065369472   ;;  %v1219_v11 = vld [vmem:[%s1502_s1 + $0x28] sm:$0xff] (!%p323_p2)  }
   0x7   : > { %520 = vmatpush1.bf16.msra.mxu1 (!%p323_p2), %v1214_v0  ;;  %v1220_v12 = vld [vmem:[%s1502_s1 + $0x30] sm:$0xff] (!%p323_p2)   ;;  %v1221_v13 = vld [vmem:[%s1502_s1 + $0x38] sm:$0xff] (!%p323_p2)   ;;  %v1222_v14 = vld [vmem:[%s1502_s1 + $0x40] sm:$0xff] (!%p323_p2)   ;;  %vm607_vm1 = vcmask (!%p323_p2), 1043456   ;;  %vm603_vm2 = vcmask (!%p323_p2), 326656   ;;  %v1442_v51 = vshrl.u32 (!%p323_p2), %v593_v50, 7 }
   0x8   : > { %521 = vmatprep.subr.bf16.mxu1 (!%p323_p2), %v1260_v1  ;;  %v1223_v15 = vld [vmem:[%s1504_s3] ss:$8 sps:$4 sm:$0xff] (!%p323_p2)   ;;  %v1225_v16 = vld [vmem:[%s1504_s3 + $0x4] ss:$8 sps:$4 sm:$0xff] (!%p323_p2)   ;;  %v1228_v17 = vld [vmem:[%s1504_s3 + $0x14] ss:$8 sps:$4 sm:$0xff] (!%p323_p2)  }
   0x9   : > { %v1226_v18 = vld [vmem:[%s1504_s3 + $0x10] ss:$8 sps:$4 sm:$0xff] (!%p323_p2)   ;;  %v565_v27 = vld [vmem:[%s1504_s3 + $0x20] sm:$0xff] (!%p323_p2)  ;;  %v1232_v40 = vld [vmem:[%s1506_s5 + $0x8] sm:$0xff] (!%p323_p2)   ;;  %v1445_v52 = vsub.s32 (!%p323_p2), 0, %v1442_v51  ;;  %v599_v54 = vsub.s32 (!%p323_p2), 1, %v1442_v51 }
   0xa   : > { %v1141_v28 = vcombine.high (!%p323_p2), %v565_v27, %v565_v27  ;;  %v1140_v29 = vcombine.low (!%p323_p2), %v565_v27, %v565_v27  ;;  %v461_v31 = vld [vmem:[%s1503_s2] sm:$0x1] (!%p323_p2)  ;;  %v1233_v41 = vld [vmem:[%s1506_s5 + $0x10] sm:$0xff] (!%p323_p2)   ;;  %v1234_v42 = vld [vmem:[%s1506_s5 + $0x18] sm:$0xff] (!%p323_p2)   ;;  %vm903_vm3 = vcmask (!%p323_p2), 392192   ;;  %vm1263_vm4 = vmmov (!%p323_p2), 0  }
   0xb   : > { %522 = vmatpush1.bf16.msra.mxu1 (!%p323_p2), %v1215_v2  ;;  %v1231_v38 = vld [vmem:[%s1506_s5] sm:$0xff] (!%p323_p2)   ;;  %v1236_v44 = vld [vmem:[%s1506_s5 + $0x28] sm:$0xff] (!%p323_p2)   ;;  %v1237_v45 = vld [vmem:[%s1506_s5 + $0x30] sm:$0xff] (!%p323_p2)   ;;  %vm1042_vm5 = vcmask (!%p323_p2), 257024  }
   0xc   : > { %523 = vmatprep.subr.bf16.mxu1 (!%p323_p2), %v1260_v1  ;;  %v609_v30 = vsel (!%p323_p2), %vm607_vm1, %v1140_v29, 0  ;;  %v1235_v43 = vld [vmem:[%s1506_s5 + $0x20] sm:$0xff] (!%p323_p2)   ;;  %v1238_v46 = vld [vmem:[%s1506_s5 + $0x38] sm:$0xff] (!%p323_p2)  }
   0xd   : > { %s1513_s14 = smov (!%p365_p3, %s1113_s14), 1  ;;  %v1239_v47 = vld [vmem:[%s1506_s5 + $0x40] sm:$0xff]  }
   0xe   : > { %s1175_s19 = sshll.u32 %s1513_s14, 4  ;;  %v1240_v48 = vld [vmem:[%s1509_s8] ss:$12 sps:$4 sm:$0xff]   ;;  %v1242_v49 = vld [vmem:[%s1509_s8 + $0x4] ss:$12 sps:$4 sm:$0xff]   ;;  %s1176_s27 = sshll.u32 %s1513_s14, 3 }
   0xf   : > { %s369_s22 = scalar_lea.vmem %s1501_s0, %s1175_s19  ;;  %524 = vmatpush1.bf16.msra.mxu1 %v1216_v3  ;;  %v566_v53 = vld [vmem:[%s1505_s4] sm:$0x3]  ;;  %s374_s30 = scalar_lea.vmem %s1508_s7, %s1176_s27 }
  0x10   : > { %v1345_v4 = vld [vmem:[%s369_s22] sm:$0xff]  ;;  %v1347_v5 = vld [vmem:[%s369_s22 + $0x8] sm:$0xff]  ;;  %525 = vmatprep.subr.bf16.mxu1 %v1260_v1  ;;  %v596_v55 = vrot.slane %v566_v53, %v1445_v52  ;;  %v600_v56 = vrot.slane %v566_v53, %v599_v54  ;;  %s1199_s23 = smul.u32 24, %s1513_s14 }
  0x11   : > { %v1124_v6 = vcombine.high %v1345_v4, %v1347_v5  ;;  %v1123_v7 = vcombine.low %v1345_v4, %v1347_v5 }
  0x12   : > { %s379_s26 = scalar_lea.vmem %s1511_s10, %s1199_s23 }
  0x13   : > { %398 = vmatprep.subr.bf16.mxu0 %v1124_v6  ;;  %526 = vmatpush1.bf16.msra.mxu1 %v1217_v8 }
  0x14   : > { %399 = vmatpush1.bf16.msra.mxu0 %v1123_v7  ;;  %527 = vmatprep.subr.bf16.mxu1 %v1260_v1 }
  0x15   : > { %614 = vmatprep.subr.bf16.mxu0 %v1225_v16 }
  0x17   : > { %1125 = vmatmul.mubr.msk.bf16.vlgmr.msra.gmra.mrb[0].mxu0 %vm394_vm0, %v1261_v10  ;;  %528 = vmatpush1.bf16.msra.mxu1 %v1218_v9 }
  0x18   : > { %646 = vmatprep.mubr.bf16.mxu0 %v1260_v1  ;;  %529 = vmatprep.subr.bf16.mxu1 %v1260_v1 }
  0x19   : > { %615 = vmatpush1.bf16.msra.mxu0 %v1223_v15 }
  0x1a   : > { %616 = vmatprep.subr.bf16.mxu0 %v1228_v17 }
  0x1b   : > { %530 = vmatpush1.bf16.msra.mxu1 %v1219_v11 }
  0x1c   : > { %531 = vmatprep.subr.bf16.mxu1 %v1260_v1 }
  0x1d   : > { %617 = vmatpush1.bf16.msra.mxu0 %v1226_v18 }
  0x1e   : > { %1142 = vmatprep.subr.msk.bf16.mxu0 %vm607_vm1, %v1141_v28 }
  0x1f   : > { %532 = vmatpush1.bf16.msra.mxu1 %v1220_v12 }
  0x20   : > { %533 = vmatprep.subr.bf16.mxu1 %v1260_v1 }
  0x21   : > { %619 = vmatpush1.bf16.msra.mxu0 %v609_v30 }
  0x22   : > { %778 = vmatprep.subr.bf16.mxu0 %v1260_v1 }
  0x23   : > { %534 = vmatpush1.bf16.msra.mxu1 %v1221_v13 }
  0x24   : > { %535 = vmatprep.subr.bf16.mxu1 %v1260_v1 }
  0x27   : > { %536 = vmatpush1.bf16.msra.mxu1 %v1222_v14 }
  0x28   : > { %907 = vmatprep.subr.bf16.mxu1 %v1242_v49 }
  0xea   : > { %v432_v19 = vpop.f32.mrb[0].mxu0 }
  0xeb   : > { %v439_v20 = vmul.f32 0.0625, %v432_v19  ;;  %v434_v21 = vpop.f32.mrb[1].mxu0 }
  0xec   : > { %v440_v22 = vmul.f32 0.0625, %v434_v21  ;;  %v436_v23 = vpop.f32.mrb[2].mxu0  ;;  %v1243_v21 = vld [vmem:[%s1509_s8 + $0x18] ss:$12 sps:$4 sm:$0xff]  }
  0xed   : > { %v437_v24 = vpop.f32.mrb[3].mxu0  ;;  %v441_v26 = vpack.c.bf16 %v439_v20, %v439_v20  ;;  %v1245_v20 = vld [vmem:[%s1509_s8 + $0x1c] ss:$12 sps:$4 sm:$0xff]   ;;  %v1145_v23 = vld [vmem:[%s1507_s6] ss:$0 sm:$0xff] }
  0xee   : > { %v442_v25 = vpack.c.bf16 %v440_v22, %v440_v22  ;;  %v1262_v22 = vmov 0.0   ;;  %v1182_v24 = vld [vmem:[%s374_s30] sm:$0xff]  }
  0xef   : > { %v1183_v27 = vunpack.c.l.bf16 %v1182_v24  ;;  %v1184_v29 = vunpack.c.h.bf16 %v1182_v24 }
  0xf0   : > { %1135 = vmatprep.mubr.msk.bf16.mxu1 %vm394_vm0, %v442_v25 }
  0xf1   : > { %552 = vmatmul.mubr.bf16.vlgmr.msra.gmra.mrb[0].mxu1 %v441_v26 }
  0xf2   : > { %939 = vmatprep.mubr.bf16.mxu1 %v1260_v1  ;;  %908 = vmatpush1.bf16.msra.mxu1 %v1240_v48 }
  0xf3   : > { %909 = vmatprep.subr.bf16.mxu1 %v1245_v20 }
  0xf6   : > { %910 = vmatpush1.bf16.msra.mxu1 %v1243_v21 }
 0x1c4   : > { %v553_v32 = vpop.f32.mrb[0].mxu1 }
 0x1c5   : > { %v554_v33 = vadd.f32 %v553_v32, %v461_v31  ;;  %v555_v34 = vpop.f32.mrb[1].mxu1 }
 0x1c6   : > { %v556_v35 = vpop.f32.mrb[2].mxu1 }
 0x1c7   : > { %v559_v36 = vmax.f32 %v554_v33, 0.0  ;;  %v557_v37 = vpop.f32.mrb[3].mxu1  ;;  %v1249_v35 = vld [vmem:[%s1509_s8 + $0x8] ss:$12 sps:$4 sm:$0xff]  }
 0x1c8   : > { %v1250_v37 = vld [vmem:[%s1509_s8 + $0x20] ss:$12 sps:$4 sm:$0xff]  }
 0x1c9   : > { %v560_v39 = vpack.c.bf16 %v559_v36, %v559_v36 }
 0x1cb   : > { %1143 = vmatmul.mubr.msk.bf16.vlgmr.msra.gmra.mrb[4].mxu0 %vm603_vm2, %v560_v39  ;;  %v838_v39 = vld [vmem:[%s1510_s9] sm:$0x7] }
 0x1cc   : > { %779 = vmatpush1.bf16.msra.mxu0 %v1231_v38  ;;  %v1251_v38 = vld [vmem:[%s1509_s8 + $0x38] ss:$12 sps:$4 sm:$0xff]  }
 0x1cd   : > { %780 = vmatprep.subr.bf16.mxu0 %v1260_v1 }
 0x1d0   : > { %781 = vmatpush1.bf16.msra.mxu0 %v1232_v40  ;;  %v843_v40 = vrot.slane %v838_v39, %v1445_v52 }
 0x1d1   : > { %782 = vmatprep.subr.bf16.mxu0 %v1260_v1 }
 0x1d4   : > { %783 = vmatpush1.bf16.msra.mxu0 %v1233_v41  ;;  %v847_v41 = vrot.slane %v838_v39, %v599_v54 }
 0x1d5   : > { %784 = vmatprep.subr.bf16.mxu0 %v1260_v1 }
 0x1d8   : > { %785 = vmatpush1.bf16.msra.mxu0 %v1234_v42 }
 0x1d9   : > { %786 = vmatprep.subr.bf16.mxu0 %v1260_v1 }
 0x1dc   : > { %787 = vmatpush1.bf16.msra.mxu0 %v1235_v43 }
 0x1dd   : > { %788 = vmatprep.subr.bf16.mxu0 %v1260_v1 }
 0x1e0   : > { %789 = vmatpush1.bf16.msra.mxu0 %v1236_v44 }
 0x1e1   : > { %790 = vmatprep.subr.bf16.mxu0 %v1260_v1 }
 0x1e4   : > { %791 = vmatpush1.bf16.msra.mxu0 %v1237_v45 }
 0x1e5   : > { %792 = vmatprep.subr.bf16.mxu0 %v1260_v1 }
 0x1e8   : > { %793 = vmatpush1.bf16.msra.mxu0 %v1238_v46 }
 0x1e9   : > { %794 = vmatprep.subr.bf16.mxu0 %v1260_v1 }
 0x1ec   : > { %795 = vmatpush1.bf16.msra.mxu0 %v1239_v47 }
 0x29e   : > { %v648_v57 = vpop.f32.mrb[4].mxu0 }
 0x29f   : > { %v649_v58 = vadd.f32 %v648_v57, %v596_v55  ;;  %v650_v59 = vpop.f32.mrb[5].mxu0  ;;  %v850_v57 = vsub.s32 2, %v1442_v51 }
 0x2a0   : > { %v651_v60 = vadd.f32 %v650_v59, %v600_v56  ;;  %v652_v61 = vpop.f32.mrb[6].mxu0 }
 0x2a1   : > { %v655_v62 = vadd.f32 3.0, %v649_v58  ;;  %v653_v63 = vpop.f32.mrb[7].mxu0 }
 0x2a2   : > { %v656_v0 = vadd.f32 3.0, %v651_v60 }
 0x2a3   : > { %v657_v1 = vmax.f32 %v655_v62, 0.0 }
 0x2a4   : > { %v658_v2 = vmax.f32 %v656_v0, 0.0  ;;  %v851_v0 = vrot.slane %v838_v39, %v850_v57 }
 0x2a5   : > { %v659_v3 = vmin.f32 %v657_v1, 6.0 }
 0x2a6   : > { %v660_v6 = vmin.f32 %v658_v2, 6.0 }
 0x2a7   : > { %v661_v7 = vmul.f32 0.16666667, %v659_v3 }
 0x2a8   : > { %v662_v8 = vmul.f32 0.16666667, %v660_v6 }
 0x2a9   : > { %v663_v9 = vpack.c.bf16 %v661_v7, %v661_v7 }
 0x2aa   : > { %v664_v10 = vpack.c.bf16 %v662_v8, %v662_v8 }
 0x2ab   : > { %v666_v11 = vpack.i.b16 %v663_v9, %v663_v9 }
 0x2ac   : > { %v673_v12 = vpack.i.b16 %v664_v10, %v664_v10 }
 0x2ad   : > { %v671_v13 = vrot.slane %v666_v11, %v1445_v52 }
 0x2ae   : > { %v678_v14 = vrot.slane %v673_v12, %v1445_v52 }
 0x2b0   : > { %v1144_v15 = vcombine.low %v671_v13, %v678_v14 }
 0x2b2   : > { %v685_v16 = vmul.bf16 %v1144_v15, %v1345_v4  ;;  %v686_v17 = vmul.bf16 %v1144_v15, %v1347_v5  ;;  %v1248_v4 = vld [vmem:[%s1509_s8 + $0x34] ss:$12 sps:$4 sm:$0xff]   ;;  %v1246_v5 = vld [vmem:[%s1509_s8 + $0x30] ss:$12 sps:$4 sm:$0xff]  }
 0x2b3   : > { %911 = vmatprep.subr.bf16.mxu1 %v1248_v4 }
 0x2b4   : > { %v1147_v18 = vcombine.high %v685_v16, %v686_v17  ;;  %v1146_v19 = vcombine.low %v685_v16, %v686_v17  ;;  %912 = vmatpush1.bf16.msra.mxu1 %v1246_v5 }
 0x2b5   : > { %1189 = vmatprep.subr.bf16.mxu1 %v1262_v22 }
 0x2b6   : > { %1157 = vmatprep.mubr.msk.bf16.mxu0 %vm394_vm0, %v1147_v18 }
 0x2b7   : > { %811 = vmatmul.mubr.bf16.vlgmr.msra.gmra.mrb[8].mxu0 %v1146_v19 }
 0x38a   : > { %v812_v25 = vpop.f32.mrb[8].mxu0 }
 0x38b   : > { %v813_v26 = vadd.f32 %v1145_v23, %v812_v25  ;;  %v814_v28 = vpop.f32.mrb[9].mxu0 }
 0x38c   : > { %v815_v30 = vpop.f32.mrb[10].mxu0 }
 0x38d   : > { %v816_v31 = vadd.f32 %v1145_v23, %v815_v30  ;;  %v817_v32 = vpop.f32.mrb[11].mxu0  ;;  %v823_v33 = vadd.f32 %v1183_v27, %v813_v26 }
 0x38f   : > { %v824_v34 = vadd.f32 %v1184_v29, %v816_v31 }
 0x391   : > { %v825_v36 = vpack.c.bf16 %v824_v34, %v823_v33 }
 0x393   : > { %1167 = vmatmul.mubr.msk.bf16.vlgmr.msra.gmra.mrb[4].mxu1 %vm903_vm3, %v825_v36 }
 0x394   : > { %1190 = vmatpush3.bf16.msra.mxu1 %v1249_v35  ;;  %1195 = vmatprep.mubr.msk.bf16.mxu1 %vm1263_vm4, %v1262_v22 }
 0x395   : > { %1191 = vmatprep.subr.bf16.mxu1 %v1262_v22 }
 0x398   : > { %1192 = vmatpush3.bf16.msra.mxu1 %v1250_v37 }
 0x399   : > { %1193 = vmatprep.subr.bf16.mxu1 %v1262_v22 }
 0x39c   : > { %1194 = vmatpush3.bf16.msra.mxu1 %v1251_v38 }
 0x39f   : > { %1196 = vmatmul.mubr.msk.bf16.vlgmr.msra.gmra.mrb[8].mxu1 %vm903_vm3, %v825_v36 }
 0x466   : > { %v941_v42 = vpop.f32.mrb[4].mxu1 }
 0x467   : > { %v942_v43 = vadd.f32 %v941_v42, %v843_v40  ;;  %v943_v44 = vpop.f32.mrb[5].mxu1 }
 0x468   : > { %v944_v45 = vadd.f32 %v943_v44, %v847_v41  ;;  %v945_v46 = vpop.f32.mrb[6].mxu1 }
 0x469   : > { %v991_v47 = vadd.f32 3.0, %v942_v43  ;;  %v946_v48 = vadd.f32 %v945_v46, %v843_v40  ;;  %v947_v49 = vpop.f32.mrb[7].mxu1 }
 0x46a   : > { %v992_v50 = vadd.f32 3.0, %v944_v45  ;;  %v948_v53 = vadd.f32 %v947_v49, %v847_v41 }
 0x46b   : > { %v997_v55 = vmax.f32 %v991_v47, 0.0  ;;  %v994_v56 = vadd.f32 3.0, %v946_v48 }
 0x46c   : > { %v998_v58 = vmax.f32 %v992_v50, 0.0  ;;  %v995_v52 = vadd.f32 3.0, %v948_v53 }
 0x46d   : > { %v1003_v59 = vmin.f32 %v997_v55, 6.0  ;;  %v1000_v60 = vmax.f32 %v994_v56, 0.0 }
 0x46e   : > { %v1004_v54 = vmin.f32 %v998_v58, 6.0  ;;  %v1001_v61 = vmax.f32 %v995_v52, 0.0 }
 0x46f   : > { %v1009_v62 = vmul.f32 %v1003_v59, %v942_v43  ;;  %v1006_v63 = vmin.f32 %v1000_v60, 6.0 }
 0x470   : > { %v1010_v1 = vmul.f32 %v1004_v54, %v944_v45  ;;  %v1007_v2 = vmin.f32 %v1001_v61, 6.0 }
 0x471   : > { %v1015_v3 = vmul.f32 0.16666667, %v1009_v62  ;;  %v1012_v6 = vmul.f32 %v1006_v63, %v946_v48 }
 0x472   : > { %v1016_v7 = vmul.f32 0.16666667, %v1010_v1  ;;  %v1013_v8 = vmul.f32 %v1007_v2, %v948_v53  ;;  %v984_v9 = vpop.f32.mrb[8].mxu1 }
 0x473   : > { %v1018_v51 = vmul.f32 0.16666667, %v1012_v6  ;;  %v985_v10 = vadd.f32 %v984_v9, %v851_v0  ;;  %v1197_v11 = vpop.f32.mrb[9].mxu1 }
 0x474   : > { %v1177_v12 = vpack.c.bf16 %v1016_v7, %v1015_v3  ;;  %v1019_v13 = vmul.f32 0.16666667, %v1013_v8  ;;  %v987_v14 = vpop.f32.mrb[10].mxu1 }
 0x475   : > { %v993_v15 = vadd.f32 3.0, %v985_v10  ;;  %v988_v16 = vadd.f32 %v987_v14, %v851_v0  ;;  %v1198_v17 = vpop.f32.mrb[11].mxu1 }
 0x476   : > { %1041 = vst [vmem:[%s379_s26] sm:$0xff] %v1177_v12  ;;  %v1179_v18 = vpack.c.bf16 %v1019_v13, %v1018_v51 }
 0x477   : > { %v999_v19 = vmax.f32 %v993_v15, 0.0  ;;  %v996_v20 = vadd.f32 3.0, %v988_v16 }
 0x478   : > { %1044 = vst [vmem:[%s379_s26 + $0xc] sm:$0xff] %v1179_v18 }
 0x479   : > { %v1005_v21 = vmin.f32 %v999_v19, 6.0  ;;  %v1002_v4 = vmax.f32 %v996_v20, 0.0 }
 0x47b   : > { %v1011_v5 = vmul.f32 %v1005_v21, %v985_v10  ;;  %v1008_v22 = vmin.f32 %v1002_v4, 6.0 }
 0x47d   : > { %v1017_v23 = vmul.f32 0.16666667, %v1011_v5  ;;  %v1014_v24 = vmul.f32 %v1008_v22, %v988_v16 }
 0x47f   : > { %v1178_v25 = vpack.c.bf16 %v1017_v23, %v1017_v23  ;;  %v1020_v26 = vmul.f32 0.16666667, %v1014_v24 }
 0x481   : > { %1043 = vst.msk [vmem:[%s379_s26 + $0x8] sm:$0xf] %vm1042_vm5, %v1178_v25  ;;  %v1180_v27 = vpack.c.bf16 %v1020_v26, %v1020_v26 }
 0x483   : > { %1045 = vst.msk [vmem:[%s379_s26 + $0x14] sm:$0xf] %vm1042_vm5, %v1180_v27 }
 0x484 PF: > { %s20_s13 = sadd.s32 1, %s1258_s13  }
 0x485   : > { %p17_p4 = scmp.ge.s32.totalorder %s20_s13, 4  }
 0x487   :  { %19 = sbr.rel (!%p17_p4) target bundleno = 1 (0x1), region = 93 }

// kernel: ball_localization_forward.19
= control target key start
LH: loop header
LB: loop body
LE: loop exit
PB: predicated region body
PF: predicated region fallthrough
CT: control target
= control target key end

     0   :  { %s2136_s13 = smov 0   ;;  %s2493_s0 = inlined_call_operand.vmem [shape: bf16[2,4,288], index: 0, kind: input, shape index: {}]   ;;  %s2494_s1 = inlined_call_operand.vmem [shape: bf16[288,72], index: 1, kind: input, shape index: {}]   ;;  %s2495_s2 = inlined_call_operand.vmem [shape: f32[1,72], index: 2, kind: input, shape index: {}]   ;;  %s2496_s3 = inlined_call_operand.vmem [shape: bf16[72,288], index: 3, kind: input, shape index: {}]   ;;  %s2497_s4 = inlined_call_operand.vmem [shape: f32[1,288], index: 4, kind: input, shape index: {}]   ;;  %s2498_s5 = inlined_call_operand.vmem [shape: bf16[288,96], index: 5, kind: input, shape index: {}]   ;;  %s2499_s6 = inlined_call_operand.vmem [shape: f32[1,96], index: 6, kind: input, shape index: {}]   ;;  %s2500_s7 = inlined_call_operand.vmem [shape: bf16[96,576], index: 7, kind: input, shape index: {}]   ;;  %s2501_s8 = inlined_call_operand.vmem [shape: f32[1,576], index: 8, kind: input, shape index: {}]   ;;  %s2502_s9 = inlined_call_operand.vmem [shape: bf16[2,4,576], index: 9, kind: output, shape index: {0}]   ;;  %s2503_s10 = inlined_call_operand.vmem [shape: bf16[2,4,96], index: 10, kind: output, shape index: {1}]  }
   0x1 LB: > { %s1733_s14 = sadd.s32 4294967295, %s2074_s13   ;;  %p1737_p0 = scmp.ge.s32.totalorder %s2074_s13, 1  ;;  %s2074_s13 = sphi %s2136_s13, %s21_s13  }
   0x2   : > { %p315_p1 = scmp.lt.s32.totalorder %s2074_s13, 3 }
   0x4   : > { %p316_p2 = pnand %p1737_p0, %p315_p1 }
   0x5   : > { %p357_p3 = scmp.lt.s32.totalorder (!%p316_p2), %s1733_s14, 1  ;;  %v379_v0 = vlaneseq (!%p316_p2)  ;;  %v2076_v1 = vmov (!%p316_p2), 1983009808   ;;  %v2077_v3 = vmov (!%p316_p2), 0   ;;  %v2078_v5 = vmov (!%p316_p2), 0.0   ;;  %v1971_v14 = vld [vmem:[%s2494_s1 + $0x40] sm:$0xff] (!%p316_p2)  }
   0x6   : > { %319 = sbr.rel (%p316_p2) target bundleno = 1203 (0x4b3), region = 56  ;;  %v377_v2 = vunpack.c.l.s4 (!%p316_p2), %v2076_v1  ;;  %437 = vmatprep.mubr.bf16.mxu0 (!%p316_p2), %v2077_v3  ;;  %1903 = vmatprep.subr.bf16.mxu1 (!%p316_p2), %v2078_v5  ;;  %vm2079_vm0 = vmmov (!%p316_p2), 0   ;;  %vm395_vm1 = vcmask (!%p316_p2), 1041408   ;;  %vm391_vm2 = vcmask (!%p316_p2), 31744   ;;  %v1972_v16 = vld [vmem:[%s2494_s1] sm:$0xff] (!%p316_p2)   ;;  %v1973_v17 = vld [vmem:[%s2494_s1 + $0x48] sm:$0xff] (!%p316_p2)  }
   0x7   : > { %v2147_v4 = vshrl.u32 (!%p316_p2), %v379_v0, 7  ;;  %1905 = vmatprep.mubr.msk.bf16.mxu1 (!%p316_p2), %vm2079_vm0, %v2078_v5  ;;  %v1974_v18 = vld [vmem:[%s2494_s1 + $0x8] sm:$0xff] (!%p316_p2)   ;;  %v2080_v19 = vmov (!%p316_p2), 1065369472   ;;  %v1975_v20 = vld [vmem:[%s2494_s1 + $0x50] sm:$0xff] (!%p316_p2)   ;;  %v1977_v22 = vld [vmem:[%s2494_s1 + $0x58] sm:$0xff] (!%p316_p2)  }
   0x8   : > { %v378_v6 = vunpack.c.0.s8 (!%p316_p2), %v377_v2  ;;  %v1976_v21 = vld [vmem:[%s2494_s1 + $0x10] sm:$0xff] (!%p316_p2)   ;;  %v1978_v23 = vld [vmem:[%s2494_s1 + $0x18] sm:$0xff] (!%p316_p2)   ;;  %v1979_v24 = vld [vmem:[%s2494_s1 + $0x60] sm:$0xff] (!%p316_p2)   ;;  %vm637_vm3 = vcmask (!%p316_p2), 261120   ;;  %vm834_vm4 = vcmask (!%p316_p2), 1043456   ;;  %vm830_vm5 = vcmask (!%p316_p2), 588800  }
   0x9   : > { %v1980_v25 = vld [vmem:[%s2494_s1 + $0x20] sm:$0xff] (!%p316_p2)   ;;  %v1981_v26 = vld [vmem:[%s2494_s1 + $0x68] sm:$0xff] (!%p316_p2)   ;;  %v1983_v28 = vld [vmem:[%s2494_s1 + $0x70] sm:$0xff] (!%p316_p2)   ;;  %vm1645_vm6 = vcmask (!%p316_p2), 779264   ;;  %vm1455_vm7 = vcmask (!%p316_p2), 785408   ;;  %vm1643_vm8 = vcmask (!%p316_p2), 517120  }
   0xa   : > { %v2154_v7 = vsub.s32 (!%p316_p2), %v378_v6, %v2147_v4  ;;  %v1982_v27 = vld [vmem:[%s2494_s1 + $0x28] sm:$0xff] (!%p316_p2)   ;;  %v1984_v29 = vld [vmem:[%s2494_s1 + $0x30] sm:$0xff] (!%p316_p2)   ;;  %v1985_v30 = vld [vmem:[%s2494_s1 + $0x78] sm:$0xff] (!%p316_p2)  }
   0xb   : > { %v1986_v31 = vld [vmem:[%s2494_s1 + $0x38] sm:$0xff] (!%p316_p2)   ;;  %v1989_v32 = vld [vmem:[%s2496_s3] ss:$12 sps:$4 sm:$0xff] (!%p316_p2)   ;;  %v1991_v33 = vld [vmem:[%s2496_s3 + $0x4] ss:$12 sps:$4 sm:$0xff] (!%p316_p2)  }
   0xc   : > { %v1994_v34 = vld [vmem:[%s2496_s3 + $0x1c] ss:$12 sps:$4 sm:$0xff] (!%p316_p2)   ;;  %v1992_v35 = vld [vmem:[%s2496_s3 + $0x18] ss:$12 sps:$4 sm:$0xff] (!%p316_p2)   ;;  %v1997_v52 = vld [vmem:[%s2496_s3 + $0x34] ss:$12 sps:$4 sm:$0xff] (!%p316_p2)  }
   0xd   : > { %s2505_s14 = smov (!%p357_p3, %s1733_s14), 1  ;;  %v1987_v47 = vld [vmem:[%s2494_s1 + $0x80] sm:$0xff]   ;;  %v1988_v50 = vld [vmem:[%s2494_s1 + $0x88] sm:$0xff]   ;;  %v1995_v53 = vld [vmem:[%s2496_s3 + $0x30] ss:$12 sps:$4 sm:$0xff]  }
   0xe   : > { %s1955_s15 = smul.u32 6, %s2505_s14  ;;  %v1998_v54 = vld [vmem:[%s2496_s3 + $0x48] ss:$12 sps:$4 sm:$0xff]   ;;  %v2000_v55 = vld [vmem:[%s2496_s3 + $0x4c] ss:$12 sps:$4 sm:$0xff]   ;;  %v739_v56 = vld [vmem:[%s2496_s3 + $0x60] sm:$0xff] }
   0xf   : > { %v1776_v57 = vcombine.high %v739_v56, %v739_v56  ;;  %v1775_v58 = vcombine.low %v739_v56, %v739_v56  ;;  %v528_v1 = vld [vmem:[%s2495_s2] sm:$0x1]  ;;  %s1740_s29 = sshll.u32 %s2505_s14, 1 }
  0x10   : > { %s361_s18 = scalar_lea.vmem %s2493_s0, %s1955_s15  ;;  %s370_s12 = scalar_lea.vmem %s2503_s10, %s1740_s29 }
  0x11   : > { %v2159_v8 = vld [vmem:[%s361_s18] sm:$0x3f]  ;;  %v836_v59 = vsel %vm834_vm4, %v1775_v58, 0  ;;  %s1956_s29 = smul.u32 10, %s2505_s14 }
  0x12   : > { %v382_v9 = vrot.slane %v2159_v8, %v2154_v7  ;;  %v375_v10 = vcombine.high %v2159_v8, %v2159_v8 }
  0x14   : > { %v390_v11 = vcombine.high %v382_v9, %v382_v9  ;;  %v397_v12 = vsel %vm395_vm1, %v382_v9, 0  ;;  %v389_v13 = vrot.slane %v375_v10, %v2154_v7 }
  0x16   : > { %1741 = vmatprep.subr.msk.bf16.mxu0 %vm395_vm1, %v390_v11  ;;  %v403_v15 = vsel %vm395_vm1, %v389_v13, 0 }
  0x17   : > { %406 = vmatpush1.bf16.msra.mxu0 %v397_v12  ;;  %1904 = vmatpush3.bf16.msra.mxu1 %v403_v15 }
  0x18   : > { %1840 = vmatprep.subr.bf16.mxu0 %v1971_v14  ;;  %844 = vmatprep.subr.bf16.mxu1 %v1991_v33  ;;  %v2003_v14 = vld [vmem:[%s2496_s3 + $0x8] ss:$12 sps:$4 sm:$0xff]  }
  0x19   : > { %v2020_v33 = vld [vmem:[%s2498_s5 + $0x70] sm:$0xff]  }
  0x1a   : > { %1742 = vmatmul.mubr.msk.bf16.vlgmr.msra.gmra.mrb[0].mxu0 %vm391_vm2, %v2080_v19  ;;  %1906 = vmatmul.mubr.msk.bf16.vlgmr.msra.gmra.mrb[0].mxu1 %vm391_vm2, %v2080_v19  ;;  %v2007_v19 = vld [vmem:[%s2496_s3 + $0x68] ss:$0 sps:$4 sm:$0xff]  }
  0x1b   : > { %1841 = vmatpush3.bf16.msra.mxu0 %v1972_v16  ;;  %876 = vmatprep.mubr.bf16.mxu1 %v2077_v3  ;;  %v2004_v16 = vld [vmem:[%s2496_s3 + $0x20] ss:$12 sps:$4 sm:$0xff]  }
  0x1c   : > { %1842 = vmatprep.subr.bf16.mxu0 %v1973_v17  ;;  %845 = vmatpush1.bf16.msra.mxu1 %v1989_v32  ;;  %v2005_v17 = vld [vmem:[%s2496_s3 + $0x38] ss:$12 sps:$4 sm:$0xff]   ;;  %v2019_v32 = vld [vmem:[%s2498_s5 + $0x28] sm:$0xff]  }
  0x1d   : > { %846 = vmatprep.subr.bf16.mxu1 %v1994_v34  ;;  %v2021_v34 = vld [vmem:[%s2498_s5 + $0x80] sm:$0xff]  }
  0x1f   : > { %1843 = vmatpush3.bf16.msra.mxu0 %v1974_v18  ;;  %v2006_v18 = vld [vmem:[%s2496_s3 + $0x50] ss:$12 sps:$4 sm:$0xff]  }
  0x20   : > { %1844 = vmatprep.subr.bf16.mxu0 %v1975_v20  ;;  %847 = vmatpush1.bf16.msra.mxu1 %v1992_v35  ;;  %v842_v20 = vsel %vm834_vm4, %v2007_v19, 0  ;;  %v2022_v35 = vld [vmem:[%s2498_s5 + $0x30] sm:$0xff]  }
  0x21   : > { %848 = vmatprep.subr.bf16.mxu1 %v1997_v52 }
  0x23   : > { %1845 = vmatpush3.bf16.msra.mxu0 %v1976_v21  ;;  %v2008_v21 = vld [vmem:[%s2498_s5 + $0x40] sm:$0xff]  }
  0x24   : > { %1846 = vmatprep.subr.bf16.mxu0 %v1977_v22  ;;  %849 = vmatpush1.bf16.msra.mxu1 %v1995_v53  ;;  %v2009_v22 = vld [vmem:[%s2498_s5] sm:$0xff]  }
  0x25   : > { %850 = vmatprep.subr.bf16.mxu1 %v2000_v55 }
  0x27   : > { %1847 = vmatpush3.bf16.msra.mxu0 %v1978_v23  ;;  %v2010_v23 = vld [vmem:[%s2498_s5 + $0x48] sm:$0xff]  }
  0x28   : > { %1848 = vmatprep.subr.bf16.mxu0 %v1979_v24  ;;  %851 = vmatpush1.bf16.msra.mxu1 %v1998_v54  ;;  %v2011_v24 = vld [vmem:[%s2498_s5 + $0x8] sm:$0xff]  }
  0x29   : > { %1778 = vmatprep.subr.msk.bf16.mxu1 %vm834_vm4, %v1776_v57 }
  0x2b   : > { %1849 = vmatpush3.bf16.msra.mxu0 %v1980_v25  ;;  %v2012_v25 = vld [vmem:[%s2498_s5 + $0x50] sm:$0xff]  }
  0x2c   : > { %1850 = vmatprep.subr.bf16.mxu0 %v1981_v26  ;;  %853 = vmatpush1.bf16.msra.mxu1 %v836_v59  ;;  %v2013_v26 = vld [vmem:[%s2498_s5 + $0x10] sm:$0xff]  }
  0x2d   : > { %1917 = vmatprep.subr.bf16.mxu1 %v2078_v5 }
  0x2f   : > { %1851 = vmatpush3.bf16.msra.mxu0 %v1982_v27  ;;  %v2014_v27 = vld [vmem:[%s2498_s5 + $0x58] sm:$0xff]  }
  0x30   : > { %1852 = vmatprep.subr.bf16.mxu0 %v1983_v28  ;;  %v2015_v28 = vld [vmem:[%s2498_s5 + $0x18] sm:$0xff]  }
  0x33   : > { %1853 = vmatpush3.bf16.msra.mxu0 %v1984_v29  ;;  %v2016_v29 = vld [vmem:[%s2498_s5 + $0x60] sm:$0xff]  }
  0x34   : > { %1854 = vmatprep.subr.bf16.mxu0 %v1985_v30  ;;  %v2017_v30 = vld [vmem:[%s2498_s5 + $0x20] sm:$0xff]  }
  0x37   : > { %1855 = vmatpush3.bf16.msra.mxu0 %v1986_v31  ;;  %v2018_v31 = vld [vmem:[%s2498_s5 + $0x68] sm:$0xff]  }
  0x38   : > { %1909 = vmatprep.subr.bf16.mxu0 %v2078_v5 }
  0xed   : > { %v439_v36 = vpop.f32.mrb[0].mxu0  ;;  %v480_v37 = vpop.f32.mrb[0].mxu1 }
  0xee   : > { %v486_v38 = vmul.f32 0.25, %v439_v36  ;;  %v441_v39 = vpop.f32.mrb[1].mxu0  ;;  %v1907_v40 = vpop.f32.mrb[1].mxu1  ;;  %v488_v49 = vmul.f32 0.25, %v480_v37  ;;  %v2023_v36 = vld [vmem:[%s2498_s5 + $0x78] sm:$0xff]   ;;  %v2024_v37 = vld [vmem:[%s2498_s5 + $0x88] sm:$0xff]  }
  0xef   : > { %v487_v41 = vmul.f32 0.25, %v441_v39  ;;  %v443_v42 = vpop.f32.mrb[2].mxu0  ;;  %v483_v43 = vpop.f32.mrb[2].mxu1  ;;  %v2028_v39 = vld [vmem:[%s2500_s7 + $0x4] ss:$20 sps:$4 sm:$0xff]  }
  0xf0   : > { %v444_v44 = vpop.f32.mrb[3].mxu0  ;;  %v1908_v45 = vpop.f32.mrb[3].mxu1  ;;  %v489_v48 = vpack.c.bf16 %v486_v38, %v486_v38  ;;  %v491_v51 = vpack.c.bf16 %v488_v49, %v488_v49  ;;  %v2025_v38 = vld [vmem:[%s2498_s5 + $0x38] sm:$0xff]   ;;  %v2031_v40 = vld [vmem:[%s2500_s7 + $0xc] ss:$20 sps:$4 sm:$0xff]   ;;  %v821_v43 = vsub.s32 1, %v2147_v4 }
  0xf1   : > { %v490_v46 = vpack.c.bf16 %v487_v41, %v487_v41  ;;  %v2348_v41 = vsub.s32 0, %v2147_v4  ;;  %v741_v42 = vld [vmem:[%s2497_s4] sm:$0x7] }
  0xf2   : > { %v822_v45 = vrot.slane %v741_v42, %v821_v43 }
  0xf3   : > { %673 = vmatprep.mubr.bf16.mxu0 %v490_v46  ;;  %v818_v44 = vrot.slane %v741_v42, %v2348_v41 }
  0xf4   : > { %674 = vmatmul.mubr.bf16.vlgmr.msra.gmra.mrb[4].mxu0 %v489_v48 }
  0xf5   : > { %1910 = vmatpush3.bf16.msra.mxu0 %v1987_v47  ;;  %1913 = vmatprep.mubr.msk.bf16.mxu0 %vm2079_vm0, %v2078_v5 }
  0xf6   : > { %1911 = vmatprep.subr.bf16.mxu0 %v2078_v5 }
  0xf9   : > { %1912 = vmatpush3.bf16.msra.mxu0 %v1988_v50 }
  0xfa   : > { %1871 = vmatprep.subr.bf16.mxu0 %v2008_v21 }
  0xfc   : > { %1914 = vmatmul.mubr.msk.bf16.vlgmr.msra.gmra.mrb[8].mxu0 %vm637_vm3, %v491_v51 }
  0xfd   : > { %1872 = vmatpush3.bf16.msra.mxu0 %v2009_v22 }
  0xfe   : > { %1873 = vmatprep.subr.bf16.mxu0 %v2010_v23 }
 0x101   : > { %1874 = vmatpush3.bf16.msra.mxu0 %v2011_v24 }
 0x102   : > { %1875 = vmatprep.subr.bf16.mxu0 %v2012_v25 }
 0x105   : > { %1876 = vmatpush3.bf16.msra.mxu0 %v2013_v26 }
 0x106   : > { %1877 = vmatprep.subr.bf16.mxu0 %v2014_v27 }
 0x109   : > { %1878 = vmatpush3.bf16.msra.mxu0 %v2015_v28  ;;  %v2026_v28 = vld [vmem:[%s2500_s7] ss:$20 sps:$4 sm:$0xff]  }
 0x10a   : > { %1879 = vmatprep.subr.bf16.mxu0 %v2016_v29 }
 0x10d   : > { %1880 = vmatpush3.bf16.msra.mxu0 %v2017_v30 }
 0x10e   : > { %1881 = vmatprep.subr.bf16.mxu0 %v2018_v31  ;;  %v2029_v31 = vld [vmem:[%s2500_s7 + $0x8] ss:$20 sps:$4 sm:$0xff]  }
 0x111   : > { %1882 = vmatpush3.bf16.msra.mxu0 %v2019_v32  ;;  %v2034_v32 = vld [vmem:[%s2500_s7 + $0x2c] ss:$20 sps:$4 sm:$0xff]  }
 0x112   : > { %1883 = vmatprep.subr.bf16.mxu0 %v2020_v33  ;;  %v2032_v33 = vld [vmem:[%s2500_s7 + $0x28] ss:$20 sps:$4 sm:$0xff]  }
 0x115   : > { %1884 = vmatpush3.bf16.msra.mxu0 %v2022_v35  ;;  %v2040_v35 = vld [vmem:[%s2500_s7 + $0x54] ss:$20 sps:$4 sm:$0xff]  }
 0x116   : > { %1885 = vmatprep.subr.bf16.mxu0 %v2023_v36  ;;  %v2043_v36 = vld [vmem:[%s2500_s7 + $0x5c] ss:$20 sps:$4 sm:$0xff]  }
 0x119   : > { %1886 = vmatpush3.bf16.msra.mxu0 %v2025_v38  ;;  %v2041_v38 = vld [vmem:[%s2500_s7 + $0x58] ss:$20 sps:$4 sm:$0xff]  }
 0x11a   : > { %1500 = vmatprep.subr.bf16.mxu0 %v2031_v40  ;;  %v2044_v40 = vld [vmem:[%s2500_s7 + $0x78] ss:$20 sps:$4 sm:$0xff]  }
 0x1c7   : > { %v1856_v60 = vpop.f32.mrb[4].mxu0 }
 0x1c8   : > { %v1857_v61 = vpop.f32.mrb[5].mxu0 }
 0x1c9   : > { %v1858_v62 = vadd.f32 %v1857_v61, %v1856_v60  ;;  %v1859_v63 = vpop.f32.mrb[6].mxu0 }
 0x1ca   : > { %v1860_v0 = vpop.f32.mrb[7].mxu0  ;;  %v825_v63 = vsub.s32 2, %v2147_v4 }
 0x1cb   : > { %v676_v2 = vadd.f32 %v1858_v62, %v528_v1 }
 0x1cf   : > { %v715_v6 = vpop.f32.mrb[8].mxu0 }
 0x1d0   : > { %v716_v9 = vadd.f32 %v715_v6, %v676_v2  ;;  %v1915_v10 = vpop.f32.mrb[9].mxu0  ;;  %v826_v6 = vrot.slane %v741_v42, %v825_v63  ;;  %v2047_v42 = vld [vmem:[%s2500_s7 + $0x80] ss:$20 sps:$4 sm:$0xff]  }
 0x1d1   : > { %v718_v11 = vpop.f32.mrb[10].mxu0 }
 0x1d2   : > { %v721_v12 = vmax.f32 %v716_v9, 0.0  ;;  %v1916_v13 = vpop.f32.mrb[11].mxu0 }
 0x1d4   : > { %v722_v15 = vpack.c.bf16 %v721_v12, %v721_v12 }
 0x1d6   : > { %1779 = vmatmul.mubr.msk.bf16.vlgmr.msra.gmra.mrb[4].mxu1 %vm830_vm5, %v722_v15 }
 0x1d7   : > { %1918 = vmatpush3.bf16.msra.mxu1 %v2003_v14  ;;  %1927 = vmatprep.mubr.msk.bf16.mxu1 %vm2079_vm0, %v2078_v5 }
 0x1d8   : > { %1919 = vmatprep.subr.bf16.mxu1 %v2078_v5 }
 0x1db   : > { %1920 = vmatpush3.bf16.msra.mxu1 %v2004_v16 }
 0x1dc   : > { %1921 = vmatprep.subr.bf16.mxu1 %v2078_v5 }
 0x1df   : > { %1922 = vmatpush3.bf16.msra.mxu1 %v2005_v17 }
 0x1e0   : > { %1923 = vmatprep.subr.bf16.mxu1 %v2078_v5 }
 0x1e3   : > { %1924 = vmatpush3.bf16.msra.mxu1 %v2006_v18 }
 0x1e4   : > { %1925 = vmatprep.subr.bf16.mxu1 %v2078_v5 }
 0x1e7   : > { %1926 = vmatpush3.bf16.msra.mxu1 %v842_v20 }
 0x1e8   : > { %1931 = vmatprep.subr.bf16.mxu1 %v2078_v5 }
 0x1ea   : > { %1928 = vmatmul.mubr.msk.bf16.vlgmr.msra.gmra.mrb[8].mxu1 %vm830_vm5, %v722_v15 }
 0x1eb   : > { %1935 = vmatprep.mubr.msk.bf16.mxu1 %vm2079_vm0, %v2078_v5  ;;  %1932 = vmatpush3.bf16.msra.mxu1 %v2021_v34  ;;  %v2035_v34 = vld [vmem:[%s2500_s7 + $0x30] ss:$20 sps:$4 sm:$0xff]  }
 0x1ec   : > { %1933 = vmatprep.subr.bf16.mxu1 %v2078_v5 }
 0x1ef   : > { %1934 = vmatpush3.bf16.msra.mxu1 %v2024_v37  ;;  %v2038_v37 = vld [vmem:[%s2500_s7 + $0x50] ss:$20 sps:$4 sm:$0xff]  }
 0x1f0   : > { %1459 = vmatprep.subr.bf16.mxu1 %v2028_v39  ;;  %v2046_v39 = vld [vmem:[%s2500_s7 + $0x7c] ss:$20 sps:$4 sm:$0xff]  }
 0x2a9   : > { %v878_v46 = vpop.f32.mrb[4].mxu1 }
 0x2aa   : > { %v879_v47 = vadd.f32 %v878_v46, %v818_v44  ;;  %v880_v48 = vpop.f32.mrb[5].mxu1  ;;  %v2052_v44 = vld [vmem:[%s2500_s7 + $0xa4] ss:$20 sps:$4 sm:$0xff]   ;;  %v2053_v46 = vld [vmem:[%s2500_s7 + $0xa8] ss:$20 sps:$4 sm:$0xff]  }
 0x2ab   : > { %v881_v49 = vadd.f32 %v880_v48, %v822_v45  ;;  %v882_v50 = vpop.f32.mrb[6].mxu1  ;;  %v2050_v45 = vld [vmem:[%s2500_s7 + $0xa0] ss:$20 sps:$4 sm:$0xff]  }
 0x2ac   : > { %v925_v51 = vadd.f32 3.0, %v879_v47  ;;  %v883_v52 = vpop.f32.mrb[7].mxu1  ;;  %v2055_v47 = vld [vmem:[%s2500_s7 + $0xac] ss:$20 sps:$4 sm:$0xff]   ;;  %v2061_v50 = vld [vmem:[%s2500_s7 + $0xd4] ss:$20 sps:$4 sm:$0xff]  }
 0x2ad   : > { %v926_v53 = vadd.f32 3.0, %v881_v49  ;;  %v2058_v48 = vld [vmem:[%s2500_s7 + $0xcc] ss:$20 sps:$4 sm:$0xff]   ;;  %v2056_v49 = vld [vmem:[%s2500_s7 + $0xc8] ss:$20 sps:$4 sm:$0xff]  }
 0x2ae   : > { %v928_v54 = vmax.f32 %v925_v51, 0.0  ;;  %v2059_v51 = vld [vmem:[%s2500_s7 + $0xd0] ss:$20 sps:$4 sm:$0xff]  }
 0x2af   : > { %v929_v55 = vmax.f32 %v926_v53, 0.0 }
 0x2b0   : > { %v931_v56 = vmin.f32 %v928_v54, 6.0 }
 0x2b1   : > { %v932_v57 = vmin.f32 %v929_v55, 6.0  ;;  %v1781_v55 = vld [vmem:[%s2499_s6] ss:$0 sm:$0xff] }
 0x2b2   : > { %v934_v58 = vmul.f32 0.16666667, %v931_v56 }
 0x2b3   : > { %v935_v59 = vmul.f32 0.16666667, %v932_v57 }
 0x2b4   : > { %v937_v60 = vpack.c.bf16 %v934_v58, %v934_v58 }
 0x2b5   : > { %v938_v61 = vpack.c.bf16 %v935_v59, %v935_v59 }
 0x2b6   : > { %v941_v62 = vpack.i.b16 %v937_v60, %v937_v60 }
 0x2b7   : > { %v948_v0 = vpack.i.b16 %v938_v61, %v938_v61 }
 0x2b8   : > { %v946_v1 = vrot.slane %v941_v62, %v2348_v41 }
 0x2b9   : > { %v953_v2 = vrot.slane %v948_v0, %v2348_v41 }
 0x2bb   : > { %v964_v9 = vcombine.low %v946_v1, %v953_v2  ;;  %v2062_v1 = vld [vmem:[%s2500_s7 + $0x10] ss:$20 sps:$4 sm:$0xff]  }
 0x2bd   : > { %v919_v10 = vpop.f32.mrb[8].mxu1  ;;  %v971_v22 = vrot.slane %v964_v9, %v2154_v7  ;;  %v2064_v9 = vld [vmem:[%s2500_s7 + $0x60] ss:$20 sps:$4 sm:$0xff]  }
 0x2be   : > { %v920_v11 = vadd.f32 %v919_v10, %v826_v6  ;;  %v1929_v12 = vpop.f32.mrb[9].mxu1  ;;  %v2063_v6 = vld [vmem:[%s2500_s7 + $0x38] ss:$20 sps:$4 sm:$0xff]   ;;  %v2065_v10 = vld [vmem:[%s2500_s7 + $0x88] ss:$20 sps:$4 sm:$0xff]  }
 0x2bf   : > { %v922_v13 = vpop.f32.mrb[10].mxu1  ;;  %v2067_v12 = vld [vmem:[%s2500_s7 + $0xd8] ss:$20 sps:$4 sm:$0xff]  }
 0x2c0   : > { %v927_v14 = vadd.f32 3.0, %v920_v11  ;;  %v1930_v15 = vpop.f32.mrb[11].mxu1  ;;  %v2066_v11 = vld [vmem:[%s2500_s7 + $0xb0] ss:$20 sps:$4 sm:$0xff]  }
 0x2c1   : > { %v1272_v13 = vld [vmem:[%s2501_s8] sm:$0x1f] }
 0x2c2   : > { %v930_v16 = vmax.f32 %v927_v14, 0.0  ;;  %v1288_v14 = vsub.s32 3, %v2147_v4  ;;  %v1277_v15 = vrot.slane %v1272_v13, %v2348_v41 }
 0x2c4   : > { %v933_v17 = vmin.f32 %v930_v16, 6.0  ;;  %v1285_v16 = vrot.slane %v1272_v13, %v825_v63 }
 0x2c6   : > { %v936_v18 = vmul.f32 0.16666667, %v933_v17  ;;  %v1281_v17 = vrot.slane %v1272_v13, %v821_v43 }
 0x2c8   : > { %v939_v19 = vpack.c.bf16 %v936_v18, %v936_v18  ;;  %v1289_v18 = vrot.slane %v1272_v13, %v1288_v14 }
 0x2ca   : > { %v955_v20 = vpack.i.b16 %v939_v19, %v939_v19 }
 0x2cc   : > { %v960_v21 = vrot.slane %v955_v20, %v2348_v41 }
 0x2ce   : > { %v978_v23 = vrot.slane %v960_v21, %v2154_v7 }
 0x2d0   : > { %v979_v24 = vcombine.low %v971_v22, %v978_v23 }
 0x2d2   : > { %v981_v25 = vmul.bf16 %v979_v24, %v2159_v8  ;;  %v2037_v8 = vld [vmem:[%s2500_s7 + $0x34] ss:$20 sps:$4 sm:$0xff]  }
 0x2d4   : > { %v1026_v26 = vcombine.high %v981_v25, %v981_v25  ;;  %v1033_v27 = vrot.slane %v981_v25, %v2154_v7 }
 0x2d6   : > { %v1041_v29 = vcombine.high %v1033_v27, %v1033_v27  ;;  %v1040_v30 = vrot.slane %v1026_v26, %v2154_v7 }
 0x2d8   : > { %1187 = vmatprep.mubr.bf16.mxu0 %v1041_v29  ;;  %1936 = vmatmul.mubr.msk.bf16.vlgmr.msra.gmra.mrb[12].mxu1 %vm637_vm3, %v1040_v30 }
 0x2d9   : > { %1188 = vmatmul.mubr.bf16.vlgmr.msra.gmra.mrb[12].mxu0 %v1033_v27  ;;  %1460 = vmatpush1.bf16.msra.mxu1 %v2026_v28 }
 0x2da   : > { %1501 = vmatpush1.bf16.msra.mxu0 %v2029_v31  ;;  %1461 = vmatprep.subr.bf16.mxu1 %v2034_v32 }
 0x2db   : > { %1502 = vmatprep.subr.bf16.mxu0 %v2037_v8  ;;  %1491 = vmatprep.mubr.bf16.mxu1 %v2077_v3 }
 0x2dc   : > { %1532 = vmatprep.mubr.bf16.mxu0 %v2077_v3  ;;  %v2049_v3 = vld [vmem:[%s2500_s7 + $0x84] ss:$20 sps:$4 sm:$0xff]  }
 0x2dd   : > { %1462 = vmatpush1.bf16.msra.mxu1 %v2032_v33 }
 0x2de   : > { %1503 = vmatpush1.bf16.msra.mxu0 %v2035_v34  ;;  %1463 = vmatprep.subr.bf16.mxu1 %v2040_v35 }
 0x2df   : > { %1504 = vmatprep.subr.bf16.mxu0 %v2043_v36 }
 0x2e1   : > { %1464 = vmatpush1.bf16.msra.mxu1 %v2038_v37 }
 0x2e2   : > { %1505 = vmatpush1.bf16.msra.mxu0 %v2041_v38  ;;  %1465 = vmatprep.subr.bf16.mxu1 %v2046_v39 }
 0x2e3   : > { %1506 = vmatprep.subr.bf16.mxu0 %v2049_v3 }
 0x2e5   : > { %1466 = vmatpush1.bf16.msra.mxu1 %v2044_v40 }
 0x2e6   : > { %1507 = vmatpush1.bf16.msra.mxu0 %v2047_v42  ;;  %1467 = vmatprep.subr.bf16.mxu1 %v2052_v44 }
 0x2e7   : > { %1508 = vmatprep.subr.bf16.mxu0 %v2055_v47 }
 0x2e9   : > { %1468 = vmatpush1.bf16.msra.mxu1 %v2050_v45 }
 0x2ea   : > { %1509 = vmatpush1.bf16.msra.mxu0 %v2053_v46  ;;  %1469 = vmatprep.subr.bf16.mxu1 %v2058_v48 }
 0x2eb   : > { %1510 = vmatprep.subr.bf16.mxu0 %v2061_v50 }
 0x2ed   : > { %1470 = vmatpush1.bf16.msra.mxu1 %v2056_v49 }
 0x2ee   : > { %1939 = vmatprep.subr.bf16.mxu1 %v2078_v5  ;;  %1511 = vmatpush1.bf16.msra.mxu0 %v2059_v51  ;;  %v1292_v51 = vsub.s32 4, %v2147_v4 }
 0x3ab   : > { %v1229_v52 = vpop.f32.mrb[12].mxu1 }
 0x3ac   : > { %v1887_v53 = vpop.f32.mrb[12].mxu0  ;;  %v1937_v54 = vpop.f32.mrb[13].mxu1 }
 0x3ad   : > { %v1888_v56 = vpop.f32.mrb[13].mxu0  ;;  %v1232_v57 = vpop.f32.mrb[14].mxu1 }
 0x3ae   : > { %v1889_v58 = vadd.f32 %v1888_v56, %v1887_v53  ;;  %v1890_v59 = vpop.f32.mrb[14].mxu0  ;;  %v1938_v60 = vpop.f32.mrb[15].mxu1  ;;  %v1293_v53 = vrot.slane %v1272_v13, %v1292_v51 }
 0x3af   : > { %v1891_v61 = vpop.f32.mrb[15].mxu0 }
 0x3b0   : > { %v1190_v62 = vadd.f32 %v1889_v58, %v1781_v55 }
 0x3b2   : > { %v1230_v0 = vadd.f32 %v1229_v52, %v1190_v62 }
 0x3b4   : > { %v1235_v2 = vpack.c.bf16 %v1230_v0, %v1230_v0 }
 0x3b6   : > { %1646 = vst.msk [vmem:[%s370_s12] sm:$0x3] %vm1645_vm6, %v1235_v2  ;;  %1831 = vmatmul.mubr.msk.bf16.vlgmr.msra.gmra.mrb[16].mxu1 %vm1455_vm7, %v1235_v2  ;;  %1832 = vmatmul.mubr.msk.bf16.vlgmr.msra.gmra.mrb[16].mxu0 %vm1455_vm7, %v1235_v2  ;;  %s366_s12 = scalar_lea.vmem %s2502_s9, %s1956_s29 }
 0x3b7   : > { %1940 = vmatpush3.bf16.msra.mxu1 %v2062_v1  ;;  %1951 = vmatprep.mubr.msk.bf16.mxu1 %vm2079_vm0, %v2078_v5 }
 0x3b8   : > { %1941 = vmatprep.subr.bf16.mxu1 %v2078_v5 }
 0x3bb   : > { %1942 = vmatpush3.bf16.msra.mxu1 %v2063_v6 }
 0x3bc   : > { %1943 = vmatprep.subr.bf16.mxu1 %v2078_v5 }
 0x3bf   : > { %1944 = vmatpush3.bf16.msra.mxu1 %v2064_v9 }
 0x3c0   : > { %1945 = vmatprep.subr.bf16.mxu1 %v2078_v5 }
 0x3c3   : > { %1946 = vmatpush3.bf16.msra.mxu1 %v2065_v10 }
 0x3c4   : > { %1947 = vmatprep.subr.bf16.mxu1 %v2078_v5 }
 0x3c7   : > { %1948 = vmatpush3.bf16.msra.mxu1 %v2066_v11 }
 0x3c8   : > { %1949 = vmatprep.subr.bf16.mxu1 %v2078_v5 }
 0x3cb   : > { %1950 = vmatpush3.bf16.msra.mxu1 %v2067_v12 }
 0x3ce   : > { %1952 = vmatmul.mubr.msk.bf16.vlgmr.msra.gmra.mrb[20].mxu1 %vm1455_vm7, %v1235_v2 }
 0x489   : > { %v1493_v19 = vpop.f32.mrb[16].mxu1  ;;  %v1534_v5 = vpop.f32.mrb[16].mxu0 }
 0x48a   : > { %v1494_v20 = vadd.f32 %v1493_v19, %v1277_v15  ;;  %v1535_v21 = vadd.f32 %v1534_v5, %v1285_v16  ;;  %v1495_v22 = vpop.f32.mrb[17].mxu1  ;;  %v1536_v23 = vpop.f32.mrb[17].mxu0 }
 0x48b   : > { %v1496_v24 = vadd.f32 %v1495_v22, %v1281_v17  ;;  %v1537_v25 = vadd.f32 %v1536_v23, %v1289_v18  ;;  %v1497_v26 = vpop.f32.mrb[18].mxu1  ;;  %v1538_v27 = vpop.f32.mrb[18].mxu0 }
 0x48c   : > { %v1581_v28 = vadd.f32 3.0, %v1494_v20  ;;  %v1583_v29 = vadd.f32 3.0, %v1535_v21  ;;  %v1498_v41 = vpop.f32.mrb[19].mxu1  ;;  %v1539_v30 = vpop.f32.mrb[19].mxu0 }
 0x48d   : > { %v1582_v31 = vadd.f32 3.0, %v1496_v24  ;;  %v1584_v63 = vadd.f32 3.0, %v1537_v25 }
 0x48e   : > { %v1586_v32 = vmax.f32 %v1581_v28, 0.0  ;;  %v1588_v43 = vmax.f32 %v1583_v29, 0.0 }
 0x48f   : > { %v1587_v8 = vmax.f32 %v1582_v31, 0.0  ;;  %v1589_v33 = vmax.f32 %v1584_v63, 0.0 }
 0x490   : > { %v1591_v34 = vmin.f32 %v1586_v32, 6.0  ;;  %v1593_v35 = vmin.f32 %v1588_v43, 6.0 }
 0x491   : > { %v1592_v36 = vmin.f32 %v1587_v8, 6.0  ;;  %v1594_v37 = vmin.f32 %v1589_v33, 6.0 }
 0x492   : > { %v1596_v38 = vmul.f32 %v1591_v34, %v1494_v20  ;;  %v1598_v39 = vmul.f32 %v1593_v35, %v1535_v21 }
 0x493   : > { %v1597_v3 = vmul.f32 %v1592_v36, %v1496_v24  ;;  %v1599_v40 = vmul.f32 %v1594_v37, %v1537_v25 }
 0x494   : > { %v1601_v42 = vmul.f32 0.16666667, %v1596_v38  ;;  %v1603_v44 = vmul.f32 0.16666667, %v1598_v39 }
 0x495   : > { %v1602_v45 = vmul.f32 0.16666667, %v1597_v3  ;;  %v1604_v46 = vmul.f32 0.16666667, %v1599_v40 }
 0x497   : > { %v1834_v47 = vpack.c.bf16 %v1602_v45, %v1601_v42  ;;  %v1835_v48 = vpack.c.bf16 %v1604_v46, %v1603_v44 }
 0x499   : > { %v1624_v49 = vrot.slane %v1834_v47, %v2154_v7  ;;  %v1631_v50 = vrot.slane %v1835_v48, %v2154_v7 }
 0x49b   : > { %v1632_v52 = vcombine.low %v1624_v49, %v1631_v50 }
 0x49d   : > { %1642 = vst [vmem:[%s366_s12] sm:$0xff] %v1632_v52 }
 0x4a1   : > { %v1575_v54 = vpop.f32.mrb[20].mxu1 }
 0x4a2   : > { %v1576_v55 = vadd.f32 %v1575_v54, %v1293_v53  ;;  %v1953_v56 = vpop.f32.mrb[21].mxu1 }
 0x4a3   : > { %v1578_v57 = vpop.f32.mrb[22].mxu1 }
 0x4a4   : > { %v1585_v58 = vadd.f32 3.0, %v1576_v55  ;;  %v1954_v59 = vpop.f32.mrb[23].mxu1 }
 0x4a6   : > { %v1590_v60 = vmax.f32 %v1585_v58, 0.0 }
 0x4a8   : > { %v1595_v61 = vmin.f32 %v1590_v60, 6.0 }
 0x4aa   : > { %v1600_v62 = vmul.f32 %v1595_v61, %v1576_v55 }
 0x4ac   : > { %v1605_v0 = vmul.f32 0.16666667, %v1600_v62 }
 0x4ae   : > { %v1610_v1 = vpack.c.bf16 %v1605_v0, %v1605_v0 }
 0x4b0   : > { %v1639_v2 = vrot.slane %v1610_v1, %v2154_v7 }
 0x4b2   : > { %1644 = vst.msk [vmem:[%s366_s12 + $0x8] sm:$0x3] %vm1643_vm8, %v1639_v2 }
 0x4b3 PF: > { %s21_s13 = sadd.s32 1, %s2074_s13  }
 0x4b4   : > { %p18_p4 = scmp.ge.s32.totalorder %s21_s13, 4  }
 0x4b6   :  { %20 = sbr.rel (!%p18_p4) target bundleno = 1 (0x1), region = 98 }

// kernel: ball_localization_forward.20
= control target key start
LH: loop header
LB: loop body
LE: loop exit
PB: predicated region body
PF: predicated region fallthrough
CT: control target
= control target key end

     0   :  { %s3319_s17 = smov 0   ;;  %s4019_s0 = inlined_call_operand.vmem [shape: bf16[2,4,576], index: 0, kind: input, shape index: {}]   ;;  %s4020_s1 = inlined_call_operand.vmem [shape: bf16[576,144], index: 1, kind: input, shape index: {}]   ;;  %s4021_s2 = inlined_call_operand.vmem [shape: f32[1,144], index: 2, kind: input, shape index: {}]   ;;  %s4022_s3 = inlined_call_operand.vmem [shape: bf16[144,576], index: 3, kind: input, shape index: {}]   ;;  %s4023_s4 = inlined_call_operand.vmem [shape: f32[1,576], index: 4, kind: input, shape index: {}]   ;;  %s4024_s5 = inlined_call_operand.vmem [shape: bf16[576,96], index: 5, kind: input, shape index: {}]   ;;  %s4025_s6 = inlined_call_operand.vmem [shape: f32[1,96], index: 6, kind: input, shape index: {}]   ;;  %s4026_s7 = inlined_call_operand.vmem [shape: bf16[2,4,96], index: 7, kind: input, shape index: {}]   ;;  %s4027_s8 = inlined_call_operand.vmem [shape: bf16[96,576], index: 8, kind: input, shape index: {}]   ;;  %s4028_s9 = inlined_call_operand.vmem [shape: f32[1,576], index: 9, kind: input, shape index: {}]   ;;  %s4029_s10 = inlined_call_operand.vmem [shape: bf16[2,4,576], index: 10, kind: output, shape index: {0}]   ;;  %s4030_s11 = inlined_call_operand.vmem [shape: bf16[2,4,96], index: 11, kind: output, shape index: {1}]  }
   0x1 LB: > { %s2667_s18 = sadd.s32 4294967295, %s3252_s17   ;;  %p2671_p0 = scmp.ge.s32.totalorder %s3252_s17, 1  ;;  %s3252_s17 = sphi %s3319_s17, %s22_s17  }
   0x2   : > { %p349_p1 = scmp.lt.s32.totalorder %s3252_s17, 3 }
   0x4   : > { %p350_p2 = pnand %p2671_p0, %p349_p1 }
   0x5   : > { %p397_p3 = scmp.lt.s32.totalorder (!%p350_p2), %s2667_s18, 1  ;;  %v425_v0 = vlaneseq (!%p350_p2)  ;;  %v3254_v1 = vmov (!%p350_p2), 1983009808   ;;  %v3255_v3 = vmov (!%p350_p2), 0   ;;  %v3256_v5 = vmov (!%p350_p2), 0.0  }
   0x6   : > { %353 = sbr.rel (%p350_p2) target bundleno = 1321 (0x529), region = 60  ;;  %v423_v2 = vunpack.c.l.s4 (!%p350_p2), %v3254_v1  ;;  %497 = vmatprep.mubr.bf16.mxu1 (!%p350_p2), %v3255_v3  ;;  %2935 = vmatprep.subr.bf16.mxu0 (!%p350_p2), %v3256_v5  ;;  %vm3257_vm0 = vmmov (!%p350_p2), 0   ;;  %vm449_vm1 = vcmask (!%p350_p2), 1041408   ;;  %vm445_vm2 = vcmask (!%p350_p2), 31744   ;;  %v2996_v19 = vld [vmem:[%s4020_s1 + $0x4] ss:$8 sps:$4 sm:$0xff] (!%p350_p2)  }
   0x7   : > { %v3330_v4 = vshrl.u32 (!%p350_p2), %v425_v0, 7  ;;  %2937 = vmatprep.mubr.msk.bf16.mxu0 (!%p350_p2), %vm3257_vm0, %v3256_v5  ;;  %v3258_v18 = vmov (!%p350_p2), 1065369472   ;;  %v2994_v20 = vld [vmem:[%s4020_s1] ss:$8 sps:$4 sm:$0xff] (!%p350_p2)   ;;  %vm1041_vm3 = vcmask (!%p350_p2), 523264  }
   0x8   : > { %v424_v6 = vunpack.c.0.s8 (!%p350_p2), %v423_v2  ;;  %v2999_v21 = vld [vmem:[%s4020_s1 + $0x14] ss:$8 sps:$4 sm:$0xff] (!%p350_p2)   ;;  %v2997_v22 = vld [vmem:[%s4020_s1 + $0x10] ss:$8 sps:$4 sm:$0xff] (!%p350_p2)   ;;  %v3002_v23 = vld [vmem:[%s4020_s1 + $0x24] ss:$8 sps:$4 sm:$0xff] (!%p350_p2)  }
   0x9   : > { %v3000_v24 = vld [vmem:[%s4020_s1 + $0x20] ss:$8 sps:$4 sm:$0xff] (!%p350_p2)   ;;  %v3005_v25 = vld [vmem:[%s4020_s1 + $0x34] ss:$8 sps:$4 sm:$0xff] (!%p350_p2)   ;;  %v3003_v26 = vld [vmem:[%s4020_s1 + $0x30] ss:$8 sps:$4 sm:$0xff] (!%p350_p2)  }
   0xa   : > { %v3337_v7 = vsub.s32 (!%p350_p2), %v424_v6, %v3330_v4  ;;  %v3008_v27 = vld [vmem:[%s4020_s1 + $0x44] ss:$8 sps:$4 sm:$0xff] (!%p350_p2)   ;;  %v3006_v28 = vld [vmem:[%s4020_s1 + $0x40] ss:$8 sps:$4 sm:$0xff] (!%p350_p2)   ;;  %v3011_v29 = vld [vmem:[%s4020_s1 + $0x54] ss:$8 sps:$4 sm:$0xff] (!%p350_p2)  }
   0xb   : > { %v3009_v30 = vld [vmem:[%s4020_s1 + $0x50] ss:$8 sps:$4 sm:$0xff] (!%p350_p2)   ;;  %v3014_v31 = vld [vmem:[%s4020_s1 + $0x64] ss:$8 sps:$4 sm:$0xff] (!%p350_p2)   ;;  %v3012_v32 = vld [vmem:[%s4020_s1 + $0x60] ss:$8 sps:$4 sm:$0xff] (!%p350_p2)  }
   0xc   : > { %v3017_v33 = vld [vmem:[%s4020_s1 + $0x74] ss:$8 sps:$4 sm:$0xff] (!%p350_p2)   ;;  %v3015_v34 = vld [vmem:[%s4020_s1 + $0x70] ss:$8 sps:$4 sm:$0xff] (!%p350_p2)   ;;  %v3020_v35 = vld [vmem:[%s4020_s1 + $0x84] ss:$8 sps:$4 sm:$0xff] (!%p350_p2)  }
   0xd   : > { %s4032_s18 = smov (!%p397_p3, %s2667_s18), 1  ;;  %v3018_v36 = vld [vmem:[%s4020_s1 + $0x80] ss:$8 sps:$4 sm:$0xff]   ;;  %v3023_v37 = vld [vmem:[%s4020_s1 + $0x94] ss:$8 sps:$4 sm:$0xff]   ;;  %vm1487_vm4 = vcmask 130048  }
   0xe   : > { %s2979_s19 = smul.u32 10, %s4032_s18  ;;  %v3021_v38 = vld [vmem:[%s4020_s1 + $0x90] ss:$8 sps:$4 sm:$0xff]   ;;  %v3026_v39 = vld [vmem:[%s4020_s1 + $0xa4] ss:$8 sps:$4 sm:$0xff]   ;;  %s2673_s16 = sshll.u32 %s4032_s18, 1 }
   0xf   : > { %v3024_v40 = vld [vmem:[%s4020_s1 + $0xa0] ss:$8 sps:$4 sm:$0xff]   ;;  %v3029_v41 = vld [vmem:[%s4020_s1 + $0xb4] ss:$8 sps:$4 sm:$0xff]   ;;  %v3027_v42 = vld [vmem:[%s4020_s1 + $0xb0] ss:$8 sps:$4 sm:$0xff]   ;;  %s405_s23 = scalar_lea.vmem %s4026_s7, %s2673_s16  ;;  %s414_s25 = scalar_lea.vmem %s4030_s11, %s2673_s16 }
  0x10   : > { %s3344_s22 = scalar_lea.vmem %s4019_s0, %s2979_s19  ;;  %v3032_v43 = vld [vmem:[%s4020_s1 + $0xc4] ss:$8 sps:$4 sm:$0xff]   ;;  %v3030_v44 = vld [vmem:[%s4020_s1 + $0xc0] ss:$8 sps:$4 sm:$0xff]   ;;  %v3035_v45 = vld [vmem:[%s4020_s1 + $0xd4] ss:$8 sps:$4 sm:$0xff]   ;;  %s410_s26 = scalar_lea.vmem %s4029_s10, %s2979_s19 }
  0x11   : > { %v417_v8 = vld [vmem:[%s3344_s22] sm:$0xff]  ;;  %v3245_v9 = vld.sshfl [vmem:[%s3344_s22 + $0x8] sm:$0x3 pattern:$0x76325410]  ;;  %vm2567_vm5 = vcmask 779264  }
  0x12   : > { %v421_v10 = vcombine.high %v417_v8, %v417_v8  ;;  %v428_v11 = vrot.slane %v417_v8, %v3337_v7  ;;  %v463_v15 = vsel %vm449_vm1, %v3245_v9, 0  ;;  %v3033_v46 = vld [vmem:[%s4020_s1 + $0xd0] ss:$8 sps:$4 sm:$0xff]   ;;  %v3038_v47 = vld [vmem:[%s4020_s1 + $0xe4] ss:$8 sps:$4 sm:$0xff]   ;;  %vm2377_vm6 = vcmask 785408  }
  0x13   : > { %2936 = vmatpush3.bf16.msra.mxu0 %v463_v15  ;;  %v3036_v48 = vld [vmem:[%s4020_s1 + $0xe0] ss:$8 sps:$4 sm:$0xff]   ;;  %v3041_v49 = vld [vmem:[%s4020_s1 + $0xf4] ss:$8 sps:$4 sm:$0xff]   ;;  %v3039_v50 = vld [vmem:[%s4020_s1 + $0xf0] ss:$8 sps:$4 sm:$0xff]  }
  0x14   : > { %v436_v12 = vcombine.high %v428_v11, %v428_v11  ;;  %v451_v13 = vsel %vm449_vm1, %v428_v11, 0  ;;  %v435_v14 = vrot.slane %v421_v10, %v3337_v7  ;;  %v3044_v51 = vld [vmem:[%s4020_s1 + $0x104] ss:$8 sps:$4 sm:$0xff]   ;;  %v3102_v52 = vld [vmem:[%s4022_s3] ss:$20 sps:$4 sm:$0xff]   ;;  %vm2565_vm7 = vcmask 517120  }
  0x15   : > { %v3104_v53 = vld [vmem:[%s4022_s3 + $0x4] ss:$20 sps:$4 sm:$0xff]   ;;  %v3107_v54 = vld [vmem:[%s4022_s3 + $0x2c] ss:$20 sps:$4 sm:$0xff]   ;;  %v3105_v55 = vld [vmem:[%s4022_s3 + $0x28] ss:$20 sps:$4 sm:$0xff]  }
  0x16   : > { %2676 = vmatprep.subr.msk.bf16.mxu1 %vm449_vm1, %v436_v12  ;;  %v437_v16 = vcombine.high %v435_v14, %v435_v14  ;;  %v457_v17 = vsel %vm449_vm1, %v435_v14, 0  ;;  %2938 = vmatmul.mubr.msk.bf16.vlgmr.msra.gmra.mrb[0].mxu0 %vm445_vm2, %v3258_v18  ;;  %v3110_v56 = vld [vmem:[%s4022_s3 + $0x54] ss:$20 sps:$4 sm:$0xff]   ;;  %v3108_v57 = vld [vmem:[%s4022_s3 + $0x50] ss:$20 sps:$4 sm:$0xff]  }
  0x17   : > { %466 = vmatpush1.bf16.msra.mxu1 %v451_v13  ;;  %1491 = vmatprep.subr.bf16.mxu0 %v3104_v53  ;;  %v3113_v58 = vld [vmem:[%s4022_s3 + $0x7c] ss:$20 sps:$4 sm:$0xff]   ;;  %v3111_v59 = vld [vmem:[%s4022_s3 + $0x78] ss:$20 sps:$4 sm:$0xff]   ;;  %v3114_v61 = vld [vmem:[%s4022_s3 + $0xa0] ss:$20 sps:$4 sm:$0xff]  }
  0x18   : > { %2678 = vmatprep.subr.msk.bf16.mxu1 %vm449_vm1, %v437_v16  ;;  %1492 = vmatpush1.bf16.msra.mxu0 %v3102_v52  ;;  %v3116_v60 = vld [vmem:[%s4022_s3 + $0xa4] ss:$20 sps:$4 sm:$0xff]   ;;  %v3119_v62 = vld [vmem:[%s4022_s3 + $0xcc] ss:$20 sps:$4 sm:$0xff]   ;;  %v3117_v63 = vld [vmem:[%s4022_s3 + $0xc8] ss:$20 sps:$4 sm:$0xff]  }
  0x19   : > { %1493 = vmatprep.subr.bf16.mxu0 %v3107_v54  ;;  %v3122_v0 = vld [vmem:[%s4022_s3 + $0xf4] ss:$20 sps:$4 sm:$0xff]   ;;  %v3120_v1 = vld [vmem:[%s4022_s3 + $0xf0] ss:$20 sps:$4 sm:$0xff]  }
  0x1a   : > { %2677 = vmatmul.mubr.msk.bf16.vlgmr.msra.gmra.mrb[0].mxu1 %vm445_vm2, %v3258_v18  ;;  %v3084_v52 = vld [vmem:[%s4020_s1 + $0x1e0] ss:$8 sps:$4 sm:$0xff]   ;;  %v3089_v53 = vld [vmem:[%s4020_s1 + $0x1f4] ss:$8 sps:$4 sm:$0xff]  }
  0x1b   : > { %507 = vmatpush1.bf16.msra.mxu1 %v457_v17  ;;  %538 = vmatprep.mubr.bf16.mxu1 %v3255_v3  ;;  %v3042_v17 = vld [vmem:[%s4020_s1 + $0x100] ss:$8 sps:$4 sm:$0xff]  }
  0x1c   : > { %1045 = vmatprep.subr.bf16.mxu1 %v2996_v19  ;;  %1494 = vmatpush1.bf16.msra.mxu0 %v3105_v55  ;;  %v3047_v19 = vld [vmem:[%s4020_s1 + $0x114] ss:$8 sps:$4 sm:$0xff]   ;;  %v3087_v55 = vld [vmem:[%s4020_s1 + $0x1f0] ss:$8 sps:$4 sm:$0xff]  }
  0x1d   : > { %1495 = vmatprep.subr.bf16.mxu0 %v3110_v56  ;;  %v3092_v56 = vld [vmem:[%s4020_s1 + $0x204] ss:$8 sps:$4 sm:$0xff]  }
  0x20   : > { %1496 = vmatpush1.bf16.msra.mxu0 %v3108_v57 }
  0x21   : > { %1497 = vmatprep.subr.bf16.mxu0 %v3113_v58  ;;  %v3090_v58 = vld [vmem:[%s4020_s1 + $0x200] ss:$8 sps:$4 sm:$0xff]  }
  0x22   : > { %2679 = vmatmul.mubr.msk.bf16.vlgmr.msra.gmra.mrb[4].mxu1 %vm445_vm2, %v3258_v18 }
  0x23   : > { %1046 = vmatpush1.bf16.msra.mxu1 %v2994_v20  ;;  %v3045_v20 = vld [vmem:[%s4020_s1 + $0x110] ss:$8 sps:$4 sm:$0xff]  }
  0x24   : > { %1047 = vmatprep.subr.bf16.mxu1 %v2999_v21  ;;  %1498 = vmatpush1.bf16.msra.mxu0 %v3111_v59  ;;  %v3095_v59 = vld [vmem:[%s4020_s1 + $0x214] ss:$8 sps:$4 sm:$0xff]  }
  0x25   : > { %1499 = vmatprep.subr.bf16.mxu0 %v3116_v60  ;;  %v3093_v60 = vld [vmem:[%s4020_s1 + $0x210] ss:$8 sps:$4 sm:$0xff]  }
  0x27   : > { %1048 = vmatpush1.bf16.msra.mxu1 %v2997_v22  ;;  %v3050_v22 = vld [vmem:[%s4020_s1 + $0x124] ss:$8 sps:$4 sm:$0xff]  }
  0x28   : > { %1049 = vmatprep.subr.bf16.mxu1 %v3002_v23  ;;  %1500 = vmatpush1.bf16.msra.mxu0 %v3114_v61  ;;  %v3098_v61 = vld [vmem:[%s4020_s1 + $0x224] ss:$8 sps:$4 sm:$0xff]  }
  0x29   : > { %1501 = vmatprep.subr.bf16.mxu0 %v3119_v62  ;;  %v3096_v62 = vld [vmem:[%s4020_s1 + $0x220] ss:$8 sps:$4 sm:$0xff]  }
  0x2b   : > { %1050 = vmatpush1.bf16.msra.mxu1 %v3000_v24 }
  0x2c   : > { %1051 = vmatprep.subr.bf16.mxu1 %v3005_v25  ;;  %1502 = vmatpush1.bf16.msra.mxu0 %v3117_v63  ;;  %v3101_v63 = vld [vmem:[%s4020_s1 + $0x234] ss:$8 sps:$4 sm:$0xff]  }
  0x2d   : > { %1503 = vmatprep.subr.bf16.mxu0 %v3122_v0 }
  0x2f   : > { %1052 = vmatpush1.bf16.msra.mxu1 %v3003_v26 }
  0x30   : > { %1053 = vmatprep.subr.bf16.mxu1 %v3008_v27  ;;  %1504 = vmatpush1.bf16.msra.mxu0 %v3120_v1  ;;  %v3048_v27 = vld [vmem:[%s4020_s1 + $0x120] ss:$8 sps:$4 sm:$0xff]   ;;  %v3099_v1 = vld [vmem:[%s4020_s1 + $0x230] ss:$8 sps:$4 sm:$0xff]  }
  0x33   : > { %1054 = vmatpush1.bf16.msra.mxu1 %v3006_v28 }
  0x34   : > { %1055 = vmatprep.subr.bf16.mxu1 %v3011_v29  ;;  %v3053_v29 = vld [vmem:[%s4020_s1 + $0x134] ss:$8 sps:$4 sm:$0xff]  }
  0x37   : > { %1056 = vmatpush1.bf16.msra.mxu1 %v3009_v30  ;;  %v3051_v30 = vld [vmem:[%s4020_s1 + $0x130] ss:$8 sps:$4 sm:$0xff]  }
  0x38   : > { %1057 = vmatprep.subr.bf16.mxu1 %v3014_v31  ;;  %v3056_v31 = vld [vmem:[%s4020_s1 + $0x144] ss:$8 sps:$4 sm:$0xff]  }
  0x3b   : > { %1058 = vmatpush1.bf16.msra.mxu1 %v3012_v32  ;;  %v3054_v32 = vld [vmem:[%s4020_s1 + $0x140] ss:$8 sps:$4 sm:$0xff]  }
  0x3c   : > { %1059 = vmatprep.subr.bf16.mxu1 %v3017_v33  ;;  %v3059_v33 = vld [vmem:[%s4020_s1 + $0x154] ss:$8 sps:$4 sm:$0xff]  }
  0x3f   : > { %1060 = vmatpush1.bf16.msra.mxu1 %v3015_v34  ;;  %v3057_v34 = vld [vmem:[%s4020_s1 + $0x150] ss:$8 sps:$4 sm:$0xff]  }
  0x40   : > { %1061 = vmatprep.subr.bf16.mxu1 %v3020_v35  ;;  %v3062_v35 = vld [vmem:[%s4020_s1 + $0x164] ss:$8 sps:$4 sm:$0xff]  }
  0x43   : > { %1062 = vmatpush1.bf16.msra.mxu1 %v3018_v36  ;;  %v3060_v36 = vld [vmem:[%s4020_s1 + $0x160] ss:$8 sps:$4 sm:$0xff]  }
  0x44   : > { %1063 = vmatprep.subr.bf16.mxu1 %v3023_v37  ;;  %v3065_v37 = vld [vmem:[%s4020_s1 + $0x174] ss:$8 sps:$4 sm:$0xff]  }
  0x47   : > { %1064 = vmatpush1.bf16.msra.mxu1 %v3021_v38  ;;  %v3063_v38 = vld [vmem:[%s4020_s1 + $0x170] ss:$8 sps:$4 sm:$0xff]  }
  0x48   : > { %1065 = vmatprep.subr.bf16.mxu1 %v3026_v39  ;;  %v3068_v39 = vld [vmem:[%s4020_s1 + $0x184] ss:$8 sps:$4 sm:$0xff]  }
  0x4b   : > { %1066 = vmatpush1.bf16.msra.mxu1 %v3024_v40  ;;  %v3066_v40 = vld [vmem:[%s4020_s1 + $0x180] ss:$8 sps:$4 sm:$0xff]  }
  0x4c   : > { %1067 = vmatprep.subr.bf16.mxu1 %v3029_v41  ;;  %v3071_v41 = vld [vmem:[%s4020_s1 + $0x194] ss:$8 sps:$4 sm:$0xff]  }
  0x4f   : > { %1068 = vmatpush1.bf16.msra.mxu1 %v3027_v42  ;;  %v3069_v42 = vld [vmem:[%s4020_s1 + $0x190] ss:$8 sps:$4 sm:$0xff]  }
  0x50   : > { %1069 = vmatprep.subr.bf16.mxu1 %v3032_v43  ;;  %v3074_v43 = vld [vmem:[%s4020_s1 + $0x1a4] ss:$8 sps:$4 sm:$0xff]  }
  0x53   : > { %1070 = vmatpush1.bf16.msra.mxu1 %v3030_v44  ;;  %v3072_v44 = vld [vmem:[%s4020_s1 + $0x1a0] ss:$8 sps:$4 sm:$0xff]  }
  0x54   : > { %1071 = vmatprep.subr.bf16.mxu1 %v3035_v45  ;;  %v3077_v45 = vld [vmem:[%s4020_s1 + $0x1b4] ss:$8 sps:$4 sm:$0xff]  }
  0x57   : > { %1072 = vmatpush1.bf16.msra.mxu1 %v3033_v46  ;;  %v3075_v46 = vld [vmem:[%s4020_s1 + $0x1b0] ss:$8 sps:$4 sm:$0xff]  }
  0x58   : > { %1073 = vmatprep.subr.bf16.mxu1 %v3038_v47  ;;  %v3080_v47 = vld [vmem:[%s4020_s1 + $0x1c4] ss:$8 sps:$4 sm:$0xff]  }
  0x5b   : > { %1074 = vmatpush1.bf16.msra.mxu1 %v3036_v48  ;;  %v3078_v48 = vld [vmem:[%s4020_s1 + $0x1c0] ss:$8 sps:$4 sm:$0xff]  }
  0x5c   : > { %1075 = vmatprep.subr.bf16.mxu1 %v3041_v49  ;;  %v3083_v49 = vld [vmem:[%s4020_s1 + $0x1d4] ss:$8 sps:$4 sm:$0xff]  }
  0x5f   : > { %1076 = vmatpush1.bf16.msra.mxu1 %v3039_v50  ;;  %v3081_v50 = vld [vmem:[%s4020_s1 + $0x1d0] ss:$8 sps:$4 sm:$0xff]  }
  0x60   : > { %1086 = vmatprep.subr.bf16.mxu1 %v3044_v51  ;;  %v3086_v51 = vld [vmem:[%s4020_s1 + $0x1e4] ss:$8 sps:$4 sm:$0xff]  }
  0xe9   : > { %v3492_v2 = vpop.f32.mrb[0].mxu0 }
  0xea   : > { %v2939_v6 = vpop.f32.mrb[1].mxu0  ;;  %v591_v0 = vmul.f32 0.25, %v3492_v2  ;;  %v3128_v2 = vld [vmem:[%s4022_s3 + $0x144] ss:$20 sps:$4 sm:$0xff]  }
  0xeb   : > { %v584_v9 = vpop.f32.mrb[2].mxu0 }
  0xec   : > { %v2940_v12 = vpop.f32.mrb[3].mxu0  ;;  %v596_v6 = vpack.c.bf16 %v591_v0, %v591_v0  ;;  %v3123_v9 = vld [vmem:[%s4022_s3 + $0x118] ss:$20 sps:$4 sm:$0xff]   ;;  %v3176_v0 = vld [vmem:[%s4024_s5 + $0x90] sm:$0xff]  }
  0xed   : > { %v499_v8 = vpop.f32.mrb[0].mxu1  ;;  %v3630_v12 = vsub.s32 0, %v3330_v4 }
  0xee   : > { %v587_v10 = vmul.f32 0.25, %v499_v8  ;;  %v501_v11 = vpop.f32.mrb[1].mxu1  ;;  %v3125_v8 = vld [vmem:[%s4022_s3 + $0x11c] ss:$20 sps:$4 sm:$0xff]  }
  0xef   : > { %v588_v13 = vmul.f32 0.25, %v501_v11  ;;  %v503_v14 = vpop.f32.mrb[2].mxu1  ;;  %1505 = vmatprep.subr.bf16.mxu0 %v3125_v8  ;;  %v3131_v11 = vld [vmem:[%s4022_s3 + $0xc] ss:$20 sps:$4 sm:$0xff]   ;;  %v3179_v8 = vld [vmem:[%s4024_s5 + $0xd8] sm:$0xff]  }
  0xf0   : > { %v504_v15 = vpop.f32.mrb[3].mxu1  ;;  %v592_v18 = vpack.c.bf16 %v587_v10, %v587_v10  ;;  %1506 = vmatpush1.bf16.msra.mxu0 %v3123_v9  ;;  %v3126_v10 = vld [vmem:[%s4022_s3 + $0x140] ss:$20 sps:$4 sm:$0xff]   ;;  %v3636_v14 = vsub.s32 1, %v3330_v4  ;;  %v3180_v9 = vld [vmem:[%s4024_s5 + $0x98] sm:$0xff]  }
  0xf1   : > { %v593_v16 = vpack.c.bf16 %v588_v13, %v588_v13  ;;  %1507 = vmatprep.subr.bf16.mxu0 %v3128_v2  ;;  %v669_v13 = vld [vmem:[%s4021_s2] sm:$0x3] }
  0xf2   : > { %v1034_v15 = vrot.slane %v669_v13, %v3630_v12  ;;  %v3181_v2 = vld [vmem:[%s4024_s5 + $0x60] sm:$0xff]  }
  0xf3   : > { %1077 = vmatprep.mubr.bf16.mxu1 %v593_v16  ;;  %v1038_v16 = vrot.slane %v669_v13, %v3636_v14  ;;  %v3184_v13 = vld [vmem:[%s4024_s5 + $0xa0] sm:$0xff]  }
  0xf4   : > { %1078 = vmatmul.mubr.bf16.vlgmr.msra.gmra.mrb[8].mxu1 %v592_v18  ;;  %1508 = vmatpush1.bf16.msra.mxu0 %v3126_v10  ;;  %v3182_v10 = vld [vmem:[%s4024_s5 + $0x20] sm:$0xff]  }
  0xf5   : > { %1087 = vmatpush1.bf16.msra.mxu1 %v3042_v17  ;;  %v540_v21 = vpop.f32.mrb[4].mxu1  ;;  %1532 = vmatprep.subr.bf16.mxu0 %v3131_v11  ;;  %v3183_v11 = vld [vmem:[%s4024_s5 + $0xe0] sm:$0xff]  }
  0xf6   : > { %1088 = vmatprep.subr.bf16.mxu1 %v3047_v19  ;;  %v542_v23 = vpop.f32.mrb[5].mxu1  ;;  %v589_v54 = vmul.f32 0.25, %v540_v21 }
  0xf7   : > { %v590_v24 = vmul.f32 0.25, %v542_v23  ;;  %v544_v25 = vpop.f32.mrb[6].mxu1 }
  0xf8   : > { %v545_v26 = vpop.f32.mrb[7].mxu1  ;;  %v594_v57 = vpack.c.bf16 %v589_v54, %v589_v54  ;;  %v3166_v54 = vld [vmem:[%s4024_s5] sm:$0xff]  }
  0xf9   : > { %1089 = vmatpush1.bf16.msra.mxu1 %v3045_v20  ;;  %v595_v28 = vpack.c.bf16 %v590_v24, %v590_v24  ;;  %v3129_v26 = vld [vmem:[%s4022_s3 + $0x8] ss:$20 sps:$4 sm:$0xff]  }
  0xfa   : > { %1090 = vmatprep.subr.bf16.mxu1 %v3050_v22 }
  0xfb   : > { %1118 = vmatprep.mubr.bf16.mxu1 %v595_v28  ;;  %v3134_v28 = vld [vmem:[%s4022_s3 + $0x34] ss:$20 sps:$4 sm:$0xff]  }
  0xfd   : > { %1091 = vmatpush1.bf16.msra.mxu1 %v3048_v27 }
  0xfe   : > { %1092 = vmatprep.subr.bf16.mxu1 %v3053_v29  ;;  %v3132_v29 = vld [vmem:[%s4022_s3 + $0x30] ss:$20 sps:$4 sm:$0xff]  }
 0x101   : > { %1093 = vmatpush1.bf16.msra.mxu1 %v3051_v30  ;;  %v3137_v30 = vld [vmem:[%s4022_s3 + $0x5c] ss:$20 sps:$4 sm:$0xff]  }
 0x102   : > { %1094 = vmatprep.subr.bf16.mxu1 %v3056_v31  ;;  %v3135_v31 = vld [vmem:[%s4022_s3 + $0x58] ss:$20 sps:$4 sm:$0xff]  }
 0x105   : > { %1095 = vmatpush1.bf16.msra.mxu1 %v3054_v32  ;;  %v3140_v32 = vld [vmem:[%s4022_s3 + $0x84] ss:$20 sps:$4 sm:$0xff]  }
 0x106   : > { %1096 = vmatprep.subr.bf16.mxu1 %v3059_v33  ;;  %v3138_v33 = vld [vmem:[%s4022_s3 + $0x80] ss:$20 sps:$4 sm:$0xff]  }
 0x109   : > { %1097 = vmatpush1.bf16.msra.mxu1 %v3057_v34  ;;  %v3143_v34 = vld [vmem:[%s4022_s3 + $0xac] ss:$20 sps:$4 sm:$0xff]  }
 0x10a   : > { %1098 = vmatprep.subr.bf16.mxu1 %v3062_v35  ;;  %v3141_v35 = vld [vmem:[%s4022_s3 + $0xa8] ss:$20 sps:$4 sm:$0xff]  }
 0x10d   : > { %1099 = vmatpush1.bf16.msra.mxu1 %v3060_v36  ;;  %v3146_v36 = vld [vmem:[%s4022_s3 + $0xd4] ss:$20 sps:$4 sm:$0xff]  }
 0x10e   : > { %1100 = vmatprep.subr.bf16.mxu1 %v3065_v37  ;;  %v3144_v37 = vld [vmem:[%s4022_s3 + $0xd0] ss:$20 sps:$4 sm:$0xff]  }
 0x111   : > { %1101 = vmatpush1.bf16.msra.mxu1 %v3063_v38  ;;  %v3149_v38 = vld [vmem:[%s4022_s3 + $0xfc] ss:$20 sps:$4 sm:$0xff]  }
 0x112   : > { %1102 = vmatprep.subr.bf16.mxu1 %v3068_v39  ;;  %v3147_v39 = vld [vmem:[%s4022_s3 + $0xf8] ss:$20 sps:$4 sm:$0xff]  }
 0x115   : > { %1103 = vmatpush1.bf16.msra.mxu1 %v3066_v40  ;;  %v3152_v40 = vld [vmem:[%s4022_s3 + $0x124] ss:$20 sps:$4 sm:$0xff]  }
 0x116   : > { %1104 = vmatprep.subr.bf16.mxu1 %v3071_v41  ;;  %v3150_v41 = vld [vmem:[%s4022_s3 + $0x120] ss:$20 sps:$4 sm:$0xff]  }
 0x119   : > { %1105 = vmatpush1.bf16.msra.mxu1 %v3069_v42  ;;  %v3155_v42 = vld [vmem:[%s4022_s3 + $0x14c] ss:$20 sps:$4 sm:$0xff]  }
 0x11a   : > { %1106 = vmatprep.subr.bf16.mxu1 %v3074_v43  ;;  %v3153_v43 = vld [vmem:[%s4022_s3 + $0x148] ss:$20 sps:$4 sm:$0xff]  }
 0x11d   : > { %1107 = vmatpush1.bf16.msra.mxu1 %v3072_v44  ;;  %v3156_v44 = vld [vmem:[%s4022_s3 + $0x10] ss:$20 sps:$4 sm:$0xff]  }
 0x11e   : > { %1108 = vmatprep.subr.bf16.mxu1 %v3077_v45  ;;  %v3157_v45 = vld [vmem:[%s4022_s3 + $0x38] ss:$20 sps:$4 sm:$0xff]  }
 0x121   : > { %1109 = vmatpush1.bf16.msra.mxu1 %v3075_v46  ;;  %v3158_v46 = vld [vmem:[%s4022_s3 + $0x60] ss:$20 sps:$4 sm:$0xff]  }
 0x122   : > { %1110 = vmatprep.subr.bf16.mxu1 %v3080_v47  ;;  %v3159_v47 = vld [vmem:[%s4022_s3 + $0x88] ss:$20 sps:$4 sm:$0xff]  }
 0x125   : > { %1111 = vmatpush1.bf16.msra.mxu1 %v3078_v48  ;;  %v3160_v48 = vld [vmem:[%s4022_s3 + $0xb0] ss:$20 sps:$4 sm:$0xff]  }
 0x126   : > { %1112 = vmatprep.subr.bf16.mxu1 %v3083_v49  ;;  %v3161_v49 = vld [vmem:[%s4022_s3 + $0xd8] ss:$20 sps:$4 sm:$0xff]  }
 0x129   : > { %1113 = vmatpush1.bf16.msra.mxu1 %v3081_v50  ;;  %v3162_v50 = vld [vmem:[%s4022_s3 + $0x100] ss:$20 sps:$4 sm:$0xff]  }
 0x12a   : > { %1114 = vmatprep.subr.bf16.mxu1 %v3086_v51  ;;  %v3163_v51 = vld [vmem:[%s4022_s3 + $0x128] ss:$20 sps:$4 sm:$0xff]  }
 0x12d   : > { %1115 = vmatpush1.bf16.msra.mxu1 %v3084_v52  ;;  %v3164_v52 = vld [vmem:[%s4022_s3 + $0x150] ss:$20 sps:$4 sm:$0xff]  }
 0x12e   : > { %1116 = vmatprep.subr.bf16.mxu1 %v3089_v53  ;;  %v3165_v53 = vld [vmem:[%s4024_s5 + $0x40] sm:$0xff]  }
 0x131   : > { %1117 = vmatpush1.bf16.msra.mxu1 %v3087_v55  ;;  %v3167_v55 = vld [vmem:[%s4024_s5 + $0xc0] sm:$0xff]  }
 0x132   : > { %1127 = vmatprep.subr.bf16.mxu1 %v3092_v56  ;;  %v3168_v56 = vld [vmem:[%s4024_s5 + $0x80] sm:$0xff]  }
 0x134   : > { %1119 = vmatmul.mubr.bf16.vlgmr.msra.gmra.mrb[8].mxu1 %v594_v57  ;;  %v3169_v57 = vld [vmem:[%s4024_s5 + $0x48] sm:$0xff]  }
 0x135   : > { %1128 = vmatpush1.bf16.msra.mxu1 %v3090_v58  ;;  %1159 = vmatprep.mubr.bf16.mxu1 %v3255_v3  ;;  %v3170_v58 = vld [vmem:[%s4024_s5 + $0x8] sm:$0xff]  }
 0x136   : > { %1129 = vmatprep.subr.bf16.mxu1 %v3095_v59  ;;  %v3171_v59 = vld [vmem:[%s4024_s5 + $0xc8] sm:$0xff]  }
 0x139   : > { %1130 = vmatpush1.bf16.msra.mxu1 %v3093_v60  ;;  %v3172_v60 = vld [vmem:[%s4024_s5 + $0x88] sm:$0xff]  }
 0x13a   : > { %1131 = vmatprep.subr.bf16.mxu1 %v3098_v61  ;;  %v3173_v61 = vld [vmem:[%s4024_s5 + $0x50] sm:$0xff]  }
 0x13d   : > { %1132 = vmatpush1.bf16.msra.mxu1 %v3096_v62  ;;  %v3174_v62 = vld [vmem:[%s4024_s5 + $0x10] sm:$0xff]  }
 0x13e   : > { %1133 = vmatprep.subr.bf16.mxu1 %v3101_v63  ;;  %v3175_v63 = vld [vmem:[%s4024_s5 + $0xd0] sm:$0xff]  }
 0x141   : > { %1134 = vmatpush1.bf16.msra.mxu1 %v3099_v1  ;;  %v3177_v1 = vld [vmem:[%s4024_s5 + $0x58] sm:$0xff]  }
 0x142   : > { %2901 = vmatprep.subr.bf16.mxu1 %v3167_v55 }
 0x144   : > { %2753 = vmatmul.mubr.msk.bf16.vlgmr.msra.gmra.mrb[8].mxu1 %vm1041_vm3, %v596_v6  ;;  %v3178_v6 = vld [vmem:[%s4024_s5 + $0x18] sm:$0xff]  }
 0x145   : > { %2902 = vmatpush3.bf16.msra.mxu1 %v3168_v56 }
 0x146   : > { %2903 = vmatprep.subr.bf16.mxu1 %v3171_v59 }
 0x149   : > { %2904 = vmatpush3.bf16.msra.mxu1 %v3172_v60 }
 0x14a   : > { %2905 = vmatprep.subr.bf16.mxu1 %v3175_v63 }
 0x14d   : > { %2906 = vmatpush3.bf16.msra.mxu1 %v3176_v0 }
 0x14e   : > { %2907 = vmatprep.subr.bf16.mxu1 %v3179_v8 }
 0x151   : > { %2908 = vmatpush3.bf16.msra.mxu1 %v3180_v9 }
 0x152   : > { %2909 = vmatprep.subr.bf16.mxu1 %v3183_v11 }
 0x155   : > { %2910 = vmatpush3.bf16.msra.mxu1 %v3184_v13 }
 0x217   : > { %v1161_v17 = vpop.f32.mrb[8].mxu1 }
 0x218   : > { %v2969_v18 = vadd.f32 %v1161_v17, %v1034_v15  ;;  %v1163_v19 = vpop.f32.mrb[9].mxu1  ;;  %v3185_v15 = vld [vmem:[%s4024_s5 + $0x68] sm:$0xff]  }
 0x219   : > { %v2970_v20 = vadd.f32 %v1163_v19, %v1038_v16  ;;  %v1165_v21 = vpop.f32.mrb[10].mxu1  ;;  %v3186_v16 = vld [vmem:[%s4024_s5 + $0x28] sm:$0xff]   ;;  %v3189_v19 = vld [vmem:[%s4024_s5 + $0x70] sm:$0xff]  }
 0x21a   : > { %v1168_v22 = vmax.f32 %v2969_v18, 0.0  ;;  %v1166_v23 = vpop.f32.mrb[11].mxu1  ;;  %v3187_v17 = vld [vmem:[%s4024_s5 + $0xe8] sm:$0xff]   ;;  %v3191_v21 = vld [vmem:[%s4024_s5 + $0xf0] sm:$0xff]  }
 0x21b   : > { %v1169_v24 = vmax.f32 %v2970_v20, 0.0  ;;  %v3188_v18 = vld [vmem:[%s4024_s5 + $0xa8] sm:$0xff]   ;;  %v3190_v20 = vld [vmem:[%s4024_s5 + $0x30] sm:$0xff]   ;;  %2911 = vmatprep.subr.bf16.mxu1 %v3187_v17 }
 0x21c   : > { %v3643_v27 = vpack.c.bf16 %v1168_v22, %v1168_v22  ;;  %v3193_v22 = vld [vmem:[%s4024_s5 + $0x78] sm:$0xff]   ;;  %2912 = vmatpush3.bf16.msra.mxu1 %v3188_v18  ;;  %v3192_v23 = vld [vmem:[%s4024_s5 + $0xb0] sm:$0xff]  }
 0x21d   : > { %v1171_v25 = vpack.c.bf16 %v1169_v24, %v1169_v24  ;;  %2913 = vmatprep.subr.bf16.mxu1 %v3191_v21  ;;  %v3195_v24 = vld [vmem:[%s4024_s5 + $0xf8] sm:$0xff]   ;;  %v3243_v21 = vld [vmem:[%s3344_s22] sm:$0xff] }
 0x21f   : > { %2799 = vmatprep.mubr.msk.bf16.mxu0 %vm1487_vm4, %v1171_v25 }
 0x220   : > { %1524 = vmatmul.mubr.bf16.vlgmr.msra.gmra.mrb[4].mxu0 %v3643_v27  ;;  %2914 = vmatpush3.bf16.msra.mxu1 %v3192_v23 }
 0x221   : > { %1533 = vmatpush1.bf16.msra.mxu0 %v3129_v26  ;;  %2800 = vmatprep.mubr.msk.bf16.mxu0 %vm1487_vm4, %v1171_v25  ;;  %v3196_v26 = vld [vmem:[%s4024_s5 + $0xb8] sm:$0xff]  }
 0x222   : > { %1534 = vmatprep.subr.bf16.mxu0 %v3134_v28  ;;  %2915 = vmatprep.subr.bf16.mxu1 %v3195_v24 }
 0x224   : > { %2916 = vmatpush3.bf16.msra.mxu1 %v3196_v26 }
 0x225   : > { %1535 = vmatpush1.bf16.msra.mxu0 %v3132_v29 }
 0x226   : > { %1536 = vmatprep.subr.bf16.mxu0 %v3137_v30 }
 0x229   : > { %1537 = vmatpush1.bf16.msra.mxu0 %v3135_v31 }
 0x22a   : > { %1538 = vmatprep.subr.bf16.mxu0 %v3140_v32 }
 0x22d   : > { %1539 = vmatpush1.bf16.msra.mxu0 %v3138_v33 }
 0x22e   : > { %1540 = vmatprep.subr.bf16.mxu0 %v3143_v34 }
 0x231   : > { %1541 = vmatpush1.bf16.msra.mxu0 %v3141_v35 }
 0x232   : > { %1542 = vmatprep.subr.bf16.mxu0 %v3146_v36 }
 0x235   : > { %1543 = vmatpush1.bf16.msra.mxu0 %v3144_v37 }
 0x236   : > { %1544 = vmatprep.subr.bf16.mxu0 %v3149_v38 }
 0x239   : > { %1545 = vmatpush1.bf16.msra.mxu0 %v3147_v39 }
 0x23a   : > { %1546 = vmatprep.subr.bf16.mxu0 %v3152_v40 }
 0x23d   : > { %1547 = vmatpush1.bf16.msra.mxu0 %v3150_v41 }
 0x23e   : > { %1548 = vmatprep.subr.bf16.mxu0 %v3155_v42 }
 0x241   : > { %1549 = vmatpush1.bf16.msra.mxu0 %v3153_v43 }
 0x242   : > { %1573 = vmatprep.subr.bf16.mxu0 %v3255_v3 }
 0x244   : > { %1565 = vmatmul.mubr.bf16.vlgmr.msra.gmra.mrb[8].mxu0 %v3643_v27 }
 0x245   : > { %1574 = vmatpush1.bf16.msra.mxu0 %v3156_v44  ;;  %2801 = vmatprep.mubr.msk.bf16.mxu0 %vm1487_vm4, %v1171_v25  ;;  %v3194_v25 = vld [vmem:[%s4024_s5 + $0x38] sm:$0xff]  }
 0x246   : > { %1575 = vmatprep.subr.bf16.mxu0 %v3255_v3 }
 0x249   : > { %1576 = vmatpush1.bf16.msra.mxu0 %v3157_v45 }
 0x24a   : > { %1577 = vmatprep.subr.bf16.mxu0 %v3255_v3 }
 0x24d   : > { %1578 = vmatpush1.bf16.msra.mxu0 %v3158_v46 }
 0x24e   : > { %1579 = vmatprep.subr.bf16.mxu0 %v3255_v3 }
 0x251   : > { %1580 = vmatpush1.bf16.msra.mxu0 %v3159_v47 }
 0x252   : > { %1581 = vmatprep.subr.bf16.mxu0 %v3255_v3 }
 0x255   : > { %1582 = vmatpush1.bf16.msra.mxu0 %v3160_v48 }
 0x256   : > { %1583 = vmatprep.subr.bf16.mxu0 %v3255_v3 }
 0x259   : > { %1584 = vmatpush1.bf16.msra.mxu0 %v3161_v49 }
 0x25a   : > { %1585 = vmatprep.subr.bf16.mxu0 %v3255_v3 }
 0x25d   : > { %1586 = vmatpush1.bf16.msra.mxu0 %v3162_v50 }
 0x25e   : > { %1587 = vmatprep.subr.bf16.mxu0 %v3255_v3 }
 0x261   : > { %1588 = vmatpush1.bf16.msra.mxu0 %v3163_v51  ;;  %v1472_v51 = vsub.s32 2, %v3330_v4 }
 0x262   : > { %1589 = vmatprep.subr.bf16.mxu0 %v3255_v3 }
 0x265   : > { %1590 = vmatpush1.bf16.msra.mxu0 %v3164_v52  ;;  %v1476_v52 = vsub.s32 3, %v3330_v4 }
 0x266   : > { %2879 = vmatprep.subr.bf16.mxu0 %v3165_v53 }
 0x268   : > { %1606 = vmatmul.mubr.bf16.vlgmr.msra.gmra.mrb[12].mxu0 %v3643_v27  ;;  %v3835_v27 = vld [vmem:[%s4023_s4] sm:$0x1f] }
 0x269   : > { %2880 = vmatpush3.bf16.msra.mxu0 %v3166_v54  ;;  %v1465_v28 = vrot.slane %v3835_v27, %v3630_v12  ;;  %v1469_v29 = vrot.slane %v3835_v27, %v3636_v14  ;;  %v1473_v53 = vrot.slane %v3835_v27, %v1472_v51  ;;  %v1477_v54 = vrot.slane %v3835_v27, %v1476_v52 }
 0x26a   : > { %2881 = vmatprep.subr.bf16.mxu0 %v3169_v57 }
 0x26d   : > { %2882 = vmatpush3.bf16.msra.mxu0 %v3170_v58 }
 0x26e   : > { %2883 = vmatprep.subr.bf16.mxu0 %v3173_v61 }
 0x271   : > { %2884 = vmatpush3.bf16.msra.mxu0 %v3174_v62 }
 0x272   : > { %2885 = vmatprep.subr.bf16.mxu0 %v3177_v1 }
 0x275   : > { %2886 = vmatpush3.bf16.msra.mxu0 %v3178_v6 }
 0x276   : > { %2887 = vmatprep.subr.bf16.mxu0 %v3181_v2 }
 0x279   : > { %2888 = vmatpush3.bf16.msra.mxu0 %v3182_v10 }
 0x27a   : > { %2889 = vmatprep.subr.bf16.mxu0 %v3185_v15 }
 0x27d   : > { %2890 = vmatpush3.bf16.msra.mxu0 %v3186_v16 }
 0x27e   : > { %2891 = vmatprep.subr.bf16.mxu0 %v3189_v19 }
 0x281   : > { %2892 = vmatpush3.bf16.msra.mxu0 %v3190_v20 }
 0x282   : > { %2893 = vmatprep.subr.bf16.mxu0 %v3193_v22 }
 0x285   : > { %2894 = vmatpush3.bf16.msra.mxu0 %v3194_v25 }
 0x286   : > { %2941 = vmatprep.subr.bf16.mxu0 %v3256_v5 }
 0x2f3   : > { %v1525_v30 = vpop.f32.mrb[4].mxu0 }
 0x2f4   : > { %v1526_v31 = vadd.f32 %v1525_v30, %v1465_v28  ;;  %v1527_v32 = vpop.f32.mrb[5].mxu0  ;;  %v3197_v28 = vld [vmem:[%s4024_s5 + $0x100] sm:$0xff]  }
 0x2f5   : > { %v1528_v33 = vadd.f32 %v1527_v32, %v1469_v29  ;;  %v1529_v34 = vpop.f32.mrb[6].mxu0  ;;  %v1480_v29 = vsub.s32 4, %v3330_v4 }
 0x2f6   : > { %v1613_v35 = vadd.f32 3.0, %v1526_v31  ;;  %v1530_v36 = vpop.f32.mrb[7].mxu0  ;;  %v3198_v31 = vld [vmem:[%s4024_s5 + $0x108] sm:$0xff]   ;;  %v3199_v34 = vld [vmem:[%s4024_s5 + $0x110] sm:$0xff]  }
 0x2f7   : > { %v1614_v37 = vadd.f32 3.0, %v1528_v33  ;;  %v1481_v32 = vrot.slane %v3835_v27, %v1480_v29 }
 0x2f8   : > { %v1618_v38 = vmax.f32 %v1613_v35, 0.0 }
 0x2f9   : > { %v1619_v39 = vmax.f32 %v1614_v37, 0.0 }
 0x2fa   : > { %v1623_v40 = vmin.f32 %v1618_v38, 6.0 }
 0x2fb   : > { %v1624_v41 = vmin.f32 %v1619_v39, 6.0  ;;  %v3200_v39 = vld [vmem:[%s4024_s5 + $0x118] sm:$0xff]  }
 0x2fc   : > { %v1628_v42 = vmul.f32 0.16666667, %v1623_v40 }
 0x2fd   : > { %v1629_v43 = vmul.f32 0.16666667, %v1624_v41 }
 0x2fe   : > { %v1633_v44 = vpack.c.bf16 %v1628_v42, %v1628_v42 }
 0x2ff   : > { %v1634_v45 = vpack.c.bf16 %v1629_v43, %v1629_v43 }
 0x300   : > { %v1639_v46 = vpack.i.b16 %v1633_v44, %v1633_v44 }
 0x301   : > { %v1646_v47 = vpack.i.b16 %v1634_v45, %v1634_v45 }
 0x302   : > { %v1644_v48 = vrot.slane %v1639_v46, %v3630_v12 }
 0x303   : > { %v1651_v49 = vrot.slane %v1646_v47, %v3630_v12  ;;  %v3244_v47 = vld [vmem:[%s3344_s22 + $0x8] sm:$0x3] }
 0x305   : > { %v1678_v50 = vcombine.low %v1644_v48, %v1651_v49 }
 0x307   : > { %v1686_v18 = vrot.slane %v1678_v50, %v3337_v7  ;;  %v3201_v50 = vld [vmem:[%s4027_s8] ss:$20 sps:$4 sm:$0xff]  }
 0x317   : > { %v1566_v55 = vpop.f32.mrb[8].mxu0 }
 0x318   : > { %v1567_v56 = vadd.f32 %v1566_v55, %v1473_v53  ;;  %v1568_v57 = vpop.f32.mrb[9].mxu0  ;;  %v3203_v53 = vld [vmem:[%s4027_s8 + $0x4] ss:$20 sps:$4 sm:$0xff]   ;;  %v3206_v55 = vld [vmem:[%s4027_s8 + $0xc] ss:$20 sps:$4 sm:$0xff]  }
 0x319   : > { %v1569_v58 = vadd.f32 %v1568_v57, %v1477_v54  ;;  %v1570_v59 = vpop.f32.mrb[10].mxu0  ;;  %v3204_v54 = vld [vmem:[%s4027_s8 + $0x8] ss:$20 sps:$4 sm:$0xff]   ;;  %2422 = vmatprep.subr.bf16.mxu1 %v3206_v55 }
 0x31a   : > { %v1615_v60 = vadd.f32 3.0, %v1567_v56  ;;  %v1571_v61 = vpop.f32.mrb[11].mxu0  ;;  %v3212_v56 = vld [vmem:[%s4027_s8 + $0x34] ss:$20 sps:$4 sm:$0xff]  }
 0x31b   : > { %v1616_v62 = vadd.f32 3.0, %v1569_v58  ;;  %v3207_v57 = vld [vmem:[%s4027_s8 + $0x28] ss:$20 sps:$4 sm:$0xff]   ;;  %v3210_v58 = vld [vmem:[%s4027_s8 + $0x30] ss:$20 sps:$4 sm:$0xff]  }
 0x31c   : > { %v1620_v63 = vmax.f32 %v1615_v60, 0.0  ;;  %v3215_v59 = vld [vmem:[%s4027_s8 + $0x54] ss:$20 sps:$4 sm:$0xff]   ;;  %v3218_v60 = vld [vmem:[%s4027_s8 + $0x5c] ss:$20 sps:$4 sm:$0xff]  }
 0x31d   : > { %v1621_v0 = vmax.f32 %v1616_v62, 0.0  ;;  %v3213_v61 = vld [vmem:[%s4027_s8 + $0x50] ss:$20 sps:$4 sm:$0xff]   ;;  %v3216_v62 = vld [vmem:[%s4027_s8 + $0x58] ss:$20 sps:$4 sm:$0xff]  }
 0x31e   : > { %v1625_v1 = vmin.f32 %v1620_v63, 6.0  ;;  %v3221_v63 = vld [vmem:[%s4027_s8 + $0x7c] ss:$20 sps:$4 sm:$0xff]  }
 0x31f   : > { %v1626_v6 = vmin.f32 %v1621_v0, 6.0  ;;  %v3224_v0 = vld [vmem:[%s4027_s8 + $0x84] ss:$20 sps:$4 sm:$0xff]  }
 0x320   : > { %v1630_v8 = vmul.f32 0.16666667, %v1625_v1  ;;  %v3219_v1 = vld [vmem:[%s4027_s8 + $0x78] ss:$20 sps:$4 sm:$0xff]  }
 0x321   : > { %v1631_v9 = vmul.f32 0.16666667, %v1626_v6  ;;  %v3222_v6 = vld [vmem:[%s4027_s8 + $0x80] ss:$20 sps:$4 sm:$0xff]  }
 0x322   : > { %v1635_v2 = vpack.c.bf16 %v1630_v8, %v1630_v8  ;;  %v3227_v8 = vld [vmem:[%s4027_s8 + $0xa4] ss:$20 sps:$4 sm:$0xff]  }
 0x323   : > { %v1636_v10 = vpack.c.bf16 %v1631_v9, %v1631_v9  ;;  %v3230_v9 = vld [vmem:[%s4027_s8 + $0xac] ss:$20 sps:$4 sm:$0xff]  }
 0x324   : > { %v1653_v11 = vpack.i.b16 %v1635_v2, %v1635_v2  ;;  %v3225_v2 = vld [vmem:[%s4027_s8 + $0xa0] ss:$20 sps:$4 sm:$0xff]  }
 0x325   : > { %v1660_v13 = vpack.i.b16 %v1636_v10, %v1636_v10  ;;  %v3228_v10 = vld [vmem:[%s4027_s8 + $0xa8] ss:$20 sps:$4 sm:$0xff]  }
 0x326   : > { %v1658_v15 = vrot.slane %v1653_v11, %v3630_v12  ;;  %v3233_v11 = vld [vmem:[%s4027_s8 + $0xcc] ss:$20 sps:$4 sm:$0xff]  }
 0x327   : > { %v1665_v16 = vrot.slane %v1660_v13, %v3630_v12  ;;  %v3231_v13 = vld [vmem:[%s4027_s8 + $0xc8] ss:$20 sps:$4 sm:$0xff]  }
 0x329   : > { %v1679_v17 = vcombine.low %v1658_v15, %v1665_v16  ;;  %v3236_v15 = vld [vmem:[%s4027_s8 + $0xd4] ss:$20 sps:$4 sm:$0xff]   ;;  %v3234_v16 = vld [vmem:[%s4027_s8 + $0xd0] ss:$20 sps:$4 sm:$0xff]  }
 0x32b   : > { %v1693_v19 = vrot.slane %v1679_v17, %v3337_v7 }
 0x32d   : > { %v1694_v20 = vcombine.low %v1686_v18, %v1693_v19  ;;  %v2802_v18 = vld [vmem:[%s4025_s6] ss:$0 sm:$0xff] }
 0x32f   : > { %v1704_v22 = vmul.bf16 %v3243_v21, %v1694_v20 }
 0x331   : > { %v1794_v23 = vrot.slane %v1704_v22, %v3337_v7  ;;  %v1787_v24 = vcombine.high %v1704_v22, %v1704_v22 }
 0x333   : > { %v1802_v25 = vcombine.high %v1794_v23, %v1794_v23  ;;  %v1801_v26 = vrot.slane %v1787_v24, %v3337_v7 }
 0x335   : > { %2066 = vmatprep.mubr.bf16.mxu0 %v1802_v25  ;;  %v1803_v30 = vcombine.high %v1801_v26, %v1801_v26 }
 0x336   : > { %2067 = vmatmul.mubr.bf16.vlgmr.msra.gmra.mrb[16].mxu0 %v1794_v23 }
 0x337   : > { %2106 = vmatprep.mubr.bf16.mxu1 %v1803_v30  ;;  %2942 = vmatpush3.bf16.msra.mxu0 %v3197_v28 }
 0x338   : > { %2107 = vmatmul.mubr.bf16.vlgmr.msra.gmra.mrb[12].mxu1 %v1801_v26  ;;  %2943 = vmatprep.subr.bf16.mxu0 %v3256_v5 }
 0x339   : > { %2949 = vmatprep.mubr.msk.bf16.mxu0 %vm3257_vm0, %v3256_v5  ;;  %2454 = vmatprep.mubr.bf16.mxu1 %v3255_v3 }
 0x33a   : > { %2423 = vmatpush1.bf16.msra.mxu1 %v3204_v54 }
 0x33b   : > { %v1607_v33 = vpop.f32.mrb[12].mxu0  ;;  %2944 = vmatpush3.bf16.msra.mxu0 %v3198_v31  ;;  %2424 = vmatprep.subr.bf16.mxu1 %v3212_v56 }
 0x33c   : > { %v1608_v35 = vadd.f32 %v1607_v33, %v1481_v32  ;;  %v1609_v36 = vpop.f32.mrb[13].mxu0  ;;  %2945 = vmatprep.subr.bf16.mxu0 %v3256_v5  ;;  %v2154_v32 = vld [vmem:[%s405_s23] sm:$0x3] }
 0x33d   : > { %v1610_v37 = vpop.f32.mrb[14].mxu0  ;;  %v2155_v33 = vunpack.c.l.bf16 %v2154_v32 }
 0x33e   : > { %v1617_v27 = vadd.f32 3.0, %v1608_v35  ;;  %v1611_v38 = vpop.f32.mrb[15].mxu0  ;;  %2425 = vmatpush1.bf16.msra.mxu1 %v3210_v58 }
 0x33f   : > { %2946 = vmatpush3.bf16.msra.mxu0 %v3199_v34  ;;  %2426 = vmatprep.subr.bf16.mxu1 %v3218_v60 }
 0x340   : > { %v1622_v40 = vmax.f32 %v1617_v27, 0.0  ;;  %2947 = vmatprep.subr.bf16.mxu0 %v3256_v5 }
 0x342   : > { %v1627_v41 = vmin.f32 %v1622_v40, 6.0  ;;  %2427 = vmatpush1.bf16.msra.mxu1 %v3216_v62 }
 0x343   : > { %2948 = vmatpush3.bf16.msra.mxu0 %v3200_v39  ;;  %2428 = vmatprep.subr.bf16.mxu1 %v3224_v0  ;;  %v3237_v39 = vld [vmem:[%s4027_s8 + $0x10] ss:$20 sps:$4 sm:$0xff]  }
 0x344   : > { %v1632_v42 = vmul.f32 0.16666667, %v1627_v41  ;;  %2381 = vmatprep.subr.bf16.mxu0 %v3203_v53  ;;  %v3238_v41 = vld [vmem:[%s4027_s8 + $0x38] ss:$20 sps:$4 sm:$0xff]  }
 0x346   : > { %v1637_v43 = vpack.c.bf16 %v1632_v42, %v1632_v42  ;;  %2429 = vmatpush1.bf16.msra.mxu1 %v3222_v6  ;;  %v3239_v42 = vld [vmem:[%s4027_s8 + $0x60] ss:$20 sps:$4 sm:$0xff]  }
 0x347   : > { %2430 = vmatprep.subr.bf16.mxu1 %v3230_v9 }
 0x348   : > { %v1667_v44 = vpack.i.b16 %v1637_v43, %v1637_v43  ;;  %v3240_v43 = vld [vmem:[%s4027_s8 + $0x88] ss:$20 sps:$4 sm:$0xff]  }
 0x34a   : > { %v1672_v45 = vrot.slane %v1667_v44, %v3630_v12  ;;  %2431 = vmatpush1.bf16.msra.mxu1 %v3228_v10  ;;  %v3241_v44 = vld [vmem:[%s4027_s8 + $0xb0] ss:$20 sps:$4 sm:$0xff]  }
 0x34b   : > { %2432 = vmatprep.subr.bf16.mxu1 %v3236_v15 }
 0x34c   : > { %v1701_v46 = vrot.slane %v1672_v45, %v3337_v7  ;;  %v3242_v45 = vld [vmem:[%s4027_s8 + $0xd8] ss:$20 sps:$4 sm:$0xff]  }
 0x34e   : > { %v1705_v48 = vmul.bf16 %v3244_v47, %v1701_v46  ;;  %2433 = vmatpush1.bf16.msra.mxu1 %v3234_v16  ;;  %v2194_v46 = vld [vmem:[%s4028_s9] sm:$0x1f] }
 0x34f   : > { %v2199_v47 = vrot.slane %v2194_v46, %v3630_v12 }
 0x350   : > { %v1810_v49 = vrot.slane %v1705_v48, %v3337_v7  ;;  %v2207_v48 = vrot.slane %v2194_v46, %v1472_v51 }
 0x352   : > { %2950 = vmatmul.mubr.msk.bf16.vlgmr.msra.gmra.mrb[20].mxu0 %vm1041_vm3, %v1810_v49  ;;  %v2203_v49 = vrot.slane %v2194_v46, %v3636_v14 }
 0x353   : > { %2413 = vmatprep.mubr.bf16.mxu0 %v3255_v3  ;;  %v3209_v3 = vld [vmem:[%s4027_s8 + $0x2c] ss:$20 sps:$4 sm:$0xff]   ;;  %2382 = vmatpush1.bf16.msra.mxu0 %v3201_v50  ;;  %v2211_v50 = vrot.slane %v2194_v46, %v1476_v52 }
 0x354   : > { %2383 = vmatprep.subr.bf16.mxu0 %v3209_v3 }
 0x357   : > { %2384 = vmatpush1.bf16.msra.mxu0 %v3207_v57 }
 0x358   : > { %2385 = vmatprep.subr.bf16.mxu0 %v3215_v59 }
 0x35b   : > { %2386 = vmatpush1.bf16.msra.mxu0 %v3213_v61 }
 0x35c   : > { %2387 = vmatprep.subr.bf16.mxu0 %v3221_v63 }
 0x35f   : > { %2388 = vmatpush1.bf16.msra.mxu0 %v3219_v1 }
 0x360   : > { %2389 = vmatprep.subr.bf16.mxu0 %v3227_v8 }
 0x363   : > { %2390 = vmatpush1.bf16.msra.mxu0 %v3225_v2 }
 0x364   : > { %2391 = vmatprep.subr.bf16.mxu0 %v3233_v11 }
 0x367   : > { %2392 = vmatpush1.bf16.msra.mxu0 %v3231_v13 }
 0x368   : > { %2953 = vmatprep.subr.bf16.mxu0 %v3256_v5 }
 0x409   : > { %v2895_v17 = vpop.f32.mrb[16].mxu0 }
 0x40a   : > { %v2896_v19 = vpop.f32.mrb[17].mxu0 }
 0x40b   : > { %v2897_v20 = vadd.f32 %v2896_v19, %v2895_v17  ;;  %v2898_v21 = vpop.f32.mrb[18].mxu0  ;;  %v2917_v22 = vpop.f32.mrb[12].mxu1 }
 0x40c   : > { %v2899_v23 = vpop.f32.mrb[19].mxu0  ;;  %v2918_v24 = vpop.f32.mrb[13].mxu1 }
 0x40d   : > { %v2069_v25 = vadd.f32 %v2897_v20, %v2802_v18  ;;  %v2919_v26 = vadd.f32 %v2918_v24, %v2917_v22  ;;  %v2920_v28 = vpop.f32.mrb[14].mxu1 }
 0x40e   : > { %v2921_v30 = vpop.f32.mrb[15].mxu1 }
 0x40f   : > { %v2109_v31 = vadd.f32 %v2919_v26, %v2069_v25  ;;  %v2215_v26 = vrot.slane %v2194_v46, %v1480_v29 }
 0x425   : > { %v2148_v34 = vpop.f32.mrb[20].mxu0 }
 0x426   : > { %v2149_v35 = vadd.f32 %v2148_v34, %v2109_v31  ;;  %v2951_v36 = vpop.f32.mrb[21].mxu0 }
 0x427   : > { %v2151_v37 = vpop.f32.mrb[22].mxu0 }
 0x428   : > { %v2156_v27 = vadd.f32 %v2155_v33, %v2149_v35  ;;  %v2952_v38 = vpop.f32.mrb[23].mxu0 }
 0x42a   : > { %v2157_v40 = vpack.c.bf16 %v2156_v27, %v2156_v27 }
 0x42c   : > { %2568 = vst.msk [vmem:[%s414_s25] sm:$0x3] %vm2567_vm5, %v2157_v40  ;;  %2870 = vmatmul.mubr.msk.bf16.vlgmr.msra.gmra.mrb[24].mxu0 %vm2377_vm6, %v2157_v40  ;;  %2871 = vmatmul.mubr.msk.bf16.vlgmr.msra.gmra.mrb[16].mxu1 %vm2377_vm6, %v2157_v40 }
 0x42d   : > { %2954 = vmatpush3.bf16.msra.mxu0 %v3237_v39  ;;  %2965 = vmatprep.mubr.msk.bf16.mxu0 %vm3257_vm0, %v3256_v5 }
 0x42e   : > { %2955 = vmatprep.subr.bf16.mxu0 %v3256_v5 }
 0x431   : > { %2956 = vmatpush3.bf16.msra.mxu0 %v3238_v41 }
 0x432   : > { %2957 = vmatprep.subr.bf16.mxu0 %v3256_v5 }
 0x435   : > { %2958 = vmatpush3.bf16.msra.mxu0 %v3239_v42 }
 0x436   : > { %2959 = vmatprep.subr.bf16.mxu0 %v3256_v5 }
 0x439   : > { %2960 = vmatpush3.bf16.msra.mxu0 %v3240_v43 }
 0x43a   : > { %2961 = vmatprep.subr.bf16.mxu0 %v3256_v5 }
 0x43d   : > { %2962 = vmatpush3.bf16.msra.mxu0 %v3241_v44 }
 0x43e   : > { %2963 = vmatprep.subr.bf16.mxu0 %v3256_v5 }
 0x441   : > { %2964 = vmatpush3.bf16.msra.mxu0 %v3242_v45 }
 0x444   : > { %2966 = vmatmul.mubr.msk.bf16.vlgmr.msra.gmra.mrb[28].mxu0 %vm2377_vm6, %v2157_v40 }
 0x4ff   : > { %v2415_v53 = vpop.f32.mrb[24].mxu0  ;;  %v2456_v54 = vpop.f32.mrb[16].mxu1 }
 0x500   : > { %v2416_v5 = vadd.f32 %v2415_v53, %v2199_v47  ;;  %v2457_v55 = vadd.f32 %v2456_v54, %v2207_v48  ;;  %v2417_v3 = vpop.f32.mrb[25].mxu0  ;;  %v2458_v56 = vpop.f32.mrb[17].mxu1 }
 0x501   : > { %v2418_v57 = vadd.f32 %v2417_v3, %v2203_v49  ;;  %v2459_v58 = vadd.f32 %v2458_v56, %v2211_v50  ;;  %v2419_v59 = vpop.f32.mrb[26].mxu0  ;;  %v2460_v60 = vpop.f32.mrb[18].mxu1 }
 0x502   : > { %v2503_v61 = vadd.f32 3.0, %v2416_v5  ;;  %v2505_v12 = vadd.f32 3.0, %v2457_v55  ;;  %v2420_v62 = vpop.f32.mrb[27].mxu0  ;;  %v2461_v63 = vpop.f32.mrb[19].mxu1 }
 0x503   : > { %v2504_v51 = vadd.f32 3.0, %v2418_v57  ;;  %v2506_v0 = vadd.f32 3.0, %v2459_v58 }
 0x504   : > { %v2508_v14 = vmax.f32 %v2503_v61, 0.0  ;;  %v2510_v1 = vmax.f32 %v2505_v12, 0.0 }
 0x505   : > { %v2509_v6 = vmax.f32 %v2504_v51, 0.0  ;;  %v2511_v52 = vmax.f32 %v2506_v0, 0.0 }
 0x506   : > { %v2513_v8 = vmin.f32 %v2508_v14, 6.0  ;;  %v2515_v9 = vmin.f32 %v2510_v1, 6.0 }
 0x507   : > { %v2514_v2 = vmin.f32 %v2509_v6, 6.0  ;;  %v2516_v10 = vmin.f32 %v2511_v52, 6.0 }
 0x508   : > { %v2518_v11 = vmul.f32 %v2513_v8, %v2416_v5  ;;  %v2520_v13 = vmul.f32 %v2515_v9, %v2457_v55 }
 0x509   : > { %v2519_v15 = vmul.f32 %v2514_v2, %v2418_v57  ;;  %v2521_v16 = vmul.f32 %v2516_v10, %v2459_v58 }
 0x50a   : > { %v2523_v17 = vmul.f32 0.16666667, %v2518_v11  ;;  %v2525_v18 = vmul.f32 0.16666667, %v2520_v13 }
 0x50b   : > { %v2524_v19 = vmul.f32 0.16666667, %v2519_v15  ;;  %v2526_v20 = vmul.f32 0.16666667, %v2521_v16 }
 0x50d   : > { %v2873_v21 = vpack.c.bf16 %v2524_v19, %v2523_v17  ;;  %v2874_v22 = vpack.c.bf16 %v2526_v20, %v2525_v18 }
 0x50f   : > { %v2546_v23 = vrot.slane %v2873_v21, %v3337_v7  ;;  %v2553_v24 = vrot.slane %v2874_v22, %v3337_v7 }
 0x511   : > { %v2554_v25 = vcombine.low %v2546_v23, %v2553_v24 }
 0x513   : > { %2564 = vst [vmem:[%s410_s26] sm:$0xff] %v2554_v25 }
 0x517   : > { %v2497_v28 = vpop.f32.mrb[28].mxu0 }
 0x518   : > { %v2498_v30 = vadd.f32 %v2497_v28, %v2215_v26  ;;  %v2967_v31 = vpop.f32.mrb[29].mxu0 }
 0x519   : > { %v2500_v32 = vpop.f32.mrb[30].mxu0 }
 0x51a   : > { %v2507_v33 = vadd.f32 3.0, %v2498_v30  ;;  %v2968_v34 = vpop.f32.mrb[31].mxu0 }
 0x51c   : > { %v2512_v35 = vmax.f32 %v2507_v33, 0.0 }
 0x51e   : > { %v2517_v36 = vmin.f32 %v2512_v35, 6.0 }
 0x520   : > { %v2522_v37 = vmul.f32 %v2517_v36, %v2498_v30 }
 0x522   : > { %v2527_v27 = vmul.f32 0.16666667, %v2522_v37 }
 0x524   : > { %v2532_v38 = vpack.c.bf16 %v2527_v27, %v2527_v27 }
 0x526   : > { %v2561_v39 = vrot.slane %v2532_v38, %v3337_v7 }
 0x528   : > { %2566 = vst.msk [vmem:[%s410_s26 + $0x8] sm:$0x3] %vm2565_vm7, %v2561_v39 }
 0x529 PF: > { %s22_s17 = sadd.s32 1, %s3252_s17  }
 0x52a   : > { %p19_p4 = scmp.ge.s32.totalorder %s22_s17, 4  }
 0x52c   :  { %21 = sbr.rel (!%p19_p4) target bundleno = 1 (0x1), region = 105 }

// kernel: ball_localization_forward.21
= control target key start
LH: loop header
LB: loop body
LE: loop exit
PB: predicated region body
PF: predicated region fallthrough
CT: control target
= control target key end

     0   :  { %s5494_s0 = inlined_call_operand.vmem [shape: bf16[2,4,576], index: 0, kind: input, shape index: {}]   ;;  %s5495_s1 = inlined_call_operand.vmem [shape: bf16[576,144], index: 1, kind: input, shape index: {}]   ;;  %s5496_s2 = inlined_call_operand.vmem [shape: f32[1,144], index: 2, kind: input, shape index: {}]   ;;  %s5497_s3 = inlined_call_operand.vmem [shape: bf16[144,576], index: 3, kind: input, shape index: {}]   ;;  %s5498_s4 = inlined_call_operand.vmem [shape: f32[1,576], index: 4, kind: input, shape index: {}]   ;;  %s5499_s5 = inlined_call_operand.vmem [shape: bf16[576,96], index: 5, kind: input, shape index: {}]   ;;  %s5500_s6 = inlined_call_operand.vmem [shape: f32[1,96], index: 6, kind: input, shape index: {}]   ;;  %s5501_s7 = inlined_call_operand.vmem [shape: bf16[2,4,96], index: 7, kind: input, shape index: {}]   ;;  %s5502_s8 = inlined_call_operand.vmem [shape: bf16[96,576], index: 8, kind: input, shape index: {}]   ;;  %s5503_s9 = inlined_call_operand.vmem [shape: f32[1,576], index: 9, kind: input, shape index: {}]   ;;  %s5504_s10 = inlined_call_operand.vmem [shape: f32[576,256], index: 10, kind: input, shape index: {}]   ;;  %s5505_s11 = inlined_call_operand.vmem [shape: f32[1,256], index: 11, kind: input, shape index: {}]   ;;  %s5506_s12 = inlined_call_operand.vmem [shape: f32[256,2], index: 12, kind: input, shape index: {}]   ;;  %s5507_s13 = inlined_call_operand.vmem [shape: f32[1,2], index: 13, kind: input, shape index: {}]   ;;  %s5508_s14 = inlined_call_operand.hbm [shape: f32[2,1,2], index: 14, kind: output, shape index: {}]  }
   0x1   :  { %5513 = sst [smem:[#allocation9_spill]] %s5494_s0 }
   0x2   :  { %19 = vsyncpa [#allocation3], 0 }
   0x3   :  { %21 = vsyncpa [#allocation3 + $0x1], 0  ;;  %s4164_s29 = smov 0   ;;  %s4166_s30 = smov 0  }
   0x4   :  { %s4168_s15 = smov 0   ;;  %s4170_s16 = smov 0  }
   0x5 LB: > { %5514 = sst [smem:[#allocation5_spill]] %s4077_s15  ;;  %s4185_s17 = sadd.s32 4294967295, %s4081_s16   ;;  %s4081_s16 = sphi %s4170_s16, %s5522_s16   ;;  %s4077_s15 = sphi %s4168_s15, %s5524_s15   ;;  %s4073_s30 = sphi %s4166_s30, %s5526_s30   ;;  %s4069_s29 = sphi %s4164_s29, %s5525_s29  }
   0x6   : > { %s3197_s18 = sadd.s32 4294967294, %s4081_s16   ;;  %s4189_s19 = sadd.s32 1, %s4081_s16  }
   0x7   : > { %5515 = sst [smem:[#allocation6_spill]] %s4189_s19  ;;  %s338_s20 = sadd.s32 1, %s4077_s15 }
   0x8   : > { %s335_s21 = ssub.s32 %s4081_s16, %s4189_s19  ;;  %p348_p0 = scmp.ne.s32.totalorder %s4077_s15, %s4073_s30 }
   0x9   : > { %p336_p1 = scmp.eq.s32.totalorder %s335_s21, 0  ;;  %p349_p2 = scmp.eq.s32.totalorder %s4185_s17, 1 }
   0xa   : > { %p354_p3 = scmp.ne.s32.totalorder %s4073_s30, %s4069_s29  ;;  %p355_p4 = scmp.eq.s32.totalorder %s3197_s18, 1 }
   0xb   : > { %s4200_s22 = scalar_select %p336_p1, %s4077_s15, %s338_s20  }
   0xc   : > { %p4202_p5 = por %p349_p2, %p348_p0  ;;  %p4206_p6 = por %p355_p4, %p354_p3 }
   0xd   : > { %5516 = sst [smem:[#allocation7_spill]] %s4200_s22  ;;  %p3200_p7 = scmp.ge.s32.totalorder %s4081_s16, 1 }
   0xe   : > { %s5518_s24 = scalar_select %p4206_p6, 1, 0 }
   0xf   : > { %p424_p8 = scmp.lt.s32.totalorder %s4081_s16, 3 }
  0x10   : > { %5519 = sst [smem:[#allocation8_spill]] %s5518_s24 }
  0x11   : > { %p425_p9 = pnand %p3200_p7, %p424_p8 }
  0x12   : > { %p473_p10 = scmp.lt.s32.totalorder (!%p425_p9), %s4185_s17, 1  ;;  %v492_v0 = vlaneseq (!%p425_p9)  ;;  %v4083_v1 = vmov (!%p425_p9), 1983009808   ;;  %v4084_v3 = vmov (!%p425_p9), 0   ;;  %s5520_s0 = sld [smem:[#allocation9_spill]] (!%p425_p9)  ;;  %vm516_vm0 = vcmask (!%p425_p9), 1041408  }
  0x13   : > { %428 = sbr.rel (%p425_p9) target bundleno = 1790 (0x6fe), region = 76  ;;  %v490_v2 = vunpack.c.l.s4 (!%p425_p9), %v4083_v1  ;;  %605 = vmatprep.mubr.bf16.mxu1 (!%p425_p9), %v4084_v3  ;;  %564 = vmatprep.mubr.bf16.mxu0 (!%p425_p9), %v4084_v3  ;;  %v3769_v16 = vld [vmem:[%s5495_s1 + $0x104] ss:$8 sps:$4 sm:$0xff] (!%p425_p9)   ;;  %vm512_vm1 = vcmask (!%p425_p9), 31744   ;;  %v4085_v17 = vmov (!%p425_p9), 0.0   ;;  %vm4087_vm2 = vmmov (!%p425_p9), 0  }
  0x14   : > { %v4218_v4 = vshrl.u32 (!%p425_p9), %v492_v0, 7  ;;  %v3775_v19 = vld [vmem:[%s5495_s1 + $0x4] ss:$8 sps:$4 sm:$0xff] (!%p425_p9)   ;;  %v3767_v20 = vld [vmem:[%s5495_s1 + $0x100] ss:$8 sps:$4 sm:$0xff] (!%p425_p9)   ;;  %vm1108_vm3 = vcmask (!%p425_p9), 523264  }
  0x15   : > { %v491_v5 = vunpack.c.0.s8 (!%p425_p9), %v490_v2  ;;  %v4086_v21 = vmov (!%p425_p9), 1065369472   ;;  %v3772_v22 = vld [vmem:[%s5495_s1 + $0x114] ss:$8 sps:$4 sm:$0xff] (!%p425_p9)   ;;  %v3770_v23 = vld [vmem:[%s5495_s1 + $0x110] ss:$8 sps:$4 sm:$0xff] (!%p425_p9)  }
  0x16   : > { %v3778_v24 = vld [vmem:[%s5495_s1 + $0x124] ss:$8 sps:$4 sm:$0xff] (!%p425_p9)   ;;  %v3773_v25 = vld [vmem:[%s5495_s1] ss:$8 sps:$4 sm:$0xff] (!%p425_p9)   ;;  %v3781_v26 = vld [vmem:[%s5495_s1 + $0x14] ss:$8 sps:$4 sm:$0xff] (!%p425_p9)  }
  0x17   : > { %v4227_v6 = vsub.s32 (!%p425_p9), %v491_v5, %v4218_v4  ;;  %v3776_v27 = vld [vmem:[%s5495_s1 + $0x120] ss:$8 sps:$4 sm:$0xff] (!%p425_p9)   ;;  %v3784_v28 = vld [vmem:[%s5495_s1 + $0x134] ss:$8 sps:$4 sm:$0xff] (!%p425_p9)   ;;  %v3779_v29 = vld [vmem:[%s5495_s1 + $0x10] ss:$8 sps:$4 sm:$0xff] (!%p425_p9)  }
  0x18   : > { %v3787_v30 = vld [vmem:[%s5495_s1 + $0x24] ss:$8 sps:$4 sm:$0xff] (!%p425_p9)   ;;  %v3782_v31 = vld [vmem:[%s5495_s1 + $0x130] ss:$8 sps:$4 sm:$0xff] (!%p425_p9)   ;;  %v3785_v33 = vld [vmem:[%s5495_s1 + $0x20] ss:$8 sps:$4 sm:$0xff] (!%p425_p9)  }
  0x19   : > { %v3790_v32 = vld [vmem:[%s5495_s1 + $0x144] ss:$8 sps:$4 sm:$0xff] (!%p425_p9)   ;;  %v3793_v34 = vld [vmem:[%s5495_s1 + $0x34] ss:$8 sps:$4 sm:$0xff] (!%p425_p9)   ;;  %v3788_v35 = vld [vmem:[%s5495_s1 + $0x140] ss:$8 sps:$4 sm:$0xff] (!%p425_p9)  }
  0x1a   : > { %s4216_s25 = scalar_select %p473_p10, %s4185_s17, 1  ;;  %v3796_v36 = vld [vmem:[%s5495_s1 + $0x154] ss:$8 sps:$4 sm:$0xff]   ;;  %v3791_v37 = vld [vmem:[%s5495_s1 + $0x30] ss:$8 sps:$4 sm:$0xff]   ;;  %vm1554_vm4 = vcmask 130048  }
  0x1b   : > { %v3799_v38 = vld [vmem:[%s5495_s1 + $0x44] ss:$8 sps:$4 sm:$0xff]   ;;  %v3794_v39 = vld [vmem:[%s5495_s1 + $0x150] ss:$8 sps:$4 sm:$0xff]   ;;  %v3797_v41 = vld [vmem:[%s5495_s1 + $0x40] ss:$8 sps:$4 sm:$0xff]  }
  0x1c   : > { %s3721_s26 = smul.u32 10, %s4216_s25  ;;  %v3802_v40 = vld [vmem:[%s5495_s1 + $0x164] ss:$8 sps:$4 sm:$0xff]   ;;  %v3800_v42 = vld [vmem:[%s5495_s1 + $0x160] ss:$8 sps:$4 sm:$0xff]   ;;  %vm2444_vm5 = vcmask 785408  }
  0x1d   : > { %v3805_v43 = vld [vmem:[%s5495_s1 + $0x54] ss:$8 sps:$4 sm:$0xff]   ;;  %v3803_v44 = vld [vmem:[%s5495_s1 + $0x50] ss:$8 sps:$4 sm:$0xff]   ;;  %v3811_v46 = vld [vmem:[%s5495_s1 + $0x64] ss:$8 sps:$4 sm:$0xff]  }
  0x1e   : > { %s4224_s18 = scalar_lea.vmem %s5520_s0, %s3721_s26  ;;  %v3808_v45 = vld [vmem:[%s5495_s1 + $0x174] ss:$8 sps:$4 sm:$0xff]   ;;  %v3806_v47 = vld [vmem:[%s5495_s1 + $0x170] ss:$8 sps:$4 sm:$0xff]   ;;  %v3814_v48 = vld [vmem:[%s5495_s1 + $0x184] ss:$8 sps:$4 sm:$0xff]  }
  0x1f   : > { %v484_v7 = vld [vmem:[%s4224_s18] sm:$0xff]  ;;  %v4018_v8 = vld.sshfl [vmem:[%s4224_s18 + $0x8] sm:$0x3 pattern:$0x76325410]  ;;  %s3202_s0 = sshll.u32 %s4216_s25, 1 }
  0x20   : > { %v488_v9 = vcombine.high %v484_v7, %v484_v7  ;;  %v495_v10 = vrot.slane %v484_v7, %v4227_v6  ;;  %v530_v18 = vsel %vm516_vm0, %v4018_v8, 0  ;;  %v3809_v49 = vld [vmem:[%s5495_s1 + $0x60] ss:$8 sps:$4 sm:$0xff]   ;;  %v3817_v50 = vld [vmem:[%s5495_s1 + $0x74] ss:$8 sps:$4 sm:$0xff]   ;;  %s481_s15 = scalar_lea.vmem %s5501_s7, %s3202_s0  ;;  %vm2595_vm6 = vcmask 1043456  }
  0x21   : > { %v3812_v51 = vld [vmem:[%s5495_s1 + $0x180] ss:$8 sps:$4 sm:$0xff]   ;;  %v3820_v52 = vld [vmem:[%s5495_s1 + $0x194] ss:$8 sps:$4 sm:$0xff]   ;;  %v3815_v53 = vld [vmem:[%s5495_s1 + $0x70] ss:$8 sps:$4 sm:$0xff]  }
  0x22   : > { %v502_v11 = vrot.slane %v488_v9, %v4227_v6  ;;  %v503_v12 = vcombine.high %v495_v10, %v495_v10  ;;  %v518_v13 = vsel %vm516_vm0, %v495_v10, 0  ;;  %v3823_v54 = vld [vmem:[%s5495_s1 + $0x84] ss:$8 sps:$4 sm:$0xff]   ;;  %v3818_v55 = vld [vmem:[%s5495_s1 + $0x190] ss:$8 sps:$4 sm:$0xff]   ;;  %vm2624_vm7 = vcmask 519168  }
  0x23   : > { %v3826_v56 = vld [vmem:[%s5495_s1 + $0x1a4] ss:$8 sps:$4 sm:$0xff]   ;;  %v3821_v57 = vld [vmem:[%s5495_s1 + $0x80] ss:$8 sps:$4 sm:$0xff]   ;;  %v3829_v58 = vld [vmem:[%s5495_s1 + $0x94] ss:$8 sps:$4 sm:$0xff]  }
  0x24   : > { %v504_v14 = vcombine.high %v502_v11, %v502_v11  ;;  %v524_v15 = vsel %vm516_vm0, %v502_v11, 0  ;;  %3203 = vmatprep.subr.msk.bf16.mxu0 %vm516_vm0, %v503_v12  ;;  %v3824_v59 = vld [vmem:[%s5495_s1 + $0x1a0] ss:$8 sps:$4 sm:$0xff]   ;;  %v3832_v60 = vld [vmem:[%s5495_s1 + $0x1b4] ss:$8 sps:$4 sm:$0xff]   ;;  %s471_s25 = sand.u32 1, %s4073_s30  }
  0x25   : > { %533 = vmatpush1.bf16.msra.mxu0 %v518_v13  ;;  %v3827_v61 = vld [vmem:[%s5495_s1 + $0x90] ss:$8 sps:$4 sm:$0xff]   ;;  %v3835_v62 = vld [vmem:[%s5495_s1 + $0xa4] ss:$8 sps:$4 sm:$0xff]   ;;  %v3833_v1 = vld [vmem:[%s5495_s1 + $0xa0] ss:$8 sps:$4 sm:$0xff]  }
  0x26   : > { %3205 = vmatprep.subr.msk.bf16.mxu1 %vm516_vm0, %v504_v14  ;;  %3497 = vmatprep.subr.bf16.mxu0 %v4085_v17  ;;  %v3830_v63 = vld [vmem:[%s5495_s1 + $0x1b0] ss:$8 sps:$4 sm:$0xff]   ;;  %v3838_v0 = vld [vmem:[%s5495_s1 + $0x1c4] ss:$8 sps:$4 sm:$0xff]   ;;  %v3841_v2 = vld [vmem:[%s5495_s1 + $0xb4] ss:$8 sps:$4 sm:$0xff]  }
  0x27   : > { %574 = vmatpush1.bf16.msra.mxu1 %v524_v15  ;;  %v3836_v5 = vld [vmem:[%s5495_s1 + $0x1c0] ss:$8 sps:$4 sm:$0xff]   ;;  %v3844_v7 = vld [vmem:[%s5495_s1 + $0x1d4] ss:$8 sps:$4 sm:$0xff]   ;;  %v3839_v8 = vld [vmem:[%s5495_s1 + $0xb0] ss:$8 sps:$4 sm:$0xff]  }
  0x28   : > { %3204 = vmatmul.mubr.msk.bf16.vlgmr.msra.gmra.mrb[0].mxu0 %vm512_vm1, %v4086_v21  ;;  %1153 = vmatprep.subr.bf16.mxu1 %v3769_v16  ;;  %v3847_v9 = vld [vmem:[%s5495_s1 + $0xc4] ss:$8 sps:$4 sm:$0xff]   ;;  %v3842_v10 = vld [vmem:[%s5495_s1 + $0x1d0] ss:$8 sps:$4 sm:$0xff]   ;;  %v3845_v12 = vld [vmem:[%s5495_s1 + $0xc0] ss:$8 sps:$4 sm:$0xff]  }
  0x29   : > { %3498 = vmatpush3.bf16.msra.mxu0 %v530_v18  ;;  %3499 = vmatprep.mubr.msk.bf16.mxu0 %vm4087_vm2, %v4085_v17  ;;  %v3850_v11 = vld [vmem:[%s5495_s1 + $0x1e4] ss:$8 sps:$4 sm:$0xff]   ;;  %v3853_v13 = vld [vmem:[%s5495_s1 + $0xd4] ss:$8 sps:$4 sm:$0xff]   ;;  %v3848_v14 = vld [vmem:[%s5495_s1 + $0x1e0] ss:$8 sps:$4 sm:$0xff]  }
  0x2a   : > { %3206 = vmatmul.mubr.msk.bf16.vlgmr.msra.gmra.mrb[0].mxu1 %vm512_vm1, %v4086_v21  ;;  %1112 = vmatprep.subr.bf16.mxu0 %v3775_v19  ;;  %v3851_v15 = vld [vmem:[%s5495_s1 + $0xd0] ss:$8 sps:$4 sm:$0xff]   ;;  %v3856_v16 = vld [vmem:[%s5495_s1 + $0x1f4] ss:$8 sps:$4 sm:$0xff]   ;;  %v3859_v19 = vld [vmem:[%s5495_s1 + $0xe4] ss:$8 sps:$4 sm:$0xff]  }
  0x2b   : > { %1154 = vmatpush1.bf16.msra.mxu1 %v3767_v20  ;;  %v3854_v18 = vld [vmem:[%s5495_s1 + $0x1f0] ss:$8 sps:$4 sm:$0xff]   ;;  %v3857_v20 = vld [vmem:[%s5495_s1 + $0xe0] ss:$8 sps:$4 sm:$0xff]   ;;  %s3401_s26 = sshll.u32 %s4185_s17, 4  ;;  %s472_s0 = scalar_lea.vmem [#allocation2], %s471_s25 }
  0x2c   : > { %1155 = vmatprep.subr.bf16.mxu1 %v3772_v22  ;;  %v3865_v22 = vld [vmem:[%s5495_s1 + $0xf4] ss:$8 sps:$4 sm:$0xff]   ;;  %s3130_s27 = sshll.u32 %s472_s0, 4  ;;  %vm3115_vm8 = vcmask 8192   ;;  %s5452_s22 = scalar_lea.hbm %s5508_s14, %s3401_s26  ;;  %s5454_s27 = int_to_ptr.vmem [resolvable:$true] %s3130_s27 }
  0x2d   : > { %s3118_s19 = scalar_lea.sflag [#allocation3], %s471_s25  ;;  %s4019_s24 = scalar_lea.vmem %s5454_s27, 16 }
  0x2e   : > { %p4020_p11 = scmp.ne.s32.totalorder %s5454_s27, %s4019_s24  ;;  %s4088_s17 = smov [#allocation2]  }
  0x2f   : > { %1156 = vmatpush1.bf16.msra.mxu1 %v3770_v23  ;;  %v3863_v23 = vld [vmem:[%s5495_s1 + $0xf0] ss:$8 sps:$4 sm:$0xff]  }
  0x30   : > { %3500 = vmatmul.mubr.msk.bf16.vlgmr.msra.gmra.mrb[4].mxu0 %vm512_vm1, %v4086_v21  ;;  %1157 = vmatprep.subr.bf16.mxu1 %v3778_v24  ;;  %v3862_v21 = vld [vmem:[%s5495_s1 + $0x204] ss:$8 sps:$4 sm:$0xff]   ;;  %p4021_p12 = pnand %p4020_p11, %p4202_p5 }
  0x31   : > { %1113 = vmatpush1.bf16.msra.mxu0 %v3773_v25  ;;  %v3877_v24 = vld [vmem:[%s5497_s3 + $0x4] ss:$20 sps:$4 sm:$0xff]  }
  0x32   : > { %1114 = vmatprep.subr.bf16.mxu0 %v3781_v26  ;;  %p4022_p13 = pneg %p4021_p12 }
  0x33   : > { %1158 = vmatpush1.bf16.msra.mxu1 %v3776_v27 }
  0x34   : > { %1159 = vmatprep.subr.bf16.mxu1 %v3784_v28 }
  0x35   : > { %1115 = vmatpush1.bf16.msra.mxu0 %v3779_v29 }
  0x36   : > { %1116 = vmatprep.subr.bf16.mxu0 %v3787_v30 }
  0x37   : > { %1160 = vmatpush1.bf16.msra.mxu1 %v3782_v31 }
  0x38   : > { %1161 = vmatprep.subr.bf16.mxu1 %v3790_v32 }
  0x39   : > { %1117 = vmatpush1.bf16.msra.mxu0 %v3785_v33 }
  0x3a   : > { %1118 = vmatprep.subr.bf16.mxu0 %v3793_v34 }
  0x3b   : > { %1162 = vmatpush1.bf16.msra.mxu1 %v3788_v35 }
  0x3c   : > { %1163 = vmatprep.subr.bf16.mxu1 %v3796_v36 }
  0x3d   : > { %1119 = vmatpush1.bf16.msra.mxu0 %v3791_v37 }
  0x3e   : > { %1120 = vmatprep.subr.bf16.mxu0 %v3799_v38  ;;  %v3875_v38 = vld [vmem:[%s5497_s3] ss:$20 sps:$4 sm:$0xff]  }
  0x3f   : > { %1164 = vmatpush1.bf16.msra.mxu1 %v3794_v39 }
  0x40   : > { %1165 = vmatprep.subr.bf16.mxu1 %v3802_v40  ;;  %v3880_v40 = vld [vmem:[%s5497_s3 + $0x2c] ss:$20 sps:$4 sm:$0xff]  }
  0x41   : > { %1121 = vmatpush1.bf16.msra.mxu0 %v3797_v41 }
  0x42   : > { %1122 = vmatprep.subr.bf16.mxu0 %v3805_v43 }
  0x43   : > { %1166 = vmatpush1.bf16.msra.mxu1 %v3800_v42  ;;  %v3860_v42 = vld [vmem:[%s5495_s1 + $0x200] ss:$8 sps:$4 sm:$0xff]  }
  0x44   : > { %1167 = vmatprep.subr.bf16.mxu1 %v3808_v45 }
  0x45   : > { %1123 = vmatpush1.bf16.msra.mxu0 %v3803_v44  ;;  %v3868_v44 = vld [vmem:[%s5495_s1 + $0x214] ss:$8 sps:$4 sm:$0xff]  }
  0x46   : > { %1124 = vmatprep.subr.bf16.mxu0 %v3811_v46  ;;  %v3878_v46 = vld [vmem:[%s5497_s3 + $0x28] ss:$20 sps:$4 sm:$0xff]  }
  0x47   : > { %1168 = vmatpush1.bf16.msra.mxu1 %v3806_v47 }
  0x48   : > { %1169 = vmatprep.subr.bf16.mxu1 %v3814_v48  ;;  %v3883_v48 = vld [vmem:[%s5497_s3 + $0x54] ss:$20 sps:$4 sm:$0xff]  }
  0x49   : > { %1125 = vmatpush1.bf16.msra.mxu0 %v3809_v49  ;;  %v3866_v49 = vld [vmem:[%s5495_s1 + $0x210] ss:$8 sps:$4 sm:$0xff]  }
  0x4a   : > { %1126 = vmatprep.subr.bf16.mxu0 %v3817_v50 }
  0x4b   : > { %1170 = vmatpush1.bf16.msra.mxu1 %v3812_v51  ;;  %v3871_v51 = vld [vmem:[%s5495_s1 + $0x224] ss:$8 sps:$4 sm:$0xff]  }
  0x4c   : > { %1171 = vmatprep.subr.bf16.mxu1 %v3820_v52 }
  0x4d   : > { %1127 = vmatpush1.bf16.msra.mxu0 %v3815_v53  ;;  %v3881_v53 = vld [vmem:[%s5497_s3 + $0x50] ss:$20 sps:$4 sm:$0xff]  }
  0x4e   : > { %1128 = vmatprep.subr.bf16.mxu0 %v3823_v54  ;;  %v3886_v54 = vld [vmem:[%s5497_s3 + $0x7c] ss:$20 sps:$4 sm:$0xff]  }
  0x4f   : > { %1172 = vmatpush1.bf16.msra.mxu1 %v3818_v55  ;;  %v3869_v55 = vld [vmem:[%s5495_s1 + $0x220] ss:$8 sps:$4 sm:$0xff]  }
  0x50   : > { %1173 = vmatprep.subr.bf16.mxu1 %v3826_v56  ;;  %v3874_v56 = vld [vmem:[%s5495_s1 + $0x234] ss:$8 sps:$4 sm:$0xff]  }
  0x51   : > { %1129 = vmatpush1.bf16.msra.mxu0 %v3821_v57  ;;  %v3884_v57 = vld [vmem:[%s5497_s3 + $0x78] ss:$20 sps:$4 sm:$0xff]  }
  0x52   : > { %1130 = vmatprep.subr.bf16.mxu0 %v3829_v58 }
  0x53   : > { %1174 = vmatpush1.bf16.msra.mxu1 %v3824_v59  ;;  %v3889_v59 = vld [vmem:[%s5497_s3 + $0xa4] ss:$20 sps:$4 sm:$0xff]  }
  0x54   : > { %1175 = vmatprep.subr.bf16.mxu1 %v3832_v60  ;;  %v3872_v60 = vld [vmem:[%s5495_s1 + $0x230] ss:$8 sps:$4 sm:$0xff]  }
  0x55   : > { %1131 = vmatpush1.bf16.msra.mxu0 %v3827_v61  ;;  %v3887_v61 = vld [vmem:[%s5497_s3 + $0xa0] ss:$20 sps:$4 sm:$0xff]  }
  0x56   : > { %1132 = vmatprep.subr.bf16.mxu0 %v3835_v62 }
  0x57   : > { %1176 = vmatpush1.bf16.msra.mxu1 %v3830_v63  ;;  %v3890_v63 = vld [vmem:[%s5497_s3 + $0xc8] ss:$20 sps:$4 sm:$0xff]  }
  0x58   : > { %1177 = vmatprep.subr.bf16.mxu1 %v3838_v0  ;;  %v3892_v0 = vld [vmem:[%s5497_s3 + $0xcc] ss:$20 sps:$4 sm:$0xff]  }
  0x59   : > { %1133 = vmatpush1.bf16.msra.mxu0 %v3833_v1  ;;  %v3895_v1 = vld [vmem:[%s5497_s3 + $0xf4] ss:$20 sps:$4 sm:$0xff]  }
  0x5a   : > { %1134 = vmatprep.subr.bf16.mxu0 %v3841_v2  ;;  %v3893_v2 = vld [vmem:[%s5497_s3 + $0xf0] ss:$20 sps:$4 sm:$0xff]  }
  0x5b   : > { %1178 = vmatpush1.bf16.msra.mxu1 %v3836_v5  ;;  %v3898_v5 = vld [vmem:[%s5497_s3 + $0x11c] ss:$20 sps:$4 sm:$0xff]  }
  0x5c   : > { %1179 = vmatprep.subr.bf16.mxu1 %v3844_v7  ;;  %v3896_v7 = vld [vmem:[%s5497_s3 + $0x118] ss:$20 sps:$4 sm:$0xff]  }
  0x5d   : > { %1135 = vmatpush1.bf16.msra.mxu0 %v3839_v8  ;;  %v3901_v8 = vld [vmem:[%s5497_s3 + $0x144] ss:$20 sps:$4 sm:$0xff]  }
  0x5e   : > { %1136 = vmatprep.subr.bf16.mxu0 %v3847_v9  ;;  %v3899_v9 = vld [vmem:[%s5497_s3 + $0x140] ss:$20 sps:$4 sm:$0xff]  }
  0x5f   : > { %1180 = vmatpush1.bf16.msra.mxu1 %v3842_v10  ;;  %v3904_v10 = vld [vmem:[%s5497_s3 + $0xc] ss:$20 sps:$4 sm:$0xff]  }
  0x60   : > { %1181 = vmatprep.subr.bf16.mxu1 %v3850_v11 }
  0x61   : > { %1137 = vmatpush1.bf16.msra.mxu0 %v3845_v12 }
  0x62   : > { %1138 = vmatprep.subr.bf16.mxu0 %v3853_v13 }
  0x63   : > { %1182 = vmatpush1.bf16.msra.mxu1 %v3848_v14 }
  0x64   : > { %1183 = vmatprep.subr.bf16.mxu1 %v3856_v16  ;;  %v736_v16 = vld [vmem:[%s5496_s2] sm:$0x3] }
  0x65   : > { %1139 = vmatpush1.bf16.msra.mxu0 %v3851_v15  ;;  %v4515_v15 = vsub.s32 0, %v4218_v4 }
  0x66   : > { %1140 = vmatprep.subr.bf16.mxu0 %v3859_v19 }
  0x67   : > { %1184 = vmatpush1.bf16.msra.mxu1 %v3854_v18  ;;  %v4521_v18 = vsub.s32 1, %v4218_v4  ;;  %v1101_v19 = vrot.slane %v736_v16, %v4515_v15 }
  0x68   : > { %1194 = vmatprep.subr.bf16.mxu1 %v3862_v21 }
  0x69   : > { %1141 = vmatpush1.bf16.msra.mxu0 %v3857_v20  ;;  %v1105_v20 = vrot.slane %v736_v16, %v4521_v18  ;;  %v3955_v16 = vld [vmem:[%s5499_s5 + $0x20] sm:$0xff]  }
  0x6a   : > { %1142 = vmatprep.subr.bf16.mxu0 %v3865_v22 }
  0x6d   : > { %1143 = vmatpush1.bf16.msra.mxu0 %v3863_v23 }
  0x6e   : > { %1558 = vmatprep.subr.bf16.mxu0 %v3877_v24 }
  0xfb   : > { %v566_v25 = vpop.f32.mrb[0].mxu0 }
  0xfc   : > { %v654_v26 = vmul.f32 0.25, %v566_v25  ;;  %v568_v27 = vpop.f32.mrb[1].mxu0 }
  0xfd   : > { %v607_v28 = vpop.f32.mrb[0].mxu1  ;;  %v655_v29 = vmul.f32 0.25, %v568_v27  ;;  %v570_v30 = vpop.f32.mrb[2].mxu0 }
  0xfe   : > { %v656_v31 = vmul.f32 0.25, %v607_v28  ;;  %v609_v32 = vpop.f32.mrb[1].mxu1  ;;  %v659_v33 = vpack.c.bf16 %v654_v26, %v654_v26  ;;  %v571_v34 = vpop.f32.mrb[3].mxu0 }
  0xff   : > { %v657_v35 = vmul.f32 0.25, %v609_v32  ;;  %v611_v36 = vpop.f32.mrb[2].mxu1  ;;  %v660_v37 = vpack.c.bf16 %v655_v29, %v655_v29  ;;  %v3902_v32 = vld [vmem:[%s5497_s3 + $0x8] ss:$20 sps:$4 sm:$0xff]  }
 0x100   : > { %v612_v39 = vpop.f32.mrb[3].mxu1  ;;  %v661_v43 = vpack.c.bf16 %v656_v31, %v656_v31  ;;  %v3907_v34 = vld [vmem:[%s5497_s3 + $0x34] ss:$20 sps:$4 sm:$0xff]   ;;  %v3910_v36 = vld [vmem:[%s5497_s3 + $0x5c] ss:$20 sps:$4 sm:$0xff]  }
 0x101   : > { %v662_v41 = vpack.c.bf16 %v657_v35, %v657_v35  ;;  %1144 = vmatprep.mubr.bf16.mxu0 %v660_v37  ;;  %v3905_v35 = vld [vmem:[%s5497_s3 + $0x30] ss:$20 sps:$4 sm:$0xff]   ;;  %v3908_v37 = vld [vmem:[%s5497_s3 + $0x58] ss:$20 sps:$4 sm:$0xff]   ;;  %v3911_v39 = vld [vmem:[%s5497_s3 + $0x80] ss:$20 sps:$4 sm:$0xff]  }
 0x102   : > { %1145 = vmatmul.mubr.bf16.vlgmr.msra.gmra.mrb[8].mxu0 %v659_v33 }
 0x103   : > { %1185 = vmatprep.mubr.bf16.mxu1 %v662_v41  ;;  %v648_v45 = vpop.f32.mrb[4].mxu0  ;;  %1559 = vmatpush1.bf16.msra.mxu0 %v3875_v38  ;;  %v3913_v38 = vld [vmem:[%s5497_s3 + $0x84] ss:$20 sps:$4 sm:$0xff]   ;;  %v3914_v41 = vld [vmem:[%s5497_s3 + $0xa8] ss:$20 sps:$4 sm:$0xff]  }
 0x104   : > { %1186 = vmatmul.mubr.bf16.vlgmr.msra.gmra.mrb[4].mxu1 %v661_v43  ;;  %v3501_v47 = vpop.f32.mrb[5].mxu0  ;;  %1560 = vmatprep.subr.bf16.mxu0 %v3880_v40  ;;  %v658_v58 = vmul.f32 0.25, %v648_v45  ;;  %v3916_v40 = vld [vmem:[%s5497_s3 + $0xac] ss:$20 sps:$4 sm:$0xff]   ;;  %v3917_v43 = vld [vmem:[%s5497_s3 + $0xd0] ss:$20 sps:$4 sm:$0xff]  }
 0x105   : > { %1195 = vmatpush1.bf16.msra.mxu1 %v3860_v42  ;;  %v651_v50 = vpop.f32.mrb[6].mxu0  ;;  %1226 = vmatprep.mubr.bf16.mxu1 %v4084_v3  ;;  %v3919_v42 = vld [vmem:[%s5497_s3 + $0xd4] ss:$20 sps:$4 sm:$0xff]   ;;  %v3920_v45 = vld [vmem:[%s5497_s3 + $0xf8] ss:$20 sps:$4 sm:$0xff]  }
 0x106   : > { %1196 = vmatprep.subr.bf16.mxu1 %v3868_v44  ;;  %v3502_v52 = vpop.f32.mrb[7].mxu0  ;;  %v663_v62 = vpack.c.bf16 %v658_v58, %v658_v58  ;;  %v3922_v44 = vld [vmem:[%s5497_s3 + $0xfc] ss:$20 sps:$4 sm:$0xff]   ;;  %v3923_v47 = vld [vmem:[%s5497_s3 + $0x120] ss:$20 sps:$4 sm:$0xff]  }
 0x107   : > { %1561 = vmatpush1.bf16.msra.mxu0 %v3878_v46  ;;  %v3925_v46 = vld [vmem:[%s5497_s3 + $0x124] ss:$20 sps:$4 sm:$0xff]   ;;  %v3931_v52 = vld [vmem:[%s5497_s3 + $0x60] ss:$20 sps:$4 sm:$0xff]  }
 0x108   : > { %1562 = vmatprep.subr.bf16.mxu0 %v3883_v48  ;;  %v3928_v48 = vld [vmem:[%s5497_s3 + $0x14c] ss:$20 sps:$4 sm:$0xff]   ;;  %v3929_v50 = vld [vmem:[%s5497_s3 + $0x10] ss:$20 sps:$4 sm:$0xff]  }
 0x109   : > { %1197 = vmatpush1.bf16.msra.mxu1 %v3866_v49  ;;  %v3926_v49 = vld [vmem:[%s5497_s3 + $0x148] ss:$20 sps:$4 sm:$0xff]   ;;  %v3937_v58 = vld [vmem:[%s5497_s3 + $0x150] ss:$20 sps:$4 sm:$0xff]  }
 0x10a   : > { %1198 = vmatprep.subr.bf16.mxu1 %v3871_v51  ;;  %v3930_v51 = vld [vmem:[%s5497_s3 + $0x38] ss:$20 sps:$4 sm:$0xff]  }
 0x10b   : > { %1563 = vmatpush1.bf16.msra.mxu0 %v3881_v53  ;;  %v3932_v53 = vld [vmem:[%s5497_s3 + $0x88] ss:$20 sps:$4 sm:$0xff]  }
 0x10c   : > { %1564 = vmatprep.subr.bf16.mxu0 %v3886_v54  ;;  %v3933_v54 = vld [vmem:[%s5497_s3 + $0xb0] ss:$20 sps:$4 sm:$0xff]  }
 0x10d   : > { %1199 = vmatpush1.bf16.msra.mxu1 %v3869_v55  ;;  %v3934_v55 = vld [vmem:[%s5497_s3 + $0xd8] ss:$20 sps:$4 sm:$0xff]  }
 0x10e   : > { %1200 = vmatprep.subr.bf16.mxu1 %v3874_v56  ;;  %v3935_v56 = vld [vmem:[%s5497_s3 + $0x100] ss:$20 sps:$4 sm:$0xff]  }
 0x10f   : > { %1565 = vmatpush1.bf16.msra.mxu0 %v3884_v57  ;;  %v3936_v57 = vld [vmem:[%s5497_s3 + $0x128] ss:$20 sps:$4 sm:$0xff]  }
 0x110   : > { %1566 = vmatprep.subr.bf16.mxu0 %v3889_v59  ;;  %v3938_v59 = vld [vmem:[%s5499_s5 + $0x40] sm:$0xff]  }
 0x111   : > { %1201 = vmatpush1.bf16.msra.mxu1 %v3872_v60  ;;  %v3939_v60 = vld [vmem:[%s5499_s5] sm:$0xff]  }
 0x113   : > { %1567 = vmatpush1.bf16.msra.mxu0 %v3887_v61  ;;  %v3940_v61 = vld [vmem:[%s5499_s5 + $0xc0] sm:$0xff]  }
 0x114   : > { %3280 = vmatmul.mubr.msk.bf16.vlgmr.msra.gmra.mrb[4].mxu1 %vm1108_vm3, %v663_v62  ;;  %1568 = vmatprep.subr.bf16.mxu0 %v3892_v0  ;;  %v3941_v62 = vld [vmem:[%s5499_s5 + $0x80] sm:$0xff]   ;;  %v3943_v0 = vld [vmem:[%s5499_s5 + $0x8] sm:$0xff]  }
 0x115   : > { %3428 = vmatprep.subr.bf16.mxu1 %v3940_v61 }
 0x116   : > { %3429 = vmatpush3.bf16.msra.mxu1 %v3941_v62 }
 0x117   : > { %1569 = vmatpush1.bf16.msra.mxu0 %v3890_v63  ;;  %v3942_v63 = vld [vmem:[%s5499_s5 + $0x48] sm:$0xff]  }
 0x118   : > { %1570 = vmatprep.subr.bf16.mxu0 %v3895_v1  ;;  %v3944_v1 = vld [vmem:[%s5499_s5 + $0xc8] sm:$0xff]  }
 0x119   : > { %3430 = vmatprep.subr.bf16.mxu1 %v3944_v1 }
 0x11b   : > { %1571 = vmatpush1.bf16.msra.mxu0 %v3893_v2  ;;  %v3945_v2 = vld [vmem:[%s5499_s5 + $0x88] sm:$0xff]  }
 0x11c   : > { %1572 = vmatprep.subr.bf16.mxu0 %v3898_v5  ;;  %v3946_v5 = vld [vmem:[%s5499_s5 + $0x50] sm:$0xff]   ;;  %3431 = vmatpush3.bf16.msra.mxu1 %v3945_v2 }
 0x11f   : > { %1573 = vmatpush1.bf16.msra.mxu0 %v3896_v7  ;;  %v3947_v7 = vld [vmem:[%s5499_s5 + $0x10] sm:$0xff]  }
 0x120   : > { %1574 = vmatprep.subr.bf16.mxu0 %v3901_v8  ;;  %v3948_v8 = vld [vmem:[%s5499_s5 + $0xd0] sm:$0xff]  }
 0x121   : > { %3432 = vmatprep.subr.bf16.mxu1 %v3948_v8 }
 0x123   : > { %1575 = vmatpush1.bf16.msra.mxu0 %v3899_v9  ;;  %v3949_v9 = vld [vmem:[%s5499_s5 + $0x90] sm:$0xff]  }
 0x124   : > { %1599 = vmatprep.subr.bf16.mxu0 %v3904_v10  ;;  %v3950_v10 = vld [vmem:[%s5499_s5 + $0x58] sm:$0xff]   ;;  %3433 = vmatpush3.bf16.msra.mxu1 %v3949_v9 }
 0x1d5   : > { %v1146_v11 = vpop.f32.mrb[8].mxu0 }
 0x1d6   : > { %v1148_v12 = vpop.f32.mrb[9].mxu0  ;;  %v1147_v21 = vadd.f32 %v1146_v11, %v1101_v19  ;;  %v3951_v11 = vld [vmem:[%s5499_s5 + $0x18] sm:$0xff]   ;;  %v3956_v19 = vld [vmem:[%s5499_s5 + $0xe0] sm:$0xff]  }
 0x1d7   : > { %v1150_v13 = vpop.f32.mrb[10].mxu0  ;;  %v1149_v22 = vadd.f32 %v1148_v12, %v1105_v20  ;;  %v3952_v12 = vld [vmem:[%s5499_s5 + $0xd8] sm:$0xff]   ;;  %v3957_v20 = vld [vmem:[%s5499_s5 + $0xa0] sm:$0xff]  }
 0x1d8   : > { %v1151_v14 = vpop.f32.mrb[11].mxu0  ;;  %v3953_v13 = vld [vmem:[%s5499_s5 + $0x98] sm:$0xff]   ;;  %3434 = vmatprep.subr.bf16.mxu1 %v3952_v12 }
 0x1d9   : > { %v3954_v14 = vld [vmem:[%s5499_s5 + $0x60] sm:$0xff]   ;;  %3435 = vmatpush3.bf16.msra.mxu1 %v3953_v13 }
 0x1da   : > { %3436 = vmatprep.subr.bf16.mxu1 %v3956_v19 }
 0x1dd   : > { %3437 = vmatpush3.bf16.msra.mxu1 %v3957_v20 }
 0x1e7   : > { %v1228_v23 = vpop.f32.mrb[4].mxu1 }
 0x1e8   : > { %v3708_v24 = vadd.f32 %v1228_v23, %v1147_v21  ;;  %v1230_v25 = vpop.f32.mrb[5].mxu1  ;;  %v3958_v21 = vld [vmem:[%s5499_s5 + $0x68] sm:$0xff]  }
 0x1e9   : > { %v3710_v26 = vadd.f32 %v1230_v25, %v1149_v22  ;;  %v1232_v27 = vpop.f32.mrb[6].mxu1  ;;  %v3959_v22 = vld [vmem:[%s5499_s5 + $0x28] sm:$0xff]   ;;  %v3962_v25 = vld [vmem:[%s5499_s5 + $0x70] sm:$0xff]  }
 0x1ea   : > { %v1235_v28 = vmax.f32 %v3708_v24, 0.0  ;;  %v1233_v29 = vpop.f32.mrb[7].mxu1  ;;  %v3960_v23 = vld [vmem:[%s5499_s5 + $0xe8] sm:$0xff]   ;;  %v3964_v27 = vld [vmem:[%s5499_s5 + $0xf0] sm:$0xff]  }
 0x1eb   : > { %v1236_v30 = vmax.f32 %v3710_v26, 0.0  ;;  %v3961_v24 = vld [vmem:[%s5499_s5 + $0xa8] sm:$0xff]   ;;  %v3963_v26 = vld [vmem:[%s5499_s5 + $0x30] sm:$0xff]   ;;  %3438 = vmatprep.subr.bf16.mxu1 %v3960_v23 }
 0x1ec   : > { %v4528_v33 = vpack.c.bf16 %v1235_v28, %v1235_v28  ;;  %v3966_v28 = vld [vmem:[%s5499_s5 + $0x78] sm:$0xff]   ;;  %3439 = vmatpush3.bf16.msra.mxu1 %v3961_v24  ;;  %v3965_v29 = vld [vmem:[%s5499_s5 + $0xb0] sm:$0xff]  }
 0x1ed   : > { %v1238_v31 = vpack.c.bf16 %v1236_v30, %v1236_v30  ;;  %3440 = vmatprep.subr.bf16.mxu1 %v3964_v27  ;;  %v3968_v30 = vld [vmem:[%s5499_s5 + $0xf8] sm:$0xff]   ;;  %v4016_v27 = vld [vmem:[%s4224_s18] sm:$0xff] }
 0x1ef   : > { %3326 = vmatprep.mubr.msk.bf16.mxu0 %vm1554_vm4, %v1238_v31 }
 0x1f0   : > { %1591 = vmatmul.mubr.bf16.vlgmr.msra.gmra.mrb[12].mxu0 %v4528_v33  ;;  %3441 = vmatpush3.bf16.msra.mxu1 %v3965_v29 }
 0x1f1   : > { %1600 = vmatpush1.bf16.msra.mxu0 %v3902_v32  ;;  %3327 = vmatprep.mubr.msk.bf16.mxu0 %vm1554_vm4, %v1238_v31  ;;  %v3969_v32 = vld [vmem:[%s5499_s5 + $0xb8] sm:$0xff]  }
 0x1f2   : > { %1601 = vmatprep.subr.bf16.mxu0 %v3907_v34  ;;  %3442 = vmatprep.subr.bf16.mxu1 %v3968_v30 }
 0x1f4   : > { %3443 = vmatpush3.bf16.msra.mxu1 %v3969_v32 }
 0x1f5   : > { %1602 = vmatpush1.bf16.msra.mxu0 %v3905_v35  ;;  %3503 = vmatprep.subr.bf16.mxu1 %v4085_v17 }
 0x1f6   : > { %1603 = vmatprep.subr.bf16.mxu0 %v3910_v36 }
 0x1f9   : > { %1604 = vmatpush1.bf16.msra.mxu0 %v3908_v37 }
 0x1fa   : > { %1605 = vmatprep.subr.bf16.mxu0 %v3913_v38 }
 0x1fd   : > { %1606 = vmatpush1.bf16.msra.mxu0 %v3911_v39 }
 0x1fe   : > { %1607 = vmatprep.subr.bf16.mxu0 %v3916_v40 }
 0x201   : > { %1608 = vmatpush1.bf16.msra.mxu0 %v3914_v41 }
 0x202   : > { %1609 = vmatprep.subr.bf16.mxu0 %v3919_v42 }
 0x205   : > { %1610 = vmatpush1.bf16.msra.mxu0 %v3917_v43 }
 0x206   : > { %1611 = vmatprep.subr.bf16.mxu0 %v3922_v44 }
 0x209   : > { %1612 = vmatpush1.bf16.msra.mxu0 %v3920_v45 }
 0x20a   : > { %1613 = vmatprep.subr.bf16.mxu0 %v3925_v46 }
 0x20d   : > { %1614 = vmatpush1.bf16.msra.mxu0 %v3923_v47 }
 0x20e   : > { %1615 = vmatprep.subr.bf16.mxu0 %v3928_v48 }
 0x211   : > { %1616 = vmatpush1.bf16.msra.mxu0 %v3926_v49 }
 0x212   : > { %1640 = vmatprep.subr.bf16.mxu0 %v4084_v3 }
 0x214   : > { %1632 = vmatmul.mubr.bf16.vlgmr.msra.gmra.mrb[16].mxu0 %v4528_v33 }
 0x215   : > { %1641 = vmatpush1.bf16.msra.mxu0 %v3929_v50  ;;  %3328 = vmatprep.mubr.msk.bf16.mxu0 %vm1554_vm4, %v1238_v31  ;;  %v3967_v31 = vld [vmem:[%s5499_s5 + $0x38] sm:$0xff]  }
 0x216   : > { %1642 = vmatprep.subr.bf16.mxu0 %v4084_v3 }
 0x219   : > { %1643 = vmatpush1.bf16.msra.mxu0 %v3930_v51 }
 0x21a   : > { %1644 = vmatprep.subr.bf16.mxu0 %v4084_v3 }
 0x21d   : > { %1645 = vmatpush1.bf16.msra.mxu0 %v3931_v52 }
 0x21e   : > { %1646 = vmatprep.subr.bf16.mxu0 %v4084_v3 }
 0x221   : > { %1647 = vmatpush1.bf16.msra.mxu0 %v3932_v53 }
 0x222   : > { %1648 = vmatprep.subr.bf16.mxu0 %v4084_v3 }
 0x225   : > { %1649 = vmatpush1.bf16.msra.mxu0 %v3933_v54 }
 0x226   : > { %1650 = vmatprep.subr.bf16.mxu0 %v4084_v3 }
 0x229   : > { %1651 = vmatpush1.bf16.msra.mxu0 %v3934_v55 }
 0x22a   : > { %1652 = vmatprep.subr.bf16.mxu0 %v4084_v3 }
 0x22d   : > { %1653 = vmatpush1.bf16.msra.mxu0 %v3935_v56 }
 0x22e   : > { %1654 = vmatprep.subr.bf16.mxu0 %v4084_v3 }
 0x231   : > { %1655 = vmatpush1.bf16.msra.mxu0 %v3936_v57  ;;  %v1539_v57 = vsub.s32 2, %v4218_v4 }
 0x232   : > { %1656 = vmatprep.subr.bf16.mxu0 %v4084_v3 }
 0x235   : > { %1657 = vmatpush1.bf16.msra.mxu0 %v3937_v58  ;;  %v1543_v58 = vsub.s32 3, %v4218_v4 }
 0x236   : > { %3406 = vmatprep.subr.bf16.mxu0 %v3938_v59 }
 0x238   : > { %1673 = vmatmul.mubr.bf16.vlgmr.msra.gmra.mrb[20].mxu0 %v4528_v33  ;;  %v4720_v33 = vld [vmem:[%s5498_s4] sm:$0x1f] }
 0x239   : > { %3407 = vmatpush3.bf16.msra.mxu0 %v3939_v60  ;;  %v1532_v34 = vrot.slane %v4720_v33, %v4515_v15  ;;  %v1536_v35 = vrot.slane %v4720_v33, %v4521_v18  ;;  %v1540_v59 = vrot.slane %v4720_v33, %v1539_v57  ;;  %v1544_v60 = vrot.slane %v4720_v33, %v1543_v58 }
 0x23a   : > { %3408 = vmatprep.subr.bf16.mxu0 %v3942_v63 }
 0x23d   : > { %3409 = vmatpush3.bf16.msra.mxu0 %v3943_v0 }
 0x23e   : > { %3410 = vmatprep.subr.bf16.mxu0 %v3946_v5 }
 0x241   : > { %3411 = vmatpush3.bf16.msra.mxu0 %v3947_v7 }
 0x242   : > { %3412 = vmatprep.subr.bf16.mxu0 %v3950_v10 }
 0x245   : > { %3413 = vmatpush3.bf16.msra.mxu0 %v3951_v11 }
 0x246   : > { %3414 = vmatprep.subr.bf16.mxu0 %v3954_v14 }
 0x249   : > { %3415 = vmatpush3.bf16.msra.mxu0 %v3955_v16 }
 0x24a   : > { %3416 = vmatprep.subr.bf16.mxu0 %v3958_v21 }
 0x24d   : > { %3417 = vmatpush3.bf16.msra.mxu0 %v3959_v22 }
 0x24e   : > { %3418 = vmatprep.subr.bf16.mxu0 %v3962_v25 }
 0x251   : > { %3419 = vmatpush3.bf16.msra.mxu0 %v3963_v26 }
 0x252   : > { %3420 = vmatprep.subr.bf16.mxu0 %v3966_v28 }
 0x255   : > { %3421 = vmatpush3.bf16.msra.mxu0 %v3967_v31 }
 0x2c3   : > { %v1592_v36 = vpop.f32.mrb[12].mxu0 }
 0x2c4   : > { %v1593_v37 = vadd.f32 %v1592_v36, %v1532_v34  ;;  %v1594_v38 = vpop.f32.mrb[13].mxu0  ;;  %v1547_v34 = vsub.s32 4, %v4218_v4  ;;  %v3970_v36 = vld [vmem:[%s5499_s5 + $0x100] sm:$0xff]   ;;  %v2736_v4 = vld [vmem:[%s5504_s10 + $0x310] sm:$0xff] }
 0x2c5   : > { %v1595_v39 = vadd.f32 %v1594_v38, %v1536_v35  ;;  %v1596_v40 = vpop.f32.mrb[14].mxu0  ;;  %v3971_v38 = vld [vmem:[%s5499_s5 + $0x108] sm:$0xff]  }
 0x2c6   : > { %v1680_v41 = vadd.f32 3.0, %v1593_v37  ;;  %v1597_v42 = vpop.f32.mrb[15].mxu0  ;;  %v1548_v37 = vrot.slane %v4720_v33, %v1547_v34  ;;  %v3972_v33 = vld [vmem:[%s5499_s5 + $0x110] sm:$0xff]  }
 0x2c7   : > { %v1681_v43 = vadd.f32 3.0, %v1595_v39 }
 0x2c8   : > { %v1685_v44 = vmax.f32 %v1680_v41, 0.0 }
 0x2c9   : > { %v1686_v45 = vmax.f32 %v1681_v43, 0.0 }
 0x2ca   : > { %v1690_v46 = vmin.f32 %v1685_v44, 6.0 }
 0x2cb   : > { %v1691_v47 = vmin.f32 %v1686_v45, 6.0 }
 0x2cc   : > { %v1695_v48 = vmul.f32 0.16666667, %v1690_v46  ;;  %v3973_v46 = vld [vmem:[%s5499_s5 + $0x118] sm:$0xff]  }
 0x2cd   : > { %v1696_v49 = vmul.f32 0.16666667, %v1691_v47 }
 0x2ce   : > { %v1700_v50 = vpack.c.bf16 %v1695_v48, %v1695_v48 }
 0x2cf   : > { %v1701_v51 = vpack.c.bf16 %v1696_v49, %v1696_v49 }
 0x2d0   : > { %v1706_v52 = vpack.i.b16 %v1700_v50, %v1700_v50 }
 0x2d1   : > { %v1713_v53 = vpack.i.b16 %v1701_v51, %v1701_v51 }
 0x2d2   : > { %v1711_v54 = vrot.slane %v1706_v52, %v4515_v15 }
 0x2d3   : > { %v1718_v55 = vrot.slane %v1713_v53, %v4515_v15  ;;  %v4017_v53 = vld [vmem:[%s4224_s18 + $0x8] sm:$0x3]  ;;  %s4023_s18 = sshll.u32 %s4088_s17, 4  ;;  %s4024_s18 = int_to_ptr.vmem [resolvable:$false] %s4023_s18 }
 0x2d4   : > { %s4025_s20 = scalar_lea.vmem %s4024_s18, 32  ;;  %p4026_p0 = scmp.lt.s32.totalorder %s5454_s27, %s4024_s18 }
 0x2d5   : > { %v1745_v56 = vcombine.low %v1711_v54, %v1718_v55  ;;  %p4027_p1 = scmp.lt.s32.totalorder %s4025_s20, %s4019_s24 }
 0x2d7   : > { %v1753_v24 = vrot.slane %v1745_v56, %v4227_v6  ;;  %v3974_v56 = vld [vmem:[%s5502_s8] ss:$20 sps:$4 sm:$0xff]   ;;  %p4028_p2 = por %p4027_p1, %p4026_p0 }
 0x2d9   : > { %p4029_p3 = pnand %p4028_p2, %p4022_p13 }
 0x2e7   : > { %v1633_v61 = vpop.f32.mrb[16].mxu0 }
 0x2e8   : > { %v1634_v62 = vadd.f32 %v1633_v61, %v1540_v59  ;;  %v1635_v63 = vpop.f32.mrb[17].mxu0  ;;  %v3976_v59 = vld [vmem:[%s5502_s8 + $0x4] ss:$20 sps:$4 sm:$0xff]   ;;  %v3985_v61 = vld [vmem:[%s5502_s8 + $0x34] ss:$20 sps:$4 sm:$0xff]  }
 0x2e9   : > { %v1636_v0 = vadd.f32 %v1635_v63, %v1544_v60  ;;  %v1637_v1 = vpop.f32.mrb[18].mxu0  ;;  %v3977_v60 = vld [vmem:[%s5502_s8 + $0x8] ss:$20 sps:$4 sm:$0xff]   ;;  %2448 = vmatprep.subr.bf16.mxu0 %v3976_v59  ;;  %v3983_v63 = vld [vmem:[%s5502_s8 + $0x30] ss:$20 sps:$4 sm:$0xff]  }
 0x2ea   : > { %v1682_v2 = vadd.f32 3.0, %v1634_v62  ;;  %v1638_v5 = vpop.f32.mrb[19].mxu0  ;;  %v3980_v62 = vld [vmem:[%s5502_s8 + $0x28] ss:$20 sps:$4 sm:$0xff]  }
 0x2eb   : > { %v1683_v7 = vadd.f32 3.0, %v1636_v0  ;;  %v3988_v0 = vld [vmem:[%s5502_s8 + $0x54] ss:$20 sps:$4 sm:$0xff]   ;;  %v3991_v1 = vld [vmem:[%s5502_s8 + $0x5c] ss:$20 sps:$4 sm:$0xff]  }
 0x2ec   : > { %v1687_v8 = vmax.f32 %v1682_v2, 0.0  ;;  %v3986_v2 = vld [vmem:[%s5502_s8 + $0x50] ss:$20 sps:$4 sm:$0xff]   ;;  %v3989_v5 = vld [vmem:[%s5502_s8 + $0x58] ss:$20 sps:$4 sm:$0xff]  }
 0x2ed   : > { %v1688_v9 = vmax.f32 %v1683_v7, 0.0  ;;  %v3994_v7 = vld [vmem:[%s5502_s8 + $0x7c] ss:$20 sps:$4 sm:$0xff]   ;;  %v2647_v59 = vld [vmem:[%s5504_s10 + $0x48] sm:$0xff] }
 0x2ee   : > { %v1692_v10 = vmin.f32 %v1687_v8, 6.0  ;;  %v3997_v8 = vld [vmem:[%s5502_s8 + $0x84] ss:$20 sps:$4 sm:$0xff]  }
 0x2ef   : > { %v1693_v11 = vmin.f32 %v1688_v9, 6.0  ;;  %v3992_v9 = vld [vmem:[%s5502_s8 + $0x78] ss:$20 sps:$4 sm:$0xff]  }
 0x2f0   : > { %v1697_v12 = vmul.f32 0.16666667, %v1692_v10  ;;  %v3995_v10 = vld [vmem:[%s5502_s8 + $0x80] ss:$20 sps:$4 sm:$0xff]  }
 0x2f1   : > { %v1698_v13 = vmul.f32 0.16666667, %v1693_v11  ;;  %v4000_v11 = vld [vmem:[%s5502_s8 + $0xa4] ss:$20 sps:$4 sm:$0xff]  }
 0x2f2   : > { %v1702_v14 = vpack.c.bf16 %v1697_v12, %v1697_v12  ;;  %v4003_v12 = vld [vmem:[%s5502_s8 + $0xac] ss:$20 sps:$4 sm:$0xff]  }
 0x2f3   : > { %v1703_v16 = vpack.c.bf16 %v1698_v13, %v1698_v13  ;;  %v3998_v13 = vld [vmem:[%s5502_s8 + $0xa0] ss:$20 sps:$4 sm:$0xff]  }
 0x2f4   : > { %v1720_v19 = vpack.i.b16 %v1702_v14, %v1702_v14  ;;  %v4001_v14 = vld [vmem:[%s5502_s8 + $0xa8] ss:$20 sps:$4 sm:$0xff]  }
 0x2f5   : > { %v1727_v20 = vpack.i.b16 %v1703_v16, %v1703_v16  ;;  %v4006_v16 = vld [vmem:[%s5502_s8 + $0xcc] ss:$20 sps:$4 sm:$0xff]  }
 0x2f6   : > { %v1725_v21 = vrot.slane %v1720_v19, %v4515_v15  ;;  %v4004_v19 = vld [vmem:[%s5502_s8 + $0xc8] ss:$20 sps:$4 sm:$0xff]  }
 0x2f7   : > { %v1732_v22 = vrot.slane %v1727_v20, %v4515_v15  ;;  %v4009_v20 = vld [vmem:[%s5502_s8 + $0xd4] ss:$20 sps:$4 sm:$0xff]  }
 0x2f9   : > { %v1746_v23 = vcombine.low %v1725_v21, %v1732_v22  ;;  %v4007_v21 = vld [vmem:[%s5502_s8 + $0xd0] ss:$20 sps:$4 sm:$0xff]   ;;  %v2639_v22 = vld [vmem:[%s5504_s10 + $0x8] sm:$0xff] }
 0x2fb   : > { %v1760_v25 = vrot.slane %v1746_v23, %v4227_v6  ;;  %v2641_v23 = vld [vmem:[%s5504_s10 + $0x18] sm:$0xff] }
 0x2fd   : > { %v1761_v26 = vcombine.low %v1753_v24, %v1760_v25  ;;  %v3531_v24 = vpack.c.bf16 %v2641_v23, %v2639_v22  ;;  %v4014_v22 = vld [vmem:[%s5502_s8 + $0xb0] ss:$20 sps:$4 sm:$0xff]  }
 0x2ff   : > { %v1771_v28 = vmul.bf16 %v4016_v27, %v1761_v26  ;;  %v3329_v26 = vld [vmem:[%s5500_s6] ss:$0 sm:$0xff] }
 0x301   : > { %v1861_v29 = vrot.slane %v1771_v28, %v4227_v6  ;;  %v1854_v30 = vcombine.high %v1771_v28, %v1771_v28 }
 0x303   : > { %v1869_v31 = vcombine.high %v1861_v29, %v1861_v29  ;;  %v1868_v32 = vrot.slane %v1854_v30, %v4227_v6 }
 0x305   : > { %2133 = vmatprep.mubr.bf16.mxu0 %v1869_v31  ;;  %v1870_v35 = vcombine.high %v1868_v32, %v1868_v32 }
 0x306   : > { %2134 = vmatmul.mubr.bf16.vlgmr.msra.gmra.mrb[24].mxu0 %v1861_v29 }
 0x307   : > { %2173 = vmatprep.mubr.bf16.mxu1 %v1870_v35  ;;  %2480 = vmatprep.mubr.bf16.mxu0 %v4084_v3 }
 0x308   : > { %2174 = vmatmul.mubr.bf16.vlgmr.msra.gmra.mrb[8].mxu1 %v1868_v32  ;;  %2449 = vmatpush1.bf16.msra.mxu0 %v3974_v56  ;;  %v2644_v56 = vld [vmem:[%s5504_s10 + $0x30] sm:$0xff] }
 0x309   : > { %3504 = vmatpush3.bf16.msra.mxu1 %v3970_v36  ;;  %3511 = vmatprep.mubr.msk.bf16.mxu1 %vm4087_vm2, %v4085_v17 }
 0x30a   : > { %3505 = vmatprep.subr.bf16.mxu1 %v4085_v17 }
 0x30b   : > { %v1674_v39 = vpop.f32.mrb[20].mxu0 }
 0x30c   : > { %v1675_v40 = vadd.f32 %v1674_v39, %v1548_v37  ;;  %v1676_v41 = vpop.f32.mrb[21].mxu0 }
 0x30d   : > { %v1677_v42 = vpop.f32.mrb[22].mxu0  ;;  %3506 = vmatpush3.bf16.msra.mxu1 %v3971_v38 }
 0x30e   : > { %v1684_v43 = vadd.f32 3.0, %v1675_v40  ;;  %v1678_v44 = vpop.f32.mrb[23].mxu0  ;;  %3507 = vmatprep.subr.bf16.mxu1 %v4085_v17  ;;  %v2221_v40 = vld [vmem:[%s481_s15] sm:$0x3] }
 0x30f   : > { %v2222_v41 = vunpack.c.l.bf16 %v2221_v40  ;;  %v2666_v40 = vld [vmem:[%s5504_s10 + $0xe0] sm:$0xff] }
 0x310   : > { %v1689_v45 = vmax.f32 %v1684_v43, 0.0 }
 0x311   : > { %3508 = vmatpush3.bf16.msra.mxu1 %v3972_v33 }
 0x312   : > { %v1694_v47 = vmin.f32 %v1689_v45, 6.0  ;;  %3509 = vmatprep.subr.bf16.mxu1 %v4085_v17  ;;  %v2638_v45 = vld [vmem:[%s5504_s10] sm:$0xff] }
 0x314   : > { %v1699_v48 = vmul.f32 0.16666667, %v1694_v47 }
 0x315   : > { %3510 = vmatpush3.bf16.msra.mxu1 %v3973_v46  ;;  %v2640_v46 = vld [vmem:[%s5504_s10 + $0x10] sm:$0xff] }
 0x316   : > { %v1704_v49 = vpack.c.bf16 %v1699_v48, %v1699_v48 }
 0x318   : > { %v1734_v50 = vpack.i.b16 %v1704_v49, %v1704_v49  ;;  %v2643_v49 = vld [vmem:[%s5504_s10 + $0x28] sm:$0xff] }
 0x31a   : > { %v1739_v51 = vrot.slane %v1734_v50, %v4515_v15  ;;  %v2645_v50 = vld [vmem:[%s5504_s10 + $0x38] sm:$0xff] }
 0x31c   : > { %v1768_v52 = vrot.slane %v1739_v51, %v4227_v6  ;;  %v4010_v51 = vld [vmem:[%s5502_s8 + $0x10] ss:$20 sps:$4 sm:$0xff]  }
 0x31e   : > { %v1772_v54 = vmul.bf16 %v4017_v53, %v1768_v52  ;;  %v3533_v53 = vpack.c.bf16 %v2640_v46, %v2638_v45  ;;  %v2670_v45 = vld [vmem:[%s5504_s10 + $0x100] sm:$0xff]  ;;  %v2672_v46 = vld [vmem:[%s5504_s10 + $0x110] sm:$0xff] }
 0x320   : > { %v1877_v55 = vrot.slane %v1772_v54, %v4227_v6  ;;  %v3979_v6 = vld [vmem:[%s5502_s8 + $0xc] ss:$20 sps:$4 sm:$0xff]   ;;  %v3535_v54 = vpack.c.bf16 %v2645_v50, %v2643_v49  ;;  %v2677_v49 = vld [vmem:[%s5504_s10 + $0x138] sm:$0xff] }
 0x321   : > { %2489 = vmatprep.subr.bf16.mxu1 %v3979_v6  ;;  %v4011_v6 = vld [vmem:[%s5502_s8 + $0x38] ss:$20 sps:$4 sm:$0xff]  }
 0x322   : > { %3512 = vmatmul.mubr.msk.bf16.vlgmr.msra.gmra.mrb[12].mxu1 %vm1108_vm3, %v1877_v55  ;;  %v2642_v55 = vld [vmem:[%s5504_s10 + $0x20] sm:$0xff] }
 0x323   : > { %2521 = vmatprep.mubr.bf16.mxu1 %v4084_v3  ;;  %v3982_v3 = vld [vmem:[%s5502_s8 + $0x2c] ss:$20 sps:$4 sm:$0xff]   ;;  %2490 = vmatpush1.bf16.msra.mxu1 %v3977_v60  ;;  %v2649_v60 = vld [vmem:[%s5504_s10 + $0x58] sm:$0xff] }
 0x324   : > { %2450 = vmatprep.subr.bf16.mxu0 %v3982_v3  ;;  %2491 = vmatprep.subr.bf16.mxu1 %v3985_v61  ;;  %v3537_v3 = vpack.c.bf16 %v2644_v56, %v2642_v55  ;;  %v3539_v61 = vpack.c.bf16 %v2649_v60, %v2647_v59  ;;  %v2681_v55 = vld [vmem:[%s5504_s10 + $0x158] sm:$0xff]  ;;  %v2678_v59 = vld [vmem:[%s5504_s10 + $0x140] sm:$0xff]  ;;  %v2680_v60 = vld [vmem:[%s5504_s10 + $0x150] sm:$0xff] }
 0x325   : > { %2451 = vmatpush1.bf16.msra.mxu0 %v3980_v62  ;;  %v2646_v62 = vld [vmem:[%s5504_s10 + $0x40] sm:$0xff] }
 0x326   : > { %2452 = vmatprep.subr.bf16.mxu0 %v3988_v0  ;;  %v2651_v0 = vld [vmem:[%s5504_s10 + $0x68] sm:$0xff] }
 0x327   : > { %2492 = vmatpush1.bf16.msra.mxu1 %v3983_v63  ;;  %v2648_v63 = vld [vmem:[%s5504_s10 + $0x50] sm:$0xff] }
 0x328   : > { %2493 = vmatprep.subr.bf16.mxu1 %v3991_v1  ;;  %v2653_v1 = vld [vmem:[%s5504_s10 + $0x78] sm:$0xff] }
 0x329   : > { %2453 = vmatpush1.bf16.msra.mxu0 %v3986_v2  ;;  %v4012_v2 = vld [vmem:[%s5502_s8 + $0x60] ss:$20 sps:$4 sm:$0xff]  }
 0x32a   : > { %2454 = vmatprep.subr.bf16.mxu0 %v3994_v7  ;;  %v3543_v7 = vpack.c.bf16 %v2653_v1, %v2651_v0  ;;  %v2684_v0 = vld [vmem:[%s5504_s10 + $0x170] sm:$0xff] }
 0x32b   : > { %2494 = vmatpush1.bf16.msra.mxu1 %v3989_v5  ;;  %v3541_v5 = vpack.c.bf16 %v2648_v63, %v2646_v62  ;;  %v2682_v63 = vld [vmem:[%s5504_s10 + $0x160] sm:$0xff] }
 0x32c   : > { %2495 = vmatprep.subr.bf16.mxu1 %v3997_v8  ;;  %v2650_v8 = vld [vmem:[%s5504_s10 + $0x60] sm:$0xff]  ;;  %v3577_v1 = vpack.c.bf16 %v2684_v0, %v2682_v63 }
 0x32d   : > { %2455 = vmatpush1.bf16.msra.mxu0 %v3992_v9  ;;  %v2652_v9 = vld [vmem:[%s5504_s10 + $0x70] sm:$0xff]  ;;  %v3020_v0 = vld [vmem:[%s5506_s12 + $0x40] sm:$0xff] }
 0x32e   : > { %2456 = vmatprep.subr.bf16.mxu0 %v4000_v11  ;;  %v2657_v11 = vld [vmem:[%s5504_s10 + $0x98] sm:$0xff] }
 0x32f   : > { %2496 = vmatpush1.bf16.msra.mxu1 %v3995_v10  ;;  %v2655_v10 = vld [vmem:[%s5504_s10 + $0x88] sm:$0xff] }
 0x330   : > { %2497 = vmatprep.subr.bf16.mxu1 %v4003_v12  ;;  %v4013_v12 = vld [vmem:[%s5502_s8 + $0x88] ss:$20 sps:$4 sm:$0xff]  }
 0x331   : > { %2457 = vmatpush1.bf16.msra.mxu0 %v3998_v13  ;;  %v3545_v13 = vpack.c.bf16 %v2652_v9, %v2650_v8  ;;  %v2686_v8 = vld [vmem:[%s5504_s10 + $0x180] sm:$0xff]  ;;  %v2688_v9 = vld [vmem:[%s5504_s10 + $0x190] sm:$0xff] }
 0x332   : > { %2458 = vmatprep.subr.bf16.mxu0 %v4006_v16  ;;  %v2654_v16 = vld [vmem:[%s5504_s10 + $0x80] sm:$0xff] }
 0x333   : > { %2498 = vmatpush1.bf16.msra.mxu1 %v4001_v14  ;;  %v3547_v14 = vpack.c.bf16 %v2657_v11, %v2655_v10  ;;  %v3581_v10 = vpack.c.bf16 %v2688_v9, %v2686_v8  ;;  %v2691_v11 = vld [vmem:[%s5504_s10 + $0x1a8] sm:$0xff] }
 0x334   : > { %2499 = vmatprep.subr.bf16.mxu1 %v4009_v20  ;;  %v2659_v20 = vld [vmem:[%s5504_s10 + $0xa8] sm:$0xff] }
 0x335   : > { %2459 = vmatpush1.bf16.msra.mxu0 %v4004_v19  ;;  %v2656_v19 = vld [vmem:[%s5504_s10 + $0x90] sm:$0xff] }
 0x336   : > { %3515 = vmatprep.subr.bf16.mxu0 %v4085_v17  ;;  %v3549_v23 = vpack.c.bf16 %v2656_v19, %v2654_v16  ;;  %v2692_v16 = vld [vmem:[%s5504_s10 + $0x1b0] sm:$0xff] }
 0x337   : > { %2500 = vmatpush1.bf16.msra.mxu1 %v4007_v21  ;;  %v2661_v21 = vld [vmem:[%s5504_s10 + $0xb8] sm:$0xff] }
 0x338   : > { %3532 = vmatprep.subr.bf16.mxu1 %v3531_v24  ;;  %v3551_v24 = vpack.c.bf16 %v2661_v21, %v2659_v20  ;;  %v2695_v20 = vld [vmem:[%s5504_s10 + $0x1c8] sm:$0xff]  ;;  %v2697_v21 = vld [vmem:[%s5504_s10 + $0x1d8] sm:$0xff] }
 0x3d9   : > { %v3422_v25 = vpop.f32.mrb[24].mxu0 }
 0x3da   : > { %v3423_v27 = vpop.f32.mrb[25].mxu0 }
 0x3db   : > { %v3424_v28 = vadd.f32 %v3423_v27, %v3422_v25  ;;  %v3425_v29 = vpop.f32.mrb[26].mxu0  ;;  %v3444_v30 = vpop.f32.mrb[8].mxu1  ;;  %v2658_v25 = vld [vmem:[%s5504_s10 + $0xa0] sm:$0xff]  ;;  %v2663_v27 = vld [vmem:[%s5504_s10 + $0xc8] sm:$0xff] }
 0x3dc   : > { %v3426_v31 = vpop.f32.mrb[27].mxu0  ;;  %v3445_v32 = vpop.f32.mrb[9].mxu1  ;;  %v4015_v29 = vld [vmem:[%s5502_s8 + $0xd8] ss:$20 sps:$4 sm:$0xff]  }
 0x3dd   : > { %v2136_v35 = vadd.f32 %v3424_v28, %v3329_v26  ;;  %v3446_v36 = vadd.f32 %v3445_v32, %v3444_v30  ;;  %v3447_v37 = vpop.f32.mrb[10].mxu1  ;;  %v2660_v26 = vld [vmem:[%s5504_s10 + $0xb0] sm:$0xff]  ;;  %v2665_v28 = vld [vmem:[%s5504_s10 + $0xd8] sm:$0xff]  ;;  %v2662_v32 = vld [vmem:[%s5504_s10 + $0xc0] sm:$0xff] }
 0x3de   : > { %v3448_v38 = vpop.f32.mrb[11].mxu1  ;;  %v3553_v30 = vpack.c.bf16 %v2660_v26, %v2658_v25  ;;  %v3555_v31 = vpack.c.bf16 %v2665_v28, %v2663_v27  ;;  %v2669_v37 = vld [vmem:[%s5504_s10 + $0xf8] sm:$0xff]  ;;  %v2699_v26 = vld [vmem:[%s5504_s10 + $0x1e8] sm:$0xff] }
 0x3df   : > { %v2176_v39 = vadd.f32 %v3446_v36, %v2136_v35  ;;  %v2664_v35 = vld [vmem:[%s5504_s10 + $0xd0] sm:$0xff]  ;;  %v2667_v36 = vld [vmem:[%s5504_s10 + $0xe8] sm:$0xff]  ;;  %v2701_v27 = vld [vmem:[%s5504_s10 + $0x1f8] sm:$0xff] }
 0x3e0   : > { %v3557_v38 = vpack.c.bf16 %v2664_v35, %v2662_v32  ;;  %v3591_v28 = vpack.c.bf16 %v2701_v27, %v2699_v26  ;;  %v2703_v32 = vld [vmem:[%s5504_s10 + $0x208] sm:$0xff]  ;;  %v2705_v35 = vld [vmem:[%s5504_s10 + $0x218] sm:$0xff] }
 0x3f5   : > { %v2215_v42 = vpop.f32.mrb[12].mxu1 }
 0x3f6   : > { %v2216_v33 = vadd.f32 %v2215_v42, %v2176_v39  ;;  %v3513_v43 = vpop.f32.mrb[13].mxu1  ;;  %v3559_v39 = vpack.c.bf16 %v2669_v37, %v2667_v36  ;;  %v2671_v42 = vld [vmem:[%s5504_s10 + $0x108] sm:$0xff]  ;;  %v3595_v36 = vpack.c.bf16 %v2705_v35, %v2703_v32  ;;  %v3028_v37 = vld [vmem:[%s5506_s12 + $0x80] sm:$0xff] }
 0x3f7   : > { %v2218_v44 = vpop.f32.mrb[14].mxu1 }
 0x3f8   : > { %v2223_v47 = vadd.f32 %v2222_v41, %v2216_v33  ;;  %v3514_v48 = vpop.f32.mrb[15].mxu1  ;;  %v2668_v41 = vld [vmem:[%s5504_s10 + $0xf0] sm:$0xff]  ;;  %v2673_v33 = vld [vmem:[%s5504_s10 + $0x118] sm:$0xff] }
 0x3f9   : > { %v3561_v43 = vpack.c.bf16 %v2668_v41, %v2666_v40  ;;  %v3563_v44 = vpack.c.bf16 %v2673_v33, %v2671_v42  ;;  %v2675_v48 = vld [vmem:[%s5504_s10 + $0x128] sm:$0xff]  ;;  %v3030_v42 = vld [vmem:[%s5506_s12 + $0x90] sm:$0xff]  ;;  %v3031_v33 = vld [vmem:[%s5506_s12 + $0x98] sm:$0xff] }
 0x3fa   : > { %v4872_v52 = vpack.c.bf16 %v2223_v47, %v2223_v47  ;;  %v3565_v47 = vpack.c.bf16 %v2672_v46, %v2670_v45  ;;  %v3567_v50 = vpack.c.bf16 %v2677_v49, %v2675_v48  ;;  %v3013_v41 = vld [vmem:[%s5506_s12 + $0x8] sm:$0xff]  ;;  %v3014_v45 = vld [vmem:[%s5506_s12 + $0x10] sm:$0xff]  ;;  %v3015_v46 = vld [vmem:[%s5506_s12 + $0x18] sm:$0xff] }
 0x3fb   : > { %v3033_v48 = vld [vmem:[%s5506_s12 + $0xa8] sm:$0xff]  ;;  %v3681_v49 = vpack.c.bf16 %v3015_v46, %v3014_v45 }
 0x3fc   : > { %3397 = vmatmul.mubr.msk.bf16.vlgmr.msra.gmra.mrb[28].mxu0 %vm2444_vm5, %v4872_v52  ;;  %3398 = vmatmul.mubr.msk.bf16.vlgmr.msra.gmra.mrb[16].mxu1 %vm2444_vm5, %v4872_v52 }
 0x3fd   : > { %3516 = vmatpush3.bf16.msra.mxu0 %v4010_v51  ;;  %3527 = vmatprep.mubr.msk.bf16.mxu0 %vm4087_vm2, %v4085_v17  ;;  %v2674_v51 = vld [vmem:[%s5504_s10 + $0x120] sm:$0xff] }
 0x3fe   : > { %3517 = vmatprep.subr.bf16.mxu0 %v4085_v17  ;;  %3534 = vmatpush1.bf16.msra.mxu1 %v3533_v53 }
 0x3ff   : > { %3536 = vmatprep.subr.bf16.mxu1 %v3535_v54  ;;  %v2679_v54 = vld [vmem:[%s5504_s10 + $0x148] sm:$0xff] }
 0x400   : > { %v3571_v56 = vpack.c.bf16 %v2681_v55, %v2679_v54  ;;  %v3035_v54 = vld [vmem:[%s5506_s12 + $0xb8] sm:$0xff] }
 0x401   : > { %3518 = vmatpush3.bf16.msra.mxu0 %v4011_v6  ;;  %v3573_v6 = vpack.c.bf16 %v2680_v60, %v2678_v59  ;;  %v3018_v59 = vld [vmem:[%s5506_s12 + $0x30] sm:$0xff]  ;;  %v3019_v60 = vld [vmem:[%s5506_s12 + $0x38] sm:$0xff] }
 0x402   : > { %3519 = vmatprep.subr.bf16.mxu0 %v4085_v17  ;;  %3538 = vmatpush1.bf16.msra.mxu1 %v3537_v3  ;;  %v2683_v3 = vld [vmem:[%s5504_s10 + $0x168] sm:$0xff] }
 0x403   : > { %3540 = vmatprep.subr.bf16.mxu1 %v3539_v61  ;;  %v2685_v61 = vld [vmem:[%s5504_s10 + $0x178] sm:$0xff] }
 0x404   : > { %v3575_v62 = vpack.c.bf16 %v2685_v61, %v2683_v3  ;;  %v3037_v3 = vld [vmem:[%s5506_s12 + $0xc8] sm:$0xff]  ;;  %v5139_v61 = vld [vmem:[%s5503_s9] sm:$0x1f] }
 0x405   : > { %3520 = vmatpush3.bf16.msra.mxu0 %v4012_v2  ;;  %v2687_v2 = vld [vmem:[%s5504_s10 + $0x188] sm:$0xff]  ;;  %v2274_v8 = vrot.slane %v5139_v61, %v1539_v57  ;;  %v2270_v9 = vrot.slane %v5139_v61, %v4521_v18 }
 0x406   : > { %3521 = vmatprep.subr.bf16.mxu0 %v4085_v17  ;;  %3542 = vmatpush1.bf16.msra.mxu1 %v3541_v5  ;;  %v2689_v5 = vld [vmem:[%s5504_s10 + $0x198] sm:$0xff] }
 0x407   : > { %3544 = vmatprep.subr.bf16.mxu1 %v3543_v7  ;;  %v3579_v7 = vpack.c.bf16 %v2689_v5, %v2687_v2  ;;  %v3038_v2 = vld [vmem:[%s5506_s12 + $0xd0] sm:$0xff]  ;;  %v3039_v5 = vld [vmem:[%s5506_s12 + $0xd8] sm:$0xff] }
 0x409   : > { %3522 = vmatpush3.bf16.msra.mxu0 %v4013_v12  ;;  %v2693_v12 = vld [vmem:[%s5504_s10 + $0x1b8] sm:$0xff] }
 0x40a   : > { %3523 = vmatprep.subr.bf16.mxu0 %v4085_v17  ;;  %3546 = vmatpush1.bf16.msra.mxu1 %v3545_v13  ;;  %v3583_v13 = vpack.c.bf16 %v2693_v12, %v2691_v11  ;;  %v3695_v12 = vpack.c.bf16 %v3039_v5, %v3038_v2 }
 0x40b   : > { %3548 = vmatprep.subr.bf16.mxu1 %v3547_v14  ;;  %v2690_v14 = vld [vmem:[%s5504_s10 + $0x1a0] sm:$0xff] }
 0x40c   : > { %v3585_v19 = vpack.c.bf16 %v2692_v16, %v2690_v14  ;;  %v3023_v14 = vld [vmem:[%s5506_s12 + $0x58] sm:$0xff] }
 0x40d   : > { %3524 = vmatpush3.bf16.msra.mxu0 %v4014_v22  ;;  %v3587_v22 = vpack.c.bf16 %v2697_v21, %v2695_v20 }
 0x40e   : > { %3525 = vmatprep.subr.bf16.mxu0 %v4085_v17  ;;  %3550 = vmatpush1.bf16.msra.mxu1 %v3549_v23  ;;  %v2694_v23 = vld [vmem:[%s5504_s10 + $0x1c0] sm:$0xff] }
 0x40f   : > { %3552 = vmatprep.subr.bf16.mxu1 %v3551_v24  ;;  %v2696_v24 = vld [vmem:[%s5504_s10 + $0x1d0] sm:$0xff] }
 0x410   : > { %v3589_v25 = vpack.c.bf16 %v2696_v24, %v2694_v23 }
 0x411   : > { %3526 = vmatpush3.bf16.msra.mxu0 %v4015_v29  ;;  %v2698_v29 = vld [vmem:[%s5504_s10 + $0x1e0] sm:$0xff] }
 0x412   : > { %3554 = vmatpush1.bf16.msra.mxu1 %v3553_v30  ;;  %v2700_v30 = vld [vmem:[%s5504_s10 + $0x1f0] sm:$0xff] }
 0x413   : > { %3556 = vmatprep.subr.bf16.mxu1 %v3555_v31  ;;  %v3593_v31 = vpack.c.bf16 %v2700_v30, %v2698_v29 }
 0x414   : > { %3528 = vmatmul.mubr.msk.bf16.vlgmr.msra.gmra.mrb[32].mxu0 %vm2444_vm5, %v4872_v52  ;;  %v2676_v52 = vld [vmem:[%s5504_s10 + $0x130] sm:$0xff] }
 0x415   : > { %v3569_v53 = vpack.c.bf16 %v2676_v52, %v2674_v51  ;;  %v3016_v51 = vld [vmem:[%s5506_s12 + $0x20] sm:$0xff]  ;;  %v3017_v52 = vld [vmem:[%s5506_s12 + $0x28] sm:$0xff] }
 0x416   : > { %3558 = vmatpush1.bf16.msra.mxu1 %v3557_v38  ;;  %v3029_v38 = vld [vmem:[%s5506_s12 + $0x88] sm:$0xff]  ;;  %v3685_v55 = vpack.c.bf16 %v3017_v52, %v3016_v51 }
 0x417   : > { %3560 = vmatprep.subr.bf16.mxu1 %v3559_v39  ;;  %v3012_v39 = vld [vmem:[%s5506_s12] sm:$0xff]  ;;  %v3675_v40 = vpack.c.bf16 %v3029_v38, %v3028_v37 }
 0x419   : > { %3676 = vmatprep.subr.bf16.mxu0 %v3675_v40 }
 0x41a   : > { %3562 = vmatpush1.bf16.msra.mxu1 %v3561_v43  ;;  %v3677_v43 = vpack.c.bf16 %v3013_v41, %v3012_v39 }
 0x41b   : > { %3564 = vmatprep.subr.bf16.mxu1 %v3563_v44  ;;  %v3679_v44 = vpack.c.bf16 %v3031_v33, %v3030_v42 }
 0x41c   : > { %3678 = vmatpush3.bf16.msra.mxu0 %v3677_v43 }
 0x41d   : > { %3680 = vmatprep.subr.bf16.mxu0 %v3679_v44 }
 0x41e   : > { %3566 = vmatpush1.bf16.msra.mxu1 %v3565_v47  ;;  %v3032_v47 = vld [vmem:[%s5506_s12 + $0xa0] sm:$0xff] }
 0x41f   : > { %3568 = vmatprep.subr.bf16.mxu1 %v3567_v50  ;;  %v3683_v50 = vpack.c.bf16 %v3033_v48, %v3032_v47 }
 0x420   : > { %3682 = vmatpush3.bf16.msra.mxu0 %v3681_v49 }
 0x421   : > { %3684 = vmatprep.subr.bf16.mxu0 %v3683_v50 }
 0x422   : > { %3570 = vmatpush1.bf16.msra.mxu1 %v3569_v53  ;;  %v3034_v53 = vld [vmem:[%s5506_s12 + $0xb0] sm:$0xff] }
 0x423   : > { %3572 = vmatprep.subr.bf16.mxu1 %v3571_v56  ;;  %v3687_v56 = vpack.c.bf16 %v3035_v54, %v3034_v53 }
 0x424   : > { %3686 = vmatpush3.bf16.msra.mxu0 %v3685_v55 }
 0x425   : > { %3688 = vmatprep.subr.bf16.mxu0 %v3687_v56 }
 0x426   : > { %3574 = vmatpush1.bf16.msra.mxu1 %v3573_v6  ;;  %v3036_v6 = vld [vmem:[%s5506_s12 + $0xc0] sm:$0xff] }
 0x427   : > { %3576 = vmatprep.subr.bf16.mxu1 %v3575_v62  ;;  %v3689_v62 = vpack.c.bf16 %v3019_v60, %v3018_v59  ;;  %v3691_v63 = vpack.c.bf16 %v3037_v3, %v3036_v6 }
 0x429   : > { %3690 = vmatpush3.bf16.msra.mxu0 %v3689_v62 }
 0x42a   : > { %3578 = vmatpush1.bf16.msra.mxu1 %v3577_v1  ;;  %v3021_v1 = vld [vmem:[%s5506_s12 + $0x48] sm:$0xff]  ;;  %3692 = vmatprep.subr.bf16.mxu0 %v3691_v63 }
 0x42b   : > { %3580 = vmatprep.subr.bf16.mxu1 %v3579_v7  ;;  %v2266_v7 = vrot.slane %v5139_v61, %v4515_v15  ;;  %v3693_v11 = vpack.c.bf16 %v3021_v1, %v3020_v0 }
 0x42d   : > { %3694 = vmatpush3.bf16.msra.mxu0 %v3693_v11 }
 0x42e   : > { %3582 = vmatpush1.bf16.msra.mxu1 %v3581_v10  ;;  %v2278_v10 = vrot.slane %v5139_v61, %v1543_v58  ;;  %v3041_v58 = vld [vmem:[%s5506_s12 + $0xe8] sm:$0xff]  ;;  %3696 = vmatprep.subr.bf16.mxu0 %v3695_v12 }
 0x42f   : > { %3584 = vmatprep.subr.bf16.mxu1 %v3583_v13  ;;  %v3022_v13 = vld [vmem:[%s5506_s12 + $0x50] sm:$0xff] }
 0x432   : > { %3586 = vmatpush1.bf16.msra.mxu1 %v3585_v19  ;;  %v3040_v19 = vld [vmem:[%s5506_s12 + $0xe0] sm:$0xff] }
 0x433   : > { %3588 = vmatprep.subr.bf16.mxu1 %v3587_v22  ;;  %v3699_v35 = vpack.c.bf16 %v3041_v58, %v3040_v19 }
 0x436   : > { %3590 = vmatpush1.bf16.msra.mxu1 %v3589_v25 }
 0x437   : > { %3592 = vmatprep.subr.bf16.mxu1 %v3591_v28  ;;  %v3697_v28 = vpack.c.bf16 %v3023_v14, %v3022_v13  ;;  %v2702_v14 = vld [vmem:[%s5504_s10 + $0x200] sm:$0xff] }
 0x439   : > { %3698 = vmatpush3.bf16.msra.mxu0 %v3697_v28  ;;  %v2706_v28 = vld [vmem:[%s5504_s10 + $0x220] sm:$0xff] }
 0x43a   : > { %3594 = vmatpush1.bf16.msra.mxu1 %v3593_v31  ;;  %3700 = vmatprep.subr.bf16.mxu0 %v3699_v35 }
 0x43b   : > { %3596 = vmatprep.subr.bf16.mxu1 %v3595_v36 }
 0x4cf   : > { %v2482_v57 = vpop.f32.mrb[28].mxu0  ;;  %v2523_v16 = vpop.f32.mrb[16].mxu1 }
 0x4d0   : > { %v2483_v20 = vadd.f32 %v2482_v57, %v2266_v7  ;;  %v2524_v21 = vadd.f32 %v2523_v16, %v2274_v8  ;;  %v2484_v22 = vpop.f32.mrb[29].mxu0  ;;  %v2525_v23 = vpop.f32.mrb[17].mxu1  ;;  %v2704_v57 = vld [vmem:[%s5504_s10 + $0x210] sm:$0xff] }
 0x4d1   : > { %v2485_v24 = vadd.f32 %v2484_v22, %v2270_v9  ;;  %v2526_v25 = vadd.f32 %v2525_v23, %v2278_v10  ;;  %v2486_v26 = vpop.f32.mrb[30].mxu0  ;;  %v2527_v27 = vpop.f32.mrb[18].mxu1 }
 0x4d2   : > { %v2570_v29 = vadd.f32 3.0, %v2483_v20  ;;  %v2572_v30 = vadd.f32 3.0, %v2524_v21  ;;  %v2487_v31 = vpop.f32.mrb[31].mxu0  ;;  %v2528_v32 = vpop.f32.mrb[19].mxu1 }
 0x4d3   : > { %v2571_v36 = vadd.f32 3.0, %v2485_v24  ;;  %v2573_v37 = vadd.f32 3.0, %v2526_v25  ;;  %v2711_v31 = vld [vmem:[%s5504_s10 + $0x248] sm:$0xff]  ;;  %v2713_v32 = vld [vmem:[%s5504_s10 + $0x258] sm:$0xff] }
 0x4d4   : > { %v2575_v38 = vmax.f32 %v2570_v29, 0.0  ;;  %v2577_v39 = vmax.f32 %v2572_v30, 0.0  ;;  %v2708_v29 = vld [vmem:[%s5504_s10 + $0x230] sm:$0xff] }
 0x4d5   : > { %v2576_v40 = vmax.f32 %v2571_v36, 0.0  ;;  %v2578_v41 = vmax.f32 %v2573_v37, 0.0  ;;  %v3601_v35 = vpack.c.bf16 %v2708_v29, %v2706_v28  ;;  %v3603_v36 = vpack.c.bf16 %v2713_v32, %v2711_v31  ;;  %v2710_v37 = vld [vmem:[%s5504_s10 + $0x240] sm:$0xff]  ;;  %v2747_v29 = vld [vmem:[%s5504_s10 + $0x368] sm:$0xff] }
 0x4d6   : > { %v2580_v42 = vmin.f32 %v2575_v38, 6.0  ;;  %v2582_v33 = vmin.f32 %v2577_v39, 6.0  ;;  %v2712_v38 = vld [vmem:[%s5504_s10 + $0x250] sm:$0xff]  ;;  %v2715_v39 = vld [vmem:[%s5504_s10 + $0x268] sm:$0xff] }
 0x4d7   : > { %v2581_v43 = vmin.f32 %v2576_v40, 6.0  ;;  %v2583_v44 = vmin.f32 %v2578_v41, 6.0  ;;  %v2717_v40 = vld [vmem:[%s5504_s10 + $0x278] sm:$0xff]  ;;  %v3605_v41 = vpack.c.bf16 %v2712_v38, %v2710_v37  ;;  %v2748_v37 = vld [vmem:[%s5504_s10 + $0x370] sm:$0xff] }
 0x4d8   : > { %v2585_v45 = vmul.f32 %v2580_v42, %v2483_v20  ;;  %v2587_v46 = vmul.f32 %v2582_v33, %v2524_v21  ;;  %v2707_v20 = vld [vmem:[%s5504_s10 + $0x228] sm:$0xff]  ;;  %v2709_v21 = vld [vmem:[%s5504_s10 + $0x238] sm:$0xff]  ;;  %v3607_v42 = vpack.c.bf16 %v2717_v40, %v2715_v39  ;;  %v2714_v33 = vld [vmem:[%s5504_s10 + $0x260] sm:$0xff] }
 0x4d9   : > { %v2586_v47 = vmul.f32 %v2581_v43, %v2485_v24  ;;  %v2588_v48 = vmul.f32 %v2583_v44, %v2526_v25  ;;  %v3597_v25 = vpack.c.bf16 %v2704_v57, %v2702_v14  ;;  %v3599_v27 = vpack.c.bf16 %v2709_v21, %v2707_v20  ;;  %v2716_v43 = vld [vmem:[%s5504_s10 + $0x270] sm:$0xff]  ;;  %v2719_v44 = vld [vmem:[%s5504_s10 + $0x288] sm:$0xff]  ;;  %v2734_v57 = vld [vmem:[%s5504_s10 + $0x300] sm:$0xff] }
 0x4da   : > { %v2590_v49 = vmul.f32 0.16666667, %v2585_v45  ;;  %v2592_v50 = vmul.f32 0.16666667, %v2587_v46  ;;  %v2721_v45 = vld [vmem:[%s5504_s10 + $0x298] sm:$0xff]  ;;  %v3609_v46 = vpack.c.bf16 %v2716_v43, %v2714_v33  ;;  %v2738_v20 = vld [vmem:[%s5504_s10 + $0x320] sm:$0xff] }
 0x4db   : > { %v2591_v51 = vmul.f32 0.16666667, %v2586_v47  ;;  %v2593_v52 = vmul.f32 0.16666667, %v2588_v48  ;;  %v3611_v47 = vpack.c.bf16 %v2721_v45, %v2719_v44  ;;  %v2718_v48 = vld [vmem:[%s5504_s10 + $0x280] sm:$0xff]  ;;  %v2751_v39 = vld [vmem:[%s5504_s10 + $0x388] sm:$0xff] }
 0x4dc   : > { %v2596_v53 = vsel %vm2595_vm6, %v2590_v49, 0.0  ;;  %v5175_v54 = vsel %vm2595_vm6, %v2592_v50, 0.0  ;;  %v2720_v49 = vld [vmem:[%s5504_s10 + $0x290] sm:$0xff]  ;;  %v2723_v50 = vld [vmem:[%s5504_s10 + $0x2a8] sm:$0xff]  ;;  %v2753_v40 = vld [vmem:[%s5504_s10 + $0x398] sm:$0xff] }
 0x4dd   : > { %v2597_v55 = vrot.slane %v2596_v53, 4  ;;  %v2603_v56 = vsel %vm2595_vm6, %v2591_v51, 0.0  ;;  %v2617_v59 = vsel %vm2595_vm6, %v2593_v52, 0.0  ;;  %v2725_v51 = vld [vmem:[%s5504_s10 + $0x2b8] sm:$0xff]  ;;  %v3613_v52 = vpack.c.bf16 %v2720_v49, %v2718_v48  ;;  %v2750_v43 = vld [vmem:[%s5504_s10 + $0x380] sm:$0xff]  ;;  %v2752_v44 = vld [vmem:[%s5504_s10 + $0x390] sm:$0xff] }
 0x4de   : > { %v2604_v60 = vrot.slane %v2603_v56, 4  ;;  %v2618_v6 = vrot.slane %v2617_v59, 4  ;;  %v2611_v32 = vrot.slane %v5175_v54, 4  ;;  %v3643_v33 = vpack.c.bf16 %v2753_v40, %v2751_v39 }
 0x4df   : > { %v2598_v3 = vadd.f32 %v2597_v55, %v2596_v53  ;;  %v3615_v53 = vpack.c.bf16 %v2725_v51, %v2723_v50  ;;  %v2722_v55 = vld [vmem:[%s5504_s10 + $0x2a0] sm:$0xff]  ;;  %v2756_v51 = vld [vmem:[%s5504_s10 + $0x3b0] sm:$0xff] }
 0x4e0   : > { %v2605_v62 = vadd.f32 %v2604_v60, %v2603_v56  ;;  %v2619_v63 = vadd.f32 %v2618_v6, %v2617_v59  ;;  %v2724_v56 = vld [vmem:[%s5504_s10 + $0x2b0] sm:$0xff]  ;;  %v2727_v59 = vld [vmem:[%s5504_s10 + $0x2c8] sm:$0xff]  ;;  %v2729_v60 = vld [vmem:[%s5504_s10 + $0x2d8] sm:$0xff] }
 0x4e1   : > { %v2599_v0 = vrot.slane %v2598_v3, 2  ;;  %v3617_v6 = vpack.c.bf16 %v2724_v56, %v2722_v55  ;;  %v2754_v50 = vld [vmem:[%s5504_s10 + $0x3a0] sm:$0xff]  ;;  %v2761_v55 = vld [vmem:[%s5504_s10 + $0x3d8] sm:$0xff] }
 0x4e2   : > { %v2606_v1 = vrot.slane %v2605_v62, 2  ;;  %v2620_v2 = vrot.slane %v2619_v63, 2  ;;  %v3649_v56 = vpack.c.bf16 %v2756_v51, %v2754_v50 }
 0x4e3   : > { %v2600_v5 = vadd.f32 %v2599_v0, %v2598_v3  ;;  %v3619_v3 = vpack.c.bf16 %v2729_v60, %v2727_v59  ;;  %v2731_v0 = vld [vmem:[%s5504_s10 + $0x2e8] sm:$0xff] }
 0x4e4   : > { %v2607_v7 = vadd.f32 %v2606_v1, %v2605_v62  ;;  %v2621_v8 = vadd.f32 %v2620_v2, %v2619_v63  ;;  %v2726_v62 = vld [vmem:[%s5504_s10 + $0x2c0] sm:$0xff]  ;;  %v2728_v63 = vld [vmem:[%s5504_s10 + $0x2d0] sm:$0xff]  ;;  %v2733_v1 = vld [vmem:[%s5504_s10 + $0x2f8] sm:$0xff] }
 0x4e5   : > { %v2601_v9 = vrot.slane %v2600_v5, 1  ;;  %v3621_v2 = vpack.c.bf16 %v2728_v63, %v2726_v62  ;;  %v2763_v63 = vld [vmem:[%s5504_s10 + $0x3e8] sm:$0xff] }
 0x4e6   : > { %v2608_v10 = vrot.slane %v2607_v7, 1  ;;  %v2622_v11 = vrot.slane %v2621_v8, 1 }
 0x4e7   : > { %v5177_v12 = vpop.f32.mrb[32].mxu0  ;;  %v2602_v13 = vadd.f32 %v2601_v9, %v2600_v5  ;;  %v3623_v5 = vpack.c.bf16 %v2733_v1, %v2731_v0  ;;  %v2282_v9 = vrot.slane %v5139_v61, %v1547_v34  ;;  %v2739_v61 = vld [vmem:[%s5504_s10 + $0x328] sm:$0xff]  ;;  %v2765_v0 = vld [vmem:[%s5504_s10 + $0x3f8] sm:$0xff] }
 0x4e8   : > { %v3529_v16 = vpop.f32.mrb[33].mxu0  ;;  %v2609_v19 = vadd.f32 %v2608_v10, %v2607_v7  ;;  %v2623_v58 = vadd.f32 %v2622_v11, %v2621_v8  ;;  %v2730_v7 = vld [vmem:[%s5504_s10 + $0x2e0] sm:$0xff]  ;;  %v2732_v8 = vld [vmem:[%s5504_s10 + $0x2f0] sm:$0xff]  ;;  %v2735_v10 = vld [vmem:[%s5504_s10 + $0x308] sm:$0xff] }
 0x4e9   : > { %v2567_v22 = vpop.f32.mrb[34].mxu0  ;;  %v2633_v26 = vmul.f32 0.25, %v2602_v13  ;;  %v2737_v11 = vld [vmem:[%s5504_s10 + $0x318] sm:$0xff]  ;;  %v3625_v13 = vpack.c.bf16 %v2732_v8, %v2730_v7  ;;  %v2565_v34 = vadd.f32 %v5177_v12, %v2282_v9  ;;  %v2740_v12 = vld [vmem:[%s5504_s10 + $0x330] sm:$0xff]  ;;  %v2762_v7 = vld [vmem:[%s5504_s10 + $0x3e0] sm:$0xff] }
 0x4ea   : > { %v3530_v23 = vpop.f32.mrb[35].mxu0  ;;  %v2634_v24 = vmul.f32 0.25, %v2609_v19  ;;  %v2636_v30 = vmul.f32 0.25, %v2623_v58  ;;  %v3627_v14 = vpack.c.bf16 %v2737_v11, %v2735_v10  ;;  %v2741_v16 = vld [vmem:[%s5504_s10 + $0x338] sm:$0xff]  ;;  %v3629_v19 = vpack.c.bf16 %v2736_v4, %v2734_v57  ;;  %v2743_v22 = vld [vmem:[%s5504_s10 + $0x348] sm:$0xff]  ;;  %v2764_v8 = vld [vmem:[%s5504_s10 + $0x3f0] sm:$0xff] }
 0x4eb   : > { %v3631_v58 = vpack.c.bf16 %v2741_v16, %v2739_v61  ;;  %v2574_v21 = vadd.f32 3.0, %v2565_v34  ;;  %v2745_v23 = vld [vmem:[%s5504_s10 + $0x358] sm:$0xff]  ;;  %v2767_v10 = vld [vmem:[%s5504_s10 + $0x408] sm:$0xff]  ;;  %v2768_v61 = vld [vmem:[%s5504_s10 + $0x410] sm:$0xff] }
 0x4ec   : > { %2861 = vmatprep.mubr.f32.mxu1 %v2634_v24  ;;  %v3633_v24 = vpack.c.bf16 %v2740_v12, %v2738_v20  ;;  %v2769_v11 = vld [vmem:[%s5504_s10 + $0x418] sm:$0xff]  ;;  %v2771_v16 = vld [vmem:[%s5504_s10 + $0x428] sm:$0xff] }
 0x4ed   : > { %2862 = vmatmul.mubr.f32.vlgmr.msra.gmra.mrb[20].mxu1 %v2633_v26  ;;  %v2742_v26 = vld [vmem:[%s5504_s10 + $0x340] sm:$0xff]  ;;  %v2579_v28 = vmax.f32 %v2574_v21, 0.0  ;;  %v3659_v4 = vpack.c.bf16 %v2769_v11, %v2767_v10 }
 0x4ee   : > { %3598 = vmatpush1.bf16.msra.mxu1 %v3597_v25  ;;  %2932 = vmatprep.mubr.f32.mxu1 %v2636_v30  ;;  %v3635_v25 = vpack.c.bf16 %v2745_v23, %v2743_v22  ;;  %v2749_v30 = vld [vmem:[%s5504_s10 + $0x378] sm:$0xff]  ;;  %v2770_v22 = vld [vmem:[%s5504_s10 + $0x420] sm:$0xff]  ;;  %v2772_v23 = vld [vmem:[%s5504_s10 + $0x430] sm:$0xff] }
 0x4ef   : > { %3600 = vmatprep.subr.bf16.mxu1 %v3599_v27  ;;  %v2744_v27 = vld [vmem:[%s5504_s10 + $0x350] sm:$0xff]  ;;  %v2584_v38 = vmin.f32 %v2579_v28, 6.0 }
 0x4f0   : > { %v3637_v31 = vpack.c.bf16 %v2744_v27, %v2742_v26  ;;  %v3665_v26 = vpack.c.bf16 %v2772_v23, %v2770_v22 }
 0x4f1   : > { %v2589_v45 = vmul.f32 %v2584_v38, %v2565_v34  ;;  %v2766_v34 = vld [vmem:[%s5504_s10 + $0x400] sm:$0xff]  ;;  %v2780_v38 = vld [vmem:[%s5504_s10 + $0x470] sm:$0xff] }
 0x4f2   : > { %3602 = vmatpush1.bf16.msra.mxu1 %v3601_v35  ;;  %v3639_v35 = vpack.c.bf16 %v2749_v30, %v2747_v29  ;;  %v2774_v29 = vld [vmem:[%s5504_s10 + $0x440] sm:$0xff]  ;;  %v2776_v30 = vld [vmem:[%s5504_s10 + $0x450] sm:$0xff] }
 0x4f3   : > { %3604 = vmatprep.subr.bf16.mxu1 %v3603_v36  ;;  %v2746_v36 = vld [vmem:[%s5504_s10 + $0x360] sm:$0xff] }
 0x4f6   : > { %3606 = vmatpush1.bf16.msra.mxu1 %v3605_v41  ;;  %v3641_v41 = vpack.c.bf16 %v2748_v37, %v2746_v36  ;;  %v2778_v37 = vld [vmem:[%s5504_s10 + $0x460] sm:$0xff] }
 0x4f7   : > { %3608 = vmatprep.subr.bf16.mxu1 %v3607_v42  ;;  %v2612_v42 = vadd.f32 %v2611_v32, %v5175_v54  ;;  %v3645_v54 = vpack.c.bf16 %v2752_v44, %v2750_v43  ;;  %v2781_v32 = vld [vmem:[%s5504_s10 + $0x478] sm:$0xff]  ;;  %v3673_v39 = vpack.c.bf16 %v2780_v38, %v2778_v37  ;;  %v3042_v44 = vld [vmem:[%s5506_s12 + $0xf0] sm:$0xff] }
 0x4f9   : > { %v2613_v48 = vrot.slane %v2612_v42, 2 }
 0x4fa   : > { %3610 = vmatpush1.bf16.msra.mxu1 %v3609_v46  ;;  %v2755_v46 = vld [vmem:[%s5504_s10 + $0x3a8] sm:$0xff] }
 0x4fb   : > { %3612 = vmatprep.subr.bf16.mxu1 %v3611_v47  ;;  %v2757_v47 = vld [vmem:[%s5504_s10 + $0x3b8] sm:$0xff]  ;;  %v2614_v59 = vadd.f32 %v2613_v48, %v2612_v42  ;;  %v3024_v42 = vld [vmem:[%s5506_s12 + $0x60] sm:$0xff] }
 0x4fc   : > { %v3647_v49 = vpack.c.bf16 %v2757_v47, %v2755_v46  ;;  %v3026_v47 = vld [vmem:[%s5506_s12 + $0x70] sm:$0xff] }
 0x4fd   : > { %v2615_v9 = vrot.slane %v2614_v59, 1 }
 0x4fe   : > { %3614 = vmatpush1.bf16.msra.mxu1 %v3613_v52  ;;  %v2594_v52 = vmul.f32 0.16666667, %v2589_v45  ;;  %v3043_v45 = vld [vmem:[%s5506_s12 + $0xf8] sm:$0xff] }
 0x4ff   : > { %3616 = vmatprep.subr.bf16.mxu1 %v3615_v53  ;;  %v2759_v53 = vld [vmem:[%s5504_s10 + $0x3c8] sm:$0xff]  ;;  %v2616_v57 = vadd.f32 %v2615_v9, %v2614_v59  ;;  %v3703_v46 = vpack.c.bf16 %v3043_v45, %v3042_v44 }
 0x500   : > { %v3651_v60 = vpack.c.bf16 %v2761_v55, %v2759_v53  ;;  %v2625_v62 = vsel %vm2624_vm7, %v2594_v52, 0.0 }
 0x501   : > { %v2635_v12 = vmul.f32 0.25, %v2616_v57 }
 0x502   : > { %3618 = vmatpush1.bf16.msra.mxu1 %v3617_v6  ;;  %v2758_v6 = vld [vmem:[%s5504_s10 + $0x3c0] sm:$0xff] }
 0x503   : > { %3620 = vmatprep.subr.bf16.mxu1 %v3619_v3  ;;  %v2760_v3 = vld [vmem:[%s5504_s10 + $0x3d0] sm:$0xff] }
 0x504   : > { %v3653_v1 = vpack.c.bf16 %v2760_v3, %v2758_v6  ;;  %v3044_v3 = vld [vmem:[%s5507_s13] sm:$0x1] }
 0x506   : > { %3622 = vmatpush1.bf16.msra.mxu1 %v3621_v2  ;;  %v2626_v2 = vrot.slane %v2625_v62, 4 }
 0x507   : > { %3624 = vmatprep.subr.bf16.mxu1 %v3623_v5  ;;  %v3655_v5 = vpack.c.bf16 %v2765_v0, %v2763_v63 }
 0x50a   : > { %3626 = vmatpush1.bf16.msra.mxu1 %v3625_v13  ;;  %v3657_v13 = vpack.c.bf16 %v2764_v8, %v2762_v7 }
 0x50b   : > { %3628 = vmatprep.subr.bf16.mxu1 %v3627_v14  ;;  %v2627_v14 = vadd.f32 %v2626_v2, %v2625_v62 }
 0x50d   : > { %v2628_v20 = vrot.slane %v2627_v14, 2 }
 0x50e   : > { %3630 = vmatpush1.bf16.msra.mxu1 %v3629_v19  ;;  %v2773_v19 = vld [vmem:[%s5504_s10 + $0x438] sm:$0xff] }
 0x50f   : > { %3632 = vmatprep.subr.bf16.mxu1 %v3631_v58  ;;  %v3661_v58 = vpack.c.bf16 %v2768_v61, %v2766_v34  ;;  %v3663_v21 = vpack.c.bf16 %v2773_v19, %v2771_v16  ;;  %v2629_v27 = vadd.f32 %v2628_v20, %v2627_v14 }
 0x512   : > { %3634 = vmatpush1.bf16.msra.mxu1 %v3633_v24  ;;  %v2775_v24 = vld [vmem:[%s5504_s10 + $0x448] sm:$0xff] }
 0x513   : > { %3636 = vmatprep.subr.bf16.mxu1 %v3635_v25  ;;  %v2777_v25 = vld [vmem:[%s5504_s10 + $0x458] sm:$0xff] }
 0x514   : > { %v3667_v28 = vpack.c.bf16 %v2777_v25, %v2775_v24 }
 0x516   : > { %3638 = vmatpush1.bf16.msra.mxu1 %v3637_v31  ;;  %v2779_v31 = vld [vmem:[%s5504_s10 + $0x468] sm:$0xff] }
 0x517   : > { %3640 = vmatprep.subr.bf16.mxu1 %v3639_v35  ;;  %v2630_v35 = vrot.slane %v2629_v27, 1  ;;  %v3671_v36 = vpack.c.bf16 %v2781_v32, %v2779_v31 }
 0x519   : > { %v2631_v40 = vadd.f32 %v2630_v35, %v2629_v27 }
 0x51a   : > { %3642 = vmatpush1.bf16.msra.mxu1 %v3641_v41 }
 0x51b   : > { %3644 = vmatprep.subr.bf16.mxu1 %v3643_v33  ;;  %v2637_v41 = vmul.f32 0.25, %v2631_v40  ;;  %v3025_v33 = vld [vmem:[%s5506_s12 + $0x68] sm:$0xff] }
 0x51c   : > { %v3701_v43 = vpack.c.bf16 %v3025_v33, %v3024_v42 }
 0x51e   : > { %3646 = vmatpush1.bf16.msra.mxu1 %v3645_v54  ;;  %3702 = vmatpush3.bf16.msra.mxu0 %v3701_v43  ;;  %v3027_v54 = vld [vmem:[%s5506_s12 + $0x78] sm:$0xff] }
 0x51f   : > { %3648 = vmatprep.subr.bf16.mxu1 %v3647_v49  ;;  %v3705_v48 = vpack.c.bf16 %v3027_v54, %v3026_v47  ;;  %3704 = vmatprep.subr.bf16.mxu0 %v3703_v46  ;;  %v2782_v49 = vld [vmem:[%s5505_s11] sm:$0x3] }
 0x520   : > { %v2787_v50 = vrot.slane %v2782_v49, %v4515_v15  ;;  %v2791_v51 = vrot.slane %v2782_v49, %v4521_v18 }
 0x522   : > { %3650 = vmatpush1.bf16.msra.mxu1 %v3649_v56  ;;  %3706 = vmatpush3.bf16.msra.mxu0 %v3705_v48 }
 0x523   : > { %3652 = vmatprep.subr.bf16.mxu1 %v3651_v60 }
 0x526   : > { %3654 = vmatpush1.bf16.msra.mxu1 %v3653_v1 }
 0x527   : > { %3656 = vmatprep.subr.bf16.mxu1 %v3655_v5 }
 0x52a   : > { %3658 = vmatpush1.bf16.msra.mxu1 %v3657_v13 }
 0x52b   : > { %3660 = vmatprep.subr.bf16.mxu1 %v3659_v4 }
 0x52d   : > { %2933 = vmatmul.mubr.f32.vlgmr.msra.gmra.mrb[20].mxu1 %v2635_v12 }
 0x52e   : > { %3662 = vmatpush1.bf16.msra.mxu1 %v3661_v58  ;;  %3003 = vmatprep.mubr.f32.mxu1 %v4085_v17  ;;  %v3669_v17 = vpack.c.bf16 %v2776_v30, %v2774_v29 }
 0x52f   : > { %3664 = vmatprep.subr.bf16.mxu1 %v3663_v21 }
 0x532   : > { %3666 = vmatpush1.bf16.msra.mxu1 %v3665_v26 }
 0x533   : > { %3668 = vmatprep.subr.bf16.mxu1 %v3667_v28 }
 0x536   : > { %3670 = vmatpush1.bf16.msra.mxu1 %v3669_v17 }
 0x537   : > { %3672 = vmatprep.subr.bf16.mxu1 %v3671_v36 }
 0x53a   : > { %3674 = vmatpush1.bf16.msra.mxu1 %v3673_v39 }
 0x53d   : > { %3400 = vmatmul.mubr.msk.f32.vlgmr.msra.gmra.mrb[20].mxu1 %vm1108_vm3, %v2637_v41 }
 0x610   : > { %v3005_v52 = vpop.f32.mrb[20].mxu1 }
 0x611   : > { %v3711_v53 = vadd.f32 %v3005_v52, %v2787_v50  ;;  %v3007_v55 = vpop.f32.mrb[21].mxu1 }
 0x612   : > { %v3712_v56 = vadd.f32 %v3007_v55, %v2791_v51 }
 0x613   : > { %v3010_v60 = vmax.f32 %v3711_v53, 0.0 }
 0x614   : > { %v3011_v59 = vmax.f32 %v3712_v56, 0.0 }
 0x616   : > { %3109 = vmatprep.mubr.f32.mxu0 %v3011_v59 }
 0x617   : > { %3110 = vmatmul.mubr.f32.vlgmr.msra.gmra.mrb[36].mxu0 %v3010_v60 }
 0x6ea   : > { %v3494_v6 = vpop.f32.mrb[36].mxu0 }
 0x6eb   : > { %v3495_v62 = vpop.f32.mrb[37].mxu0 }
 0x6ec   : > { %v3496_v15 = vadd.f32 %v3495_v62, %v3494_v6 }
 0x6ee   : > { %v3112_v18 = vadd.f32 %v3496_v15, %v3044_v3 }
 0x6f0   : > { %3116 = vst.msk [vmem:[%s472_s0] sm:$0x1] %vm3115_vm8, %v3112_v18 }
 0x6f1   : > { %4032 = shalt.err (!%p4029_p3)
}
 0x6f2   : > { %s4033_s25 = scalar_lea.hbm %s5452_s22, 16  ;;  %s4037_s0 = scalar_lea.hbm %s5508_s14, 32 }
 0x6f3   : > { %p4034_p4 = scmp.ne.s32.totalorder %s5452_s22, %s4033_s25  ;;  %p4038_p9 = scmp.lt.u32.totalorder %s5452_s22, %s5508_s14 }
 0x6f4   : > { %p4039_p10 = scmp.lt.u32.totalorder %s4037_s0, %s4033_s25  ;;  %p4041_p12 = scmp.lt.u32.totalorder %s4033_s25, %s5452_s22 }
 0x6f5   : > { %p4035_p7 = pnand %p4034_p4, %p4202_p5 }
 0x6f6   : > { %p4040_p11 = por %p4039_p10, %p4038_p9 }
 0x6f7   : > { %p4036_p8 = pneg %p4035_p7 }
 0x6f8   : > { %p4042_p13 = por %p4041_p12, %p4040_p11 }
 0x6fa   : > { %p4043_p0 = pnand %p4042_p13, %p4036_p8 }
 0x6fc   : > { %4046 = shalt.err (!%p4043_p0)
}
 0x6fd   : > { %3722 = dma.vmem_to_hbm [thread:$0]  (%p4202_p5), %s5454_s27, 16, %s5452_s22, %s3118_s19  }
 0x6fe PF: > { %p3728_p1 = scmp.ge.s32.totalorder %s4081_s16, 2  ;;  %s3142_s17 = sand.u32 1, %s4069_s29  }
 0x6ff   : > { %s3143_s18 = scalar_lea.sflag [#allocation3], %s3142_s17 }
 0x700   : > { %p3725_p2 = pnand %p3728_p1, %p4206_p6 }
 0x702   : > { %4064 = dma.done.wait (!%p3725_p2), %s3143_s18, 16  }
 0x703   : > { %4066 = vsyncadd (!%p3725_p2), %s3143_s18, 4294967280  ;;  %s5522_s16 = sld [smem:[#allocation6_spill]]  ;;  %s5523_s20 = sld [smem:[#allocation5_spill]] }
 0x704   : > { %s5524_s15 = sld [smem:[#allocation7_spill]]  ;;  %s5525_s29 = smov %s4073_s30 }
 0x709   : > { %p24_p3 = scmp.ge.s32.totalorder %s5522_s16, 4   ;;  %s5526_s30 = smov %s5523_s20 }
 0x70b   :  { %26 = sbr.rel (!%p24_p3) target bundleno = 5 (0x5), region = 114 }
 0x712   :  { %3147 = vsyncpa [#allocation3], 1 }
 0x713   :  { %3149 = vsyncpa [#allocation3 + $0x1], 1 }

</bundles_post_ra>
